<compile_context>
chip_gen: v5e
topology: v5e:2x2
jax: 0.10.0
libtpu: 0.0.40
codegen_flags: <defaults>
</compile_context>

<pallas_src>
import numpy as np

import jax
import jax.numpy as jnp
from jax import lax
from jax.experimental import pallas as pl
from jax.experimental.pallas import tpu as pltpu

NDF = 8      # cfg.discriminatorDim (small synthetic value)
EFG = 8      # cfg.embeddingsDim    (small synthetic value)
BN_EPS = 1e-5
LEAK = 0.2
BT = 8       # images per grid step (== f32 sublane-tile height)


# ---------------------------------------------------------------------------
# Fused whole-network Pallas kernel (one program per BT-image tile)
# ---------------------------------------------------------------------------
def _dnet64_kernel(xe_ref, xo_ref, c_ref,
                   t1_ref, t2_ref, t3_ref, t4_ref, tj_ref,
                   aff_ref, heads_ref, hb_ref,
                   o_ref,
                   e2, o2, e3, o3, e4, o4, jbuf):
    # Activation row layout throughout: matmul row m = oh*BT + b (spatial row
    # major, image minor); lanes = [w*C + c].

    def conv_s2(e_src, o_src, t_ref, ho):
        # 4x4 / stride-2 / pad-1 conv: vertical tap ki reads image row
        # 2*oh - 1 + ki, i.e. tap0->odd[0:m], tap1->even[0:m],
        # tap2->odd[8:m+8], tap3->even[8:m+8]  (all contiguous, 8-aligned).
        m = ho * BT
        acc = None
        for src, ki, off in ((o_src, 0, 0), (e_src, 1, 0),
                             (o_src, 2, BT), (e_src, 3, BT)):
            lhs = src[off:off + m, :].astype(jnp.bfloat16)
            part = jnp.dot(lhs, t_ref[ki], preferred_element_type=jnp.float32)
            acc = part if acc is None else acc + part
        return acc

    def conv_joint(t_ref):
        # 3x3 / stride-1 / pad-1 conv on the 6-position joint slab.
        acc = None
        for ki in range(3):
            lhs = jbuf[ki * BT:(ki + 4) * BT, :].astype(jnp.bfloat16)
            part = jnp.dot(lhs, t_ref[ki], preferred_element_type=jnp.float32)
            acc = part if acc is None else acc + part
        return acc

    def affine_leaky(y, idx):
        a = aff_ref[idx]                        # (2, 256) f32: [scale; bias]
        y = y * a[0:1, :] + a[1:2, :]
        return jnp.maximum(y, LEAK * y)         # LeakyReLU(0.2)

    def scatter_even_odd(y, e_dst, o_dst, ho):
        # Output row oh -> next layer's even slab (oh even) / odd slab (oh odd)
        for oh in range(ho):
            blk = y[oh * BT:(oh + 1) * BT, :]
            if oh % 2 == 0:
                p = oh // 2
                e_dst[p * BT:(p + 1) * BT, :] = blk
            else:
                p = (oh + 1) // 2
                o_dst[p * BT:(p + 1) * BT, :] = blk

    # Zero only the vertical-padding row groups (everything else is fully
    # overwritten each step, so "parallel" grid semantics stay safe).
    z256 = jnp.zeros((BT, 256), jnp.float32)
    o2[0:BT, :] = z256
    e2[16 * BT:17 * BT, :] = z256
    o3[0:BT, :] = z256
    e3[8 * BT:9 * BT, :] = z256
    o4[0:BT, :] = z256
    e4[4 * BT:5 * BT, :] = z256
    zj = jnp.zeros((BT, 384), jnp.float32)
    jbuf[0:BT, :] = zj
    jbuf[5 * BT:6 * BT, :] = zj

    # ---- img_code_s16: 64x64x3 -> 4x4x(8*ndf) ------------------------------
    y = affine_leaky(conv_s2(xe_ref, xo_ref, t1_ref, 32), 0)     # (256, 256)
    scatter_even_odd(y, e2, o2, 32)
    y = affine_leaky(conv_s2(e2, o2, t2_ref, 16), 1)             # (128, 256)
    scatter_even_odd(y, e3, o3, 16)
    y = affine_leaky(conv_s2(e3, o3, t3_ref, 8), 2)              # (64, 256)
    scatter_even_odd(y, e4, o4, 8)
    x_code = affine_leaky(conv_s2(e4, o4, t4_ref, 4), 3)         # (32, 256)

    # ---- jointConv on cat(c_code, x_code) ----------------------------------
    jbuf[BT:5 * BT, 0:256] = x_code
    cv = c_ref[...]                                              # (8, 128): lanes 0:32 = tiled c
    for p in range(4):
        jbuf[(p + 1) * BT:(p + 2) * BT, 256:384] = cv
    h_c = affine_leaky(conv_joint(tj_ref), 4)                    # (32, 256)

    # ---- both sigmoid heads (4x4 stride-4 conv == full dot product) --------
    def head(code, w2d, b11):
        s = None
        for ki in range(4):
            p = code[ki * BT:(ki + 1) * BT, :] * w2d[ki:ki + 1, :]
            r = jnp.sum(p, axis=1, keepdims=True)                # (BT, 1)
            s = r if s is None else s + r
        return 1.0 / (1.0 + jnp.exp(-(s + b11)))                 # sigmoid

    cond = head(h_c, heads_ref[0], hb_ref[0:1, 0:1])             # (BT, 1)
    uncond = head(x_code, heads_ref[1], hb_ref[0:1, 1:2])        # (BT, 1)

    # One lane-dense (8,128) tile: row b = image, lane0 = cond, lane1 = uncond.
    lane = lax.broadcasted_iota(jnp.int32, (BT, 128), 1)
    o_ref[...] = jnp.where(lane == 0, cond, jnp.where(lane == 1, uncond, 0.0))


# ---------------------------------------------------------------------------
# Host-side parameter packing (block-Toeplitz weights, folded BN, head slabs)
# ---------------------------------------------------------------------------
def _row_toeplitz(w_oihw, w_in, w_out, stride, pad):
    """(Cout,Cin,k,k) conv weight -> (k, W_in*Cin, W_out*Cout) row-Toeplitz."""
    w = np.asarray(w_oihw, np.float32)
    cout, cin, k, _ = w.shape
    t = np.zeros((k, w_in * cin, w_out * cout), np.float32)
    for ki in range(k):
        for ow in range(w_out):
            for kj in range(k):
                col = stride * ow - pad + kj
                if 0 <= col < w_in:
                    t[ki, col * cin:(col + 1) * cin,
                      ow * cout:(ow + 1) * cout] = w[:, :, ki, kj].T
    return t


def pack_params(params):
    # Per-tap Toeplitz weights; K dims padded to multiples of 128 lanes.
    t1 = np.zeros((4, 256, 256), np.float32)
    t1[:, :192, :] = _row_toeplitz(params["w1"], 64, 32, 2, 1)
    t2 = _row_toeplitz(params["w2"], 32, 16, 2, 1)      # (4, 256, 256)
    t3 = _row_toeplitz(params["w3"], 16, 8, 2, 1)       # (4, 256, 256)
    t4 = _row_toeplitz(params["w4"], 8, 4, 2, 1)        # (4, 256, 256)

    # jointConv input row layout: [x_code (4*64 lanes)] ++ [c tiled (4*8)] ++ zeros.
    # PyTorch cat((c_code, x_code), 1): in-channels 0..7 = c, 8..71 = x_code.
    wj = np.asarray(params["wj"], np.float32)           # (64, 72, 3, 3)
    tj = np.zeros((3, 384, 256), np.float32)
    for ki in range(3):
        for ow in range(4):
            for kj in range(3):
                col = ow - 1 + kj
                if 0 <= col < 4:
                    tj[ki, col * 64:(col + 1) * 64, ow * 64:(ow + 1) * 64] = wj[:, 8:, ki, kj].T
                    tj[ki, 256 + col * 8:256 + (col + 1) * 8, ow * 64:(ow + 1) * 64] = wj[:, :8, ki, kj].T

    def bn_rows(gamma, beta, wo):
        scale = np.asarray(gamma, np.float32) / np.sqrt(1.0 + BN_EPS)  # eval-mode BN fold
        bias = np.asarray(beta, np.float32)
        return np.tile(scale, wo), np.tile(bias, wo)

    aff = np.zeros((5, 2, 256), np.float32)
    aff[0, 0] = 1.0                                       # layer 1: no BN, no bias
    aff[1, 0], aff[1, 1] = bn_rows(params["g2"], params["be2"], 16)
    aff[2, 0], aff[2, 1] = bn_rows(params["g3"], params["be3"], 8)
    aff[3, 0], aff[3, 1] = bn_rows(params["g4"], params["be4"], 4)
    aff[4, 0], aff[4, 1] = bn_rows(params["gj"], params["bej"], 4)

    def head_slab(w_head):                                # (1,64,4,4) -> (4, 256)
        w = np.asarray(w_head, np.float32)[0]             # (ci, ki, kj)
        return np.transpose(w, (1, 2, 0)).reshape(4, 256)  # [ki, kj*64+ci]

    heads = np.stack([head_slab(params["wl"]), head_slab(params["wu"])])
    hb = np.asarray([[float(np.asarray(params["bl"])[0]),
                      float(np.asarray(params["bu"])[0])]], np.float32)

    return {
        "t1": jnp.asarray(t1, jnp.bfloat16),
        "t2": jnp.asarray(t2, jnp.bfloat16),
        "t3": jnp.asarray(t3, jnp.bfloat16),
        "t4": jnp.asarray(t4, jnp.bfloat16),
        "tj": jnp.asarray(tj, jnp.bfloat16),
        "aff": jnp.asarray(aff),
        "heads": jnp.asarray(heads),
        "hb": jnp.asarray(hb),
    }


# ---------------------------------------------------------------------------
# Forward wrapper (single fused pallas_call)
# ---------------------------------------------------------------------------
def d_net64_forward(packed, x_nhwc, c_code):
    n = x_nhwc.shape[0]
    n_tiles = -(-n // BT)
    n_pad = n_tiles * BT

    # Row layout [w*3 + c], lanes padded 192 -> 256, batch padded to BT.
    x_rows = x_nhwc.reshape(n, 64, 192).astype(jnp.float32)
    x_rows = jnp.pad(x_rows, ((0, n_pad - n), (0, 0), (0, 64)))
    zrow = jnp.zeros((n_pad, 1, 256), jnp.float32)
    # Even/odd vertical split with the stride-2 zero-pad rows baked in:
    #   even position p holds image row 2p   (p=32 -> bottom pad)
    #   odd  position p holds image row 2p-1 (p=0  -> top pad)
    x_even = jnp.concatenate([x_rows[:, 0::2, :], zrow], axis=1)   # (n_pad, 33, 256)
    x_odd = jnp.concatenate([zrow, x_rows[:, 1::2, :]], axis=1)    # (n_pad, 33, 256)

    def to_slab(a):   # (n_pad, P, 256) -> (n_tiles*P*BT, 256); row = t*P*BT + p*BT + b
        p = a.shape[1]
        a = a.reshape(n_tiles, BT, p, 256)
        return jnp.transpose(a, (0, 2, 1, 3)).reshape(n_tiles * p * BT, 256)

    x_even = to_slab(x_even)
    x_odd = to_slab(x_odd)

    c_pad = jnp.pad(c_code.astype(jnp.float32), ((0, n_pad - n), (0, 0)))
    c_rows = jnp.pad(jnp.tile(c_pad, (1, 4)), ((0, 0), (0, 128 - 4 * EFG)))  # (n_pad, 128)

    inputs = (x_even, x_odd, c_rows, packed["t1"], packed["t2"], packed["t3"],
              packed["t4"], packed["tj"], packed["aff"], packed["heads"], packed["hb"])

    layer_dims = [(4, 256, 32), (4, 256, 16), (4, 256, 8), (4, 256, 4), (3, 384, 4)]
    flops = 2 * n_pad * 256 * sum(k * din * ho for k, din, ho in layer_dims)
    bytes_accessed = sum(int(np.prod(a.shape)) * a.dtype.itemsize for a in inputs)
    bytes_accessed += n_pad * 128 * 4

    out = pl.pallas_call(
        _dnet64_kernel,
        grid=(n_tiles,),
        out_shape=jax.ShapeDtypeStruct((n_pad, 128), jnp.float32),
        in_specs=[
            pl.BlockSpec((33 * BT, 256), lambda t: (t, 0)),     # even image rows (pre-padded)
            pl.BlockSpec((33 * BT, 256), lambda t: (t, 0)),     # odd image rows
            pl.BlockSpec((BT, 128), lambda t: (t, 0)),          # tiled c_code rows
            pl.BlockSpec((4, 256, 256), lambda t: (0, 0, 0)),   # T layer1 (grid-invariant)
            pl.BlockSpec((4, 256, 256), lambda t: (0, 0, 0)),   # T layer2
            pl.BlockSpec((4, 256, 256), lambda t: (0, 0, 0)),   # T layer3
            pl.BlockSpec((4, 256, 256), lambda t: (0, 0, 0)),   # T layer4
            pl.BlockSpec((3, 384, 256), lambda t: (0, 0, 0)),   # T jointConv
            pl.BlockSpec((5, 2, 256), lambda t: (0, 0, 0)),     # folded BN scale/bias rows
            pl.BlockSpec((2, 4, 256), lambda t: (0, 0, 0)),     # head weight slabs
            pl.BlockSpec((1, 2), lambda t: (0, 0)),             # head biases
        ],
        out_specs=pl.BlockSpec((BT, 128), lambda t: (t, 0)),
        scratch_shapes=[
            pltpu.VMEM((17 * BT, 256), jnp.float32),   # e2: even rows of 32x32x8
            pltpu.VMEM((17 * BT, 256), jnp.float32),   # o2: odd rows (+top pad)
            pltpu.VMEM((9 * BT, 256), jnp.float32),    # e3: 16x16x16
            pltpu.VMEM((9 * BT, 256), jnp.float32),    # o3
            pltpu.VMEM((5 * BT, 256), jnp.float32),    # e4: 8x8x32
            pltpu.VMEM((5 * BT, 256), jnp.float32),    # o4
            pltpu.VMEM((6 * BT, 384), jnp.float32),    # joint slab 4x4x72 (+lane pad)
        ],
        compiler_params=pltpu.CompilerParams(
            dimension_semantics=("parallel",),
            vmem_limit_bytes=32 * 1024 * 1024),
        cost_estimate=pl.CostEstimate(flops=flops, transcendentals=2 * n_pad,
                                      bytes_accessed=bytes_accessed),
    )(*inputs)

    return [out[:n, 0], out[:n, 1]]


# ---------------------------------------------------------------------------
# Parameter init (deterministic, synthetic) and pure-JAX reference
# ---------------------------------------------------------------------------
def init_params(key):
    ks = jax.random.split(key, 17)
    ndf, efg = NDF, EFG
    w = lambda k, s: 0.02 * jax.random.normal(k, s, jnp.float32)
    g = lambda k, c: 1.0 + 0.1 * jax.random.normal(k, (c,), jnp.float32)
    b = lambda k, c: 0.1 * jax.random.normal(k, (c,), jnp.float32)
    p = {}
    p["w1"] = w(ks[0], (ndf, 3, 4, 4))
    p["w2"] = w(ks[1], (ndf * 2, ndf, 4, 4)); p["g2"] = g(ks[2], ndf * 2); p["be2"] = b(ks[3], ndf * 2)
    p["w3"] = w(ks[4], (ndf * 4, ndf * 2, 4, 4)); p["g3"] = g(ks[5], ndf * 4); p["be3"] = b(ks[6], ndf * 4)
    p["w4"] = w(ks[7], (ndf * 8, ndf * 4, 4, 4)); p["g4"] = g(ks[8], ndf * 8); p["be4"] = b(ks[9], ndf * 8)
    p["wj"] = w(ks[10], (ndf * 8, ndf * 8 + efg, 3, 3)); p["gj"] = g(ks[11], ndf * 8); p["bej"] = b(ks[12], ndf * 8)
    p["wl"] = w(ks[13], (1, ndf * 8, 4, 4)); p["bl"] = b(ks[14], 1)
    p["wu"] = w(ks[15], (1, ndf * 8, 4, 4)); p["bu"] = b(ks[16], 1)
    return p


def reference_forward(params, x_nhwc, c_code):
    def conv(x, w_oihw, stride, pad):
        w_hwio = jnp.transpose(w_oihw, (2, 3, 1, 0))
        return lax.conv_general_dilated(
            x, w_hwio, (stride, stride), [(pad, pad), (pad, pad)],
            dimension_numbers=("NHWC", "HWIO", "NHWC"))

    leaky = lambda y: jnp.where(y >= 0, y, LEAK * y)

    def bn_leaky(y, gamma, beta):
        return leaky(y * (gamma / jnp.sqrt(1.0 + BN_EPS)) + beta)

    h = leaky(conv(x_nhwc, params["w1"], 2, 1))
    h = bn_leaky(conv(h, params["w2"], 2, 1), params["g2"], params["be2"])
    h = bn_leaky(conv(h, params["w3"], 2, 1), params["g3"], params["be3"])
    x_code = bn_leaky(conv(h, params["w4"], 2, 1), params["g4"], params["be4"])

    n = x_code.shape[0]
    c_rep = jnp.broadcast_to(c_code.reshape(n, 1, 1, EFG), (n, 4, 4, EFG))
    h_c = jnp.concatenate([c_rep, x_code], axis=-1)
    h_c = bn_leaky(conv(h_c, params["wj"], 1, 1), params["gj"], params["bej"])

    cond = jax.nn.sigmoid(conv(h_c, params["wl"], 4, 0) + params["bl"])
    uncond = jax.nn.sigmoid(conv(x_code, params["wu"], 4, 0) + params["bu"])
    return [cond.reshape(-1), uncond.reshape(-1)]


if __name__ == "__main__":
    key = jax.random.PRNGKey(0)
    kp, kx, kc = jax.random.split(key, 3)

    params = init_params(kp)
    packed = pack_params(params)

    # PyTorch input would be (2, 3, 64, 64) NCHW; we build it NHWC directly.
    x = jax.random.normal(kx, (2, 64, 64, 3), jnp.float32)
    c_code = jax.random.normal(kc, (2, EFG), jnp.float32)

    fwd = jax.jit(d_net64_forward)
    out_cond, out_uncond = fwd(packed, x, c_code)
    jax.block_until_ready(out_cond)
    jax.block_until_ready(out_uncond)

    assert out_cond.shape == (2,) and out_uncond.shape == (2,)
    assert bool(jnp.all(jnp.isfinite(out_cond))) and bool(jnp.all(jnp.isfinite(out_uncond)))

    # Self-check against a plain-JAX (XLA) reference with the same folded-BN params.
    ref_cond, ref_uncond = reference_forward(params, x, c_code)
    np.testing.assert_allclose(np.asarray(out_cond), np.asarray(ref_cond), atol=2e-2, rtol=2e-2)
    np.testing.assert_allclose(np.asarray(out_uncond), np.asarray(ref_uncond), atol=2e-2, rtol=2e-2)

    print("KERNEL_OK")
</pallas_src>

<mosaic_0001>
module attributes {stable_mosaic.version = 11 : i64} {
  func.func @_dnet64_kernel(%arg0: i32, %arg1: memref<264x256xf32, #tpu.memory_space<vmem>>, %arg2: memref<264x256xf32, #tpu.memory_space<vmem>>, %arg3: memref<8x128xf32, #tpu.memory_space<vmem>>, %arg4: memref<4x256x256xbf16, #tpu.memory_space<vmem>>, %arg5: memref<4x256x256xbf16, #tpu.memory_space<vmem>>, %arg6: memref<4x256x256xbf16, #tpu.memory_space<vmem>>, %arg7: memref<4x256x256xbf16, #tpu.memory_space<vmem>>, %arg8: memref<3x384x256xbf16, #tpu.memory_space<vmem>>, %arg9: memref<5x2x256xf32, #tpu.memory_space<vmem>>, %arg10: memref<2x4x256xf32, #tpu.memory_space<vmem>>, %arg11: memref<1x2xf32, #tpu.memory_space<vmem>>, %arg12: memref<8x128xf32, #tpu.memory_space<vmem>>, %arg13: memref<136x256xf32, #tpu.memory_space<vmem>>, %arg14: memref<136x256xf32, #tpu.memory_space<vmem>>, %arg15: memref<72x256xf32, #tpu.memory_space<vmem>>, %arg16: memref<72x256xf32, #tpu.memory_space<vmem>>, %arg17: memref<40x256xf32, #tpu.memory_space<vmem>>, %arg18: memref<40x256xf32, #tpu.memory_space<vmem>>, %arg19: memref<48x384xf32, #tpu.memory_space<vmem>>) attributes {dimension_semantics = [#tpu.dimension_semantics<parallel>], iteration_bounds = array<i64: 1>, scalar_prefetch = 0 : i64, scratch_operands = 7 : i64, tpu.core_type = #tpu.core_type<tc>, window_params = [{transform_indices = @transform_0, window_bounds = array<i64: 264, 256>}, {transform_indices = @transform_1, window_bounds = array<i64: 264, 256>}, {transform_indices = @transform_2, window_bounds = array<i64: 8, 128>}, {pipeline_mode = #tpu.pipeline_mode<synchronous>, transform_indices = @transform_3, window_bounds = array<i64: 4, 256, 256>}, {pipeline_mode = #tpu.pipeline_mode<synchronous>, transform_indices = @transform_4, window_bounds = array<i64: 4, 256, 256>}, {pipeline_mode = #tpu.pipeline_mode<synchronous>, transform_indices = @transform_5, window_bounds = array<i64: 4, 256, 256>}, {pipeline_mode = #tpu.pipeline_mode<synchronous>, transform_indices = @transform_6, window_bounds = array<i64: 4, 256, 256>}, {pipeline_mode = #tpu.pipeline_mode<synchronous>, transform_indices = @transform_7, window_bounds = array<i64: 3, 384, 256>}, {pipeline_mode = #tpu.pipeline_mode<synchronous>, transform_indices = @transform_8, window_bounds = array<i64: 5, 2, 256>}, {pipeline_mode = #tpu.pipeline_mode<synchronous>, transform_indices = @transform_9, window_bounds = array<i64: 2, 4, 256>}, {pipeline_mode = #tpu.pipeline_mode<synchronous>, transform_indices = @transform_10, window_bounds = array<i64: 1, 2>}, {transform_indices = @transform_11, window_bounds = array<i64: 8, 128>}]} {
    %cst = arith.constant 0.000000e+00 : f32
    %0 = vector.broadcast %cst : f32 to vector<8x256xf32>
    %c0 = arith.constant 0 : index
    %c0_0 = arith.constant 0 : index
    %1 = vector.load %arg14[%c0, %c0_0] : memref<136x256xf32, #tpu.memory_space<vmem>>, vector<8x256xf32>
    tpu.vector_store %arg14[%c0, %c0_0], %0 {strides = array<i32>} : memref<136x256xf32, #tpu.memory_space<vmem>>, vector<8x256xf32>,
    %c128 = arith.constant 128 : index
    %c0_1 = arith.constant 0 : index
    %2 = vector.load %arg13[%c128, %c0_1] : memref<136x256xf32, #tpu.memory_space<vmem>>, vector<8x256xf32>
    tpu.vector_store %arg13[%c128, %c0_1], %0 {strides = array<i32>} : memref<136x256xf32, #tpu.memory_space<vmem>>, vector<8x256xf32>,
    %c0_2 = arith.constant 0 : index
    %c0_3 = arith.constant 0 : index
    %3 = vector.load %arg16[%c0_2, %c0_3] : memref<72x256xf32, #tpu.memory_space<vmem>>, vector<8x256xf32>
    tpu.vector_store %arg16[%c0_2, %c0_3], %0 {strides = array<i32>} : memref<72x256xf32, #tpu.memory_space<vmem>>, vector<8x256xf32>,
    %c64 = arith.constant 64 : index
    %c0_4 = arith.constant 0 : index
    %4 = vector.load %arg15[%c64, %c0_4] : memref<72x256xf32, #tpu.memory_space<vmem>>, vector<8x256xf32>
    tpu.vector_store %arg15[%c64, %c0_4], %0 {strides = array<i32>} : memref<72x256xf32, #tpu.memory_space<vmem>>, vector<8x256xf32>,
    %c0_5 = arith.constant 0 : index
    %c0_6 = arith.constant 0 : index
    %5 = vector.load %arg18[%c0_5, %c0_6] : memref<40x256xf32, #tpu.memory_space<vmem>>, vector<8x256xf32>
    tpu.vector_store %arg18[%c0_5, %c0_6], %0 {strides = array<i32>} : memref<40x256xf32, #tpu.memory_space<vmem>>, vector<8x256xf32>,
    %c32 = arith.constant 32 : index
    %c0_7 = arith.constant 0 : index
    %6 = vector.load %arg17[%c32, %c0_7] : memref<40x256xf32, #tpu.memory_space<vmem>>, vector<8x256xf32>
    tpu.vector_store %arg17[%c32, %c0_7], %0 {strides = array<i32>} : memref<40x256xf32, #tpu.memory_space<vmem>>, vector<8x256xf32>,
    %cst_8 = arith.constant 0.000000e+00 : f32
    %7 = vector.broadcast %cst_8 : f32 to vector<8x384xf32>
    %c0_9 = arith.constant 0 : index
    %c0_10 = arith.constant 0 : index
    %8 = vector.load %arg19[%c0_9, %c0_10] : memref<48x384xf32, #tpu.memory_space<vmem>>, vector<8x384xf32>
    tpu.vector_store %arg19[%c0_9, %c0_10], %7 {strides = array<i32>} : memref<48x384xf32, #tpu.memory_space<vmem>>, vector<8x384xf32>,
    %c40 = arith.constant 40 : index
    %c0_11 = arith.constant 0 : index
    %9 = vector.load %arg19[%c40, %c0_11] : memref<48x384xf32, #tpu.memory_space<vmem>>, vector<8x384xf32>
    tpu.vector_store %arg19[%c40, %c0_11], %7 {strides = array<i32>} : memref<48x384xf32, #tpu.memory_space<vmem>>, vector<8x384xf32>,
    %c0_12 = arith.constant 0 : index
    %c0_13 = arith.constant 0 : index
    %10 = vector.load %arg2[%c0_12, %c0_13] : memref<264x256xf32, #tpu.memory_space<vmem>>, vector<256x256xf32>
    %11 = arith.truncf %10 : vector<256x256xf32> to vector<256x256xbf16>
    %c0_14 = arith.constant 0 : index
    %c0_15 = arith.constant 0 : index
    %c0_16 = arith.constant 0 : index
    %12 = vector.load %arg4[%c0_14, %c0_15, %c0_16] : memref<4x256x256xbf16, #tpu.memory_space<vmem>>, vector<1x256x256xbf16>
    %13 = vector.shape_cast %12 : vector<1x256x256xbf16> to vector<256x256xbf16>
    %cst_17 = arith.constant dense<0.000000e+00> : vector<256x256xf32>
    %14 = tpu.matmul %11, %13, %cst_17 {dimension_numbers = #tpu.dot_dimension_numbers<[1], [0], [0], [1], [0, 0, 1, 1], [], []>} : vector<256x256xbf16>, vector<256x256xbf16>, vector<256x256xf32> -> vector<256x256xf32>
    %c0_18 = arith.constant 0 : index
    %c0_19 = arith.constant 0 : index
    %15 = vector.load %arg1[%c0_18, %c0_19] : memref<264x256xf32, #tpu.memory_space<vmem>>, vector<256x256xf32>
    %16 = arith.truncf %15 : vector<256x256xf32> to vector<256x256xbf16>
    %c1 = arith.constant 1 : index
    %c0_20 = arith.constant 0 : index
    %c0_21 = arith.constant 0 : index
    %17 = vector.load %arg4[%c1, %c0_20, %c0_21] : memref<4x256x256xbf16, #tpu.memory_space<vmem>>, vector<1x256x256xbf16>
    %18 = vector.shape_cast %17 : vector<1x256x256xbf16> to vector<256x256xbf16>
    %cst_22 = arith.constant dense<0.000000e+00> : vector<256x256xf32>
    %19 = tpu.matmul %16, %18, %cst_22 {dimension_numbers = #tpu.dot_dimension_numbers<[1], [0], [0], [1], [0, 0, 1, 1], [], []>} : vector<256x256xbf16>, vector<256x256xbf16>, vector<256x256xf32> -> vector<256x256xf32>
    %20 = arith.addf %14, %19 : vector<256x256xf32>
    %c8 = arith.constant 8 : index
    %c0_23 = arith.constant 0 : index
    %21 = vector.load %arg2[%c8, %c0_23] : memref<264x256xf32, #tpu.memory_space<vmem>>, vector<256x256xf32>
    %22 = arith.truncf %21 : vector<256x256xf32> to vector<256x256xbf16>
    %c2 = arith.constant 2 : index
    %c0_24 = arith.constant 0 : index
    %c0_25 = arith.constant 0 : index
    %23 = vector.load %arg4[%c2, %c0_24, %c0_25] : memref<4x256x256xbf16, #tpu.memory_space<vmem>>, vector<1x256x256xbf16>
    %24 = vector.shape_cast %23 : vector<1x256x256xbf16> to vector<256x256xbf16>
    %cst_26 = arith.constant dense<0.000000e+00> : vector<256x256xf32>
    %25 = tpu.matmul %22, %24, %cst_26 {dimension_numbers = #tpu.dot_dimension_numbers<[1], [0], [0], [1], [0, 0, 1, 1], [], []>} : vector<256x256xbf16>, vector<256x256xbf16>, vector<256x256xf32> -> vector<256x256xf32>
    %26 = arith.addf %20, %25 : vector<256x256xf32>
    %c8_27 = arith.constant 8 : index
    %c0_28 = arith.constant 0 : index
    %27 = vector.load %arg1[%c8_27, %c0_28] : memref<264x256xf32, #tpu.memory_space<vmem>>, vector<256x256xf32>
    %28 = arith.truncf %27 : vector<256x256xf32> to vector<256x256xbf16>
    %c3 = arith.constant 3 : index
    %c0_29 = arith.constant 0 : index
    %c0_30 = arith.constant 0 : index
    %29 = vector.load %arg4[%c3, %c0_29, %c0_30] : memref<4x256x256xbf16, #tpu.memory_space<vmem>>, vector<1x256x256xbf16>
    %30 = vector.shape_cast %29 : vector<1x256x256xbf16> to vector<256x256xbf16>
    %cst_31 = arith.constant dense<0.000000e+00> : vector<256x256xf32>
    %31 = tpu.matmul %28, %30, %cst_31 {dimension_numbers = #tpu.dot_dimension_numbers<[1], [0], [0], [1], [0, 0, 1, 1], [], []>} : vector<256x256xbf16>, vector<256x256xbf16>, vector<256x256xf32> -> vector<256x256xf32>
    %32 = arith.addf %26, %31 : vector<256x256xf32>
    %c0_32 = arith.constant 0 : index
    %c0_33 = arith.constant 0 : index
    %c0_34 = arith.constant 0 : index
    %33 = vector.load %arg9[%c0_32, %c0_33, %c0_34] : memref<5x2x256xf32, #tpu.memory_space<vmem>>, vector<1x2x256xf32>
    %34 = vector.shape_cast %33 : vector<1x2x256xf32> to vector<2x256xf32>
    %35 = vector.extract_strided_slice %34 {offsets = [0, 0], sizes = [1, 256], strides = [1, 1]} : vector<2x256xf32> to vector<1x256xf32>
    %36 = vector.broadcast %35 : vector<1x256xf32> to vector<256x256xf32>
    %37 = arith.mulf %32, %36 : vector<256x256xf32>
    %38 = vector.extract_strided_slice %34 {offsets = [1, 0], sizes = [1, 256], strides = [1, 1]} : vector<2x256xf32> to vector<1x256xf32>
    %39 = vector.broadcast %38 : vector<1x256xf32> to vector<256x256xf32>
    %40 = arith.addf %37, %39 : vector<256x256xf32>
    %cst_35 = arith.constant 2.000000e-01 : f32
    %41 = vector.broadcast %cst_35 : f32 to vector<256x256xf32>
    %42 = arith.mulf %41, %40 : vector<256x256xf32>
    %43 = arith.maximumf %40, %42 : vector<256x256xf32>
    %44 = vector.extract_strided_slice %43 {offsets = [0, 0], sizes = [8, 256], strides = [1, 1]} : vector<256x256xf32> to vector<8x256xf32>
    %c0_36 = arith.constant 0 : index
    %c0_37 = arith.constant 0 : index
    %45 = vector.load %arg13[%c0_36, %c0_37] : memref<136x256xf32, #tpu.memory_space<vmem>>, vector<8x256xf32>
    tpu.vector_store %arg13[%c0_36, %c0_37], %44 {strides = array<i32>} : memref<136x256xf32, #tpu.memory_space<vmem>>, vector<8x256xf32>,
    %46 = vector.extract_strided_slice %43 {offsets = [8, 0], sizes = [8, 256], strides = [1, 1]} : vector<256x256xf32> to vector<8x256xf32>
    %c8_38 = arith.constant 8 : index
    %c0_39 = arith.constant 0 : index
    %47 = vector.load %arg14[%c8_38, %c0_39] : memref<136x256xf32, #tpu.memory_space<vmem>>, vector<8x256xf32>
    tpu.vector_store %arg14[%c8_38, %c0_39], %46 {strides = array<i32>} : memref<136x256xf32, #tpu.memory_space<vmem>>, vector<8x256xf32>,
    %48 = vector.extract_strided_slice %43 {offsets = [16, 0], sizes = [8, 256], strides = [1, 1]} : vector<256x256xf32> to vector<8x256xf32>
    %c8_40 = arith.constant 8 : index
    %c0_41 = arith.constant 0 : index
    %49 = vector.load %arg13[%c8_40, %c0_41] : memref<136x256xf32, #tpu.memory_space<vmem>>, vector<8x256xf32>
    tpu.vector_store %arg13[%c8_40, %c0_41], %48 {strides = array<i32>} : memref<136x256xf32, #tpu.memory_space<vmem>>, vector<8x256xf32>,
    %50 = vector.extract_strided_slice %43 {offsets = [24, 0], sizes = [8, 256], strides = [1, 1]} : vector<256x256xf32> to vector<8x256xf32>
    %c16 = arith.constant 16 : index
    %c0_42 = arith.constant 0 : index
    %51 = vector.load %arg14[%c16, %c0_42] : memref<136x256xf32, #tpu.memory_space<vmem>>, vector<8x256xf32>
    tpu.vector_store %arg14[%c16, %c0_42], %50 {strides = array<i32>} : memref<136x256xf32, #tpu.memory_space<vmem>>, vector<8x256xf32>,
    %52 = vector.extract_strided_slice %43 {offsets = [32, 0], sizes = [8, 256], strides = [1, 1]} : vector<256x256xf32> to vector<8x256xf32>
    %c16_43 = arith.constant 16 : index
    %c0_44 = arith.constant 0 : index
    %53 = vector.load %arg13[%c16_43, %c0_44] : memref<136x256xf32, #tpu.memory_space<vmem>>, vector<8x256xf32>
    tpu.vector_store %arg13[%c16_43, %c0_44], %52 {strides = array<i32>} : memref<136x256xf32, #tpu.memory_space<vmem>>, vector<8x256xf32>,
    %54 = vector.extract_strided_slice %43 {offsets = [40, 0], sizes = [8, 256], strides = [1, 1]} : vector<256x256xf32> to vector<8x256xf32>
    %c24 = arith.constant 24 : index
    %c0_45 = arith.constant 0 : index
    %55 = vector.load %arg14[%c24, %c0_45] : memref<136x256xf32, #tpu.memory_space<vmem>>, vector<8x256xf32>
    tpu.vector_store %arg14[%c24, %c0_45], %54 {strides = array<i32>} : memref<136x256xf32, #tpu.memory_space<vmem>>, vector<8x256xf32>,
    %56 = vector.extract_strided_slice %43 {offsets = [48, 0], sizes = [8, 256], strides = [1, 1]} : vector<256x256xf32> to vector<8x256xf32>
    %c24_46 = arith.constant 24 : index
    %c0_47 = arith.constant 0 : index
    %57 = vector.load %arg13[%c24_46, %c0_47] : memref<136x256xf32, #tpu.memory_space<vmem>>, vector<8x256xf32>
    tpu.vector_store %arg13[%c24_46, %c0_47], %56 {strides = array<i32>} : memref<136x256xf32, #tpu.memory_space<vmem>>, vector<8x256xf32>,
    %58 = vector.extract_strided_slice %43 {offsets = [56, 0], sizes = [8, 256], strides = [1, 1]} : vector<256x256xf32> to vector<8x256xf32>
    %c32_48 = arith.constant 32 : index
    %c0_49 = arith.constant 0 : index
    %59 = vector.load %arg14[%c32_48, %c0_49] : memref<136x256xf32, #tpu.memory_space<vmem>>, vector<8x256xf32>
    tpu.vector_store %arg14[%c32_48, %c0_49], %58 {strides = array<i32>} : memref<136x256xf32, #tpu.memory_space<vmem>>, vector<8x256xf32>,
    %60 = vector.extract_strided_slice %43 {offsets = [64, 0], sizes = [8, 256], strides = [1, 1]} : vector<256x256xf32> to vector<8x256xf32>
    %c32_50 = arith.constant 32 : index
    %c0_51 = arith.constant 0 : index
    %61 = vector.load %arg13[%c32_50, %c0_51] : memref<136x256xf32, #tpu.memory_space<vmem>>, vector<8x256xf32>
    tpu.vector_store %arg13[%c32_50, %c0_51], %60 {strides = array<i32>} : memref<136x256xf32, #tpu.memory_space<vmem>>, vector<8x256xf32>,
    %62 = vector.extract_strided_slice %43 {offsets = [72, 0], sizes = [8, 256], strides = [1, 1]} : vector<256x256xf32> to vector<8x256xf32>
    %c40_52 = arith.constant 40 : index
    %c0_53 = arith.constant 0 : index
    %63 = vector.load %arg14[%c40_52, %c0_53] : memref<136x256xf32, #tpu.memory_space<vmem>>, vector<8x256xf32>
    tpu.vector_store %arg14[%c40_52, %c0_53], %62 {strides = array<i32>} : memref<136x256xf32, #tpu.memory_space<vmem>>, vector<8x256xf32>,
    %64 = vector.extract_strided_slice %43 {offsets = [80, 0], sizes = [8, 256], strides = [1, 1]} : vector<256x256xf32> to vector<8x256xf32>
    %c40_54 = arith.constant 40 : index
    %c0_55 = arith.constant 0 : index
    %65 = vector.load %arg13[%c40_54, %c0_55] : memref<136x256xf32, #tpu.memory_space<vmem>>, vector<8x256xf32>
    tpu.vector_store %arg13[%c40_54, %c0_55], %64 {strides = array<i32>} : memref<136x256xf32, #tpu.memory_space<vmem>>, vector<8x256xf32>,
    %66 = vector.extract_strided_slice %43 {offsets = [88, 0], sizes = [8, 256], strides = [1, 1]} : vector<256x256xf32> to vector<8x256xf32>
    %c48 = arith.constant 48 : index
    %c0_56 = arith.constant 0 : index
    %67 = vector.load %arg14[%c48, %c0_56] : memref<136x256xf32, #tpu.memory_space<vmem>>, vector<8x256xf32>
    tpu.vector_store %arg14[%c48, %c0_56], %66 {strides = array<i32>} : memref<136x256xf32, #tpu.memory_space<vmem>>, vector<8x256xf32>,
    %68 = vector.extract_strided_slice %43 {offsets = [96, 0], sizes = [8, 256], strides = [1, 1]} : vector<256x256xf32> to vector<8x256xf32>
    %c48_57 = arith.constant 48 : index
    %c0_58 = arith.constant 0 : index
    %69 = vector.load %arg13[%c48_57, %c0_58] : memref<136x256xf32, #tpu.memory_space<vmem>>, vector<8x256xf32>
    tpu.vector_store %arg13[%c48_57, %c0_58], %68 {strides = array<i32>} : memref<136x256xf32, #tpu.memory_space<vmem>>, vector<8x256xf32>,
    %70 = vector.extract_strided_slice %43 {offsets = [104, 0], sizes = [8, 256], strides = [1, 1]} : vector<256x256xf32> to vector<8x256xf32>
    %c56 = arith.constant 56 : index
    %c0_59 = arith.constant 0 : index
    %71 = vector.load %arg14[%c56, %c0_59] : memref<136x256xf32, #tpu.memory_space<vmem>>, vector<8x256xf32>
    tpu.vector_store %arg14[%c56, %c0_59], %70 {strides = array<i32>} : memref<136x256xf32, #tpu.memory_space<vmem>>, vector<8x256xf32>,
    %72 = vector.extract_strided_slice %43 {offsets = [112, 0], sizes = [8, 256], strides = [1, 1]} : vector<256x256xf32> to vector<8x256xf32>
    %c56_60 = arith.constant 56 : index
    %c0_61 = arith.constant 0 : index
    %73 = vector.load %arg13[%c56_60, %c0_61] : memref<136x256xf32, #tpu.memory_space<vmem>>, vector<8x256xf32>
    tpu.vector_store %arg13[%c56_60, %c0_61], %72 {strides = array<i32>} : memref<136x256xf32, #tpu.memory_space<vmem>>, vector<8x256xf32>,
    %74 = vector.extract_strided_slice %43 {offsets = [120, 0], sizes = [8, 256], strides = [1, 1]} : vector<256x256xf32> to vector<8x256xf32>
    %c64_62 = arith.constant 64 : index
    %c0_63 = arith.constant 0 : index
    %75 = vector.load %arg14[%c64_62, %c0_63] : memref<136x256xf32, #tpu.memory_space<vmem>>, vector<8x256xf32>
    tpu.vector_store %arg14[%c64_62, %c0_63], %74 {strides = array<i32>} : memref<136x256xf32, #tpu.memory_space<vmem>>, vector<8x256xf32>,
    %76 = vector.extract_strided_slice %43 {offsets = [128, 0], sizes = [8, 256], strides = [1, 1]} : vector<256x256xf32> to vector<8x256xf32>
    %c64_64 = arith.constant 64 : index
    %c0_65 = arith.constant 0 : index
    %77 = vector.load %arg13[%c64_64, %c0_65] : memref<136x256xf32, #tpu.memory_space<vmem>>, vector<8x256xf32>
    tpu.vector_store %arg13[%c64_64, %c0_65], %76 {strides = array<i32>} : memref<136x256xf32, #tpu.memory_space<vmem>>, vector<8x256xf32>,
    %78 = vector.extract_strided_slice %43 {offsets = [136, 0], sizes = [8, 256], strides = [1, 1]} : vector<256x256xf32> to vector<8x256xf32>
    %c72 = arith.constant 72 : index
    %c0_66 = arith.constant 0 : index
    %79 = vector.load %arg14[%c72, %c0_66] : memref<136x256xf32, #tpu.memory_space<vmem>>, vector<8x256xf32>
    tpu.vector_store %arg14[%c72, %c0_66], %78 {strides = array<i32>} : memref<136x256xf32, #tpu.memory_space<vmem>>, vector<8x256xf32>,
    %80 = vector.extract_strided_slice %43 {offsets = [144, 0], sizes = [8, 256], strides = [1, 1]} : vector<256x256xf32> to vector<8x256xf32>
    %c72_67 = arith.constant 72 : index
    %c0_68 = arith.constant 0 : index
    %81 = vector.load %arg13[%c72_67, %c0_68] : memref<136x256xf32, #tpu.memory_space<vmem>>, vector<8x256xf32>
    tpu.vector_store %arg13[%c72_67, %c0_68], %80 {strides = array<i32>} : memref<136x256xf32, #tpu.memory_space<vmem>>, vector<8x256xf32>,
    %82 = vector.extract_strided_slice %43 {offsets = [152, 0], sizes = [8, 256], strides = [1, 1]} : vector<256x256xf32> to vector<8x256xf32>
    %c80 = arith.constant 80 : index
    %c0_69 = arith.constant 0 : index
    %83 = vector.load %arg14[%c80, %c0_69] : memref<136x256xf32, #tpu.memory_space<vmem>>, vector<8x256xf32>
    tpu.vector_store %arg14[%c80, %c0_69], %82 {strides = array<i32>} : memref<136x256xf32, #tpu.memory_space<vmem>>, vector<8x256xf32>,
    %84 = vector.extract_strided_slice %43 {offsets = [160, 0], sizes = [8, 256], strides = [1, 1]} : vector<256x256xf32> to vector<8x256xf32>
    %c80_70 = arith.constant 80 : index
    %c0_71 = arith.constant 0 : index
    %85 = vector.load %arg13[%c80_70, %c0_71] : memref<136x256xf32, #tpu.memory_space<vmem>>, vector<8x256xf32>
    tpu.vector_store %arg13[%c80_70, %c0_71], %84 {strides = array<i32>} : memref<136x256xf32, #tpu.memory_space<vmem>>, vector<8x256xf32>,
    %86 = vector.extract_strided_slice %43 {offsets = [168, 0], sizes = [8, 256], strides = [1, 1]} : vector<256x256xf32> to vector<8x256xf32>
    %c88 = arith.constant 88 : index
    %c0_72 = arith.constant 0 : index
    %87 = vector.load %arg14[%c88, %c0_72] : memref<136x256xf32, #tpu.memory_space<vmem>>, vector<8x256xf32>
    tpu.vector_store %arg14[%c88, %c0_72], %86 {strides = array<i32>} : memref<136x256xf32, #tpu.memory_space<vmem>>, vector<8x256xf32>,
    %88 = vector.extract_strided_slice %43 {offsets = [176, 0], sizes = [8, 256], strides = [1, 1]} : vector<256x256xf32> to vector<8x256xf32>
    %c88_73 = arith.constant 88 : index
    %c0_74 = arith.constant 0 : index
    %89 = vector.load %arg13[%c88_73, %c0_74] : memref<136x256xf32, #tpu.memory_space<vmem>>, vector<8x256xf32>
    tpu.vector_store %arg13[%c88_73, %c0_74], %88 {strides = array<i32>} : memref<136x256xf32, #tpu.memory_space<vmem>>, vector<8x256xf32>,
    %90 = vector.extract_strided_slice %43 {offsets = [184, 0], sizes = [8, 256], strides = [1, 1]} : vector<256x256xf32> to vector<8x256xf32>
    %c96 = arith.constant 96 : index
    %c0_75 = arith.constant 0 : index
    %91 = vector.load %arg14[%c96, %c0_75] : memref<136x256xf32, #tpu.memory_space<vmem>>, vector<8x256xf32>
    tpu.vector_store %arg14[%c96, %c0_75], %90 {strides = array<i32>} : memref<136x256xf32, #tpu.memory_space<vmem>>, vector<8x256xf32>,
    %92 = vector.extract_strided_slice %43 {offsets = [192, 0], sizes = [8, 256], strides = [1, 1]} : vector<256x256xf32> to vector<8x256xf32>
    %c96_76 = arith.constant 96 : index
    %c0_77 = arith.constant 0 : index
    %93 = vector.load %arg13[%c96_76, %c0_77] : memref<136x256xf32, #tpu.memory_space<vmem>>, vector<8x256xf32>
    tpu.vector_store %arg13[%c96_76, %c0_77], %92 {strides = array<i32>} : memref<136x256xf32, #tpu.memory_space<vmem>>, vector<8x256xf32>,
    %94 = vector.extract_strided_slice %43 {offsets = [200, 0], sizes = [8, 256], strides = [1, 1]} : vector<256x256xf32> to vector<8x256xf32>
    %c104 = arith.constant 104 : index
    %c0_78 = arith.constant 0 : index
    %95 = vector.load %arg14[%c104, %c0_78] : memref<136x256xf32, #tpu.memory_space<vmem>>, vector<8x256xf32>
    tpu.vector_store %arg14[%c104, %c0_78], %94 {strides = array<i32>} : memref<136x256xf32, #tpu.memory_space<vmem>>, vector<8x256xf32>,
    %96 = vector.extract_strided_slice %43 {offsets = [208, 0], sizes = [8, 256], strides = [1, 1]} : vector<256x256xf32> to vector<8x256xf32>
    %c104_79 = arith.constant 104 : index
    %c0_80 = arith.constant 0 : index
    %97 = vector.load %arg13[%c104_79, %c0_80] : memref<136x256xf32, #tpu.memory_space<vmem>>, vector<8x256xf32>
    tpu.vector_store %arg13[%c104_79, %c0_80], %96 {strides = array<i32>} : memref<136x256xf32, #tpu.memory_space<vmem>>, vector<8x256xf32>,
    %98 = vector.extract_strided_slice %43 {offsets = [216, 0], sizes = [8, 256], strides = [1, 1]} : vector<256x256xf32> to vector<8x256xf32>
    %c112 = arith.constant 112 : index
    %c0_81 = arith.constant 0 : index
    %99 = vector.load %arg14[%c112, %c0_81] : memref<136x256xf32, #tpu.memory_space<vmem>>, vector<8x256xf32>
    tpu.vector_store %arg14[%c112, %c0_81], %98 {strides = array<i32>} : memref<136x256xf32, #tpu.memory_space<vmem>>, vector<8x256xf32>,
    %100 = vector.extract_strided_slice %43 {offsets = [224, 0], sizes = [8, 256], strides = [1, 1]} : vector<256x256xf32> to vector<8x256xf32>
    %c112_82 = arith.constant 112 : index
    %c0_83 = arith.constant 0 : index
    %101 = vector.load %arg13[%c112_82, %c0_83] : memref<136x256xf32, #tpu.memory_space<vmem>>, vector<8x256xf32>
    tpu.vector_store %arg13[%c112_82, %c0_83], %100 {strides = array<i32>} : memref<136x256xf32, #tpu.memory_space<vmem>>, vector<8x256xf32>,
    %102 = vector.extract_strided_slice %43 {offsets = [232, 0], sizes = [8, 256], strides = [1, 1]} : vector<256x256xf32> to vector<8x256xf32>
    %c120 = arith.constant 120 : index
    %c0_84 = arith.constant 0 : index
    %103 = vector.load %arg14[%c120, %c0_84] : memref<136x256xf32, #tpu.memory_space<vmem>>, vector<8x256xf32>
    tpu.vector_store %arg14[%c120, %c0_84], %102 {strides = array<i32>} : memref<136x256xf32, #tpu.memory_space<vmem>>, vector<8x256xf32>,
    %104 = vector.extract_strided_slice %43 {offsets = [240, 0], sizes = [8, 256], strides = [1, 1]} : vector<256x256xf32> to vector<8x256xf32>
    %c120_85 = arith.constant 120 : index
    %c0_86 = arith.constant 0 : index
    %105 = vector.load %arg13[%c120_85, %c0_86] : memref<136x256xf32, #tpu.memory_space<vmem>>, vector<8x256xf32>
    tpu.vector_store %arg13[%c120_85, %c0_86], %104 {strides = array<i32>} : memref<136x256xf32, #tpu.memory_space<vmem>>, vector<8x256xf32>,
    %106 = vector.extract_strided_slice %43 {offsets = [248, 0], sizes = [8, 256], strides = [1, 1]} : vector<256x256xf32> to vector<8x256xf32>
    %c128_87 = arith.constant 128 : index
    %c0_88 = arith.constant 0 : index
    %107 = vector.load %arg14[%c128_87, %c0_88] : memref<136x256xf32, #tpu.memory_space<vmem>>, vector<8x256xf32>
    tpu.vector_store %arg14[%c128_87, %c0_88], %106 {strides = array<i32>} : memref<136x256xf32, #tpu.memory_space<vmem>>, vector<8x256xf32>,
    %c0_89 = arith.constant 0 : index
    %c0_90 = arith.constant 0 : index
    %108 = vector.load %arg14[%c0_89, %c0_90] : memref<136x256xf32, #tpu.memory_space<vmem>>, vector<128x256xf32>
    %109 = arith.truncf %108 : vector<128x256xf32> to vector<128x256xbf16>
    %c0_91 = arith.constant 0 : index
    %c0_92 = arith.constant 0 : index
    %c0_93 = arith.constant 0 : index
    %110 = vector.load %arg5[%c0_91, %c0_92, %c0_93] : memref<4x256x256xbf16, #tpu.memory_space<vmem>>, vector<1x256x256xbf16>
    %111 = vector.shape_cast %110 : vector<1x256x256xbf16> to vector<256x256xbf16>
    %cst_94 = arith.constant dense<0.000000e+00> : vector<128x256xf32>
    %112 = tpu.matmul %109, %111, %cst_94 {dimension_numbers = #tpu.dot_dimension_numbers<[1], [0], [0], [1], [0, 0, 1, 1], [], []>} : vector<128x256xbf16>, vector<256x256xbf16>, vector<128x256xf32> -> vector<128x256xf32>
    %c0_95 = arith.constant 0 : index
    %c0_96 = arith.constant 0 : index
    %113 = vector.load %arg13[%c0_95, %c0_96] : memref<136x256xf32, #tpu.memory_space<vmem>>, vector<128x256xf32>
    %114 = arith.truncf %113 : vector<128x256xf32> to vector<128x256xbf16>
    %c1_97 = arith.constant 1 : index
    %c0_98 = arith.constant 0 : index
    %c0_99 = arith.constant 0 : index
    %115 = vector.load %arg5[%c1_97, %c0_98, %c0_99] : memref<4x256x256xbf16, #tpu.memory_space<vmem>>, vector<1x256x256xbf16>
    %116 = vector.shape_cast %115 : vector<1x256x256xbf16> to vector<256x256xbf16>
    %cst_100 = arith.constant dense<0.000000e+00> : vector<128x256xf32>
    %117 = tpu.matmul %114, %116, %cst_100 {dimension_numbers = #tpu.dot_dimension_numbers<[1], [0], [0], [1], [0, 0, 1, 1], [], []>} : vector<128x256xbf16>, vector<256x256xbf16>, vector<128x256xf32> -> vector<128x256xf32>
    %118 = arith.addf %112, %117 : vector<128x256xf32>
    %c8_101 = arith.constant 8 : index
    %c0_102 = arith.constant 0 : index
    %119 = vector.load %arg14[%c8_101, %c0_102] : memref<136x256xf32, #tpu.memory_space<vmem>>, vector<128x256xf32>
    %120 = arith.truncf %119 : vector<128x256xf32> to vector<128x256xbf16>
    %c2_103 = arith.constant 2 : index
    %c0_104 = arith.constant 0 : index
    %c0_105 = arith.constant 0 : index
    %121 = vector.load %arg5[%c2_103, %c0_104, %c0_105] : memref<4x256x256xbf16, #tpu.memory_space<vmem>>, vector<1x256x256xbf16>
    %122 = vector.shape_cast %121 : vector<1x256x256xbf16> to vector<256x256xbf16>
    %cst_106 = arith.constant dense<0.000000e+00> : vector<128x256xf32>
    %123 = tpu.matmul %120, %122, %cst_106 {dimension_numbers = #tpu.dot_dimension_numbers<[1], [0], [0], [1], [0, 0, 1, 1], [], []>} : vector<128x256xbf16>, vector<256x256xbf16>, vector<128x256xf32> -> vector<128x256xf32>
    %124 = arith.addf %118, %123 : vector<128x256xf32>
    %c8_107 = arith.constant 8 : index
    %c0_108 = arith.constant 0 : index
    %125 = vector.load %arg13[%c8_107, %c0_108] : memref<136x256xf32, #tpu.memory_space<vmem>>, vector<128x256xf32>
    %126 = arith.truncf %125 : vector<128x256xf32> to vector<128x256xbf16>
    %c3_109 = arith.constant 3 : index
    %c0_110 = arith.constant 0 : index
    %c0_111 = arith.constant 0 : index
    %127 = vector.load %arg5[%c3_109, %c0_110, %c0_111] : memref<4x256x256xbf16, #tpu.memory_space<vmem>>, vector<1x256x256xbf16>
    %128 = vector.shape_cast %127 : vector<1x256x256xbf16> to vector<256x256xbf16>
    %cst_112 = arith.constant dense<0.000000e+00> : vector<128x256xf32>
    %129 = tpu.matmul %126, %128, %cst_112 {dimension_numbers = #tpu.dot_dimension_numbers<[1], [0], [0], [1], [0, 0, 1, 1], [], []>} : vector<128x256xbf16>, vector<256x256xbf16>, vector<128x256xf32> -> vector<128x256xf32>
    %130 = arith.addf %124, %129 : vector<128x256xf32>
    %c1_113 = arith.constant 1 : index
    %c0_114 = arith.constant 0 : index
    %c0_115 = arith.constant 0 : index
    %131 = vector.load %arg9[%c1_113, %c0_114, %c0_115] : memref<5x2x256xf32, #tpu.memory_space<vmem>>, vector<1x2x256xf32>
    %132 = vector.shape_cast %131 : vector<1x2x256xf32> to vector<2x256xf32>
    %133 = vector.extract_strided_slice %132 {offsets = [0, 0], sizes = [1, 256], strides = [1, 1]} : vector<2x256xf32> to vector<1x256xf32>
    %134 = vector.broadcast %133 : vector<1x256xf32> to vector<128x256xf32>
    %135 = arith.mulf %130, %134 : vector<128x256xf32>
    %136 = vector.extract_strided_slice %132 {offsets = [1, 0], sizes = [1, 256], strides = [1, 1]} : vector<2x256xf32> to vector<1x256xf32>
    %137 = vector.broadcast %136 : vector<1x256xf32> to vector<128x256xf32>
    %138 = arith.addf %135, %137 : vector<128x256xf32>
    %cst_116 = arith.constant 2.000000e-01 : f32
    %139 = vector.broadcast %cst_116 : f32 to vector<128x256xf32>
    %140 = arith.mulf %139, %138 : vector<128x256xf32>
    %141 = arith.maximumf %138, %140 : vector<128x256xf32>
    %142 = vector.extract_strided_slice %141 {offsets = [0, 0], sizes = [8, 256], strides = [1, 1]} : vector<128x256xf32> to vector<8x256xf32>
    %c0_117 = arith.constant 0 : index
    %c0_118 = arith.constant 0 : index
    %143 = vector.load %arg15[%c0_117, %c0_118] : memref<72x256xf32, #tpu.memory_space<vmem>>, vector<8x256xf32>
    tpu.vector_store %arg15[%c0_117, %c0_118], %142 {strides = array<i32>} : memref<72x256xf32, #tpu.memory_space<vmem>>, vector<8x256xf32>,
    %144 = vector.extract_strided_slice %141 {offsets = [8, 0], sizes = [8, 256], strides = [1, 1]} : vector<128x256xf32> to vector<8x256xf32>
    %c8_119 = arith.constant 8 : index
    %c0_120 = arith.constant 0 : index
    %145 = vector.load %arg16[%c8_119, %c0_120] : memref<72x256xf32, #tpu.memory_space<vmem>>, vector<8x256xf32>
    tpu.vector_store %arg16[%c8_119, %c0_120], %144 {strides = array<i32>} : memref<72x256xf32, #tpu.memory_space<vmem>>, vector<8x256xf32>,
    %146 = vector.extract_strided_slice %141 {offsets = [16, 0], sizes = [8, 256], strides = [1, 1]} : vector<128x256xf32> to vector<8x256xf32>
    %c8_121 = arith.constant 8 : index
    %c0_122 = arith.constant 0 : index
    %147 = vector.load %arg15[%c8_121, %c0_122] : memref<72x256xf32, #tpu.memory_space<vmem>>, vector<8x256xf32>
    tpu.vector_store %arg15[%c8_121, %c0_122], %146 {strides = array<i32>} : memref<72x256xf32, #tpu.memory_space<vmem>>, vector<8x256xf32>,
    %148 = vector.extract_strided_slice %141 {offsets = [24, 0], sizes = [8, 256], strides = [1, 1]} : vector<128x256xf32> to vector<8x256xf32>
    %c16_123 = arith.constant 16 : index
    %c0_124 = arith.constant 0 : index
    %149 = vector.load %arg16[%c16_123, %c0_124] : memref<72x256xf32, #tpu.memory_space<vmem>>, vector<8x256xf32>
    tpu.vector_store %arg16[%c16_123, %c0_124], %148 {strides = array<i32>} : memref<72x256xf32, #tpu.memory_space<vmem>>, vector<8x256xf32>,
    %150 = vector.extract_strided_slice %141 {offsets = [32, 0], sizes = [8, 256], strides = [1, 1]} : vector<128x256xf32> to vector<8x256xf32>
    %c16_125 = arith.constant 16 : index
    %c0_126 = arith.constant 0 : index
    %151 = vector.load %arg15[%c16_125, %c0_126] : memref<72x256xf32, #tpu.memory_space<vmem>>, vector<8x256xf32>
    tpu.vector_store %arg15[%c16_125, %c0_126], %150 {strides = array<i32>} : memref<72x256xf32, #tpu.memory_space<vmem>>, vector<8x256xf32>,
    %152 = vector.extract_strided_slice %141 {offsets = [40, 0], sizes = [8, 256], strides = [1, 1]} : vector<128x256xf32> to vector<8x256xf32>
    %c24_127 = arith.constant 24 : index
    %c0_128 = arith.constant 0 : index
    %153 = vector.load %arg16[%c24_127, %c0_128] : memref<72x256xf32, #tpu.memory_space<vmem>>, vector<8x256xf32>
    tpu.vector_store %arg16[%c24_127, %c0_128], %152 {strides = array<i32>} : memref<72x256xf32, #tpu.memory_space<vmem>>, vector<8x256xf32>,
    %154 = vector.extract_strided_slice %141 {offsets = [48, 0], sizes = [8, 256], strides = [1, 1]} : vector<128x256xf32> to vector<8x256xf32>
    %c24_129 = arith.constant 24 : index
    %c0_130 = arith.constant 0 : index
    %155 = vector.load %arg15[%c24_129, %c0_130] : memref<72x256xf32, #tpu.memory_space<vmem>>, vector<8x256xf32>
    tpu.vector_store %arg15[%c24_129, %c0_130], %154 {strides = array<i32>} : memref<72x256xf32, #tpu.memory_space<vmem>>, vector<8x256xf32>,
    %156 = vector.extract_strided_slice %141 {offsets = [56, 0], sizes = [8, 256], strides = [1, 1]} : vector<128x256xf32> to vector<8x256xf32>
    %c32_131 = arith.constant 32 : index
    %c0_132 = arith.constant 0 : index
    %157 = vector.load %arg16[%c32_131, %c0_132] : memref<72x256xf32, #tpu.memory_space<vmem>>, vector<8x256xf32>
    tpu.vector_store %arg16[%c32_131, %c0_132], %156 {strides = array<i32>} : memref<72x256xf32, #tpu.memory_space<vmem>>, vector<8x256xf32>,
    %158 = vector.extract_strided_slice %141 {offsets = [64, 0], sizes = [8, 256], strides = [1, 1]} : vector<128x256xf32> to vector<8x256xf32>
    %c32_133 = arith.constant 32 : index
    %c0_134 = arith.constant 0 : index
    %159 = vector.load %arg15[%c32_133, %c0_134] : memref<72x256xf32, #tpu.memory_space<vmem>>, vector<8x256xf32>
    tpu.vector_store %arg15[%c32_133, %c0_134], %158 {strides = array<i32>} : memref<72x256xf32, #tpu.memory_space<vmem>>, vector<8x256xf32>,
    %160 = vector.extract_strided_slice %141 {offsets = [72, 0], sizes = [8, 256], strides = [1, 1]} : vector<128x256xf32> to vector<8x256xf32>
    %c40_135 = arith.constant 40 : index
    %c0_136 = arith.constant 0 : index
    %161 = vector.load %arg16[%c40_135, %c0_136] : memref<72x256xf32, #tpu.memory_space<vmem>>, vector<8x256xf32>
    tpu.vector_store %arg16[%c40_135, %c0_136], %160 {strides = array<i32>} : memref<72x256xf32, #tpu.memory_space<vmem>>, vector<8x256xf32>,
    %162 = vector.extract_strided_slice %141 {offsets = [80, 0], sizes = [8, 256], strides = [1, 1]} : vector<128x256xf32> to vector<8x256xf32>
    %c40_137 = arith.constant 40 : index
    %c0_138 = arith.constant 0 : index
    %163 = vector.load %arg15[%c40_137, %c0_138] : memref<72x256xf32, #tpu.memory_space<vmem>>, vector<8x256xf32>
    tpu.vector_store %arg15[%c40_137, %c0_138], %162 {strides = array<i32>} : memref<72x256xf32, #tpu.memory_space<vmem>>, vector<8x256xf32>,
    %164 = vector.extract_strided_slice %141 {offsets = [88, 0], sizes = [8, 256], strides = [1, 1]} : vector<128x256xf32> to vector<8x256xf32>
    %c48_139 = arith.constant 48 : index
    %c0_140 = arith.constant 0 : index
    %165 = vector.load %arg16[%c48_139, %c0_140] : memref<72x256xf32, #tpu.memory_space<vmem>>, vector<8x256xf32>
    tpu.vector_store %arg16[%c48_139, %c0_140], %164 {strides = array<i32>} : memref<72x256xf32, #tpu.memory_space<vmem>>, vector<8x256xf32>,
    %166 = vector.extract_strided_slice %141 {offsets = [96, 0], sizes = [8, 256], strides = [1, 1]} : vector<128x256xf32> to vector<8x256xf32>
    %c48_141 = arith.constant 48 : index
    %c0_142 = arith.constant 0 : index
    %167 = vector.load %arg15[%c48_141, %c0_142] : memref<72x256xf32, #tpu.memory_space<vmem>>, vector<8x256xf32>
    tpu.vector_store %arg15[%c48_141, %c0_142], %166 {strides = array<i32>} : memref<72x256xf32, #tpu.memory_space<vmem>>, vector<8x256xf32>,
    %168 = vector.extract_strided_slice %141 {offsets = [104, 0], sizes = [8, 256], strides = [1, 1]} : vector<128x256xf32> to vector<8x256xf32>
    %c56_143 = arith.constant 56 : index
    %c0_144 = arith.constant 0 : index
    %169 = vector.load %arg16[%c56_143, %c0_144] : memref<72x256xf32, #tpu.memory_space<vmem>>, vector<8x256xf32>
    tpu.vector_store %arg16[%c56_143, %c0_144], %168 {strides = array<i32>} : memref<72x256xf32, #tpu.memory_space<vmem>>, vector<8x256xf32>,
    %170 = vector.extract_strided_slice %141 {offsets = [112, 0], sizes = [8, 256], strides = [1, 1]} : vector<128x256xf32> to vector<8x256xf32>
    %c56_145 = arith.constant 56 : index
    %c0_146 = arith.constant 0 : index
    %171 = vector.load %arg15[%c56_145, %c0_146] : memref<72x256xf32, #tpu.memory_space<vmem>>, vector<8x256xf32>
    tpu.vector_store %arg15[%c56_145, %c0_146], %170 {strides = array<i32>} : memref<72x256xf32, #tpu.memory_space<vmem>>, vector<8x256xf32>,
    %172 = vector.extract_strided_slice %141 {offsets = [120, 0], sizes = [8, 256], strides = [1, 1]} : vector<128x256xf32> to vector<8x256xf32>
    %c64_147 = arith.constant 64 : index
    %c0_148 = arith.constant 0 : index
    %173 = vector.load %arg16[%c64_147, %c0_148] : memref<72x256xf32, #tpu.memory_space<vmem>>, vector<8x256xf32>
    tpu.vector_store %arg16[%c64_147, %c0_148], %172 {strides = array<i32>} : memref<72x256xf32, #tpu.memory_space<vmem>>, vector<8x256xf32>,
    %c0_149 = arith.constant 0 : index
    %c0_150 = arith.constant 0 : index
    %174 = vector.load %arg16[%c0_149, %c0_150] : memref<72x256xf32, #tpu.memory_space<vmem>>, vector<64x256xf32>
    %175 = arith.truncf %174 : vector<64x256xf32> to vector<64x256xbf16>
    %c0_151 = arith.constant 0 : index
    %c0_152 = arith.constant 0 : index
    %c0_153 = arith.constant 0 : index
    %176 = vector.load %arg6[%c0_151, %c0_152, %c0_153] : memref<4x256x256xbf16, #tpu.memory_space<vmem>>, vector<1x256x256xbf16>
    %177 = vector.shape_cast %176 : vector<1x256x256xbf16> to vector<256x256xbf16>
    %cst_154 = arith.constant dense<0.000000e+00> : vector<64x256xf32>
    %178 = tpu.matmul %175, %177, %cst_154 {dimension_numbers = #tpu.dot_dimension_numbers<[1], [0], [0], [1], [0, 0, 1, 1], [], []>} : vector<64x256xbf16>, vector<256x256xbf16>, vector<64x256xf32> -> vector<64x256xf32>
    %c0_155 = arith.constant 0 : index
    %c0_156 = arith.constant 0 : index
    %179 = vector.load %arg15[%c0_155, %c0_156] : memref<72x256xf32, #tpu.memory_space<vmem>>, vector<64x256xf32>
    %180 = arith.truncf %179 : vector<64x256xf32> to vector<64x256xbf16>
    %c1_157 = arith.constant 1 : index
    %c0_158 = arith.constant 0 : index
    %c0_159 = arith.constant 0 : index
    %181 = vector.load %arg6[%c1_157, %c0_158, %c0_159] : memref<4x256x256xbf16, #tpu.memory_space<vmem>>, vector<1x256x256xbf16>
    %182 = vector.shape_cast %181 : vector<1x256x256xbf16> to vector<256x256xbf16>
    %cst_160 = arith.constant dense<0.000000e+00> : vector<64x256xf32>
    %183 = tpu.matmul %180, %182, %cst_160 {dimension_numbers = #tpu.dot_dimension_numbers<[1], [0], [0], [1], [0, 0, 1, 1], [], []>} : vector<64x256xbf16>, vector<256x256xbf16>, vector<64x256xf32> -> vector<64x256xf32>
    %184 = arith.addf %178, %183 : vector<64x256xf32>
    %c8_161 = arith.constant 8 : index
    %c0_162 = arith.constant 0 : index
    %185 = vector.load %arg16[%c8_161, %c0_162] : memref<72x256xf32, #tpu.memory_space<vmem>>, vector<64x256xf32>
    %186 = arith.truncf %185 : vector<64x256xf32> to vector<64x256xbf16>
    %c2_163 = arith.constant 2 : index
    %c0_164 = arith.constant 0 : index
    %c0_165 = arith.constant 0 : index
    %187 = vector.load %arg6[%c2_163, %c0_164, %c0_165] : memref<4x256x256xbf16, #tpu.memory_space<vmem>>, vector<1x256x256xbf16>
    %188 = vector.shape_cast %187 : vector<1x256x256xbf16> to vector<256x256xbf16>
    %cst_166 = arith.constant dense<0.000000e+00> : vector<64x256xf32>
    %189 = tpu.matmul %186, %188, %cst_166 {dimension_numbers = #tpu.dot_dimension_numbers<[1], [0], [0], [1], [0, 0, 1, 1], [], []>} : vector<64x256xbf16>, vector<256x256xbf16>, vector<64x256xf32> -> vector<64x256xf32>
    %190 = arith.addf %184, %189 : vector<64x256xf32>
    %c8_167 = arith.constant 8 : index
    %c0_168 = arith.constant 0 : index
    %191 = vector.load %arg15[%c8_167, %c0_168] : memref<72x256xf32, #tpu.memory_space<vmem>>, vector<64x256xf32>
    %192 = arith.truncf %191 : vector<64x256xf32> to vector<64x256xbf16>
    %c3_169 = arith.constant 3 : index
    %c0_170 = arith.constant 0 : index
    %c0_171 = arith.constant 0 : index
    %193 = vector.load %arg6[%c3_169, %c0_170, %c0_171] : memref<4x256x256xbf16, #tpu.memory_space<vmem>>, vector<1x256x256xbf16>
    %194 = vector.shape_cast %193 : vector<1x256x256xbf16> to vector<256x256xbf16>
    %cst_172 = arith.constant dense<0.000000e+00> : vector<64x256xf32>
    %195 = tpu.matmul %192, %194, %cst_172 {dimension_numbers = #tpu.dot_dimension_numbers<[1], [0], [0], [1], [0, 0, 1, 1], [], []>} : vector<64x256xbf16>, vector<256x256xbf16>, vector<64x256xf32> -> vector<64x256xf32>
    %196 = arith.addf %190, %195 : vector<64x256xf32>
    %c2_173 = arith.constant 2 : index
    %c0_174 = arith.constant 0 : index
    %c0_175 = arith.constant 0 : index
    %197 = vector.load %arg9[%c2_173, %c0_174, %c0_175] : memref<5x2x256xf32, #tpu.memory_space<vmem>>, vector<1x2x256xf32>
    %198 = vector.shape_cast %197 : vector<1x2x256xf32> to vector<2x256xf32>
    %199 = vector.extract_strided_slice %198 {offsets = [0, 0], sizes = [1, 256], strides = [1, 1]} : vector<2x256xf32> to vector<1x256xf32>
    %200 = vector.broadcast %199 : vector<1x256xf32> to vector<64x256xf32>
    %201 = arith.mulf %196, %200 : vector<64x256xf32>
    %202 = vector.extract_strided_slice %198 {offsets = [1, 0], sizes = [1, 256], strides = [1, 1]} : vector<2x256xf32> to vector<1x256xf32>
    %203 = vector.broadcast %202 : vector<1x256xf32> to vector<64x256xf32>
    %204 = arith.addf %201, %203 : vector<64x256xf32>
    %cst_176 = arith.constant 2.000000e-01 : f32
    %205 = vector.broadcast %cst_176 : f32 to vector<64x256xf32>
    %206 = arith.mulf %205, %204 : vector<64x256xf32>
    %207 = arith.maximumf %204, %206 : vector<64x256xf32>
    %208 = vector.extract_strided_slice %207 {offsets = [0, 0], sizes = [8, 256], strides = [1, 1]} : vector<64x256xf32> to vector<8x256xf32>
    %c0_177 = arith.constant 0 : index
    %c0_178 = arith.constant 0 : index
    %209 = vector.load %arg17[%c0_177, %c0_178] : memref<40x256xf32, #tpu.memory_space<vmem>>, vector<8x256xf32>
    tpu.vector_store %arg17[%c0_177, %c0_178], %208 {strides = array<i32>} : memref<40x256xf32, #tpu.memory_space<vmem>>, vector<8x256xf32>,
    %210 = vector.extract_strided_slice %207 {offsets = [8, 0], sizes = [8, 256], strides = [1, 1]} : vector<64x256xf32> to vector<8x256xf32>
    %c8_179 = arith.constant 8 : index
    %c0_180 = arith.constant 0 : index
    %211 = vector.load %arg18[%c8_179, %c0_180] : memref<40x256xf32, #tpu.memory_space<vmem>>, vector<8x256xf32>
    tpu.vector_store %arg18[%c8_179, %c0_180], %210 {strides = array<i32>} : memref<40x256xf32, #tpu.memory_space<vmem>>, vector<8x256xf32>,
    %212 = vector.extract_strided_slice %207 {offsets = [16, 0], sizes = [8, 256], strides = [1, 1]} : vector<64x256xf32> to vector<8x256xf32>
    %c8_181 = arith.constant 8 : index
    %c0_182 = arith.constant 0 : index
    %213 = vector.load %arg17[%c8_181, %c0_182] : memref<40x256xf32, #tpu.memory_space<vmem>>, vector<8x256xf32>
    tpu.vector_store %arg17[%c8_181, %c0_182], %212 {strides = array<i32>} : memref<40x256xf32, #tpu.memory_space<vmem>>, vector<8x256xf32>,
    %214 = vector.extract_strided_slice %207 {offsets = [24, 0], sizes = [8, 256], strides = [1, 1]} : vector<64x256xf32> to vector<8x256xf32>
    %c16_183 = arith.constant 16 : index
    %c0_184 = arith.constant 0 : index
    %215 = vector.load %arg18[%c16_183, %c0_184] : memref<40x256xf32, #tpu.memory_space<vmem>>, vector<8x256xf32>
    tpu.vector_store %arg18[%c16_183, %c0_184], %214 {strides = array<i32>} : memref<40x256xf32, #tpu.memory_space<vmem>>, vector<8x256xf32>,
    %216 = vector.extract_strided_slice %207 {offsets = [32, 0], sizes = [8, 256], strides = [1, 1]} : vector<64x256xf32> to vector<8x256xf32>
    %c16_185 = arith.constant 16 : index
    %c0_186 = arith.constant 0 : index
    %217 = vector.load %arg17[%c16_185, %c0_186] : memref<40x256xf32, #tpu.memory_space<vmem>>, vector<8x256xf32>
    tpu.vector_store %arg17[%c16_185, %c0_186], %216 {strides = array<i32>} : memref<40x256xf32, #tpu.memory_space<vmem>>, vector<8x256xf32>,
    %218 = vector.extract_strided_slice %207 {offsets = [40, 0], sizes = [8, 256], strides = [1, 1]} : vector<64x256xf32> to vector<8x256xf32>
    %c24_187 = arith.constant 24 : index
    %c0_188 = arith.constant 0 : index
    %219 = vector.load %arg18[%c24_187, %c0_188] : memref<40x256xf32, #tpu.memory_space<vmem>>, vector<8x256xf32>
    tpu.vector_store %arg18[%c24_187, %c0_188], %218 {strides = array<i32>} : memref<40x256xf32, #tpu.memory_space<vmem>>, vector<8x256xf32>,
    %220 = vector.extract_strided_slice %207 {offsets = [48, 0], sizes = [8, 256], strides = [1, 1]} : vector<64x256xf32> to vector<8x256xf32>
    %c24_189 = arith.constant 24 : index
    %c0_190 = arith.constant 0 : index
    %221 = vector.load %arg17[%c24_189, %c0_190] : memref<40x256xf32, #tpu.memory_space<vmem>>, vector<8x256xf32>
    tpu.vector_store %arg17[%c24_189, %c0_190], %220 {strides = array<i32>} : memref<40x256xf32, #tpu.memory_space<vmem>>, vector<8x256xf32>,
    %222 = vector.extract_strided_slice %207 {offsets = [56, 0], sizes = [8, 256], strides = [1, 1]} : vector<64x256xf32> to vector<8x256xf32>
    %c32_191 = arith.constant 32 : index
    %c0_192 = arith.constant 0 : index
    %223 = vector.load %arg18[%c32_191, %c0_192] : memref<40x256xf32, #tpu.memory_space<vmem>>, vector<8x256xf32>
    tpu.vector_store %arg18[%c32_191, %c0_192], %222 {strides = array<i32>} : memref<40x256xf32, #tpu.memory_space<vmem>>, vector<8x256xf32>,
    %c0_193 = arith.constant 0 : index
    %c0_194 = arith.constant 0 : index
    %224 = vector.load %arg18[%c0_193, %c0_194] : memref<40x256xf32, #tpu.memory_space<vmem>>, vector<32x256xf32>
    %225 = arith.truncf %224 : vector<32x256xf32> to vector<32x256xbf16>
    %c0_195 = arith.constant 0 : index
    %c0_196 = arith.constant 0 : index
    %c0_197 = arith.constant 0 : index
    %226 = vector.load %arg7[%c0_195, %c0_196, %c0_197] : memref<4x256x256xbf16, #tpu.memory_space<vmem>>, vector<1x256x256xbf16>
    %227 = vector.shape_cast %226 : vector<1x256x256xbf16> to vector<256x256xbf16>
    %cst_198 = arith.constant dense<0.000000e+00> : vector<32x256xf32>
    %228 = tpu.matmul %225, %227, %cst_198 {dimension_numbers = #tpu.dot_dimension_numbers<[1], [0], [0], [1], [0, 0, 1, 1], [], []>} : vector<32x256xbf16>, vector<256x256xbf16>, vector<32x256xf32> -> vector<32x256xf32>
    %c0_199 = arith.constant 0 : index
    %c0_200 = arith.constant 0 : index
    %229 = vector.load %arg17[%c0_199, %c0_200] : memref<40x256xf32, #tpu.memory_space<vmem>>, vector<32x256xf32>
    %230 = arith.truncf %229 : vector<32x256xf32> to vector<32x256xbf16>
    %c1_201 = arith.constant 1 : index
    %c0_202 = arith.constant 0 : index
    %c0_203 = arith.constant 0 : index
    %231 = vector.load %arg7[%c1_201, %c0_202, %c0_203] : memref<4x256x256xbf16, #tpu.memory_space<vmem>>, vector<1x256x256xbf16>
    %232 = vector.shape_cast %231 : vector<1x256x256xbf16> to vector<256x256xbf16>
    %cst_204 = arith.constant dense<0.000000e+00> : vector<32x256xf32>
    %233 = tpu.matmul %230, %232, %cst_204 {dimension_numbers = #tpu.dot_dimension_numbers<[1], [0], [0], [1], [0, 0, 1, 1], [], []>} : vector<32x256xbf16>, vector<256x256xbf16>, vector<32x256xf32> -> vector<32x256xf32>
    %234 = arith.addf %228, %233 : vector<32x256xf32>
    %c8_205 = arith.constant 8 : index
    %c0_206 = arith.constant 0 : index
    %235 = vector.load %arg18[%c8_205, %c0_206] : memref<40x256xf32, #tpu.memory_space<vmem>>, vector<32x256xf32>
    %236 = arith.truncf %235 : vector<32x256xf32> to vector<32x256xbf16>
    %c2_207 = arith.constant 2 : index
    %c0_208 = arith.constant 0 : index
    %c0_209 = arith.constant 0 : index
    %237 = vector.load %arg7[%c2_207, %c0_208, %c0_209] : memref<4x256x256xbf16, #tpu.memory_space<vmem>>, vector<1x256x256xbf16>
    %238 = vector.shape_cast %237 : vector<1x256x256xbf16> to vector<256x256xbf16>
    %cst_210 = arith.constant dense<0.000000e+00> : vector<32x256xf32>
    %239 = tpu.matmul %236, %238, %cst_210 {dimension_numbers = #tpu.dot_dimension_numbers<[1], [0], [0], [1], [0, 0, 1, 1], [], []>} : vector<32x256xbf16>, vector<256x256xbf16>, vector<32x256xf32> -> vector<32x256xf32>
    %240 = arith.addf %234, %239 : vector<32x256xf32>
    %c8_211 = arith.constant 8 : index
    %c0_212 = arith.constant 0 : index
    %241 = vector.load %arg17[%c8_211, %c0_212] : memref<40x256xf32, #tpu.memory_space<vmem>>, vector<32x256xf32>
    %242 = arith.truncf %241 : vector<32x256xf32> to vector<32x256xbf16>
    %c3_213 = arith.constant 3 : index
    %c0_214 = arith.constant 0 : index
    %c0_215 = arith.constant 0 : index
    %243 = vector.load %arg7[%c3_213, %c0_214, %c0_215] : memref<4x256x256xbf16, #tpu.memory_space<vmem>>, vector<1x256x256xbf16>
    %244 = vector.shape_cast %243 : vector<1x256x256xbf16> to vector<256x256xbf16>
    %cst_216 = arith.constant dense<0.000000e+00> : vector<32x256xf32>
    %245 = tpu.matmul %242, %244, %cst_216 {dimension_numbers = #tpu.dot_dimension_numbers<[1], [0], [0], [1], [0, 0, 1, 1], [], []>} : vector<32x256xbf16>, vector<256x256xbf16>, vector<32x256xf32> -> vector<32x256xf32>
    %246 = arith.addf %240, %245 : vector<32x256xf32>
    %c3_217 = arith.constant 3 : index
    %c0_218 = arith.constant 0 : index
    %c0_219 = arith.constant 0 : index
    %247 = vector.load %arg9[%c3_217, %c0_218, %c0_219] : memref<5x2x256xf32, #tpu.memory_space<vmem>>, vector<1x2x256xf32>
    %248 = vector.shape_cast %247 : vector<1x2x256xf32> to vector<2x256xf32>
    %249 = vector.extract_strided_slice %248 {offsets = [0, 0], sizes = [1, 256], strides = [1, 1]} : vector<2x256xf32> to vector<1x256xf32>
    %250 = vector.broadcast %249 : vector<1x256xf32> to vector<32x256xf32>
    %251 = arith.mulf %246, %250 : vector<32x256xf32>
    %252 = vector.extract_strided_slice %248 {offsets = [1, 0], sizes = [1, 256], strides = [1, 1]} : vector<2x256xf32> to vector<1x256xf32>
    %253 = vector.broadcast %252 : vector<1x256xf32> to vector<32x256xf32>
    %254 = arith.addf %251, %253 : vector<32x256xf32>
    %cst_220 = arith.constant 2.000000e-01 : f32
    %255 = vector.broadcast %cst_220 : f32 to vector<32x256xf32>
    %256 = arith.mulf %255, %254 : vector<32x256xf32>
    %257 = arith.maximumf %254, %256 : vector<32x256xf32>
    %c8_221 = arith.constant 8 : index
    %c0_222 = arith.constant 0 : index
    %258 = vector.load %arg19[%c8_221, %c0_222] : memref<48x384xf32, #tpu.memory_space<vmem>>, vector<32x256xf32>
    tpu.vector_store %arg19[%c8_221, %c0_222], %257 {strides = array<i32>} : memref<48x384xf32, #tpu.memory_space<vmem>>, vector<32x256xf32>,
    %c0_223 = arith.constant 0 : index
    %c0_224 = arith.constant 0 : index
    %259 = vector.load %arg3[%c0_223, %c0_224] : memref<8x128xf32, #tpu.memory_space<vmem>>, vector<8x128xf32>
    %c8_225 = arith.constant 8 : index
    %c256 = arith.constant 256 : index
    %260 = vector.load %arg19[%c8_225, %c256] : memref<48x384xf32, #tpu.memory_space<vmem>>, vector<8x128xf32>
    tpu.vector_store %arg19[%c8_225, %c256], %259 {strides = array<i32>} : memref<48x384xf32, #tpu.memory_space<vmem>>, vector<8x128xf32>,
    %c16_226 = arith.constant 16 : index
    %c256_227 = arith.constant 256 : index
    %261 = vector.load %arg19[%c16_226, %c256_227] : memref<48x384xf32, #tpu.memory_space<vmem>>, vector<8x128xf32>
    tpu.vector_store %arg19[%c16_226, %c256_227], %259 {strides = array<i32>} : memref<48x384xf32, #tpu.memory_space<vmem>>, vector<8x128xf32>,
    %c24_228 = arith.constant 24 : index
    %c256_229 = arith.constant 256 : index
    %262 = vector.load %arg19[%c24_228, %c256_229] : memref<48x384xf32, #tpu.memory_space<vmem>>, vector<8x128xf32>
    tpu.vector_store %arg19[%c24_228, %c256_229], %259 {strides = array<i32>} : memref<48x384xf32, #tpu.memory_space<vmem>>, vector<8x128xf32>,
    %c32_230 = arith.constant 32 : index
    %c256_231 = arith.constant 256 : index
    %263 = vector.load %arg19[%c32_230, %c256_231] : memref<48x384xf32, #tpu.memory_space<vmem>>, vector<8x128xf32>
    tpu.vector_store %arg19[%c32_230, %c256_231], %259 {strides = array<i32>} : memref<48x384xf32, #tpu.memory_space<vmem>>, vector<8x128xf32>,
    %c0_232 = arith.constant 0 : index
    %c0_233 = arith.constant 0 : index
    %264 = vector.load %arg19[%c0_232, %c0_233] : memref<48x384xf32, #tpu.memory_space<vmem>>, vector<32x384xf32>
    %265 = arith.truncf %264 : vector<32x384xf32> to vector<32x384xbf16>
    %c0_234 = arith.constant 0 : index
    %c0_235 = arith.constant 0 : index
    %c0_236 = arith.constant 0 : index
    %266 = vector.load %arg8[%c0_234, %c0_235, %c0_236] : memref<3x384x256xbf16, #tpu.memory_space<vmem>>, vector<1x384x256xbf16>
    %267 = vector.shape_cast %266 : vector<1x384x256xbf16> to vector<384x256xbf16>
    %cst_237 = arith.constant dense<0.000000e+00> : vector<32x256xf32>
    %268 = tpu.matmul %265, %267, %cst_237 {dimension_numbers = #tpu.dot_dimension_numbers<[1], [0], [0], [1], [0, 0, 1, 1], [], []>} : vector<32x384xbf16>, vector<384x256xbf16>, vector<32x256xf32> -> vector<32x256xf32>
    %c8_238 = arith.constant 8 : index
    %c0_239 = arith.constant 0 : index
    %269 = vector.load %arg19[%c8_238, %c0_239] : memref<48x384xf32, #tpu.memory_space<vmem>>, vector<32x384xf32>
    %270 = arith.truncf %269 : vector<32x384xf32> to vector<32x384xbf16>
    %c1_240 = arith.constant 1 : index
    %c0_241 = arith.constant 0 : index
    %c0_242 = arith.constant 0 : index
    %271 = vector.load %arg8[%c1_240, %c0_241, %c0_242] : memref<3x384x256xbf16, #tpu.memory_space<vmem>>, vector<1x384x256xbf16>
    %272 = vector.shape_cast %271 : vector<1x384x256xbf16> to vector<384x256xbf16>
    %cst_243 = arith.constant dense<0.000000e+00> : vector<32x256xf32>
    %273 = tpu.matmul %270, %272, %cst_243 {dimension_numbers = #tpu.dot_dimension_numbers<[1], [0], [0], [1], [0, 0, 1, 1], [], []>} : vector<32x384xbf16>, vector<384x256xbf16>, vector<32x256xf32> -> vector<32x256xf32>
    %274 = arith.addf %268, %273 : vector<32x256xf32>
    %c16_244 = arith.constant 16 : index
    %c0_245 = arith.constant 0 : index
    %275 = vector.load %arg19[%c16_244, %c0_245] : memref<48x384xf32, #tpu.memory_space<vmem>>, vector<32x384xf32>
    %276 = arith.truncf %275 : vector<32x384xf32> to vector<32x384xbf16>
    %c2_246 = arith.constant 2 : index
    %c0_247 = arith.constant 0 : index
    %c0_248 = arith.constant 0 : index
    %277 = vector.load %arg8[%c2_246, %c0_247, %c0_248] : memref<3x384x256xbf16, #tpu.memory_space<vmem>>, vector<1x384x256xbf16>
    %278 = vector.shape_cast %277 : vector<1x384x256xbf16> to vector<384x256xbf16>
    %cst_249 = arith.constant dense<0.000000e+00> : vector<32x256xf32>
    %279 = tpu.matmul %276, %278, %cst_249 {dimension_numbers = #tpu.dot_dimension_numbers<[1], [0], [0], [1], [0, 0, 1, 1], [], []>} : vector<32x384xbf16>, vector<384x256xbf16>, vector<32x256xf32> -> vector<32x256xf32>
    %280 = arith.addf %274, %279 : vector<32x256xf32>
    %c4 = arith.constant 4 : index
    %c0_250 = arith.constant 0 : index
    %c0_251 = arith.constant 0 : index
    %281 = vector.load %arg9[%c4, %c0_250, %c0_251] : memref<5x2x256xf32, #tpu.memory_space<vmem>>, vector<1x2x256xf32>
    %282 = vector.shape_cast %281 : vector<1x2x256xf32> to vector<2x256xf32>
    %283 = vector.extract_strided_slice %282 {offsets = [0, 0], sizes = [1, 256], strides = [1, 1]} : vector<2x256xf32> to vector<1x256xf32>
    %284 = vector.broadcast %283 : vector<1x256xf32> to vector<32x256xf32>
    %285 = arith.mulf %280, %284 : vector<32x256xf32>
    %286 = vector.extract_strided_slice %282 {offsets = [1, 0], sizes = [1, 256], strides = [1, 1]} : vector<2x256xf32> to vector<1x256xf32>
    %287 = vector.broadcast %286 : vector<1x256xf32> to vector<32x256xf32>
    %288 = arith.addf %285, %287 : vector<32x256xf32>
    %cst_252 = arith.constant 2.000000e-01 : f32
    %289 = vector.broadcast %cst_252 : f32 to vector<32x256xf32>
    %290 = arith.mulf %289, %288 : vector<32x256xf32>
    %291 = arith.maximumf %288, %290 : vector<32x256xf32>
    %c0_253 = arith.constant 0 : index
    %c0_254 = arith.constant 0 : index
    %c0_255 = arith.constant 0 : index
    %292 = vector.load %arg10[%c0_253, %c0_254, %c0_255] : memref<2x4x256xf32, #tpu.memory_space<vmem>>, vector<1x4x256xf32>
    %293 = vector.shape_cast %292 : vector<1x4x256xf32> to vector<4x256xf32>
    %c0_256 = arith.constant 0 : index
    %c0_257 = arith.constant 0 : index
    %294 = vector.load %arg11[%c0_256, %c0_257] : memref<1x2xf32, #tpu.memory_space<vmem>>, vector<1x1xf32>
    %295 = vector.extract_strided_slice %291 {offsets = [0, 0], sizes = [8, 256], strides = [1, 1]} : vector<32x256xf32> to vector<8x256xf32>
    %296 = vector.extract_strided_slice %293 {offsets = [0, 0], sizes = [1, 256], strides = [1, 1]} : vector<4x256xf32> to vector<1x256xf32>
    %297 = vector.broadcast %296 : vector<1x256xf32> to vector<8x256xf32>
    %298 = arith.mulf %295, %297 : vector<8x256xf32>
    %cst_258 = arith.constant dense<0.000000e+00> : vector<8xf32>
    %299 = vector.multi_reduction <add>, %298, %cst_258 [1] : vector<8x256xf32> to vector<8xf32>
    %300 = vector.shape_cast %299 : vector<8xf32> to vector<8x1xf32>
    %301 = vector.extract_strided_slice %291 {offsets = [8, 0], sizes = [8, 256], strides = [1, 1]} : vector<32x256xf32> to vector<8x256xf32>
    %302 = vector.extract_strided_slice %293 {offsets = [1, 0], sizes = [1, 256], strides = [1, 1]} : vector<4x256xf32> to vector<1x256xf32>
    %303 = vector.broadcast %302 : vector<1x256xf32> to vector<8x256xf32>
    %304 = arith.mulf %301, %303 : vector<8x256xf32>
    %cst_259 = arith.constant dense<0.000000e+00> : vector<8xf32>
    %305 = vector.multi_reduction <add>, %304, %cst_259 [1] : vector<8x256xf32> to vector<8xf32>
    %306 = vector.shape_cast %305 : vector<8xf32> to vector<8x1xf32>
    %307 = arith.addf %300, %306 : vector<8x1xf32>
    %308 = vector.extract_strided_slice %291 {offsets = [16, 0], sizes = [8, 256], strides = [1, 1]} : vector<32x256xf32> to vector<8x256xf32>
    %309 = vector.extract_strided_slice %293 {offsets = [2, 0], sizes = [1, 256], strides = [1, 1]} : vector<4x256xf32> to vector<1x256xf32>
    %310 = vector.broadcast %309 : vector<1x256xf32> to vector<8x256xf32>
    %311 = arith.mulf %308, %310 : vector<8x256xf32>
    %cst_260 = arith.constant dense<0.000000e+00> : vector<8xf32>
    %312 = vector.multi_reduction <add>, %311, %cst_260 [1] : vector<8x256xf32> to vector<8xf32>
    %313 = vector.shape_cast %312 : vector<8xf32> to vector<8x1xf32>
    %314 = arith.addf %307, %313 : vector<8x1xf32>
    %315 = vector.extract_strided_slice %291 {offsets = [24, 0], sizes = [8, 256], strides = [1, 1]} : vector<32x256xf32> to vector<8x256xf32>
    %316 = vector.extract_strided_slice %293 {offsets = [3, 0], sizes = [1, 256], strides = [1, 1]} : vector<4x256xf32> to vector<1x256xf32>
    %317 = vector.broadcast %316 : vector<1x256xf32> to vector<8x256xf32>
    %318 = arith.mulf %315, %317 : vector<8x256xf32>
    %cst_261 = arith.constant dense<0.000000e+00> : vector<8xf32>
    %319 = vector.multi_reduction <add>, %318, %cst_261 [1] : vector<8x256xf32> to vector<8xf32>
    %320 = vector.shape_cast %319 : vector<8xf32> to vector<8x1xf32>
    %321 = arith.addf %314, %320 : vector<8x1xf32>
    %322 = vector.broadcast %294 : vector<1x1xf32> to vector<8x1xf32>
    %323 = arith.addf %321, %322 : vector<8x1xf32>
    %cst_262 = arith.constant 0.000000e+00 : f32
    %324 = vector.broadcast %cst_262 : f32 to vector<8x1xf32>
    %325 = arith.subf %324, %323 : vector<8x1xf32>
    %326 = math.exp %325 : vector<8x1xf32>
    %cst_263 = arith.constant 1.000000e+00 : f32
    %327 = vector.broadcast %cst_263 : f32 to vector<8x1xf32>
    %328 = arith.addf %327, %326 : vector<8x1xf32>
    %cst_264 = arith.constant 1.000000e+00 : f32
    %329 = vector.broadcast %cst_264 : f32 to vector<8x1xf32>
    %330 = arith.divf %329, %328 : vector<8x1xf32>
    %c1_265 = arith.constant 1 : index
    %c0_266 = arith.constant 0 : index
    %c0_267 = arith.constant 0 : index
    %331 = vector.load %arg10[%c1_265, %c0_266, %c0_267] : memref<2x4x256xf32, #tpu.memory_space<vmem>>, vector<1x4x256xf32>
    %332 = vector.shape_cast %331 : vector<1x4x256xf32> to vector<4x256xf32>
    %c0_268 = arith.constant 0 : index
    %c1_269 = arith.constant 1 : index
    %333 = vector.load %arg11[%c0_268, %c1_269] : memref<1x2xf32, #tpu.memory_space<vmem>>, vector<1x1xf32>
    %334 = vector.extract_strided_slice %257 {offsets = [0, 0], sizes = [8, 256], strides = [1, 1]} : vector<32x256xf32> to vector<8x256xf32>
    %335 = vector.extract_strided_slice %332 {offsets = [0, 0], sizes = [1, 256], strides = [1, 1]} : vector<4x256xf32> to vector<1x256xf32>
    %336 = vector.broadcast %335 : vector<1x256xf32> to vector<8x256xf32>
    %337 = arith.mulf %334, %336 : vector<8x256xf32>
    %cst_270 = arith.constant dense<0.000000e+00> : vector<8xf32>
    %338 = vector.multi_reduction <add>, %337, %cst_270 [1] : vector<8x256xf32> to vector<8xf32>
    %339 = vector.shape_cast %338 : vector<8xf32> to vector<8x1xf32>
    %340 = vector.extract_strided_slice %257 {offsets = [8, 0], sizes = [8, 256], strides = [1, 1]} : vector<32x256xf32> to vector<8x256xf32>
    %341 = vector.extract_strided_slice %332 {offsets = [1, 0], sizes = [1, 256], strides = [1, 1]} : vector<4x256xf32> to vector<1x256xf32>
    %342 = vector.broadcast %341 : vector<1x256xf32> to vector<8x256xf32>
    %343 = arith.mulf %340, %342 : vector<8x256xf32>
    %cst_271 = arith.constant dense<0.000000e+00> : vector<8xf32>
    %344 = vector.multi_reduction <add>, %343, %cst_271 [1] : vector<8x256xf32> to vector<8xf32>
    %345 = vector.shape_cast %344 : vector<8xf32> to vector<8x1xf32>
    %346 = arith.addf %339, %345 : vector<8x1xf32>
    %347 = vector.extract_strided_slice %257 {offsets = [16, 0], sizes = [8, 256], strides = [1, 1]} : vector<32x256xf32> to vector<8x256xf32>
    %348 = vector.extract_strided_slice %332 {offsets = [2, 0], sizes = [1, 256], strides = [1, 1]} : vector<4x256xf32> to vector<1x256xf32>
    %349 = vector.broadcast %348 : vector<1x256xf32> to vector<8x256xf32>
    %350 = arith.mulf %347, %349 : vector<8x256xf32>
    %cst_272 = arith.constant dense<0.000000e+00> : vector<8xf32>
    %351 = vector.multi_reduction <add>, %350, %cst_272 [1] : vector<8x256xf32> to vector<8xf32>
    %352 = vector.shape_cast %351 : vector<8xf32> to vector<8x1xf32>
    %353 = arith.addf %346, %352 : vector<8x1xf32>
    %354 = vector.extract_strided_slice %257 {offsets = [24, 0], sizes = [8, 256], strides = [1, 1]} : vector<32x256xf32> to vector<8x256xf32>
    %355 = vector.extract_strided_slice %332 {offsets = [3, 0], sizes = [1, 256], strides = [1, 1]} : vector<4x256xf32> to vector<1x256xf32>
    %356 = vector.broadcast %355 : vector<1x256xf32> to vector<8x256xf32>
    %357 = arith.mulf %354, %356 : vector<8x256xf32>
    %cst_273 = arith.constant dense<0.000000e+00> : vector<8xf32>
    %358 = vector.multi_reduction <add>, %357, %cst_273 [1] : vector<8x256xf32> to vector<8xf32>
    %359 = vector.shape_cast %358 : vector<8xf32> to vector<8x1xf32>
    %360 = arith.addf %353, %359 : vector<8x1xf32>
    %361 = vector.broadcast %333 : vector<1x1xf32> to vector<8x1xf32>
    %362 = arith.addf %360, %361 : vector<8x1xf32>
    %cst_274 = arith.constant 0.000000e+00 : f32
    %363 = vector.broadcast %cst_274 : f32 to vector<8x1xf32>
    %364 = arith.subf %363, %362 : vector<8x1xf32>
    %365 = math.exp %364 : vector<8x1xf32>
    %cst_275 = arith.constant 1.000000e+00 : f32
    %366 = vector.broadcast %cst_275 : f32 to vector<8x1xf32>
    %367 = arith.addf %366, %365 : vector<8x1xf32>
    %cst_276 = arith.constant 1.000000e+00 : f32
    %368 = vector.broadcast %cst_276 : f32 to vector<8x1xf32>
    %369 = arith.divf %368, %367 : vector<8x1xf32>
    %370 = tpu.iota {dimensions = array<i32: 1>} : vector<8x128xi32>
    %c0_i32 = arith.constant 0 : i32
    %371 = vector.broadcast %c0_i32 : i32 to vector<8x128xi32>
    %372 = arith.cmpi eq, %370, %371 : vector<8x128xi32>
    %c1_i32 = arith.constant 1 : i32
    %373 = vector.broadcast %c1_i32 : i32 to vector<8x128xi32>
    %374 = arith.cmpi eq, %370, %373 : vector<8x128xi32>
    %cst_277 = arith.constant 0.000000e+00 : f32
    %375 = vector.shape_cast %369 : vector<8x1xf32> to vector<8x1xf32>
    %376 = vector.broadcast %375 : vector<8x1xf32> to vector<8x128xf32>
    %377 = vector.broadcast %cst_277 : f32 to vector<8x128xf32>
    %378 = arith.select %374, %376, %377 : vector<8x128xi1>, vector<8x128xf32>
    %379 = vector.shape_cast %330 : vector<8x1xf32> to vector<8x1xf32>
    %380 = vector.broadcast %379 : vector<8x1xf32> to vector<8x128xf32>
    %381 = arith.select %372, %380, %378 : vector<8x128xi1>, vector<8x128xf32>
    %c0_278 = arith.constant 0 : index
    %c0_279 = arith.constant 0 : index
    %382 = vector.load %arg12[%c0_278, %c0_279] : memref<8x128xf32, #tpu.memory_space<vmem>>, vector<8x128xf32>
    tpu.vector_store %arg12[%c0_278, %c0_279], %381 {strides = array<i32>} : memref<8x128xf32, #tpu.memory_space<vmem>>, vector<8x128xf32>,
    return
  }
  func.func @transform_0(%arg0: i32) -> (i32, i32) {
    %c0_i32 = arith.constant 0 : i32
    %c0_i32_0 = arith.constant 0 : i32
    return %arg0, %c0_i32 : i32, i32
  }
  func.func @transform_1(%arg0: i32) -> (i32, i32) {
    %c0_i32 = arith.constant 0 : i32
    %c0_i32_0 = arith.constant 0 : i32
    return %arg0, %c0_i32 : i32, i32
  }
  func.func @transform_2(%arg0: i32) -> (i32, i32) {
    %c0_i32 = arith.constant 0 : i32
    %c0_i32_0 = arith.constant 0 : i32
    return %arg0, %c0_i32 : i32, i32
  }
  func.func @transform_3(%arg0: i32) -> (i32, i32, i32) {
    %c0_i32 = arith.constant 0 : i32
    %c0_i32_0 = arith.constant 0 : i32
    %c0_i32_1 = arith.constant 0 : i32
    %c0_i32_2 = arith.constant 0 : i32
    return %c0_i32, %c0_i32_0, %c0_i32_1 : i32, i32, i32
  }
  func.func @transform_4(%arg0: i32) -> (i32, i32, i32) {
    %c0_i32 = arith.constant 0 : i32
    %c0_i32_0 = arith.constant 0 : i32
    %c0_i32_1 = arith.constant 0 : i32
    %c0_i32_2 = arith.constant 0 : i32
    return %c0_i32, %c0_i32_0, %c0_i32_1 : i32, i32, i32
  }
  func.func @transform_5(%arg0: i32) -> (i32, i32, i32) {
    %c0_i32 = arith.constant 0 : i32
    %c0_i32_0 = arith.constant 0 : i32
    %c0_i32_1 = arith.constant 0 : i32
    %c0_i32_2 = arith.constant 0 : i32
    return %c0_i32, %c0_i32_0, %c0_i32_1 : i32, i32, i32
  }
  func.func @transform_6(%arg0: i32) -> (i32, i32, i32) {
    %c0_i32 = arith.constant 0 : i32
    %c0_i32_0 = arith.constant 0 : i32
    %c0_i32_1 = arith.constant 0 : i32
    %c0_i32_2 = arith.constant 0 : i32
    return %c0_i32, %c0_i32_0, %c0_i32_1 : i32, i32, i32
  }
  func.func @transform_7(%arg0: i32) -> (i32, i32, i32) {
    %c0_i32 = arith.constant 0 : i32
    %c0_i32_0 = arith.constant 0 : i32
    %c0_i32_1 = arith.constant 0 : i32
    %c0_i32_2 = arith.constant 0 : i32
    return %c0_i32, %c0_i32_0, %c0_i32_1 : i32, i32, i32
  }
  func.func @transform_8(%arg0: i32) -> (i32, i32, i32) {
    %c0_i32 = arith.constant 0 : i32
    %c0_i32_0 = arith.constant 0 : i32
    %c0_i32_1 = arith.constant 0 : i32
    %c0_i32_2 = arith.constant 0 : i32
    return %c0_i32, %c0_i32_0, %c0_i32_1 : i32, i32, i32
  }
  func.func @transform_9(%arg0: i32) -> (i32, i32, i32) {
    %c0_i32 = arith.constant 0 : i32
    %c0_i32_0 = arith.constant 0 : i32
    %c0_i32_1 = arith.constant 0 : i32
    %c0_i32_2 = arith.constant 0 : i32
    return %c0_i32, %c0_i32_0, %c0_i32_1 : i32, i32, i32
  }
  func.func @transform_10(%arg0: i32) -> (i32, i32) {
    %c0_i32 = arith.constant 0 : i32
    %c0_i32_0 = arith.constant 0 : i32
    %c0_i32_1 = arith.constant 0 : i32
    return %c0_i32, %c0_i32_0 : i32, i32
  }
  func.func @transform_11(%arg0: i32) -> (i32, i32) {
    %c0_i32 = arith.constant 0 : i32
    %c0_i32_0 = arith.constant 0 : i32
    return %arg0, %c0_i32 : i32, i32
  }
}

</mosaic_0001>

<bundles_post_ra>
// kernel: tile.9
= control target key start
LH: loop header
LB: loop body
LE: loop exit
PB: predicated region body
PF: predicated region fallthrough
CT: control target
= control target key end

     0   :  { %vm36_vm0 = vcmask 1047556   ;;  %s81_s22 = smov 8   ;;  %s82_s23 = smov 16   ;;  %vm38_vm1 = vcmask 64512   ;;  %vm48_vm2 = vcmask 261312   ;;  %vm58_vm3 = vcmask 195712   ;;  %s133_s0 = inlined_call_operand.vmem [shape: f32[8,4,8], index: 0, kind: input, shape index: {}]   ;;  %s134_s1 = inlined_call_operand.vmem [shape: f32[8,32], index: 1, kind: output, shape index: {}]  }
   0x1   :  { %v70_v0 = vld [vmem:[%s133_s0 + $0x1c] sm:$0xf]  ;;  %v71_v1 = vld [vmem:[%s133_s0 + $0x18] sm:$0xf]  ;;  %v72_v2 = vld [vmem:[%s133_s0 + $0x14] sm:$0xf] }
   0x2   :  { %7 = vst [vmem:[#allocation0 + $0x38] sm:$0xf] %v70_v0  ;;  %v73_v3 = vld [vmem:[%s133_s0 + $0x10] sm:$0xf]  ;;  %v74_v4 = vld [vmem:[%s133_s0 + $0xc] sm:$0xf] }
   0x3   :  { %11 = vst [vmem:[#allocation0 + $0x30] sm:$0xf] %v71_v1  ;;  %v75_v5 = vld [vmem:[%s133_s0 + $0x8] sm:$0xf]  ;;  %v76_v6 = vld [vmem:[%s133_s0 + $0x4] sm:$0xf] }
   0x4   :  { %15 = vst [vmem:[#allocation0 + $0x28] sm:$0xf] %v72_v2  ;;  %v32_v7 = vld [vmem:[%s133_s0] sm:$0xf]  ;;  %s80_s0 = smov 24   ;;  %vm68_vm4 = vcmask 130112  }
   0x5   :  { %19 = vst [vmem:[#allocation0 + $0x20] sm:$0xf] %v73_v3 }
   0x6   :  { %23 = vst [vmem:[#allocation0 + $0x18] sm:$0xf] %v74_v4 }
   0x7   :  { %27 = vst [vmem:[#allocation0 + $0x10] sm:$0xf] %v75_v5 }
   0x8   :  { %31 = vst [vmem:[#allocation0 + $0x8] sm:$0xf] %v76_v6 }
   0x9   :  { %33 = vst [vmem:[#allocation0] sm:$0xf] %v32_v7 }
   0xc   :  { %v43_v8 = vld [vmem:[#allocation0 + $0x3] ss:$8 sm:$0xf0]   ;;  %v63_v9 = vld [vmem:[#allocation0 + $0x1] ss:$8 sm:$0xf0]  }
   0xd   :  { %v53_v15 = vld [vmem:[#allocation0 + $0x2] ss:$8 sm:$0xf0]   ;;  %v35_v18 = vld [vmem:[#allocation0] ss:$8 sm:$0xf0]  }
  0x10   :  { %v41_v10 = vld [vmem:[#allocation0 + $0x3] ss:$8 sm:$0xf]   ;;  %v61_v12 = vld [vmem:[#allocation0 + $0x1] ss:$8 sm:$0xf]  }
  0x11   :  { %v45_v11 = vsel %vm36_vm0, %v43_v8, %v41_v10  ;;  %v65_v13 = vsel %vm36_vm0, %v63_v9, %v61_v12  ;;  %v51_v14 = vld [vmem:[#allocation0 + $0x2] ss:$8 sm:$0xf]   ;;  %v34_v17 = vld [vmem:[#allocation0] ss:$8 sm:$0xf]  }
  0x12   :  { %46 = vrot.lane.b32.xlu0 %v45_v11, %s80_s0  ;;  %66 = vrot.lane.b32.xlu1 %v65_v13, %s81_s22  ;;  %v55_v16 = vsel %vm36_vm0, %v53_v15, %v51_v14  ;;  %v37_v19 = vsel %vm36_vm0, %v35_v18, %v34_v17 }
  0x13   :  { %39 = vst.msk [vmem:[%s134_s1] sm:$0xff] %vm38_vm1, %v37_v19  }
  0x1a   :  { %56 = vrot.lane.b32.xlu0 %v55_v16, %s82_s23 }
  0x84   :  { %v47_v20 = vpop.permute.xlu0 %46   ;;  %v67_v21 = vpop.permute.xlu1 %66  }
  0x85   :  { %49 = vst.msk [vmem:[%s134_s1] sm:$0xff] %vm48_vm2, %v47_v20  }
  0x8c   :  { %v57_v22 = vpop.permute.xlu0 %56  }
  0x8d   :  { %59 = vst.msk [vmem:[%s134_s1] sm:$0xff] %vm58_vm3, %v57_v22  }
  0x8e   :  { %69 = vst.msk [vmem:[%s134_s1] sm:$0xff] %vm68_vm4, %v67_v21  }

// kernel: d_net64_forward.1
= control target key start
LH: loop header
LB: loop body
LE: loop exit
PB: predicated region body
PF: predicated region fallthrough
CT: control target
= control target key end

     0   :  { %s20245_s3 = inlined_call_operand.vmem [shape: bf16[4,256,256], index: 3, kind: input, shape index: {}]   ;;  %s20246_s0 = inlined_call_operand.vmem [shape: f32[264,256], index: 0, kind: input, shape index: {}]   ;;  %s20247_s1 = inlined_call_operand.vmem [shape: f32[264,256], index: 1, kind: input, shape index: {}]   ;;  %s20248_s4 = inlined_call_operand.vmem [shape: bf16[4,256,256], index: 4, kind: input, shape index: {}]   ;;  %s20249_s8 = inlined_call_operand.vmem [shape: f32[5,2,256], index: 8, kind: input, shape index: {}]   ;;  %s20250_s5 = inlined_call_operand.vmem [shape: bf16[4,256,256], index: 5, kind: input, shape index: {}]   ;;  %s20251_s6 = inlined_call_operand.vmem [shape: bf16[4,256,256], index: 6, kind: input, shape index: {}]   ;;  %s20252_s7 = inlined_call_operand.vmem [shape: bf16[3,384,256], index: 7, kind: input, shape index: {}]   ;;  %s20253_s2 = inlined_call_operand.vmem [shape: f32[8,128], index: 2, kind: input, shape index: {}]   ;;  %s20254_s9 = inlined_call_operand.vmem [shape: f32[2,4,256], index: 9, kind: input, shape index: {}]   ;;  %s20255_s10 = inlined_call_operand.vmem [shape: f32[1,2], index: 10, kind: input, shape index: {}]   ;;  %s20256_s11 = inlined_call_operand.vmem [shape: f32[8,128], index: 11, kind: output, shape index: {}]  }
   0x1   :  { %v9302_v0 = vld [vmem:[%s20245_s3 + $0x170] sm:$0xf]  ;;  %v12368_v1 = vld [vmem:[%s20245_s3 + $0x174] sm:$0xf0]  ;;  %v12367_v5 = vld [vmem:[%s20245_s3 + $0x174] sm:$0xf] }
   0x2   :  { %v9366_v2 = vld [vmem:[%s20245_s3 + $0x1f0] sm:$0xf]  ;;  %v9303_v3 = vor.u32 %v12368_v1, %v9302_v0  ;;  %v12384_v4 = vld [vmem:[%s20245_s3 + $0x1f4] sm:$0xf0]  ;;  %v9304_v6 = vld [vmem:[%s20245_s3 + $0x178] sm:$0xf0] }
   0x3   :  { %v9367_v7 = vor.u32 %v12384_v4, %v9366_v2  ;;  %v9307_v8 = vor.u32 %v12367_v5, %v9304_v6  ;;  %v12383_v9 = vld [vmem:[%s20245_s3 + $0x1f4] sm:$0xf]  ;;  %v9368_v10 = vld [vmem:[%s20245_s3 + $0x1f8] sm:$0xf0]  ;;  %v9294_v11 = vld [vmem:[%s20245_s3 + $0x160] sm:$0xf] }
   0x4   :  { %473 = vmatpush.bf16.msra.mxu0 %v9303_v3  ;;  %v9371_v12 = vor.u32 %v12383_v9, %v9368_v10  ;;  %v12366_v13 = vld [vmem:[%s20245_s3 + $0x164] sm:$0xf0]  ;;  %v9358_v14 = vld [vmem:[%s20245_s3 + $0x1e0] sm:$0xf]  ;;  %v12365_v18 = vld [vmem:[%s20245_s3 + $0x164] sm:$0xf] }
   0x5   :  { %v12382_v15 = vld [vmem:[%s20245_s3 + $0x1e4] sm:$0xf0]  ;;  %562 = vmatpush.bf16.msra.mxu1 %v9367_v7  ;;  %651 = vmatpush.bf16.msra.mxu2 %v9307_v8  ;;  %v9295_v16 = vor.u32 %v12366_v13, %v9294_v11  ;;  %v9296_v19 = vld [vmem:[%s20245_s3 + $0x168] sm:$0xf0]  ;;  %v12381_v20 = vld [vmem:[%s20245_s3 + $0x1e4] sm:$0xf] }
   0x6   :  { %v9359_v17 = vor.u32 %v12382_v15, %v9358_v14  ;;  %740 = vmatpush.bf16.msra.mxu3 %v9371_v12  ;;  %v9299_v21 = vor.u32 %v12365_v18, %v9296_v19  ;;  %v9360_v22 = vld [vmem:[%s20245_s3 + $0x1e8] sm:$0xf0]  ;;  %v9286_v23 = vld [vmem:[%s20245_s3 + $0x150] sm:$0xf]  ;;  %v12364_v24 = vld [vmem:[%s20245_s3 + $0x154] sm:$0xf0] }
   0x7   :  { %v9363_v25 = vor.u32 %v12381_v20, %v9360_v22  ;;  %v9350_v26 = vld [vmem:[%s20245_s3 + $0x1d0] sm:$0xf]  ;;  %v12380_v27 = vld [vmem:[%s20245_s3 + $0x1d4] sm:$0xf0]  ;;  %v12363_v28 = vld [vmem:[%s20245_s3 + $0x154] sm:$0xf]  ;;  %v9287_v29 = vor.u32 %v12364_v24, %v9286_v23 }
   0x8   :  { %474 = vmatpush.bf16.msra.mxu0 %v9295_v16  ;;  %v9288_v30 = vld [vmem:[%s20245_s3 + $0x158] sm:$0xf0]  ;;  %v12379_v31 = vld [vmem:[%s20245_s3 + $0x1d4] sm:$0xf]  ;;  %v9351_v33 = vor.u32 %v12380_v27, %v9350_v26  ;;  %v9278_v35 = vld [vmem:[%s20245_s3 + $0x140] sm:$0xf] }
   0x9   :  { %v9352_v32 = vld [vmem:[%s20245_s3 + $0x1d8] sm:$0xf0]  ;;  %563 = vmatpush.bf16.msra.mxu1 %v9359_v17  ;;  %652 = vmatpush.bf16.msra.mxu2 %v9299_v21  ;;  %v9291_v34 = vor.u32 %v12363_v28, %v9288_v30  ;;  %v12362_v36 = vld [vmem:[%s20245_s3 + $0x144] sm:$0xf0]  ;;  %v9342_v37 = vld [vmem:[%s20245_s3 + $0x1c0] sm:$0xf] }
   0xa   :  { %741 = vmatpush.bf16.msra.mxu3 %v9363_v25  ;;  %v9355_v38 = vor.u32 %v12379_v31, %v9352_v32  ;;  %v12378_v39 = vld [vmem:[%s20245_s3 + $0x1c4] sm:$0xf0]  ;;  %v12361_v40 = vld [vmem:[%s20245_s3 + $0x144] sm:$0xf]  ;;  %v9280_v41 = vld [vmem:[%s20245_s3 + $0x148] sm:$0xf0]  ;;  %v9279_v44 = vor.u32 %v12362_v36, %v9278_v35 }
   0xb   :  { %v12377_v42 = vld [vmem:[%s20245_s3 + $0x1c4] sm:$0xf]  ;;  %v9344_v43 = vld [vmem:[%s20245_s3 + $0x1c8] sm:$0xf0]  ;;  %v9343_v45 = vor.u32 %v12378_v39, %v9342_v37  ;;  %v9283_v46 = vor.u32 %v12361_v40, %v9280_v41  ;;  %v9270_v47 = vld [vmem:[%s20245_s3 + $0x130] sm:$0xf] }
   0xc   :  { %475 = vmatpush.bf16.msra.mxu0 %v9287_v29  ;;  %v12360_v48 = vld [vmem:[%s20245_s3 + $0x134] sm:$0xf0]  ;;  %v9334_v49 = vld [vmem:[%s20245_s3 + $0x1b0] sm:$0xf]  ;;  %v9347_v50 = vor.u32 %v12377_v42, %v9344_v43  ;;  %v12359_v52 = vld [vmem:[%s20245_s3 + $0x134] sm:$0xf] }
   0xd   :  { %564 = vmatpush.bf16.msra.mxu1 %v9351_v33  ;;  %653 = vmatpush.bf16.msra.mxu2 %v9291_v34  ;;  %v12376_v51 = vld [vmem:[%s20245_s3 + $0x1b4] sm:$0xf0]  ;;  %v9272_v53 = vld [vmem:[%s20245_s3 + $0x138] sm:$0xf0]  ;;  %v12375_v54 = vld [vmem:[%s20245_s3 + $0x1b4] sm:$0xf]  ;;  %v9271_v56 = vor.u32 %v12360_v48, %v9270_v47 }
   0xe   :  { %742 = vmatpush.bf16.msra.mxu3 %v9355_v38  ;;  %v9336_v55 = vld [vmem:[%s20245_s3 + $0x1b8] sm:$0xf0]  ;;  %v9335_v57 = vor.u32 %v12376_v51, %v9334_v49  ;;  %v9275_v58 = vor.u32 %v12359_v52, %v9272_v53  ;;  %v9262_v59 = vld [vmem:[%s20245_s3 + $0x120] sm:$0xf]  ;;  %v12358_v60 = vld [vmem:[%s20245_s3 + $0x124] sm:$0xf0] }
   0xf   :  { %v9326_v61 = vld [vmem:[%s20245_s3 + $0x1a0] sm:$0xf]  ;;  %v9339_v62 = vor.u32 %v12375_v54, %v9336_v55  ;;  %v12374_v63 = vld [vmem:[%s20245_s3 + $0x1a4] sm:$0xf0]  ;;  %v12357_v0 = vld [vmem:[%s20245_s3 + $0x124] sm:$0xf]  ;;  %v9263_v4 = vor.u32 %v12358_v60, %v9262_v59 }
  0x10   :  { %476 = vmatpush.bf16.msra.mxu0 %v9279_v44  ;;  %v9264_v1 = vld [vmem:[%s20245_s3 + $0x128] sm:$0xf0]  ;;  %v12373_v2 = vld [vmem:[%s20245_s3 + $0x1a4] sm:$0xf]  ;;  %v9327_v5 = vor.u32 %v12374_v63, %v9326_v61  ;;  %v9254_v7 = vld [vmem:[%s20245_s3 + $0x110] sm:$0xf] }
  0x11   :  { %565 = vmatpush.bf16.msra.mxu1 %v9343_v45  ;;  %654 = vmatpush.bf16.msra.mxu2 %v9283_v46  ;;  %v9328_v3 = vld [vmem:[%s20245_s3 + $0x1a8] sm:$0xf0]  ;;  %v9267_v6 = vor.u32 %v12357_v0, %v9264_v1  ;;  %v12356_v8 = vld [vmem:[%s20245_s3 + $0x114] sm:$0xf0]  ;;  %v9318_v9 = vld [vmem:[%s20245_s3 + $0x190] sm:$0xf] }
  0x12   :  { %743 = vmatpush.bf16.msra.mxu3 %v9347_v50  ;;  %v9331_v10 = vor.u32 %v12373_v2, %v9328_v3  ;;  %v12372_v11 = vld [vmem:[%s20245_s3 + $0x194] sm:$0xf0]  ;;  %v12355_v12 = vld [vmem:[%s20245_s3 + $0x114] sm:$0xf]  ;;  %v9256_v13 = vld [vmem:[%s20245_s3 + $0x118] sm:$0xf0]  ;;  %v9255_v16 = vor.u32 %v12356_v8, %v9254_v7 }
  0x13   :  { %v12371_v14 = vld [vmem:[%s20245_s3 + $0x194] sm:$0xf]  ;;  %v9320_v15 = vld [vmem:[%s20245_s3 + $0x198] sm:$0xf0]  ;;  %v9246_v17 = vld [vmem:[%s20245_s3 + $0x100] sm:$0xf]  ;;  %v9319_v19 = vor.u32 %v12372_v11, %v9318_v9  ;;  %v9259_v20 = vor.u32 %v12355_v12, %v9256_v13 }
  0x14   :  { %477 = vmatpush.bf16.msra.mxu0 %v9271_v56  ;;  %v12354_v18 = vld [vmem:[%s20245_s3 + $0x104] sm:$0xf0]  ;;  %v9310_v21 = vld [vmem:[%s20245_s3 + $0x180] sm:$0xf]  ;;  %v12353_v23 = vld [vmem:[%s20245_s3 + $0x104] sm:$0xf]  ;;  %v9323_v24 = vor.u32 %v12371_v14, %v9320_v15 }
  0x15   :  { %566 = vmatpush.bf16.msra.mxu1 %v9335_v57  ;;  %655 = vmatpush.bf16.msra.mxu2 %v9275_v58  ;;  %v12370_v22 = vld [vmem:[%s20245_s3 + $0x184] sm:$0xf0]  ;;  %v9248_v25 = vld [vmem:[%s20245_s3 + $0x108] sm:$0xf0]  ;;  %v12369_v26 = vld [vmem:[%s20245_s3 + $0x184] sm:$0xf]  ;;  %v9247_v31 = vor.u32 %v12354_v18, %v9246_v17 }
  0x16   :  { %744 = vmatpush.bf16.msra.mxu3 %v9339_v62  ;;  %v9312_v27 = vld [vmem:[%s20245_s3 + $0x188] sm:$0xf0]  ;;  %v184_v28 = vld [vmem:[%s20246_s0] sm:$0xff]  ;;  %v12335_v29 = vld [vmem:[%s20245_s3 + $0x74] sm:$0xf]  ;;  %v9311_v35 = vor.u32 %v12370_v22, %v9310_v21  ;;  %v9251_v36 = vor.u32 %v12353_v23, %v9248_v25 }
  0x17   :  { %v9432_v30 = vld [vmem:[%s20245_s3 + $0x78] sm:$0xf0]  ;;  %v186_v32 = vld [vmem:[%s20246_s0 + $0x10] sm:$0xff]  ;;  %v185_v37 = vld [vmem:[%s20246_s0 + $0x8] sm:$0xff]  ;;  %v9315_v39 = vor.u32 %v12369_v26, %v9312_v27 }
  0x18   :  { %478 = vmatpush.bf16.msra.mxu0 %v9263_v4  ;;  %v12351_v33 = vld [vmem:[%s20245_s3 + $0xf4] sm:$0xf]  ;;  %v9496_v34 = vld [vmem:[%s20245_s3 + $0xf8] sm:$0xf0]  ;;  %v9435_v40 = vor.u32 %v12335_v29, %v9432_v30  ;;  %v9430_v41 = vld [vmem:[%s20245_s3 + $0x70] sm:$0xf]  ;;  %v248_v43 = vpack.c.bf16 %v186_v32, %v184_v28 }
  0x19   :  { %567 = vmatpush.bf16.msra.mxu1 %v9327_v5  ;;  %656 = vmatpush.bf16.msra.mxu2 %v9267_v6  ;;  %v187_v38 = vld [vmem:[%s20246_s0 + $0x18] sm:$0xff]  ;;  %v9499_v44 = vor.u32 %v12351_v33, %v9496_v34  ;;  %v9494_v45 = vld [vmem:[%s20245_s3 + $0xf0] sm:$0xf]  ;;  %v12333_v50 = vld [vmem:[%s20245_s3 + $0x64] sm:$0xf] }
  0x1a   :  { %745 = vmatpush.bf16.msra.mxu3 %v9331_v10  ;;  %v12336_v42 = vld [vmem:[%s20245_s3 + $0x74] sm:$0xf0]  ;;  %v249_v47 = vpack.c.bf16 %v187_v38, %v185_v37  ;;  %v9424_v51 = vld [vmem:[%s20245_s3 + $0x68] sm:$0xf0]  ;;  %v12349_v52 = vld [vmem:[%s20245_s3 + $0xe4] sm:$0xf] }
  0x1b   :  { %v12352_v46 = vld [vmem:[%s20245_s3 + $0xf4] sm:$0xf0]  ;;  %v9431_v48 = vor.u32 %v12336_v42, %v9430_v41  ;;  %v9427_v53 = vor.u32 %v12333_v50, %v9424_v51  ;;  %v9488_v54 = vld [vmem:[%s20245_s3 + $0xe8] sm:$0xf0]  ;;  %v9422_v55 = vld [vmem:[%s20245_s3 + $0x60] sm:$0xf] }
  0x1c   :  { %479 = vmatpush.bf16.msra.mxu0 %v9255_v16  ;;  %v9495_v49 = vor.u32 %v12352_v46, %v9494_v45  ;;  %v12334_v56 = vld [vmem:[%s20245_s3 + $0x64] sm:$0xf0]  ;;  %v9491_v57 = vor.u32 %v12349_v52, %v9488_v54  ;;  %v9486_v59 = vld [vmem:[%s20245_s3 + $0xe0] sm:$0xf]  ;;  %v190_v63 = vld [vmem:[%s20246_s0 + $0x30] sm:$0xff] }
  0x1d   :  { %568 = vmatpush.bf16.msra.mxu1 %v9319_v19  ;;  %657 = vmatpush.bf16.msra.mxu2 %v9259_v20  ;;  %v9423_v58 = vor.u32 %v12334_v56, %v9422_v55  ;;  %v12350_v60 = vld [vmem:[%s20245_s3 + $0xe4] sm:$0xf0]  ;;  %v188_v62 = vld [vmem:[%s20246_s0 + $0x20] sm:$0xff]  ;;  %v191_v1 = vld [vmem:[%s20246_s0 + $0x38] sm:$0xff] }
  0x1e   :  { %746 = vmatpush.bf16.msra.mxu3 %v9323_v24  ;;  %v9487_v61 = vor.u32 %v12350_v60, %v9486_v59  ;;  %v189_v0 = vld [vmem:[%s20246_s0 + $0x28] sm:$0xff]  ;;  %v250_v2 = vpack.c.bf16 %v190_v63, %v188_v62  ;;  %v192_v4 = vld [vmem:[%s20246_s0 + $0x40] sm:$0xff]  ;;  %v194_v5 = vld [vmem:[%s20246_s0 + $0x50] sm:$0xff] }
  0x1f   :  { %v251_v3 = vpack.c.bf16 %v191_v1, %v189_v0  ;;  %v193_v6 = vld [vmem:[%s20246_s0 + $0x48] sm:$0xff]  ;;  %v195_v7 = vld [vmem:[%s20246_s0 + $0x58] sm:$0xff]  ;;  %v252_v8 = vpack.c.bf16 %v194_v5, %v192_v4  ;;  %v12331_v10 = vld [vmem:[%s20245_s3 + $0x54] sm:$0xf] }
  0x20   :  { %480 = vmatpush.bf16.msra.mxu0 %v9247_v31  ;;  %v253_v9 = vpack.c.bf16 %v195_v7, %v193_v6  ;;  %v9416_v11 = vld [vmem:[%s20245_s3 + $0x58] sm:$0xf0]  ;;  %v12347_v12 = vld [vmem:[%s20245_s3 + $0xd4] sm:$0xf]  ;;  %v9414_v15 = vld [vmem:[%s20245_s3 + $0x50] sm:$0xf] }
  0x21   :  { %569 = vmatpush.bf16.msra.mxu1 %v9311_v35  ;;  %658 = vmatpush.bf16.msra.mxu2 %v9251_v36  ;;  %v9419_v13 = vor.u32 %v12331_v10, %v9416_v11  ;;  %v9480_v14 = vld [vmem:[%s20245_s3 + $0xd8] sm:$0xf0]  ;;  %v12332_v16 = vld [vmem:[%s20245_s3 + $0x54] sm:$0xf0]  ;;  %v9478_v19 = vld [vmem:[%s20245_s3 + $0xd0] sm:$0xf] }
  0x22   :  { %747 = vmatpush.bf16.msra.mxu3 %v9315_v39  ;;  %v9483_v17 = vor.u32 %v12347_v12, %v9480_v14  ;;  %v9415_v18 = vor.u32 %v12332_v16, %v9414_v15  ;;  %v12348_v20 = vld [vmem:[%s20245_s3 + $0xd4] sm:$0xf0]  ;;  %v196_v22 = vld [vmem:[%s20246_s0 + $0x60] sm:$0xff]  ;;  %v198_v23 = vld [vmem:[%s20246_s0 + $0x70] sm:$0xff] }
  0x23   :  { %481 = vmatmul.bf16.vlgmr.msra.gmra.mxu0 %v248_v43  ;;  %v9479_v21 = vor.u32 %v12348_v20, %v9478_v19  ;;  %v197_v24 = vld [vmem:[%s20246_s0 + $0x68] sm:$0xff]  ;;  %v199_v25 = vld [vmem:[%s20246_s0 + $0x78] sm:$0xff]  ;;  %v254_v26 = vpack.c.bf16 %v198_v23, %v196_v22  ;;  %v200_v28 = vld [vmem:[%s20246_s0 + $0x80] sm:$0xff] }
  0x24   :  { %570 = vmatmul.bf16.vlgmr.msra.gmra.mxu1 %v249_v47  ;;  %659 = vmatmul.bf16.vlgmr.msra.gmra.mxu2 %v248_v43  ;;  %v255_v27 = vpack.c.bf16 %v199_v25, %v197_v24  ;;  %v202_v29 = vld [vmem:[%s20246_s0 + $0x90] sm:$0xff]  ;;  %v201_v30 = vld [vmem:[%s20246_s0 + $0x88] sm:$0xff]  ;;  %v203_v31 = vld [vmem:[%s20246_s0 + $0x98] sm:$0xff] }
  0x25   :  { %1167 = vmatpush.bf16.msrb.mxu2 %v9435_v40  ;;  %748 = vmatmul.bf16.vlgmr.msra.gmra.mxu3 %v249_v47  ;;  %v256_v32 = vpack.c.bf16 %v202_v29, %v200_v28  ;;  %v257_v33 = vpack.c.bf16 %v203_v31, %v201_v30  ;;  %v12329_v34 = vld [vmem:[%s20245_s3 + $0x44] sm:$0xf]  ;;  %v9408_v35 = vld [vmem:[%s20245_s3 + $0x48] sm:$0xf0]  ;;  %v9406_v39 = vld [vmem:[%s20245_s3 + $0x40] sm:$0xf] }
  0x26   :  { %1256 = vmatpush.bf16.msrb.mxu3 %v9499_v44  ;;  %989 = vmatpush.bf16.msrb.mxu0 %v9431_v48  ;;  %v12345_v36 = vld [vmem:[%s20245_s3 + $0xc4] sm:$0xf]  ;;  %v9411_v37 = vor.u32 %v12329_v34, %v9408_v35  ;;  %v9472_v38 = vld [vmem:[%s20245_s3 + $0xc8] sm:$0xf0]  ;;  %v12330_v40 = vld [vmem:[%s20245_s3 + $0x44] sm:$0xf0] }
  0x27   :  { %1078 = vmatpush.bf16.msrb.mxu1 %v9495_v49  ;;  %v9475_v41 = vor.u32 %v12345_v36, %v9472_v38  ;;  %v9407_v42 = vor.u32 %v12330_v40, %v9406_v39  ;;  %v9470_v43 = vld [vmem:[%s20245_s3 + $0xc0] sm:$0xf]  ;;  %v12346_v44 = vld [vmem:[%s20245_s3 + $0xc4] sm:$0xf0]  ;;  %v206_v47 = vld [vmem:[%s20246_s0 + $0xb0] sm:$0xff] }
  0x28   :  { %v9471_v45 = vor.u32 %v12346_v44, %v9470_v43  ;;  %v204_v46 = vld [vmem:[%s20246_s0 + $0xa0] sm:$0xff]  ;;  %v205_v48 = vld [vmem:[%s20246_s0 + $0xa8] sm:$0xff]  ;;  %v207_v49 = vld [vmem:[%s20246_s0 + $0xb8] sm:$0xff] }
  0x29   :  { %1168 = vmatpush.bf16.msrb.mxu2 %v9427_v53  ;;  %v258_v50 = vpack.c.bf16 %v206_v47, %v204_v46  ;;  %v259_v51 = vpack.c.bf16 %v207_v49, %v205_v48  ;;  %v208_v52 = vld [vmem:[%s20246_s0 + $0xc0] sm:$0xff]  ;;  %v210_v53 = vld [vmem:[%s20246_s0 + $0xd0] sm:$0xff]  ;;  %v209_v54 = vld [vmem:[%s20246_s0 + $0xc8] sm:$0xff] }
  0x2a   :  { %1257 = vmatpush.bf16.msrb.mxu3 %v9491_v57  ;;  %990 = vmatpush.bf16.msrb.mxu0 %v9423_v58  ;;  %v211_v55 = vld [vmem:[%s20246_s0 + $0xd8] sm:$0xff]  ;;  %v260_v56 = vpack.c.bf16 %v210_v53, %v208_v52  ;;  %v12327_v58 = vld [vmem:[%s20245_s3 + $0x34] sm:$0xf]  ;;  %v9398_v0 = vld [vmem:[%s20245_s3 + $0x30] sm:$0xf] }
  0x2b   :  { %1079 = vmatpush.bf16.msrb.mxu1 %v9487_v61  ;;  %v261_v57 = vpack.c.bf16 %v211_v55, %v209_v54  ;;  %v9400_v59 = vld [vmem:[%s20245_s3 + $0x38] sm:$0xf0]  ;;  %v12343_v60 = vld [vmem:[%s20245_s3 + $0xb4] sm:$0xf]  ;;  %v12328_v1 = vld [vmem:[%s20245_s3 + $0x34] sm:$0xf0] }
  0x2c   :  { %v9403_v61 = vor.u32 %v12327_v58, %v9400_v59  ;;  %v9464_v62 = vld [vmem:[%s20245_s3 + $0xb8] sm:$0xf0]  ;;  %v12344_v4 = vld [vmem:[%s20245_s3 + $0xb4] sm:$0xf0]  ;;  %v212_v5 = vld [vmem:[%s20246_s0 + $0xe0] sm:$0xff] }
  0x2d   :  { %1169 = vmatpush.bf16.msrb.mxu2 %v9419_v13  ;;  %v9467_v63 = vor.u32 %v12343_v60, %v9464_v62  ;;  %v214_v6 = vld [vmem:[%s20246_s0 + $0xf0] sm:$0xff]  ;;  %v216_v12 = vld [vmem:[%s20246_s0 + $0x100] sm:$0xff]  ;;  %v217_v14 = vld [vmem:[%s20246_s0 + $0x108] sm:$0xff] }
  0x2e   :  { %1258 = vmatpush.bf16.msrb.mxu3 %v9483_v17  ;;  %991 = vmatpush.bf16.msrb.mxu0 %v9415_v18  ;;  %v262_v10 = vpack.c.bf16 %v214_v6, %v212_v5  ;;  %v218_v13 = vld [vmem:[%s20246_s0 + $0x110] sm:$0xff]  ;;  %v219_v15 = vld [vmem:[%s20246_s0 + $0x118] sm:$0xff]  ;;  %v9392_v22 = vld [vmem:[%s20245_s3 + $0x28] sm:$0xf0] }
  0x2f   :  { %1080 = vmatpush.bf16.msrb.mxu1 %v9479_v21  ;;  %v264_v16 = vpack.c.bf16 %v218_v13, %v216_v12  ;;  %v265_v18 = vpack.c.bf16 %v219_v15, %v217_v14  ;;  %v12325_v21 = vld [vmem:[%s20245_s3 + $0x24] sm:$0xf]  ;;  %v9456_v25 = vld [vmem:[%s20245_s3 + $0xa8] sm:$0xf0]  ;;  %v12326_v34 = vld [vmem:[%s20245_s3 + $0x24] sm:$0xf0] }
  0x30   :  { %v12341_v23 = vld [vmem:[%s20245_s3 + $0xa4] sm:$0xf]  ;;  %v9395_v24 = vor.u32 %v12325_v21, %v9392_v22  ;;  %v9454_v35 = vld [vmem:[%s20245_s3 + $0xa0] sm:$0xf]  ;;  %v222_v39 = vld [vmem:[%s20246_s0 + $0x130] sm:$0xff] }
  0x31   :  { %1170 = vmatpush.bf16.msrb.mxu2 %v9411_v37  ;;  %v12342_v37 = vld [vmem:[%s20245_s3 + $0xa4] sm:$0xf0]  ;;  %v220_v38 = vld [vmem:[%s20246_s0 + $0x120] sm:$0xff]  ;;  %v226_v58 = vld [vmem:[%s20246_s0 + $0x150] sm:$0xff] }
  0x32   :  { %1259 = vmatpush.bf16.msrb.mxu3 %v9475_v41  ;;  %992 = vmatpush.bf16.msrb.mxu0 %v9407_v42  ;;  %v9455_v40 = vor.u32 %v12342_v37, %v9454_v35  ;;  %v221_v41 = vld [vmem:[%s20246_s0 + $0x128] sm:$0xff]  ;;  %v223_v42 = vld [vmem:[%s20246_s0 + $0x138] sm:$0xff]  ;;  %v266_v44 = vpack.c.bf16 %v222_v39, %v220_v38  ;;  %v12323_v5 = vld [vmem:[%s20245_s3 + $0x14] sm:$0xf] }
  0x33   :  { %486 = vmatmul.bf16.gmra.mxu0 %v250_v2  ;;  %1081 = vmatpush.bf16.msrb.mxu1 %v9471_v45  ;;  %v267_v47 = vpack.c.bf16 %v223_v42, %v221_v41  ;;  %v225_v59 = vld [vmem:[%s20246_s0 + $0x148] sm:$0xff]  ;;  %v227_v60 = vld [vmem:[%s20246_s0 + $0x158] sm:$0xff] }
  0x34   :  { %575 = vmatmul.bf16.gmra.mxu1 %v251_v3  ;;  %664 = vmatmul.bf16.gmra.mxu2 %v250_v2  ;;  %v9462_v2 = vld [vmem:[%s20245_s3 + $0xb0] sm:$0xf]  ;;  %v9384_v6 = vld [vmem:[%s20245_s3 + $0x18] sm:$0xf0]  ;;  %v12340_v22 = vld [vmem:[%s20245_s3 + $0x94] sm:$0xf0] }
  0x35   :  { %753 = vmatmul.bf16.gmra.mxu3 %v251_v3  ;;  %1171 = vmatpush.bf16.msrb.mxu2 %v9403_v61  ;;  %v9399_v3 = vor.u32 %v12328_v1, %v9398_v0  ;;  %v9463_v7 = vor.u32 %v12344_v4, %v9462_v2  ;;  %v269_v1 = vpack.c.bf16 %v227_v60, %v225_v59  ;;  %v12321_v60 = vld [vmem:[%s20245_s3 + $0x4] sm:$0xf] }
  0x36   :  { %1260 = vmatpush.bf16.msrb.mxu3 %v9467_v63 }
  0x37   :  { %993 = vmatpush.bf16.msrb.mxu0 %v9399_v3  ;;  %1082 = vmatpush.bf16.msrb.mxu1 %v9463_v7  ;;  %v12339_v7 = vld [vmem:[%s20245_s3 + $0x94] sm:$0xf] }
  0x39   :  { %1172 = vmatpush.bf16.msrb.mxu2 %v9395_v24  ;;  %v230_v24 = vld [vmem:[%s20246_s0 + $0x170] sm:$0xff] }
  0x3b   :  { %1083 = vmatpush.bf16.msrb.mxu1 %v9455_v40 }
  0x43   :  { %491 = vmatmul.bf16.gmra.mxu0 %v252_v8 }
  0x44   :  { %580 = vmatmul.bf16.gmra.mxu1 %v253_v9  ;;  %669 = vmatmul.bf16.gmra.mxu2 %v252_v8  ;;  %v213_v8 = vld [vmem:[%s20246_s0 + $0xe8] sm:$0xff] }
  0x45   :  { %758 = vmatmul.bf16.gmra.mxu3 %v253_v9  ;;  %v215_v9 = vld [vmem:[%s20246_s0 + $0xf8] sm:$0xff] }
  0x46   :  { %v263_v11 = vpack.c.bf16 %v215_v9, %v213_v8  ;;  %v9387_v8 = vor.u32 %v12323_v5, %v9384_v6  ;;  %v9448_v9 = vld [vmem:[%s20245_s3 + $0x98] sm:$0xf0] }
  0x48   :  { %1173 = vmatpush.bf16.msrb.mxu2 %v9387_v8 }
  0x53   :  { %496 = vmatmul.bf16.gmra.mxu0 %v254_v26 }
  0x54   :  { %585 = vmatmul.bf16.gmra.mxu1 %v255_v27  ;;  %674 = vmatmul.bf16.gmra.mxu2 %v254_v26 }
  0x55   :  { %763 = vmatmul.bf16.gmra.mxu3 %v255_v27  ;;  %v9459_v27 = vor.u32 %v12341_v23, %v9456_v25  ;;  %v228_v23 = vld [vmem:[%s20246_s0 + $0x160] sm:$0xff] }
  0x57   :  { %1261 = vmatpush.bf16.msrb.mxu3 %v9459_v27  ;;  %v231_v27 = vld [vmem:[%s20246_s0 + $0x178] sm:$0xff] }
  0x63   :  { %501 = vmatmul.bf16.gmra.mxu0 %v256_v32 }
  0x64   :  { %590 = vmatmul.bf16.gmra.mxu1 %v257_v33  ;;  %679 = vmatmul.bf16.gmra.mxu2 %v256_v32 }
  0x65   :  { %768 = vmatmul.bf16.gmra.mxu3 %v257_v33  ;;  %v9390_v33 = vld [vmem:[%s20245_s3 + $0x20] sm:$0xf] }
  0x66   :  { %v9391_v36 = vor.u32 %v12326_v34, %v9390_v33 }
  0x68   :  { %994 = vmatpush.bf16.msrb.mxu0 %v9391_v36 }
  0x73   :  { %506 = vmatmul.bf16.gmra.mxu0 %v258_v50 }
  0x74   :  { %595 = vmatmul.bf16.gmra.mxu1 %v259_v51  ;;  %684 = vmatmul.bf16.gmra.mxu2 %v258_v50 }
  0x75   :  { %773 = vmatmul.bf16.gmra.mxu3 %v259_v51 }
  0x83   :  { %511 = vmatmul.bf16.gmra.mxu0 %v260_v56 }
  0x84   :  { %600 = vmatmul.bf16.gmra.mxu1 %v261_v57  ;;  %689 = vmatmul.bf16.gmra.mxu2 %v260_v56 }
  0x85   :  { %778 = vmatmul.bf16.gmra.mxu3 %v261_v57  ;;  %v224_v57 = vld [vmem:[%s20246_s0 + $0x140] sm:$0xff] }
  0x86   :  { %v268_v62 = vpack.c.bf16 %v226_v58, %v224_v57 }
  0x93   :  { %516 = vmatmul.bf16.gmra.mxu0 %v262_v10 }
  0x94   :  { %605 = vmatmul.bf16.gmra.mxu1 %v263_v11  ;;  %694 = vmatmul.bf16.gmra.mxu2 %v262_v10 }
  0x95   :  { %783 = vmatmul.bf16.gmra.mxu3 %v263_v11  ;;  %v9451_v11 = vor.u32 %v12339_v7, %v9448_v9 }
  0x97   :  { %1262 = vmatpush.bf16.msrb.mxu3 %v9451_v11  ;;  %v12322_v11 = vld [vmem:[%s20245_s3 + $0x4] sm:$0xf0] }
  0xa0   :  { %v482_v17 = vpop.f32.mrf.mxu0 }
  0xa1   :  { %v571_v19 = vpop.f32.mrf.mxu1 }
  0xa2   :  { %v13492_v20 = vadd.f32 %v571_v19, %v482_v17  ;;  %v9382_v17 = vld [vmem:[%s20245_s3 + $0x10] sm:$0xf] }
  0xa3   :  { %521 = vmatmul.bf16.gmra.mxu0 %v264_v16  ;;  %v9446_v19 = vld [vmem:[%s20245_s3 + $0x90] sm:$0xf] }
  0xa4   :  { %610 = vmatmul.bf16.gmra.mxu1 %v265_v18  ;;  %699 = vmatmul.bf16.gmra.mxu2 %v264_v16  ;;  %v9447_v25 = vor.u32 %v12340_v22, %v9446_v19  ;;  %v239_v22 = vld [vmem:[%s20246_s0 + $0x1b8] sm:$0xff] }
  0xa5   :  { %788 = vmatmul.bf16.gmra.mxu3 %v265_v18  ;;  %v12324_v18 = vld [vmem:[%s20245_s3 + $0x14] sm:$0xf0] }
  0xa6   :  { %v9383_v21 = vor.u32 %v12324_v18, %v9382_v17  ;;  %1084 = vmatpush.bf16.msrb.mxu1 %v9447_v25  ;;  %v236_v17 = vld [vmem:[%s20246_s0 + $0x1a0] sm:$0xff]  ;;  %v238_v18 = vld [vmem:[%s20246_s0 + $0x1b0] sm:$0xff] }
  0xa7   :  { %v660_v26 = vpop.f32.mrf.mxu2 }
  0xa8   :  { %v749_v28 = vpop.f32.mrf.mxu3  ;;  %v484_v29 = vpop.f32.mrf.mxu0  ;;  %995 = vmatpush.bf16.msrb.mxu0 %v9383_v21  ;;  %v237_v21 = vld [vmem:[%s20246_s0 + $0x1a8] sm:$0xff] }
  0xa9   :  { %v13506_v30 = vadd.f32 %v749_v28, %v660_v26  ;;  %v573_v31 = vpop.f32.mrf.mxu1  ;;  %v229_v26 = vld [vmem:[%s20246_s0 + $0x168] sm:$0xff] }
  0xaa   :  { %v13508_v32 = vadd.f32 %v573_v31, %v484_v29  ;;  %v270_v29 = vpack.c.bf16 %v230_v24, %v228_v23  ;;  %v271_v34 = vpack.c.bf16 %v231_v27, %v229_v26  ;;  %v274_v24 = vpack.c.bf16 %v238_v18, %v236_v17  ;;  %v9654_v17 = vld [vmem:[%s20245_s3 + $0x2f0] sm:$0xf] }
  0xab   :  { %v275_v27 = vpack.c.bf16 %v239_v22, %v237_v21  ;;  %v244_v21 = vld [vmem:[%s20246_s0 + $0x1e0] sm:$0xff]  ;;  %v246_v22 = vld [vmem:[%s20246_s0 + $0x1f0] sm:$0xff] }
  0xaf   :  { %v662_v43 = vpop.f32.mrf.mxu2 }
  0xb0   :  { %v751_v45 = vpop.f32.mrf.mxu3  ;;  %v487_v46 = vpop.f32.mrf.mxu0 }
  0xb1   :  { %v13534_v48 = vadd.f32 %v751_v45, %v662_v43  ;;  %v576_v49 = vpop.f32.mrf.mxu1  ;;  %v234_v45 = vld [vmem:[%s20246_s0 + $0x190] sm:$0xff] }
  0xb2   :  { %v13536_v50 = vadd.f32 %v576_v49, %v487_v46  ;;  %v233_v46 = vld [vmem:[%s20246_s0 + $0x188] sm:$0xff] }
  0xb3   :  { %526 = vmatmul.bf16.gmra.mxu0 %v266_v44 }
  0xb4   :  { %615 = vmatmul.bf16.gmra.mxu1 %v267_v47  ;;  %704 = vmatmul.bf16.gmra.mxu2 %v266_v44  ;;  %v232_v44 = vld [vmem:[%s20246_s0 + $0x180] sm:$0xff] }
  0xb5   :  { %793 = vmatmul.bf16.gmra.mxu3 %v267_v47  ;;  %v235_v47 = vld [vmem:[%s20246_s0 + $0x198] sm:$0xff] }
  0xb7   :  { %v665_v51 = vpop.f32.mrf.mxu2 }
  0xb8   :  { %v754_v52 = vpop.f32.mrf.mxu3  ;;  %v489_v53 = vpop.f32.mrf.mxu0 }
  0xb9   :  { %v13538_v54 = vadd.f32 %v754_v52, %v665_v51  ;;  %v578_v55 = vpop.f32.mrf.mxu1  ;;  %v272_v51 = vpack.c.bf16 %v234_v45, %v232_v44  ;;  %v242_v44 = vld [vmem:[%s20246_s0 + $0x1d0] sm:$0xff]  ;;  %v241_v45 = vld [vmem:[%s20246_s0 + $0x1c8] sm:$0xff] }
  0xba   :  { %v13540_v56 = vadd.f32 %v578_v55, %v489_v53  ;;  %v273_v55 = vpack.c.bf16 %v235_v47, %v233_v46  ;;  %v243_v46 = vld [vmem:[%s20246_s0 + $0x1d8] sm:$0xff] }
  0xbf   :  { %v667_v61 = vpop.f32.mrf.mxu2 }
  0xc0   :  { %v756_v63 = vpop.f32.mrf.mxu3  ;;  %v492_v0 = vpop.f32.mrf.mxu0 }
  0xc1   :  { %v13554_v2 = vadd.f32 %v756_v63, %v667_v61  ;;  %v581_v3 = vpop.f32.mrf.mxu1  ;;  %v9376_v61 = vld [vmem:[%s20245_s3 + $0x8] sm:$0xf0] }
  0xc2   :  { %v13556_v4 = vadd.f32 %v581_v3, %v492_v0  ;;  %v9379_v63 = vor.u32 %v12321_v60, %v9376_v61  ;;  %v9440_v0 = vld [vmem:[%s20245_s3 + $0x88] sm:$0xf0]  ;;  %v12399_v61 = vld [vmem:[%s20245_s3 + $0x274] sm:$0xf] }
  0xc3   :  { %531 = vmatmul.bf16.gmra.mxu0 %v268_v62 }
  0xc4   :  { %620 = vmatmul.bf16.gmra.mxu1 %v269_v1  ;;  %709 = vmatmul.bf16.gmra.mxu2 %v268_v62  ;;  %v12337_v62 = vld [vmem:[%s20245_s3 + $0x84] sm:$0xf] }
  0xc5   :  { %798 = vmatmul.bf16.gmra.mxu3 %v269_v1  ;;  %v9443_v3 = vor.u32 %v12337_v62, %v9440_v0  ;;  %1174 = vmatpush.bf16.msrb.mxu2 %v9379_v63  ;;  %v9592_v62 = vld [vmem:[%s20245_s3 + $0x278] sm:$0xf0]  ;;  %v12415_v63 = vld [vmem:[%s20245_s3 + $0x2f4] sm:$0xf] }
  0xc6   :  { %v9595_v0 = vor.u32 %v12399_v61, %v9592_v62  ;;  %v59_v61 = vld [vmem:[%s20247_s1 + $0x18] sm:$0xff] }
  0xc7   :  { %v670_v10 = vpop.f32.mrf.mxu2  ;;  %1263 = vmatpush.bf16.msrb.mxu3 %v9443_v3 }
  0xc8   :  { %v759_v12 = vpop.f32.mrf.mxu3  ;;  %v494_v13 = vpop.f32.mrf.mxu0 }
  0xc9   :  { %v13570_v14 = vadd.f32 %v759_v12, %v670_v10  ;;  %v583_v15 = vpop.f32.mrf.mxu1  ;;  %v9374_v10 = vld [vmem:[%s20245_s3] sm:$0xf]  ;;  %1812 = vmatpush.bf16.msra.mxu2 %v9595_v0 }
  0xca   :  { %v13572_v16 = vadd.f32 %v583_v15, %v494_v13  ;;  %v9438_v12 = vld [vmem:[%s20245_s3 + $0x80] sm:$0xf]  ;;  %v9375_v13 = vor.u32 %v12322_v11, %v9374_v10  ;;  %v12338_v15 = vld [vmem:[%s20245_s3 + $0x84] sm:$0xf0] }
  0xcb   :  { %v9439_v19 = vor.u32 %v12338_v15, %v9438_v12  ;;  %v12400_v15 = vld [vmem:[%s20245_s3 + $0x274] sm:$0xf0] }
  0xcc   :  { %996 = vmatpush.bf16.msrb.mxu0 %v9375_v13  ;;  %v9590_v13 = vld [vmem:[%s20245_s3 + $0x270] sm:$0xf] }
  0xcd   :  { %1085 = vmatpush.bf16.msrb.mxu1 %v9439_v19  ;;  %v9591_v18 = vor.u32 %v12400_v15, %v9590_v13  ;;  %v12416_v19 = vld [vmem:[%s20245_s3 + $0x2f4] sm:$0xf0]  ;;  %v9584_v13 = vld [vmem:[%s20245_s3 + $0x268] sm:$0xf0]  ;;  %v12413_v15 = vld [vmem:[%s20245_s3 + $0x2e4] sm:$0xf] }
  0xcf   :  { %v672_v28 = vpop.f32.mrf.mxu2 }
  0xd0   :  { %v761_v31 = vpop.f32.mrf.mxu3  ;;  %v497_v33 = vpop.f32.mrf.mxu0  ;;  %1634 = vmatpush.bf16.msra.mxu0 %v9591_v18  ;;  %v9648_v18 = vld [vmem:[%s20245_s3 + $0x2e8] sm:$0xf0] }
  0xd1   :  { %v13598_v35 = vadd.f32 %v761_v31, %v672_v28  ;;  %v586_v36 = vpop.f32.mrf.mxu1 }
  0xd2   :  { %v13600_v37 = vadd.f32 %v586_v36, %v497_v33 }
  0xd3   :  { %536 = vmatmul.bf16.gmra.mxu0 %v270_v29 }
  0xd4   :  { %625 = vmatmul.bf16.gmra.mxu1 %v271_v34  ;;  %714 = vmatmul.bf16.gmra.mxu2 %v270_v29 }
  0xd5   :  { %803 = vmatmul.bf16.gmra.mxu3 %v271_v34 }
  0xd7   :  { %v675_v38 = vpop.f32.mrf.mxu2 }
  0xd8   :  { %v764_v39 = vpop.f32.mrf.mxu3  ;;  %v499_v40 = vpop.f32.mrf.mxu0 }
  0xd9   :  { %v13602_v41 = vadd.f32 %v764_v39, %v675_v38  ;;  %v588_v42 = vpop.f32.mrf.mxu1 }
  0xda   :  { %v13604_v43 = vadd.f32 %v588_v42, %v499_v40  ;;  %v240_v42 = vld [vmem:[%s20246_s0 + $0x1c0] sm:$0xff] }
  0xdf   :  { %v677_v49 = vpop.f32.mrf.mxu2 }
  0xe0   :  { %v766_v52 = vpop.f32.mrf.mxu3  ;;  %v502_v53 = vpop.f32.mrf.mxu0 }
  0xe1   :  { %v13618_v57 = vadd.f32 %v766_v52, %v677_v49  ;;  %v591_v58 = vpop.f32.mrf.mxu1  ;;  %v276_v49 = vpack.c.bf16 %v242_v44, %v240_v42 }
  0xe2   :  { %v13620_v59 = vadd.f32 %v591_v58, %v502_v53  ;;  %v277_v53 = vpack.c.bf16 %v243_v46, %v241_v45 }
  0xe3   :  { %541 = vmatmul.bf16.gmra.mxu0 %v272_v51 }
  0xe4   :  { %630 = vmatmul.bf16.gmra.mxu1 %v273_v55  ;;  %719 = vmatmul.bf16.gmra.mxu2 %v272_v51 }
  0xe5   :  { %808 = vmatmul.bf16.gmra.mxu3 %v273_v55 }
  0xe7   :  { %v680_v1 = vpop.f32.mrf.mxu2 }
  0xe8   :  { %v769_v5 = vpop.f32.mrf.mxu3  ;;  %v504_v6 = vpop.f32.mrf.mxu0 }
  0xe9   :  { %v13634_v7 = vadd.f32 %v769_v5, %v680_v1  ;;  %v593_v8 = vpop.f32.mrf.mxu1  ;;  %v9656_v1 = vld [vmem:[%s20245_s3 + $0x2f8] sm:$0xf0] }
  0xea   :  { %v13636_v9 = vadd.f32 %v593_v8, %v504_v6  ;;  %v9659_v5 = vor.u32 %v12415_v63, %v9656_v1 }
  0xec   :  { %1901 = vmatpush.bf16.msra.mxu3 %v9659_v5 }
  0xef   :  { %v682_v23 = vpop.f32.mrf.mxu2 }
  0xf0   :  { %v771_v25 = vpop.f32.mrf.mxu3  ;;  %v507_v26 = vpop.f32.mrf.mxu0 }
  0xf1   :  { %v13662_v28 = vadd.f32 %v771_v25, %v682_v23  ;;  %v596_v29 = vpop.f32.mrf.mxu1  ;;  %v9655_v23 = vor.u32 %v12416_v19, %v9654_v17  ;;  %v247_v25 = vld [vmem:[%s20246_s0 + $0x1f8] sm:$0xff] }
  0xf2   :  { %v13664_v31 = vadd.f32 %v596_v29, %v507_v26 }
  0xf3   :  { %546 = vmatmul.bf16.gmra.mxu0 %v274_v24  ;;  %1723 = vmatpush.bf16.msra.mxu1 %v9655_v23 }
  0xf4   :  { %635 = vmatmul.bf16.gmra.mxu1 %v275_v27  ;;  %724 = vmatmul.bf16.gmra.mxu2 %v274_v24  ;;  %v245_v24 = vld [vmem:[%s20246_s0 + $0x1e8] sm:$0xff] }
  0xf5   :  { %813 = vmatmul.bf16.gmra.mxu3 %v275_v27  ;;  %v278_v27 = vpack.c.bf16 %v246_v22, %v244_v21  ;;  %v9651_v21 = vor.u32 %v12413_v15, %v9648_v18 }
  0xf7   :  { %v685_v33 = vpop.f32.mrf.mxu2  ;;  %1902 = vmatpush.bf16.msra.mxu3 %v9651_v21  ;;  %v13810_v21 = vld [vmem:[%s20247_s1 + $0x40] sm:$0xff] }
  0xf8   :  { %v774_v34 = vpop.f32.mrf.mxu3  ;;  %v509_v36 = vpop.f32.mrf.mxu0 }
  0xf9   :  { %v13666_v38 = vadd.f32 %v774_v34, %v685_v33  ;;  %v598_v39 = vpop.f32.mrf.mxu1  ;;  %v279_v34 = vpack.c.bf16 %v247_v25, %v245_v24 }
  0xfa   :  { %v13668_v40 = vadd.f32 %v598_v39, %v509_v36 }
  0xff   :  { %v687_v47 = vpop.f32.mrf.mxu2 }
 0x100   :  { %v776_v51 = vpop.f32.mrf.mxu3  ;;  %v512_v52 = vpop.f32.mrf.mxu0 }
 0x101   :  { %v13682_v55 = vadd.f32 %v776_v51, %v687_v47  ;;  %v601_v58 = vpop.f32.mrf.mxu1 }
 0x102   :  { %v13684_v60 = vadd.f32 %v601_v58, %v512_v52  ;;  %v56_v52 = vld [vmem:[%s20247_s1] sm:$0xff]  ;;  %v57_v58 = vld [vmem:[%s20247_s1 + $0x8] sm:$0xff] }
 0x103   :  { %551 = vmatmul.bf16.gmra.mxu0 %v276_v49 }
 0x104   :  { %640 = vmatmul.bf16.gmra.mxu1 %v277_v53  ;;  %729 = vmatmul.bf16.gmra.mxu2 %v276_v49 }
 0x105   :  { %818 = vmatmul.bf16.gmra.mxu3 %v277_v53  ;;  %v13740_v53 = vld [vmem:[%s20247_s1 + $0x10] sm:$0xff] }
 0x106   :  { %v120_v63 = vpack.c.bf16 %v13740_v53, %v56_v52  ;;  %v63_v52 = vld [vmem:[%s20247_s1 + $0x38] sm:$0xff] }
 0x107   :  { %v690_v3 = vpop.f32.mrf.mxu2 }
 0x108   :  { %v779_v6 = vpop.f32.mrf.mxu3  ;;  %v514_v8 = vpop.f32.mrf.mxu0 }
 0x109   :  { %v13698_v10 = vadd.f32 %v779_v6, %v690_v3  ;;  %v603_v11 = vpop.f32.mrf.mxu1  ;;  %v121_v3 = vpack.c.bf16 %v59_v61, %v57_v58 }
 0x10a   :  { %v13700_v12 = vadd.f32 %v603_v11, %v514_v8  ;;  %v12397_v11 = vld [vmem:[%s20245_s3 + $0x264] sm:$0xf] }
 0x10b   :  { %v9587_v17 = vor.u32 %v12397_v11, %v9584_v13 }
 0x10d   :  { %1813 = vmatpush.bf16.msra.mxu2 %v9587_v17 }
 0x10f   :  { %v692_v26 = vpop.f32.mrf.mxu2 }
 0x110   :  { %v781_v29 = vpop.f32.mrf.mxu3  ;;  %v517_v33 = vpop.f32.mrf.mxu0 }
 0x111   :  { %v13726_v36 = vadd.f32 %v781_v29, %v692_v26  ;;  %v606_v39 = vpop.f32.mrf.mxu1  ;;  %v12398_v29 = vld [vmem:[%s20245_s3 + $0x264] sm:$0xf0] }
 0x112   :  { %v13728_v42 = vadd.f32 %v606_v39, %v517_v33  ;;  %v9646_v33 = vld [vmem:[%s20245_s3 + $0x2e0] sm:$0xf]  ;;  %v12414_v39 = vld [vmem:[%s20245_s3 + $0x2e4] sm:$0xf0] }
 0x113   :  { %556 = vmatmul.bf16.gmra.mxu0 %v278_v27 }
 0x114   :  { %645 = vmatmul.bf16.gmra.mxu1 %v279_v34  ;;  %734 = vmatmul.bf16.gmra.mxu2 %v278_v27  ;;  %v9582_v27 = vld [vmem:[%s20245_s3 + $0x260] sm:$0xf] }
 0x115   :  { %823 = vmatmul.bf16.gmra.mxu3 %v279_v34  ;;  %v9583_v34 = vor.u32 %v12398_v29, %v9582_v27 }
 0x117   :  { %v695_v44 = vpop.f32.mrf.mxu2  ;;  %1635 = vmatpush.bf16.msra.mxu0 %v9583_v34 }
 0x118   :  { %v784_v45 = vpop.f32.mrf.mxu3  ;;  %v519_v46 = vpop.f32.mrf.mxu0 }
 0x119   :  { %v13730_v47 = vadd.f32 %v784_v45, %v695_v44  ;;  %v608_v49 = vpop.f32.mrf.mxu1  ;;  %v13784_v44 = vld [vmem:[%s20247_s1 + $0x20] sm:$0xff]  ;;  %v62_v45 = vld [vmem:[%s20247_s1 + $0x30] sm:$0xff] }
 0x11a   :  { %v13732_v51 = vadd.f32 %v608_v49, %v519_v46  ;;  %v9647_v46 = vor.u32 %v12414_v39, %v9646_v33  ;;  %v13792_v49 = vld [vmem:[%s20247_s1 + $0x28] sm:$0xff]  ;;  %v122_v61 = vpack.c.bf16 %v62_v45, %v13784_v44 }
 0x11c   :  { %1724 = vmatpush.bf16.msra.mxu1 %v9647_v46 }
 0x11f   :  { %v697_v62 = vpop.f32.mrf.mxu2 }
 0x120   :  { %v786_v0 = vpop.f32.mrf.mxu3  ;;  %v522_v1 = vpop.f32.mrf.mxu0 }
 0x121   :  { %v13749_v5 = vadd.f32 %v786_v0, %v697_v62  ;;  %v611_v6 = vpop.f32.mrf.mxu1  ;;  %v123_v0 = vpack.c.bf16 %v63_v52, %v13792_v49 }
 0x122   :  { %v13751_v8 = vadd.f32 %v611_v6, %v522_v1 }
 0x123   :  { %997 = vmatmul.bf16.vlgmr.msrb.gmra.mxu0 %v120_v63 }
 0x124   :  { %1086 = vmatmul.bf16.vlgmr.msrb.gmra.mxu1 %v121_v3  ;;  %1175 = vmatmul.bf16.vlgmr.msrb.gmra.mxu2 %v120_v63 }
 0x125   :  { %1264 = vmatmul.bf16.vlgmr.msrb.gmra.mxu3 %v121_v3 }
 0x127   :  { %v700_v19 = vpop.f32.mrf.mxu2 }
 0x128   :  { %v789_v22 = vpop.f32.mrf.mxu3  ;;  %v524_v23 = vpop.f32.mrf.mxu0 }
 0x129   :  { %v13765_v24 = vadd.f32 %v789_v22, %v700_v19  ;;  %v613_v25 = vpop.f32.mrf.mxu1  ;;  %v66_v22 = vld [vmem:[%s20247_s1 + $0x50] sm:$0xff] }
 0x12a   :  { %v13767_v26 = vadd.f32 %v613_v25, %v524_v23  ;;  %v13818_v23 = vld [vmem:[%s20247_s1 + $0x48] sm:$0xff]  ;;  %v67_v25 = vld [vmem:[%s20247_s1 + $0x58] sm:$0xff]  ;;  %v124_v29 = vpack.c.bf16 %v66_v22, %v13810_v21 }
 0x12b   :  { %v125_v39 = vpack.c.bf16 %v67_v25, %v13818_v23 }
 0x12f   :  { %v702_v58 = vpop.f32.mrf.mxu2 }
 0x130   :  { %v791_v62 = vpop.f32.mrf.mxu3  ;;  %v527_v63 = vpop.f32.mrf.mxu0 }
 0x131   :  { %v13799_v1 = vadd.f32 %v791_v62, %v702_v58  ;;  %v616_v3 = vpop.f32.mrf.mxu1  ;;  %v12395_v58 = vld [vmem:[%s20245_s3 + $0x254] sm:$0xf] }
 0x132   :  { %v13801_v6 = vadd.f32 %v616_v3, %v527_v63  ;;  %v12411_v62 = vld [vmem:[%s20245_s3 + $0x2d4] sm:$0xf] }
 0x133   :  { %1002 = vmatmul.bf16.gmra.mxu0 %v122_v61 }
 0x134   :  { %1091 = vmatmul.bf16.gmra.mxu1 %v123_v0  ;;  %1180 = vmatmul.bf16.gmra.mxu2 %v122_v61  ;;  %v9576_v61 = vld [vmem:[%s20245_s3 + $0x258] sm:$0xf0] }
 0x135   :  { %1269 = vmatmul.bf16.gmra.mxu3 %v123_v0  ;;  %v9579_v63 = vor.u32 %v12395_v58, %v9576_v61  ;;  %v9640_v0 = vld [vmem:[%s20245_s3 + $0x2d8] sm:$0xf0]  ;;  %v70_v58 = vld [vmem:[%s20247_s1 + $0x70] sm:$0xff] }
 0x137   :  { %v705_v11 = vpop.f32.mrf.mxu2  ;;  %1814 = vmatpush.bf16.msra.mxu2 %v9579_v63  ;;  %v71_v63 = vld [vmem:[%s20247_s1 + $0x78] sm:$0xff] }
 0x138   :  { %v794_v13 = vpop.f32.mrf.mxu3  ;;  %v529_v15 = vpop.f32.mrf.mxu0 }
 0x139   :  { %v13803_v17 = vadd.f32 %v794_v13, %v705_v11  ;;  %v618_v18 = vpop.f32.mrf.mxu1  ;;  %v9643_v11 = vor.u32 %v12411_v62, %v9640_v0  ;;  %v13868_v62 = vld [vmem:[%s20247_s1 + $0x68] sm:$0xff] }
 0x13a   :  { %v13805_v19 = vadd.f32 %v618_v18, %v529_v15 }
 0x13b   :  { %1903 = vmatpush.bf16.msra.mxu3 %v9643_v11 }
 0x13f   :  { %v707_v27 = vpop.f32.mrf.mxu2 }
 0x140   :  { %v796_v33 = vpop.f32.mrf.mxu3  ;;  %v532_v34 = vpop.f32.mrf.mxu0 }
 0x141   :  { %v13825_v45 = vadd.f32 %v796_v33, %v707_v27  ;;  %v621_v46 = vpop.f32.mrf.mxu1  ;;  %v9574_v27 = vld [vmem:[%s20245_s3 + $0x250] sm:$0xf] }
 0x142   :  { %v13827_v52 = vadd.f32 %v621_v46, %v532_v34  ;;  %v9638_v33 = vld [vmem:[%s20245_s3 + $0x2d0] sm:$0xf]  ;;  %v13860_v46 = vld [vmem:[%s20247_s1 + $0x60] sm:$0xff] }
 0x143   :  { %1007 = vmatmul.bf16.gmra.mxu0 %v124_v29 }
 0x144   :  { %20286 = vst [vmem:[#allocation9_spill] sm:$0xff] %v13827_v52  ;;  %1096 = vmatmul.bf16.gmra.mxu1 %v125_v39  ;;  %1185 = vmatmul.bf16.gmra.mxu2 %v124_v29  ;;  %v12396_v29 = vld [vmem:[%s20245_s3 + $0x254] sm:$0xf0] }
 0x145   :  { %1274 = vmatmul.bf16.gmra.mxu3 %v125_v39  ;;  %v9575_v34 = vor.u32 %v12396_v29, %v9574_v27  ;;  %v12412_v39 = vld [vmem:[%s20245_s3 + $0x2d4] sm:$0xf0] }
 0x146   :  { %v9639_v61 = vor.u32 %v12412_v39, %v9638_v33 }
 0x147   :  { %v710_v3 = vpop.f32.mrf.mxu2  ;;  %1636 = vmatpush.bf16.msra.mxu0 %v9575_v34 }
 0x148   :  { %v799_v13 = vpop.f32.mrf.mxu3  ;;  %v534_v15 = vpop.f32.mrf.mxu0  ;;  %1725 = vmatpush.bf16.msra.mxu1 %v9639_v61 }
 0x149   :  { %v13841_v18 = vadd.f32 %v799_v13, %v710_v3  ;;  %v623_v22 = vpop.f32.mrf.mxu1  ;;  %v126_v3 = vpack.c.bf16 %v70_v58, %v13860_v46 }
 0x14a   :  { %v13843_v25 = vadd.f32 %v623_v22, %v534_v15  ;;  %v127_v15 = vpack.c.bf16 %v71_v63, %v13868_v62  ;;  %v13886_v63 = vld [vmem:[%s20247_s1 + $0x80] sm:$0xff] }
 0x14b   :  { %20287 = vst [vmem:[#allocation10_spill] sm:$0xff] %v13841_v18 }
 0x14c   :  { %20288 = vst [vmem:[#allocation11_spill] sm:$0xff] %v13843_v25 }
 0x14d   :  { %20293 = vst [vmem:[#allocation16_spill] sm:$0xff] %v13886_v63 }
 0x14f   :  { %v712_v0 = vpop.f32.mrf.mxu2 }
 0x150   :  { %v801_v11 = vpop.f32.mrf.mxu3  ;;  %v537_v13 = vpop.f32.mrf.mxu0 }
 0x151   :  { %v13875_v22 = vadd.f32 %v801_v11, %v712_v0  ;;  %v626_v27 = vpop.f32.mrf.mxu1  ;;  %v74_v0 = vld [vmem:[%s20247_s1 + $0x90] sm:$0xff]  ;;  %v75_v11 = vld [vmem:[%s20247_s1 + $0x98] sm:$0xff] }
 0x152   :  { %v13877_v29 = vadd.f32 %v626_v27, %v537_v13  ;;  %v128_v13 = vpack.c.bf16 %v74_v0, %v13886_v63  ;;  %v9568_v0 = vld [vmem:[%s20245_s3 + $0x248] sm:$0xf0] }
 0x153   :  { %20289 = vst [vmem:[#allocation12_spill] sm:$0xff] %v13875_v22  ;;  %1012 = vmatmul.bf16.gmra.mxu0 %v126_v3 }
 0x154   :  { %20290 = vst [vmem:[#allocation13_spill] sm:$0xff] %v13877_v29  ;;  %1101 = vmatmul.bf16.gmra.mxu1 %v127_v15  ;;  %1190 = vmatmul.bf16.gmra.mxu2 %v126_v3  ;;  %v13894_v3 = vld [vmem:[%s20247_s1 + $0x88] sm:$0xff] }
 0x155   :  { %1279 = vmatmul.bf16.gmra.mxu3 %v127_v15  ;;  %20294 = vst [vmem:[#allocation17_spill] sm:$0xff] %v13894_v3 }
 0x157   :  { %v715_v33 = vpop.f32.mrf.mxu2 }
 0x158   :  { %v804_v39 = vpop.f32.mrf.mxu3  ;;  %v539_v34 = vpop.f32.mrf.mxu0 }
 0x159   :  { %v13879_v61 = vadd.f32 %v804_v39, %v715_v33  ;;  %v628_v25 = vpop.f32.mrf.mxu1  ;;  %v129_v33 = vpack.c.bf16 %v75_v11, %v13894_v3  ;;  %v12409_v11 = vld [vmem:[%s20245_s3 + $0x2c4] sm:$0xf]  ;;  %v9566_v3 = vld [vmem:[%s20245_s3 + $0x240] sm:$0xf] }
 0x15a   :  { %v13881_v58 = vadd.f32 %v628_v25, %v539_v34 }
 0x15b   :  { %20291 = vst [vmem:[#allocation14_spill] sm:$0xff] %v13879_v61  ;;  %v12393_v61 = vld [vmem:[%s20245_s3 + $0x244] sm:$0xf] }
 0x15c   :  { %20292 = vst [vmem:[#allocation15_spill] sm:$0xff] %v13881_v58 }
 0x15f   :  { %v717_v25 = vpop.f32.mrf.mxu2 }
 0x160   :  { %v806_v15 = vpop.f32.mrf.mxu3  ;;  %v542_v27 = vpop.f32.mrf.mxu0 }
 0x161   :  { %v13901_v39 = vadd.f32 %v806_v15, %v717_v25  ;;  %v631_v34 = vpop.f32.mrf.mxu1  ;;  %v9571_v25 = vor.u32 %v12393_v61, %v9568_v0  ;;  %v9632_v15 = vld [vmem:[%s20245_s3 + $0x2c8] sm:$0xf0]  ;;  %v12394_v61 = vld [vmem:[%s20245_s3 + $0x244] sm:$0xf0]  ;;  %v9630_v0 = vld [vmem:[%s20245_s3 + $0x2c0] sm:$0xf] }
 0x162   :  { %v13903_v58 = vadd.f32 %v631_v34, %v542_v27 }
 0x163   :  { %20295 = vst [vmem:[#allocation18_spill] sm:$0xff] %v13901_v39  ;;  %1017 = vmatmul.bf16.gmra.mxu0 %v128_v13  ;;  %1815 = vmatpush.bf16.msra.mxu2 %v9571_v25  ;;  %v12410_v25 = vld [vmem:[%s20245_s3 + $0x2c4] sm:$0xf0] }
 0x164   :  { %20296 = vst [vmem:[#allocation19_spill] sm:$0xff] %v13903_v58  ;;  %1106 = vmatmul.bf16.gmra.mxu1 %v129_v33  ;;  %1195 = vmatmul.bf16.gmra.mxu2 %v128_v13  ;;  %v9635_v13 = vor.u32 %v12409_v11, %v9632_v15  ;;  %v9567_v11 = vor.u32 %v12394_v61, %v9566_v3  ;;  %v78_v15 = vld [vmem:[%s20247_s1 + $0xb0] sm:$0xff]  ;;  %v79_v3 = vld [vmem:[%s20247_s1 + $0xb8] sm:$0xff] }
 0x165   :  { %1284 = vmatmul.bf16.gmra.mxu3 %v129_v33 }
 0x166   :  { %1904 = vmatpush.bf16.msra.mxu3 %v9635_v13  ;;  %v13944_v13 = vld [vmem:[%s20247_s1 + $0xa8] sm:$0xff]  ;;  %1637 = vmatpush.bf16.msra.mxu0 %v9567_v11 }
 0x167   :  { %v720_v27 = vpop.f32.mrf.mxu2  ;;  %20300 = vst [vmem:[#allocation23_spill] sm:$0xff] %v13944_v13 }
 0x168   :  { %v809_v33 = vpop.f32.mrf.mxu3  ;;  %v544_v34 = vpop.f32.mrf.mxu0 }
 0x169   :  { %v13917_v58 = vadd.f32 %v809_v33, %v720_v27  ;;  %v633_v39 = vpop.f32.mrf.mxu1  ;;  %v9631_v27 = vor.u32 %v12410_v25, %v9630_v0 }
 0x16a   :  { %v13919_v29 = vadd.f32 %v633_v39, %v544_v34  ;;  %v13936_v39 = vld [vmem:[%s20247_s1 + $0xa0] sm:$0xff] }
 0x16b   :  { %20297 = vst [vmem:[#allocation20_spill] sm:$0xff] %v13917_v58  ;;  %1726 = vmatpush.bf16.msra.mxu1 %v9631_v27  ;;  %v130_v34 = vpack.c.bf16 %v78_v15, %v13936_v39  ;;  %v131_v58 = vpack.c.bf16 %v79_v3, %v13944_v13  ;;  %v13962_v3 = vld [vmem:[%s20247_s1 + $0xc0] sm:$0xff] }
 0x16c   :  { %20298 = vst [vmem:[#allocation21_spill] sm:$0xff] %v13919_v29 }
 0x16d   :  { %20299 = vst [vmem:[#allocation22_spill] sm:$0xff] %v13936_v39 }
 0x16e   :  { %20305 = vst [vmem:[#allocation28_spill] sm:$0xff] %v13962_v3 }
 0x16f   :  { %v722_v33 = vpop.f32.mrf.mxu2 }
 0x170   :  { %v811_v61 = vpop.f32.mrf.mxu3  ;;  %v547_v29 = vpop.f32.mrf.mxu0 }
 0x171   :  { %v13951_v22 = vadd.f32 %v811_v61, %v722_v33  ;;  %v636_v0 = vpop.f32.mrf.mxu1 }
 0x172   :  { %v13953_v25 = vadd.f32 %v636_v0, %v547_v29  ;;  %v82_v29 = vld [vmem:[%s20247_s1 + $0xd0] sm:$0xff] }
 0x173   :  { %20301 = vst [vmem:[#allocation24_spill] sm:$0xff] %v13951_v22  ;;  %1022 = vmatmul.bf16.gmra.mxu0 %v130_v34 }
 0x174   :  { %20302 = vst [vmem:[#allocation25_spill] sm:$0xff] %v13953_v25  ;;  %1111 = vmatmul.bf16.gmra.mxu1 %v131_v58  ;;  %1200 = vmatmul.bf16.gmra.mxu2 %v130_v34 }
 0x175   :  { %1289 = vmatmul.bf16.gmra.mxu3 %v131_v58  ;;  %v13970_v58 = vld [vmem:[%s20247_s1 + $0xc8] sm:$0xff] }
 0x176   :  { %20306 = vst [vmem:[#allocation29_spill] sm:$0xff] %v13970_v58 }
 0x177   :  { %v725_v63 = vpop.f32.mrf.mxu2 }
 0x178   :  { %v814_v18 = vpop.f32.mrf.mxu3  ;;  %v549_v11 = vpop.f32.mrf.mxu0 }
 0x179   :  { %v13955_v27 = vadd.f32 %v814_v18, %v725_v63  ;;  %v638_v52 = vpop.f32.mrf.mxu1  ;;  %v83_v18 = vld [vmem:[%s20247_s1 + $0xd8] sm:$0xff]  ;;  %v132_v63 = vpack.c.bf16 %v82_v29, %v13962_v3 }
 0x17a   :  { %v13957_v15 = vadd.f32 %v638_v52, %v549_v11  ;;  %v133_v61 = vpack.c.bf16 %v83_v18, %v13970_v58  ;;  %v9560_v29 = vld [vmem:[%s20245_s3 + $0x238] sm:$0xf0]  ;;  %v12407_v18 = vld [vmem:[%s20245_s3 + $0x2b4] sm:$0xf]  ;;  %v9558_v58 = vld [vmem:[%s20245_s3 + $0x230] sm:$0xf] }
 0x17b   :  { %20303 = vst [vmem:[#allocation26_spill] sm:$0xff] %v13955_v27  ;;  %v12391_v27 = vld [vmem:[%s20245_s3 + $0x234] sm:$0xf] }
 0x17c   :  { %20304 = vst [vmem:[#allocation27_spill] sm:$0xff] %v13957_v15 }
 0x17f   :  { %v727_v52 = vpop.f32.mrf.mxu2 }
 0x180   :  { %v816_v33 = vpop.f32.mrf.mxu3  ;;  %v552_v34 = vpop.f32.mrf.mxu0 }
 0x181   :  { %v13977_v0 = vadd.f32 %v816_v33, %v727_v52  ;;  %v641_v11 = vpop.f32.mrf.mxu1  ;;  %v9563_v52 = vor.u32 %v12391_v27, %v9560_v29  ;;  %v9624_v33 = vld [vmem:[%s20245_s3 + $0x2b8] sm:$0xf0]  ;;  %v12392_v27 = vld [vmem:[%s20245_s3 + $0x234] sm:$0xf0]  ;;  %v9622_v29 = vld [vmem:[%s20245_s3 + $0x2b0] sm:$0xf] }
 0x182   :  { %v13979_v15 = vadd.f32 %v641_v11, %v552_v34 }
 0x183   :  { %20307 = vst [vmem:[#allocation30_spill] sm:$0xff] %v13977_v0  ;;  %1027 = vmatmul.bf16.gmra.mxu0 %v132_v63  ;;  %1816 = vmatpush.bf16.msra.mxu2 %v9563_v52  ;;  %v9559_v52 = vor.u32 %v12392_v27, %v9558_v58 }
 0x184   :  { %20308 = vst [vmem:[#allocation31_spill] sm:$0xff] %v13979_v15  ;;  %1116 = vmatmul.bf16.gmra.mxu1 %v133_v61  ;;  %1205 = vmatmul.bf16.gmra.mxu2 %v132_v63  ;;  %v9627_v63 = vor.u32 %v12407_v18, %v9624_v33  ;;  %v14009_v18 = vld [vmem:[%s20247_s1 + $0xe0] sm:$0xff]  ;;  %v12408_v33 = vld [vmem:[%s20245_s3 + $0x2b4] sm:$0xf0] }
 0x185   :  { %1294 = vmatmul.bf16.gmra.mxu3 %v133_v61  ;;  %1638 = vmatpush.bf16.msra.mxu0 %v9559_v52 }
 0x186   :  { %1905 = vmatpush.bf16.msra.mxu3 %v9627_v63  ;;  %v87_v63 = vld [vmem:[%s20247_s1 + $0xf8] sm:$0xff] }
 0x187   :  { %v730_v34 = vpop.f32.mrf.mxu2 }
 0x188   :  { %v819_v61 = vpop.f32.mrf.mxu3  ;;  %v554_v11 = vpop.f32.mrf.mxu0 }
 0x189   :  { %v13993_v15 = vadd.f32 %v819_v61, %v730_v34  ;;  %v643_v0 = vpop.f32.mrf.mxu1  ;;  %v14020_v34 = vld [vmem:[%s20247_s1 + $0xe8] sm:$0xff]  ;;  %v9623_v61 = vor.u32 %v12408_v33, %v9622_v29 }
 0x18a   :  { %v13995_v25 = vadd.f32 %v643_v0, %v554_v11  ;;  %v86_v0 = vld [vmem:[%s20247_s1 + $0xf0] sm:$0xff] }
 0x18b   :  { %20309 = vst [vmem:[#allocation32_spill] sm:$0xff] %v13993_v15  ;;  %1727 = vmatpush.bf16.msra.mxu1 %v9623_v61  ;;  %v135_v15 = vpack.c.bf16 %v87_v63, %v14020_v34  ;;  %v88_v63 = vld [vmem:[%s20247_s1 + $0x100] sm:$0xff] }
 0x18c   :  { %20310 = vst [vmem:[#allocation33_spill] sm:$0xff] %v13995_v25  ;;  %v134_v25 = vpack.c.bf16 %v86_v0, %v14009_v18 }
 0x18f   :  { %v732_v11 = vpop.f32.mrf.mxu2 }
 0x190   :  { %v821_v58 = vpop.f32.mrf.mxu3  ;;  %v557_v27 = vpop.f32.mrf.mxu0 }
 0x191   :  { %v14027_v22 = vadd.f32 %v821_v58, %v732_v11  ;;  %v646_v3 = vpop.f32.mrf.mxu1 }
 0x192   :  { %v14029_v13 = vadd.f32 %v646_v3, %v557_v27  ;;  %v90_v3 = vld [vmem:[%s20247_s1 + $0x110] sm:$0xff] }
 0x193   :  { %20311 = vst [vmem:[#allocation34_spill] sm:$0xff] %v14027_v22  ;;  %1032 = vmatmul.bf16.gmra.mxu0 %v134_v25  ;;  %v136_v11 = vpack.c.bf16 %v90_v3, %v88_v63  ;;  %v9552_v63 = vld [vmem:[%s20245_s3 + $0x228] sm:$0xf0]  ;;  %v12405_v3 = vld [vmem:[%s20245_s3 + $0x2a4] sm:$0xf] }
 0x194   :  { %20312 = vst [vmem:[#allocation35_spill] sm:$0xff] %v14029_v13  ;;  %1121 = vmatmul.bf16.gmra.mxu1 %v135_v15  ;;  %1210 = vmatmul.bf16.gmra.mxu2 %v134_v25  ;;  %v89_v25 = vld [vmem:[%s20247_s1 + $0x108] sm:$0xff]  ;;  %v12389_v13 = vld [vmem:[%s20245_s3 + $0x224] sm:$0xf] }
 0x195   :  { %1299 = vmatmul.bf16.gmra.mxu3 %v135_v15 }
 0x197   :  { %v735_v39 = vpop.f32.mrf.mxu2 }
 0x198   :  { %v824_v29 = vpop.f32.mrf.mxu3  ;;  %v559_v52 = vpop.f32.mrf.mxu0 }
 0x199   :  { %v14031_v33 = vadd.f32 %v824_v29, %v735_v39  ;;  %v648_v0 = vpop.f32.mrf.mxu1  ;;  %v91_v39 = vld [vmem:[%s20247_s1 + $0x118] sm:$0xff] }
 0x19a   :  { %v14033_v61 = vadd.f32 %v648_v0, %v559_v52  ;;  %v137_v29 = vpack.c.bf16 %v91_v39, %v89_v25 }
 0x19b   :  { %20313 = vst [vmem:[#allocation36_spill] sm:$0xff] %v14031_v33 }
 0x19c   :  { %20314 = vst [vmem:[#allocation37_spill] sm:$0xff] %v14033_v61 }
 0x19f   :  { %v737_v15 = vpop.f32.mrf.mxu2 }
 0x1a0   :  { %v826_v58 = vpop.f32.mrf.mxu3  ;;  %v998_v27 = vpop.f32.mrf.mxu0 }
 0x1a1   :  { %v14047_v52 = vadd.f32 %v826_v58, %v737_v15  ;;  %v999_v0 = vadd.f32 %v998_v27, %v13492_v20  ;;  %v1087_v61 = vpop.f32.mrf.mxu1  ;;  %v9555_v20 = vor.u32 %v12389_v13, %v9552_v63  ;;  %v9550_v13 = vld [vmem:[%s20245_s3 + $0x220] sm:$0xf]  ;;  %v12390_v63 = vld [vmem:[%s20245_s3 + $0x224] sm:$0xf0] }
 0x1a3   :  { %20315 = vst [vmem:[#allocation38_spill] sm:$0xff] %v14047_v52  ;;  %v14050_v33 = vadd.f32 %v1087_v61, %v999_v0  ;;  %1037 = vmatmul.bf16.gmra.mxu0 %v136_v11  ;;  %v9616_v61 = vld [vmem:[%s20245_s3 + $0x2a8] sm:$0xf0]  ;;  %1817 = vmatpush.bf16.msra.mxu2 %v9555_v20  ;;  %v9551_v20 = vor.u32 %v12390_v63, %v9550_v13 }
 0x1a4   :  { %1126 = vmatmul.bf16.gmra.mxu1 %v137_v29  ;;  %1215 = vmatmul.bf16.gmra.mxu2 %v136_v11  ;;  %v9619_v39 = vor.u32 %v12405_v3, %v9616_v61  ;;  %v94_v3 = vld [vmem:[%s20247_s1 + $0x130] sm:$0xff]  ;;  %v12406_v61 = vld [vmem:[%s20245_s3 + $0x2a4] sm:$0xf0] }
 0x1a5   :  { %20316 = vst [vmem:[#allocation39_spill] sm:$0xff] %v14050_v33  ;;  %1304 = vmatmul.bf16.gmra.mxu3 %v137_v29  ;;  %1639 = vmatpush.bf16.msra.mxu0 %v9551_v20 }
 0x1a6   :  { %1906 = vmatpush.bf16.msra.mxu3 %v9619_v39  ;;  %v95_v39 = vld [vmem:[%s20247_s1 + $0x138] sm:$0xff] }
 0x1a7   :  { %v1176_v25 = vpop.f32.mrf.mxu2 }
 0x1a8   :  { %v1177_v15 = vadd.f32 %v1176_v25, %v13506_v30  ;;  %v1265_v11 = vpop.f32.mrf.mxu3  ;;  %v1000_v58 = vpop.f32.mrf.mxu0  ;;  %v9614_v30 = vld [vmem:[%s20245_s3 + $0x2a0] sm:$0xf]  ;;  %v14093_v25 = vld [vmem:[%s20247_s1 + $0x128] sm:$0xff] }
 0x1a9   :  { %v1001_v27 = vadd.f32 %v1000_v58, %v13508_v32  ;;  %v1089_v29 = vpop.f32.mrf.mxu1  ;;  %v14082_v32 = vld [vmem:[%s20247_s1 + $0x120] sm:$0xff]  ;;  %v139_v63 = vpack.c.bf16 %v95_v39, %v14093_v25 }
 0x1aa   :  { %v14066_v0 = vadd.f32 %v1265_v11, %v1177_v15  ;;  %v9615_v15 = vor.u32 %v12406_v61, %v9614_v30  ;;  %v138_v58 = vpack.c.bf16 %v94_v3, %v14082_v32 }
 0x1ab   :  { %v14068_v33 = vadd.f32 %v1089_v29, %v1001_v27 }
 0x1ac   :  { %20317 = vst [vmem:[#allocation40_spill] sm:$0xff] %v14066_v0  ;;  %1728 = vmatpush.bf16.msra.mxu1 %v9615_v15 }
 0x1ad   :  { %20318 = vst [vmem:[#allocation41_spill] sm:$0xff] %v14068_v33 }
 0x1af   :  { %v1178_v11 = vpop.f32.mrf.mxu2 }
 0x1b0   :  { %v1179_v27 = vadd.f32 %v1178_v11, %v13534_v48  ;;  %v1267_v29 = vpop.f32.mrf.mxu3  ;;  %v1003_v13 = vpop.f32.mrf.mxu0 }
 0x1b1   :  { %v1004_v33 = vadd.f32 %v1003_v13, %v13536_v50  ;;  %v1092_v0 = vpop.f32.mrf.mxu1 }
 0x1b2   :  { %v14102_v52 = vadd.f32 %v1267_v29, %v1179_v27 }
 0x1b3   :  { %v14104_v22 = vadd.f32 %v1092_v0, %v1004_v33  ;;  %1042 = vmatmul.bf16.gmra.mxu0 %v138_v58  ;;  %v96_v33 = vld [vmem:[%s20247_s1 + $0x140] sm:$0xff]  ;;  %v98_v0 = vld [vmem:[%s20247_s1 + $0x150] sm:$0xff] }
 0x1b4   :  { %1131 = vmatmul.bf16.gmra.mxu1 %v139_v63  ;;  %1220 = vmatmul.bf16.gmra.mxu2 %v138_v58  ;;  %v140_v58 = vpack.c.bf16 %v98_v0, %v96_v33  ;;  %v9608_v33 = vld [vmem:[%s20245_s3 + $0x298] sm:$0xf0] }
 0x1b5   :  { %1309 = vmatmul.bf16.gmra.mxu3 %v139_v63 }
 0x1b7   :  { %v1181_v30 = vpop.f32.mrf.mxu2 }
 0x1b8   :  { %v1182_v3 = vadd.f32 %v1181_v30, %v13538_v54  ;;  %v1270_v20 = vpop.f32.mrf.mxu3  ;;  %v1005_v48 = vpop.f32.mrf.mxu0  ;;  %v97_v54 = vld [vmem:[%s20247_s1 + $0x148] sm:$0xff] }
 0x1b9   :  { %v1006_v61 = vadd.f32 %v1005_v48, %v13540_v56  ;;  %v1094_v15 = vpop.f32.mrf.mxu1  ;;  %v99_v56 = vld [vmem:[%s20247_s1 + $0x158] sm:$0xff] }
 0x1ba   :  { %v14108_v39 = vadd.f32 %v1270_v20, %v1182_v3  ;;  %v141_v63 = vpack.c.bf16 %v99_v56, %v97_v54 }
 0x1bb   :  { %v14110_v50 = vadd.f32 %v1094_v15, %v1006_v61  ;;  %v12387_v61 = vld [vmem:[%s20245_s3 + $0x214] sm:$0xf] }
 0x1bf   :  { %v1183_v11 = vpop.f32.mrf.mxu2 }
 0x1c0   :  { %v1184_v27 = vadd.f32 %v1183_v11, %v13554_v2  ;;  %v1272_v29 = vpop.f32.mrf.mxu3  ;;  %v1008_v13 = vpop.f32.mrf.mxu0  ;;  %v9544_v2 = vld [vmem:[%s20245_s3 + $0x218] sm:$0xf0] }
 0x1c1   :  { %v1009_v30 = vadd.f32 %v1008_v13, %v13556_v4  ;;  %v1097_v3 = vpop.f32.mrf.mxu1  ;;  %v12403_v4 = vld [vmem:[%s20245_s3 + $0x294] sm:$0xf]  ;;  %v9547_v15 = vor.u32 %v12387_v61, %v9544_v2 }
 0x1c2   :  { %v14126_v20 = vadd.f32 %v1272_v29, %v1184_v27  ;;  %v9611_v54 = vor.u32 %v12403_v4, %v9608_v33  ;;  %v102_v61 = vld [vmem:[%s20247_s1 + $0x170] sm:$0xff]  ;;  %v12404_v4 = vld [vmem:[%s20245_s3 + $0x294] sm:$0xf0] }
 0x1c3   :  { %v14128_v48 = vadd.f32 %v1097_v3, %v1009_v30  ;;  %1047 = vmatmul.bf16.gmra.mxu0 %v140_v58  ;;  %1818 = vmatpush.bf16.msra.mxu2 %v9547_v15  ;;  %v9542_v30 = vld [vmem:[%s20245_s3 + $0x210] sm:$0xf]  ;;  %v12388_v3 = vld [vmem:[%s20245_s3 + $0x214] sm:$0xf0]  ;;  %v14171_v15 = vld [vmem:[%s20247_s1 + $0x168] sm:$0xff] }
 0x1c4   :  { %1136 = vmatmul.bf16.gmra.mxu1 %v141_v63  ;;  %1225 = vmatmul.bf16.gmra.mxu2 %v140_v58  ;;  %v9543_v2 = vor.u32 %v12388_v3, %v9542_v30  ;;  %v103_v33 = vld [vmem:[%s20247_s1 + $0x178] sm:$0xff] }
 0x1c5   :  { %1314 = vmatmul.bf16.gmra.mxu3 %v141_v63 }
 0x1c6   :  { %1907 = vmatpush.bf16.msra.mxu3 %v9611_v54  ;;  %1640 = vmatpush.bf16.msra.mxu0 %v9543_v2 }
 0x1c7   :  { %v1186_v0 = vpop.f32.mrf.mxu2 }
 0x1c8   :  { %v1187_v56 = vadd.f32 %v1186_v0, %v13570_v14  ;;  %v1275_v11 = vpop.f32.mrf.mxu3  ;;  %v1010_v58 = vpop.f32.mrf.mxu0  ;;  %v9606_v14 = vld [vmem:[%s20245_s3 + $0x290] sm:$0xf] }
 0x1c9   :  { %v1011_v27 = vadd.f32 %v1010_v58, %v13572_v16  ;;  %v1099_v29 = vpop.f32.mrf.mxu1  ;;  %v14160_v16 = vld [vmem:[%s20247_s1 + $0x160] sm:$0xff]  ;;  %v9607_v0 = vor.u32 %v12404_v4, %v9606_v14 }
 0x1ca   :  { %v14144_v13 = vadd.f32 %v1275_v11, %v1187_v56  ;;  %v142_v56 = vpack.c.bf16 %v102_v61, %v14160_v16 }
 0x1cb   :  { %v14146_v63 = vadd.f32 %v1099_v29, %v1011_v27  ;;  %1729 = vmatpush.bf16.msra.mxu1 %v9607_v0  ;;  %v143_v29 = vpack.c.bf16 %v103_v33, %v14171_v15 }
 0x1cc   :  { %20319 = vst [vmem:[#allocation42_spill] sm:$0xff] %v14144_v13 }
 0x1cd   :  { %20320 = vst [vmem:[#allocation43_spill] sm:$0xff] %v14146_v63 }
 0x1cf   :  { %v1188_v54 = vpop.f32.mrf.mxu2 }
 0x1d0   :  { %v1189_v11 = vadd.f32 %v1188_v54, %v13598_v35  ;;  %v1277_v58 = vpop.f32.mrf.mxu3  ;;  %v1013_v27 = vpop.f32.mrf.mxu0  ;;  %v104_v54 = vld [vmem:[%s20247_s1 + $0x180] sm:$0xff] }
 0x1d1   :  { %v1014_v30 = vadd.f32 %v1013_v27, %v13600_v37  ;;  %v1102_v3 = vpop.f32.mrf.mxu1 }
 0x1d2   :  { %v14180_v63 = vadd.f32 %v1277_v58, %v1189_v11 }
 0x1d3   :  { %v14182_v13 = vadd.f32 %v1102_v3, %v1014_v30  ;;  %1052 = vmatmul.bf16.gmra.mxu0 %v142_v56 }
 0x1d4   :  { %1141 = vmatmul.bf16.gmra.mxu1 %v143_v29  ;;  %1230 = vmatmul.bf16.gmra.mxu2 %v142_v56  ;;  %v106_v56 = vld [vmem:[%s20247_s1 + $0x190] sm:$0xff] }
 0x1d5   :  { %1319 = vmatmul.bf16.gmra.mxu3 %v143_v29  ;;  %v144_v58 = vpack.c.bf16 %v106_v56, %v104_v54  ;;  %v9600_v54 = vld [vmem:[%s20245_s3 + $0x288] sm:$0xf0] }
 0x1d7   :  { %v1191_v14 = vpop.f32.mrf.mxu2 }
 0x1d8   :  { %v1192_v61 = vadd.f32 %v1191_v14, %v13602_v41  ;;  %v1280_v2 = vpop.f32.mrf.mxu3  ;;  %v1015_v35 = vpop.f32.mrf.mxu0  ;;  %v105_v41 = vld [vmem:[%s20247_s1 + $0x188] sm:$0xff] }
 0x1d9   :  { %v1016_v4 = vadd.f32 %v1015_v35, %v13604_v43  ;;  %v1104_v0 = vpop.f32.mrf.mxu1  ;;  %v107_v43 = vld [vmem:[%s20247_s1 + $0x198] sm:$0xff] }
 0x1da   :  { %v14186_v33 = vadd.f32 %v1280_v2, %v1192_v61  ;;  %v145_v3 = vpack.c.bf16 %v107_v43, %v105_v41 }
 0x1db   :  { %v14188_v37 = vadd.f32 %v1104_v0, %v1016_v4  ;;  %v12385_v4 = vld [vmem:[%s20245_s3 + $0x204] sm:$0xf] }
 0x1df   :  { %v1193_v11 = vpop.f32.mrf.mxu2 }
 0x1e0   :  { %v1194_v27 = vadd.f32 %v1193_v11, %v13618_v57  ;;  %v1282_v29 = vpop.f32.mrf.mxu3  ;;  %v1018_v30 = vpop.f32.mrf.mxu0  ;;  %v9536_v57 = vld [vmem:[%s20245_s3 + $0x208] sm:$0xf0] }
 0x1e1   :  { %v1019_v14 = vadd.f32 %v1018_v30, %v13620_v59  ;;  %v1107_v61 = vpop.f32.mrf.mxu1  ;;  %v12401_v59 = vld [vmem:[%s20245_s3 + $0x284] sm:$0xf]  ;;  %v9539_v0 = vor.u32 %v12385_v4, %v9536_v57  ;;  %v110_v4 = vld [vmem:[%s20247_s1 + $0x1b0] sm:$0xff] }
 0x1e2   :  { %v14204_v2 = vadd.f32 %v1282_v29, %v1194_v27  ;;  %v9603_v41 = vor.u32 %v12401_v59, %v9600_v54  ;;  %v12402_v59 = vld [vmem:[%s20245_s3 + $0x284] sm:$0xf0]  ;;  %v111_v54 = vld [vmem:[%s20247_s1 + $0x1b8] sm:$0xff] }
 0x1e3   :  { %v14206_v35 = vadd.f32 %v1107_v61, %v1019_v14  ;;  %1057 = vmatmul.bf16.gmra.mxu0 %v144_v58  ;;  %1819 = vmatpush.bf16.msra.mxu2 %v9539_v0  ;;  %v9534_v14 = vld [vmem:[%s20245_s3 + $0x200] sm:$0xf]  ;;  %v12386_v61 = vld [vmem:[%s20245_s3 + $0x204] sm:$0xf0] }
 0x1e4   :  { %1146 = vmatmul.bf16.gmra.mxu1 %v145_v3  ;;  %1235 = vmatmul.bf16.gmra.mxu2 %v144_v58  ;;  %v9535_v57 = vor.u32 %v12386_v61, %v9534_v14  ;;  %v14249_v0 = vld [vmem:[%s20247_s1 + $0x1a8] sm:$0xff] }
 0x1e5   :  { %1324 = vmatmul.bf16.gmra.mxu3 %v145_v3 }
 0x1e6   :  { %1908 = vmatpush.bf16.msra.mxu3 %v9603_v41  ;;  %1641 = vmatpush.bf16.msra.mxu0 %v9535_v57 }
 0x1e7   :  { %v1196_v56 = vpop.f32.mrf.mxu2 }
 0x1e8   :  { %v1197_v43 = vadd.f32 %v1196_v56, %v13634_v7  ;;  %v1285_v11 = vpop.f32.mrf.mxu3  ;;  %v1020_v58 = vpop.f32.mrf.mxu0  ;;  %v9598_v7 = vld [vmem:[%s20245_s3 + $0x280] sm:$0xf] }
 0x1e9   :  { %v1021_v27 = vadd.f32 %v1020_v58, %v13636_v9  ;;  %v1109_v29 = vpop.f32.mrf.mxu1  ;;  %v14238_v9 = vld [vmem:[%s20247_s1 + $0x1a0] sm:$0xff]  ;;  %v9599_v56 = vor.u32 %v12402_v59, %v9598_v7 }
 0x1ea   :  { %v14222_v30 = vadd.f32 %v1285_v11, %v1197_v43  ;;  %v146_v43 = vpack.c.bf16 %v110_v4, %v14238_v9 }
 0x1eb   :  { %v14224_v3 = vadd.f32 %v1109_v29, %v1021_v27  ;;  %1730 = vmatpush.bf16.msra.mxu1 %v9599_v56  ;;  %v147_v29 = vpack.c.bf16 %v111_v54, %v14249_v0 }
 0x1ec   :  { %20321 = vst [vmem:[#allocation44_spill] sm:$0xff] %v14222_v30 }
 0x1ed   :  { %20322 = vst [vmem:[#allocation45_spill] sm:$0xff] %v14224_v3 }
 0x1ef   :  { %v1198_v41 = vpop.f32.mrf.mxu2 }
 0x1f0   :  { %v1199_v11 = vadd.f32 %v1198_v41, %v13662_v28  ;;  %v1287_v58 = vpop.f32.mrf.mxu3  ;;  %v1023_v27 = vpop.f32.mrf.mxu0  ;;  %v112_v41 = vld [vmem:[%s20247_s1 + $0x1c0] sm:$0xff] }
 0x1f1   :  { %v1024_v14 = vadd.f32 %v1023_v27, %v13664_v31  ;;  %v1112_v61 = vpop.f32.mrf.mxu1 }
 0x1f2   :  { %v14258_v3 = vadd.f32 %v1287_v58, %v1199_v11 }
 0x1f3   :  { %v14260_v30 = vadd.f32 %v1112_v61, %v1024_v14  ;;  %1062 = vmatmul.bf16.gmra.mxu0 %v146_v43 }
 0x1f4   :  { %1151 = vmatmul.bf16.gmra.mxu1 %v147_v29  ;;  %1240 = vmatmul.bf16.gmra.mxu2 %v146_v43  ;;  %v114_v43 = vld [vmem:[%s20247_s1 + $0x1d0] sm:$0xff] }
 0x1f5   :  { %1329 = vmatmul.bf16.gmra.mxu3 %v147_v29  ;;  %v148_v58 = vpack.c.bf16 %v114_v43, %v112_v41  ;;  %v9816_v41 = vld [vmem:[%s20245_s3 + $0x3f8] sm:$0xf0] }
 0x1f7   :  { %v1201_v7 = vpop.f32.mrf.mxu2 }
 0x1f8   :  { %v1202_v4 = vadd.f32 %v1201_v7, %v13666_v38  ;;  %v1290_v57 = vpop.f32.mrf.mxu3  ;;  %v1025_v28 = vpop.f32.mrf.mxu0  ;;  %v113_v38 = vld [vmem:[%s20247_s1 + $0x1c8] sm:$0xff] }
 0x1f9   :  { %v1026_v59 = vadd.f32 %v1025_v28, %v13668_v40  ;;  %v1114_v56 = vpop.f32.mrf.mxu1  ;;  %v115_v40 = vld [vmem:[%s20247_s1 + $0x1d8] sm:$0xff] }
 0x1fa   :  { %v14264_v54 = vadd.f32 %v1290_v57, %v1202_v4  ;;  %v149_v61 = vpack.c.bf16 %v115_v40, %v113_v38 }
 0x1fb   :  { %v14266_v31 = vadd.f32 %v1114_v56, %v1026_v59  ;;  %v12431_v59 = vld [vmem:[%s20245_s3 + $0x374] sm:$0xf] }
 0x1ff   :  { %v1203_v11 = vpop.f32.mrf.mxu2 }
 0x200   :  { %v1204_v27 = vadd.f32 %v1203_v11, %v13682_v55  ;;  %v1292_v29 = vpop.f32.mrf.mxu3  ;;  %v1028_v14 = vpop.f32.mrf.mxu0  ;;  %v9752_v55 = vld [vmem:[%s20245_s3 + $0x378] sm:$0xf0] }
 0x201   :  { %v1029_v7 = vadd.f32 %v1028_v14, %v13684_v60  ;;  %v1117_v4 = vpop.f32.mrf.mxu1  ;;  %v12447_v60 = vld [vmem:[%s20245_s3 + $0x3f4] sm:$0xf]  ;;  %v9755_v56 = vor.u32 %v12431_v59, %v9752_v55 }
 0x202   :  { %v14282_v57 = vadd.f32 %v1292_v29, %v1204_v27  ;;  %v9819_v38 = vor.u32 %v12447_v60, %v9816_v41  ;;  %v118_v59 = vld [vmem:[%s20247_s1 + $0x1f0] sm:$0xff]  ;;  %v12448_v60 = vld [vmem:[%s20245_s3 + $0x3f4] sm:$0xf0] }
 0x203   :  { %v14284_v28 = vadd.f32 %v1117_v4, %v1029_v7  ;;  %1067 = vmatmul.bf16.gmra.mxu0 %v148_v58  ;;  %2521 = vmatpush.bf16.msrb.mxu2 %v9755_v56  ;;  %v9750_v7 = vld [vmem:[%s20245_s3 + $0x370] sm:$0xf]  ;;  %v12432_v4 = vld [vmem:[%s20245_s3 + $0x374] sm:$0xf0]  ;;  %v14327_v56 = vld [vmem:[%s20247_s1 + $0x1e8] sm:$0xff] }
 0x204   :  { %1156 = vmatmul.bf16.gmra.mxu1 %v149_v61  ;;  %1245 = vmatmul.bf16.gmra.mxu2 %v148_v58  ;;  %v9751_v55 = vor.u32 %v12432_v4, %v9750_v7  ;;  %v119_v41 = vld [vmem:[%s20247_s1 + $0x1f8] sm:$0xff] }
 0x205   :  { %1334 = vmatmul.bf16.gmra.mxu3 %v149_v61 }
 0x206   :  { %2610 = vmatpush.bf16.msrb.mxu3 %v9819_v38  ;;  %2343 = vmatpush.bf16.msrb.mxu0 %v9751_v55 }
 0x207   :  { %v1206_v43 = vpop.f32.mrf.mxu2 }
 0x208   :  { %v1207_v40 = vadd.f32 %v1206_v43, %v13698_v10  ;;  %v1295_v11 = vpop.f32.mrf.mxu3  ;;  %v1030_v58 = vpop.f32.mrf.mxu0  ;;  %v9814_v10 = vld [vmem:[%s20245_s3 + $0x3f0] sm:$0xf] }
 0x209   :  { %v1031_v27 = vadd.f32 %v1030_v58, %v13700_v12  ;;  %v1119_v29 = vpop.f32.mrf.mxu1  ;;  %v14316_v12 = vld [vmem:[%s20247_s1 + $0x1e0] sm:$0xff]  ;;  %v9815_v43 = vor.u32 %v12448_v60, %v9814_v10 }
 0x20a   :  { %v14300_v14 = vadd.f32 %v1295_v11, %v1207_v40  ;;  %v150_v40 = vpack.c.bf16 %v118_v59, %v14316_v12 }
 0x20b   :  { %v14302_v61 = vadd.f32 %v1119_v29, %v1031_v27  ;;  %2432 = vmatpush.bf16.msrb.mxu1 %v9815_v43  ;;  %v151_v29 = vpack.c.bf16 %v119_v41, %v14327_v56 }
 0x20c   :  { %20323 = vst [vmem:[#allocation46_spill] sm:$0xff] %v14300_v14 }
 0x20d   :  { %20324 = vst [vmem:[#allocation47_spill] sm:$0xff] %v14302_v61 }
 0x20f   :  { %v1208_v38 = vpop.f32.mrf.mxu2 }
 0x210   :  { %v1209_v11 = vadd.f32 %v1208_v38, %v13726_v36  ;;  %v1297_v58 = vpop.f32.mrf.mxu3  ;;  %v1033_v27 = vpop.f32.mrf.mxu0 }
 0x211   :  { %v1034_v7 = vadd.f32 %v1033_v27, %v13728_v42  ;;  %v1122_v4 = vpop.f32.mrf.mxu1 }
 0x212   :  { %v14336_v61 = vadd.f32 %v1297_v58, %v1209_v11  ;;  %v1409_v11 = vpack.c.bf16 %v13784_v44, %v13740_v53  ;;  %v12429_v53 = vld [vmem:[%s20245_s3 + $0x364] sm:$0xf] }
 0x213   :  { %v14338_v14 = vadd.f32 %v1122_v4, %v1034_v7  ;;  %1072 = vmatmul.bf16.gmra.mxu0 %v150_v40 }
 0x214   :  { %1161 = vmatmul.bf16.gmra.mxu1 %v151_v29  ;;  %1250 = vmatmul.bf16.gmra.mxu2 %v150_v40 }
 0x215   :  { %1339 = vmatmul.bf16.gmra.mxu3 %v151_v29 }
 0x217   :  { %v1211_v10 = vpop.f32.mrf.mxu2 }
 0x218   :  { %v1212_v59 = vadd.f32 %v1211_v10, %v13730_v47  ;;  %v1300_v55 = vpop.f32.mrf.mxu3  ;;  %v1035_v36 = vpop.f32.mrf.mxu0  ;;  %v13007_v47 = vld [vmem:[%s20247_s1 + $0x18] sm:$0xff] }
 0x219   :  { %v1036_v60 = vadd.f32 %v1035_v36, %v13732_v51  ;;  %v1124_v43 = vpop.f32.mrf.mxu1  ;;  %v1410_v29 = vpack.c.bf16 %v13792_v49, %v13007_v47  ;;  %v9808_v49 = vld [vmem:[%s20245_s3 + $0x3e8] sm:$0xf0]  ;;  %v12430_v47 = vld [vmem:[%s20245_s3 + $0x364] sm:$0xf0] }
 0x21a   :  { %v14342_v41 = vadd.f32 %v1300_v55, %v1212_v59 }
 0x21b   :  { %v14344_v42 = vadd.f32 %v1124_v43, %v1036_v60 }
 0x21f   :  { %v1213_v38 = vpop.f32.mrf.mxu2 }
 0x220   :  { %v1214_v58 = vadd.f32 %v1213_v38, %v13749_v5  ;;  %v1302_v40 = vpop.f32.mrf.mxu3  ;;  %v1038_v27 = vpop.f32.mrf.mxu0  ;;  %v9744_v5 = vld [vmem:[%s20245_s3 + $0x368] sm:$0xf0] }
 0x221   :  { %v1039_v51 = vadd.f32 %v1038_v27, %v13751_v8  ;;  %v1127_v7 = vpop.f32.mrf.mxu1  ;;  %v12445_v8 = vld [vmem:[%s20245_s3 + $0x3e4] sm:$0xf]  ;;  %v9747_v44 = vor.u32 %v12429_v53, %v9744_v5  ;;  %v9742_v27 = vld [vmem:[%s20245_s3 + $0x360] sm:$0xf] }
 0x222   :  { %v14354_v4 = vadd.f32 %v1302_v40, %v1214_v58  ;;  %v9811_v55 = vor.u32 %v12445_v8, %v9808_v49 }
 0x223   :  { %v14356_v10 = vadd.f32 %v1127_v7, %v1039_v51  ;;  %1642 = vmatmul.bf16.vlgmr.msra.gmra.mxu0 %v1409_v11  ;;  %2522 = vmatpush.bf16.msrb.mxu2 %v9747_v44  ;;  %v12446_v51 = vld [vmem:[%s20245_s3 + $0x3e4] sm:$0xf0]  ;;  %v1350_v7 = vld [vmem:[%s20247_s1 + $0x38] sm:$0xff] }
 0x224   :  { %1731 = vmatmul.bf16.vlgmr.msra.gmra.mxu1 %v1410_v29  ;;  %1820 = vmatmul.bf16.vlgmr.msra.gmra.mxu2 %v1409_v11 }
 0x225   :  { %1909 = vmatmul.bf16.vlgmr.msra.gmra.mxu3 %v1410_v29  ;;  %v9743_v29 = vor.u32 %v12430_v47, %v9742_v27 }
 0x226   :  { %2611 = vmatpush.bf16.msrb.mxu3 %v9811_v55  ;;  %v1412_v55 = vpack.c.bf16 %v13818_v23, %v1350_v7 }
 0x227   :  { %v1216_v59 = vpop.f32.mrf.mxu2  ;;  %2344 = vmatpush.bf16.msrb.mxu0 %v9743_v29  ;;  %v1354_v29 = vld [vmem:[%s20247_s1 + $0x58] sm:$0xff] }
 0x228   :  { %v1217_v36 = vadd.f32 %v1216_v59, %v13765_v24  ;;  %v1305_v60 = vpop.f32.mrf.mxu3  ;;  %v1040_v43 = vpop.f32.mrf.mxu0  ;;  %v9806_v24 = vld [vmem:[%s20245_s3 + $0x3e0] sm:$0xf] }
 0x229   :  { %v1041_v38 = vadd.f32 %v1040_v43, %v13767_v26  ;;  %v1129_v11 = vpop.f32.mrf.mxu1  ;;  %v1349_v26 = vld [vmem:[%s20247_s1 + $0x30] sm:$0xff]  ;;  %v9807_v53 = vor.u32 %v12446_v51, %v9806_v24 }
 0x22a   :  { %v14372_v58 = vadd.f32 %v1305_v60, %v1217_v36  ;;  %v1411_v8 = vpack.c.bf16 %v13810_v21, %v1349_v26  ;;  %v1353_v26 = vld [vmem:[%s20247_s1 + $0x50] sm:$0xff] }
 0x22b   :  { %v14374_v40 = vadd.f32 %v1129_v11, %v1041_v38  ;;  %2433 = vmatpush.bf16.msrb.mxu1 %v9807_v53 }
 0x22f   :  { %v1218_v5 = vpop.f32.mrf.mxu2 }
 0x230   :  { %v1219_v44 = vadd.f32 %v1218_v5, %v13799_v1  ;;  %v1307_v49 = vpop.f32.mrf.mxu3  ;;  %v1043_v59 = vpop.f32.mrf.mxu0  ;;  %v1414_v5 = vpack.c.bf16 %v13868_v62, %v1354_v29  ;;  %v12443_v62 = vld [vmem:[%s20245_s3 + $0x3d4] sm:$0xf] }
 0x231   :  { %v1044_v36 = vadd.f32 %v1043_v59, %v13801_v6  ;;  %v1132_v60 = vpop.f32.mrf.mxu1 }
 0x232   :  { %v14398_v43 = vadd.f32 %v1307_v49, %v1219_v44 }
 0x233   :  { %v14400_v38 = vadd.f32 %v1132_v60, %v1044_v36  ;;  %1647 = vmatmul.bf16.gmra.mxu0 %v1411_v8  ;;  %v9800_v60 = vld [vmem:[%s20245_s3 + $0x3d8] sm:$0xf0] }
 0x234   :  { %1736 = vmatmul.bf16.gmra.mxu1 %v1412_v55  ;;  %1825 = vmatmul.bf16.gmra.mxu2 %v1411_v8  ;;  %v20325_v8 = vld [vmem:[#allocation9_spill] sm:$0xff] }
 0x235   :  { %1914 = vmatmul.bf16.gmra.mxu3 %v1412_v55 }
 0x237   :  { %v1221_v11 = vpop.f32.mrf.mxu2 }
 0x238   :  { %v1222_v21 = vadd.f32 %v1221_v11, %v13803_v17  ;;  %v1310_v27 = vpop.f32.mrf.mxu3  ;;  %v1045_v1 = vpop.f32.mrf.mxu0  ;;  %v1413_v17 = vpack.c.bf16 %v13860_v46, %v1353_v26  ;;  %v12427_v46 = vld [vmem:[%s20245_s3 + $0x354] sm:$0xf] }
 0x239   :  { %v1046_v47 = vadd.f32 %v1045_v1, %v13805_v19  ;;  %v1134_v24 = vpop.f32.mrf.mxu1  ;;  %v20327_v26 = vld [vmem:[#allocation11_spill] sm:$0xff] }
 0x23a   :  { %v14404_v23 = vadd.f32 %v1310_v27, %v1222_v21  ;;  %v9803_v21 = vor.u32 %v12443_v62, %v9800_v60  ;;  %v20326_v27 = vld [vmem:[#allocation10_spill] sm:$0xff] }
 0x23b   :  { %v14406_v6 = vadd.f32 %v1134_v24, %v1046_v47 }
 0x23c   :  { %2612 = vmatpush.bf16.msrb.mxu3 %v9803_v21 }
 0x23f   :  { %v1223_v51 = vpop.f32.mrf.mxu2 }
 0x240   :  { %v1224_v7 = vadd.f32 %v1223_v51, %v13825_v45  ;;  %v1312_v53 = vpop.f32.mrf.mxu3  ;;  %v1048_v19 = vpop.f32.mrf.mxu0  ;;  %v9736_v45 = vld [vmem:[%s20245_s3 + $0x358] sm:$0xf0] }
 0x241   :  { %v1049_v44 = vadd.f32 %v1048_v19, %v20325_v8  ;;  %v1137_v49 = vpop.f32.mrf.mxu1  ;;  %v9739_v36 = vor.u32 %v12427_v46, %v9736_v45  ;;  %v12428_v19 = vld [vmem:[%s20245_s3 + $0x354] sm:$0xf0]  ;;  %v1357_v8 = vld [vmem:[%s20247_s1 + $0x70] sm:$0xff] }
 0x242   :  { %v14418_v59 = vadd.f32 %v1312_v53, %v1224_v7  ;;  %v9734_v53 = vld [vmem:[%s20245_s3 + $0x350] sm:$0xf]  ;;  %v1358_v46 = vld [vmem:[%s20247_s1 + $0x78] sm:$0xff] }
 0x243   :  { %v14420_v55 = vadd.f32 %v1137_v49, %v1049_v44  ;;  %1652 = vmatmul.bf16.gmra.mxu0 %v1413_v17  ;;  %2523 = vmatpush.bf16.msrb.mxu2 %v9739_v36  ;;  %v9735_v44 = vor.u32 %v12428_v19, %v9734_v53  ;;  %v12444_v49 = vld [vmem:[%s20245_s3 + $0x3d4] sm:$0xf0] }
 0x244   :  { %1741 = vmatmul.bf16.gmra.mxu1 %v1414_v5  ;;  %1830 = vmatmul.bf16.gmra.mxu2 %v1413_v17  ;;  %v20328_v36 = vld [vmem:[#allocation16_spill] sm:$0xff] }
 0x245   :  { %1919 = vmatmul.bf16.gmra.mxu3 %v1414_v5  ;;  %v9798_v5 = vld [vmem:[%s20245_s3 + $0x3d0] sm:$0xf]  ;;  %2345 = vmatpush.bf16.msrb.mxu0 %v9735_v44  ;;  %v1415_v60 = vpack.c.bf16 %v20328_v36, %v1357_v8  ;;  %v20334_v8 = vld [vmem:[#allocation14_spill] sm:$0xff] }
 0x246   :  { %v9799_v45 = vor.u32 %v12444_v49, %v9798_v5 }
 0x247   :  { %v1226_v11 = vpop.f32.mrf.mxu2 }
 0x248   :  { %v1227_v1 = vadd.f32 %v1226_v11, %v20326_v27  ;;  %v1315_v47 = vpop.f32.mrf.mxu3  ;;  %v1050_v24 = vpop.f32.mrf.mxu0  ;;  %2434 = vmatpush.bf16.msrb.mxu1 %v9799_v45  ;;  %v20329_v11 = vld [vmem:[#allocation12_spill] sm:$0xff] }
 0x249   :  { %v1051_v29 = vadd.f32 %v1050_v24, %v20327_v26  ;;  %v1139_v51 = vpop.f32.mrf.mxu1  ;;  %v20331_v26 = vld [vmem:[#allocation13_spill] sm:$0xff] }
 0x24a   :  { %v14436_v17 = vadd.f32 %v1315_v47, %v1227_v1  ;;  %v20330_v47 = vld [vmem:[#allocation17_spill] sm:$0xff] }
 0x24b   :  { %v14438_v7 = vadd.f32 %v1139_v51, %v1051_v29  ;;  %v1416_v24 = vpack.c.bf16 %v20330_v47, %v1358_v46  ;;  %v20338_v47 = vld [vmem:[#allocation22_spill] sm:$0xff] }
 0x24f   :  { %v1228_v62 = vpop.f32.mrf.mxu2 }
 0x250   :  { %v1229_v21 = vadd.f32 %v1228_v62, %v20329_v11  ;;  %v1317_v27 = vpop.f32.mrf.mxu3  ;;  %v1053_v1 = vpop.f32.mrf.mxu0  ;;  %v20335_v62 = vld [vmem:[#allocation15_spill] sm:$0xff] }
 0x251   :  { %v1054_v29 = vadd.f32 %v1053_v1, %v20331_v26  ;;  %v1142_v51 = vpop.f32.mrf.mxu1  ;;  %v20339_v26 = vld [vmem:[#allocation18_spill] sm:$0xff] }
 0x252   :  { %v14462_v53 = vadd.f32 %v1317_v27, %v1229_v21  ;;  %v1361_v21 = vld [vmem:[%s20247_s1 + $0x90] sm:$0xff] }
 0x253   :  { %v14464_v19 = vadd.f32 %v1142_v51, %v1054_v29  ;;  %1657 = vmatmul.bf16.gmra.mxu0 %v1415_v60 }
 0x254   :  { %20332 = vst [vmem:[#allocation9_spill] sm:$0xff] %v14462_v53  ;;  %1746 = vmatmul.bf16.gmra.mxu1 %v1416_v24  ;;  %1835 = vmatmul.bf16.gmra.mxu2 %v1415_v60  ;;  %v1362_v60 = vld [vmem:[%s20247_s1 + $0x98] sm:$0xff] }
 0x255   :  { %20333 = vst [vmem:[#allocation10_spill] sm:$0xff] %v14464_v19  ;;  %1924 = vmatmul.bf16.gmra.mxu3 %v1416_v24  ;;  %v1417_v24 = vpack.c.bf16 %v20338_v47, %v1361_v21  ;;  %v12425_v21 = vld [vmem:[%s20245_s3 + $0x344] sm:$0xf] }
 0x257   :  { %v1231_v5 = vpop.f32.mrf.mxu2 }
 0x258   :  { %v1232_v44 = vadd.f32 %v1231_v5, %v20334_v8  ;;  %v1320_v49 = vpop.f32.mrf.mxu3  ;;  %v1055_v45 = vpop.f32.mrf.mxu0  ;;  %v20340_v8 = vld [vmem:[#allocation23_spill] sm:$0xff] }
 0x259   :  { %v1056_v36 = vadd.f32 %v1055_v45, %v20335_v62  ;;  %v1144_v11 = vpop.f32.mrf.mxu1 }
 0x25a   :  { %v14468_v46 = vadd.f32 %v1320_v49, %v1232_v44  ;;  %v1418_v44 = vpack.c.bf16 %v20340_v8, %v1362_v60  ;;  %v20341_v49 = vld [vmem:[#allocation19_spill] sm:$0xff]  ;;  %v12441_v60 = vld [vmem:[%s20245_s3 + $0x3c4] sm:$0xf] }
 0x25b   :  { %v14470_v1 = vadd.f32 %v1144_v11, %v1056_v36 }
 0x25c   :  { %20336 = vst [vmem:[#allocation11_spill] sm:$0xff] %v14468_v46 }
 0x25d   :  { %20337 = vst [vmem:[#allocation16_spill] sm:$0xff] %v14470_v1 }
 0x25f   :  { %v1233_v27 = vpop.f32.mrf.mxu2 }
 0x260   :  { %v1234_v29 = vadd.f32 %v1233_v27, %v20339_v26  ;;  %v1322_v51 = vpop.f32.mrf.mxu3  ;;  %v1058_v5 = vpop.f32.mrf.mxu0  ;;  %v9728_v27 = vld [vmem:[%s20245_s3 + $0x348] sm:$0xf0] }
 0x261   :  { %v1059_v45 = vadd.f32 %v1058_v5, %v20341_v49  ;;  %v1147_v62 = vpop.f32.mrf.mxu1  ;;  %v9731_v47 = vor.u32 %v12425_v21, %v9728_v27  ;;  %v9792_v26 = vld [vmem:[%s20245_s3 + $0x3c8] sm:$0xf0]  ;;  %v20345_v49 = vld [vmem:[#allocation21_spill] sm:$0xff]  ;;  %v12426_v27 = vld [vmem:[%s20245_s3 + $0x344] sm:$0xf0] }
 0x262   :  { %v14482_v36 = vadd.f32 %v1322_v51, %v1234_v29  ;;  %v20344_v51 = vld [vmem:[#allocation20_spill] sm:$0xff]  ;;  %v9726_v21 = vld [vmem:[%s20245_s3 + $0x340] sm:$0xf] }
 0x263   :  { %v14484_v11 = vadd.f32 %v1147_v62, %v1059_v45  ;;  %1662 = vmatmul.bf16.gmra.mxu0 %v1417_v24  ;;  %2524 = vmatpush.bf16.msrb.mxu2 %v9731_v47  ;;  %v1365_v47 = vld [vmem:[%s20247_s1 + $0xb0] sm:$0xff] }
 0x264   :  { %20342 = vst [vmem:[#allocation12_spill] sm:$0xff] %v14482_v36  ;;  %1751 = vmatmul.bf16.gmra.mxu1 %v1418_v44  ;;  %1840 = vmatmul.bf16.gmra.mxu2 %v1417_v24  ;;  %v9795_v24 = vor.u32 %v12441_v60, %v9792_v26  ;;  %v9790_v60 = vld [vmem:[%s20245_s3 + $0x3c0] sm:$0xf]  ;;  %v9727_v26 = vor.u32 %v12426_v27, %v9726_v21 }
 0x265   :  { %20343 = vst [vmem:[#allocation17_spill] sm:$0xff] %v14484_v11  ;;  %1929 = vmatmul.bf16.gmra.mxu3 %v1418_v44  ;;  %v20351_v27 = vld [vmem:[#allocation25_spill] sm:$0xff] }
 0x266   :  { %2613 = vmatpush.bf16.msrb.mxu3 %v9795_v24  ;;  %v1366_v24 = vld [vmem:[%s20247_s1 + $0xb8] sm:$0xff]  ;;  %2346 = vmatpush.bf16.msrb.mxu0 %v9727_v26 }
 0x267   :  { %v1236_v29 = vpop.f32.mrf.mxu2 }
 0x268   :  { %v1237_v5 = vadd.f32 %v1236_v29, %v20344_v51  ;;  %v1325_v8 = vpop.f32.mrf.mxu3  ;;  %v1060_v44 = vpop.f32.mrf.mxu0  ;;  %v12442_v29 = vld [vmem:[%s20245_s3 + $0x3c4] sm:$0xf0] }
 0x269   :  { %v1061_v45 = vadd.f32 %v1060_v44, %v20345_v49  ;;  %v1149_v62 = vpop.f32.mrf.mxu1  ;;  %v9791_v51 = vor.u32 %v12442_v29, %v9790_v60  ;;  %v20349_v49 = vld [vmem:[#allocation24_spill] sm:$0xff] }
 0x26a   :  { %v14500_v11 = vadd.f32 %v1325_v8, %v1237_v5  ;;  %v20348_v8 = vld [vmem:[#allocation28_spill] sm:$0xff] }
 0x26b   :  { %v14502_v36 = vadd.f32 %v1149_v62, %v1061_v45  ;;  %v1419_v44 = vpack.c.bf16 %v20348_v8, %v1365_v47  ;;  %2435 = vmatpush.bf16.msrb.mxu1 %v9791_v51  ;;  %v20353_v47 = vld [vmem:[#allocation26_spill] sm:$0xff] }
 0x26c   :  { %20346 = vst [vmem:[#allocation13_spill] sm:$0xff] %v14500_v11  ;;  %v20350_v11 = vld [vmem:[#allocation29_spill] sm:$0xff] }
 0x26d   :  { %20347 = vst [vmem:[#allocation14_spill] sm:$0xff] %v14502_v36  ;;  %v1420_v21 = vpack.c.bf16 %v20350_v11, %v1366_v24 }
 0x26f   :  { %v1238_v5 = vpop.f32.mrf.mxu2 }
 0x270   :  { %v1239_v45 = vadd.f32 %v1238_v5, %v20349_v49  ;;  %v1327_v62 = vpop.f32.mrf.mxu3  ;;  %v1063_v36 = vpop.f32.mrf.mxu0  ;;  %v20354_v5 = vld [vmem:[#allocation27_spill] sm:$0xff] }
 0x271   :  { %v1064_v1 = vadd.f32 %v1063_v36, %v20351_v27  ;;  %v1152_v46 = vpop.f32.mrf.mxu1 }
 0x272   :  { %v14526_v19 = vadd.f32 %v1327_v62, %v1239_v45  ;;  %v20357_v45 = vld [vmem:[#allocation30_spill] sm:$0xff] }
 0x273   :  { %v14528_v53 = vadd.f32 %v1152_v46, %v1064_v1  ;;  %1667 = vmatmul.bf16.gmra.mxu0 %v1419_v44  ;;  %v1369_v46 = vld [vmem:[%s20247_s1 + $0xd0] sm:$0xff]  ;;  %v1370_v1 = vld [vmem:[%s20247_s1 + $0xd8] sm:$0xff] }
 0x274   :  { %1756 = vmatmul.bf16.gmra.mxu1 %v1420_v21  ;;  %1845 = vmatmul.bf16.gmra.mxu2 %v1419_v44  ;;  %v1421_v44 = vpack.c.bf16 %v14009_v18, %v1369_v46  ;;  %v12423_v18 = vld [vmem:[%s20245_s3 + $0x334] sm:$0xf]  ;;  %v9784_v46 = vld [vmem:[%s20245_s3 + $0x3b8] sm:$0xf0] }
 0x275   :  { %20352 = vst [vmem:[#allocation15_spill] sm:$0xff] %v14528_v53  ;;  %1934 = vmatmul.bf16.gmra.mxu3 %v1420_v21 }
 0x277   :  { %v1241_v60 = vpop.f32.mrf.mxu2 }
 0x278   :  { %v1242_v26 = vadd.f32 %v1241_v60, %v20353_v47  ;;  %v1330_v29 = vpop.f32.mrf.mxu3  ;;  %v1065_v51 = vpop.f32.mrf.mxu0  ;;  %v1422_v60 = vpack.c.bf16 %v14020_v34, %v1370_v1  ;;  %v20358_v47 = vld [vmem:[#allocation31_spill] sm:$0xff] }
 0x279   :  { %v1066_v8 = vadd.f32 %v1065_v51, %v20354_v5  ;;  %v1154_v49 = vpop.f32.mrf.mxu1  ;;  %v12439_v34 = vld [vmem:[%s20245_s3 + $0x3b4] sm:$0xf] }
 0x27a   :  { %v14532_v11 = vadd.f32 %v1330_v29, %v1242_v26 }
 0x27b   :  { %v14534_v36 = vadd.f32 %v1154_v49, %v1066_v8  ;;  %v9720_v8 = vld [vmem:[%s20245_s3 + $0x338] sm:$0xf0] }
 0x27c   :  { %20355 = vst [vmem:[#allocation22_spill] sm:$0xff] %v14532_v11  ;;  %v9723_v49 = vor.u32 %v12423_v18, %v9720_v8  ;;  %v1373_v18 = vld [vmem:[%s20247_s1 + $0xf0] sm:$0xff]  ;;  %v1375_v8 = vld [vmem:[%s20247_s1 + $0x100] sm:$0xff] }
 0x27d   :  { %20356 = vst [vmem:[#allocation18_spill] sm:$0xff] %v14534_v36 }
 0x27e   :  { %2525 = vmatpush.bf16.msrb.mxu2 %v9723_v49  ;;  %v12424_v49 = vld [vmem:[%s20245_s3 + $0x334] sm:$0xf0] }
 0x27f   :  { %v1243_v24 = vpop.f32.mrf.mxu2 }
 0x280   :  { %v1244_v62 = vadd.f32 %v1243_v24, %v20357_v45  ;;  %v1332_v21 = vpop.f32.mrf.mxu3  ;;  %v1068_v27 = vpop.f32.mrf.mxu0  ;;  %v9787_v24 = vor.u32 %v12439_v34, %v9784_v46  ;;  %v9718_v34 = vld [vmem:[%s20245_s3 + $0x330] sm:$0xf] }
 0x281   :  { %v1069_v26 = vadd.f32 %v1068_v27, %v20358_v47  ;;  %v1157_v29 = vpop.f32.mrf.mxu1  ;;  %v20362_v27 = vld [vmem:[#allocation33_spill] sm:$0xff]  ;;  %v9782_v46 = vld [vmem:[%s20245_s3 + $0x3b0] sm:$0xf] }
 0x282   :  { %v14546_v51 = vadd.f32 %v1332_v21, %v1244_v62  ;;  %2614 = vmatpush.bf16.msrb.mxu3 %v9787_v24  ;;  %v1376_v24 = vld [vmem:[%s20247_s1 + $0x108] sm:$0xff] }
 0x283   :  { %v14548_v5 = vadd.f32 %v1157_v29, %v1069_v26  ;;  %1672 = vmatmul.bf16.gmra.mxu0 %v1421_v44 }
 0x284   :  { %20359 = vst [vmem:[#allocation23_spill] sm:$0xff] %v14546_v51  ;;  %1761 = vmatmul.bf16.gmra.mxu1 %v1422_v60  ;;  %1850 = vmatmul.bf16.gmra.mxu2 %v1421_v44  ;;  %v20361_v44 = vld [vmem:[#allocation32_spill] sm:$0xff]  ;;  %v20366_v51 = vld [vmem:[#allocation35_spill] sm:$0xff] }
 0x285   :  { %20360 = vst [vmem:[#allocation19_spill] sm:$0xff] %v14548_v5  ;;  %1939 = vmatmul.bf16.gmra.mxu3 %v1422_v60 }
 0x287   :  { %v1246_v1 = vpop.f32.mrf.mxu2 }
 0x288   :  { %v1247_v45 = vadd.f32 %v1246_v1, %v20361_v44  ;;  %v1335_v62 = vpop.f32.mrf.mxu3  ;;  %v1070_v21 = vpop.f32.mrf.mxu0  ;;  %v1374_v1 = vld [vmem:[%s20247_s1 + $0xf8] sm:$0xff]  ;;  %v9719_v44 = vor.u32 %v12424_v49, %v9718_v34 }
 0x289   :  { %v1071_v60 = vadd.f32 %v1070_v21, %v20362_v27  ;;  %v1159_v47 = vpop.f32.mrf.mxu1  ;;  %v1423_v27 = vpack.c.bf16 %v1375_v8, %v1373_v18  ;;  %v1424_v5 = vpack.c.bf16 %v1376_v24, %v1374_v1  ;;  %v20367_v18 = vld [vmem:[#allocation36_spill] sm:$0xff] }
 0x28a   :  { %v14564_v26 = vadd.f32 %v1335_v62, %v1247_v45  ;;  %v12440_v45 = vld [vmem:[%s20245_s3 + $0x3b4] sm:$0xf0]  ;;  %2347 = vmatpush.bf16.msrb.mxu0 %v9719_v44 }
 0x28b   :  { %v14566_v29 = vadd.f32 %v1159_v47, %v1071_v60  ;;  %v9783_v62 = vor.u32 %v12440_v45, %v9782_v46  ;;  %v20365_v60 = vld [vmem:[#allocation34_spill] sm:$0xff]  ;;  %v20368_v45 = vld [vmem:[#allocation37_spill] sm:$0xff] }
 0x28c   :  { %20363 = vst [vmem:[#allocation20_spill] sm:$0xff] %v14564_v26 }
 0x28d   :  { %20364 = vst [vmem:[#allocation21_spill] sm:$0xff] %v14566_v29  ;;  %2436 = vmatpush.bf16.msrb.mxu1 %v9783_v62 }
 0x28f   :  { %v1248_v21 = vpop.f32.mrf.mxu2 }
 0x290   :  { %v1249_v47 = vadd.f32 %v1248_v21, %v20365_v60  ;;  %v1337_v29 = vpop.f32.mrf.mxu3  ;;  %v1073_v26 = vpop.f32.mrf.mxu0 }
 0x291   :  { %v1074_v36 = vadd.f32 %v1073_v26, %v20366_v51  ;;  %v1162_v11 = vpop.f32.mrf.mxu1 }
 0x292   :  { %v14594_v53 = vadd.f32 %v1337_v29, %v1249_v47  ;;  %v20369_v29 = vld [vmem:[#allocation38_spill] sm:$0xff] }
 0x293   :  { %v14596_v34 = vadd.f32 %v1162_v11, %v1074_v36  ;;  %1677 = vmatmul.bf16.gmra.mxu0 %v1423_v27  ;;  %v1377_v11 = vld [vmem:[%s20247_s1 + $0x110] sm:$0xff]  ;;  %v1378_v36 = vld [vmem:[%s20247_s1 + $0x118] sm:$0xff] }
 0x294   :  { %1766 = vmatmul.bf16.gmra.mxu1 %v1424_v5  ;;  %1855 = vmatmul.bf16.gmra.mxu2 %v1423_v27  ;;  %v1425_v26 = vpack.c.bf16 %v14082_v32, %v1377_v11  ;;  %v1426_v47 = vpack.c.bf16 %v14093_v25, %v1378_v36  ;;  %v12421_v32 = vld [vmem:[%s20245_s3 + $0x324] sm:$0xf] }
 0x295   :  { %1944 = vmatmul.bf16.gmra.mxu3 %v1424_v5  ;;  %v12437_v25 = vld [vmem:[%s20245_s3 + $0x3a4] sm:$0xf] }
 0x297   :  { %v1251_v49 = vpop.f32.mrf.mxu2 }
 0x298   :  { %v1252_v8 = vadd.f32 %v1251_v49, %v20367_v18  ;;  %v1340_v46 = vpop.f32.mrf.mxu3  ;;  %v1075_v44 = vpop.f32.mrf.mxu0 }
 0x299   :  { %v1076_v21 = vadd.f32 %v1075_v44, %v20368_v45  ;;  %v1164_v1 = vpop.f32.mrf.mxu1  ;;  %v9712_v45 = vld [vmem:[%s20245_s3 + $0x328] sm:$0xf0] }
 0x29a   :  { %v14600_v24 = vadd.f32 %v1340_v46, %v1252_v8  ;;  %v20371_v46 = vld [vmem:[#allocation39_spill] sm:$0xff] }
 0x29b   :  { %v14602_v51 = vadd.f32 %v1164_v1, %v1076_v21  ;;  %v9715_v21 = vor.u32 %v12421_v32, %v9712_v45  ;;  %v9776_v1 = vld [vmem:[%s20245_s3 + $0x3a8] sm:$0xf0]  ;;  %v9710_v45 = vld [vmem:[%s20245_s3 + $0x320] sm:$0xf] }
 0x29c   :  { %v9779_v36 = vor.u32 %v12437_v25, %v9776_v1  ;;  %v12422_v25 = vld [vmem:[%s20245_s3 + $0x324] sm:$0xf0]  ;;  %v1382_v1 = vld [vmem:[%s20247_s1 + $0x138] sm:$0xff] }
 0x29d   :  { %2526 = vmatpush.bf16.msrb.mxu2 %v9715_v21  ;;  %v9774_v21 = vld [vmem:[%s20245_s3 + $0x3a0] sm:$0xf] }
 0x29e   :  { %2615 = vmatpush.bf16.msrb.mxu3 %v9779_v36  ;;  %v9711_v36 = vor.u32 %v12422_v25, %v9710_v45 }
 0x29f   :  { %v1253_v5 = vpop.f32.mrf.mxu2 }
 0x2a0   :  { %v1254_v62 = vadd.f32 %v1253_v5, %v20369_v29  ;;  %v1342_v27 = vpop.f32.mrf.mxu3  ;;  %v1643_v60 = vpop.f32.mrf.mxu0  ;;  %2348 = vmatpush.bf16.msrb.mxu0 %v9711_v36 }
 0x2a1   :  { %v1732_v49 = vpop.f32.mrf.mxu1 }
 0x2a2   :  { %v14613_v18 = vadd.f32 %v1342_v27, %v1254_v62  ;;  %v1733_v8 = vadd.f32 %v1732_v49, %v1643_v60  ;;  %v20373_v60 = vld [vmem:[#allocation40_spill] sm:$0xff]  ;;  %v1381_v49 = vld [vmem:[%s20247_s1 + $0x130] sm:$0xff] }
 0x2a3   :  { %1682 = vmatmul.bf16.gmra.mxu0 %v1425_v26 }
 0x2a4   :  { %20370 = vst [vmem:[#allocation28_spill] sm:$0xff] %v14613_v18  ;;  %v14616_v44 = vadd.f32 %v1733_v8, %v20371_v46  ;;  %1771 = vmatmul.bf16.gmra.mxu1 %v1426_v47  ;;  %1860 = vmatmul.bf16.gmra.mxu2 %v1425_v26  ;;  %v1383_v8 = vld [vmem:[%s20247_s1 + $0x140] sm:$0xff] }
 0x2a5   :  { %1949 = vmatmul.bf16.gmra.mxu3 %v1426_v47  ;;  %v20375_v46 = vld [vmem:[#allocation41_spill] sm:$0xff] }
 0x2a6   :  { %20372 = vst [vmem:[#allocation24_spill] sm:$0xff] %v14616_v44 }
 0x2a7   :  { %v1821_v11 = vpop.f32.mrf.mxu2 }
 0x2a8   :  { %v1910_v5 = vpop.f32.mrf.mxu3  ;;  %v1645_v26 = vpop.f32.mrf.mxu0 }
 0x2a9   :  { %v1911_v29 = vadd.f32 %v1910_v5, %v1821_v11  ;;  %v1734_v62 = vpop.f32.mrf.mxu1  ;;  %v1384_v11 = vld [vmem:[%s20247_s1 + $0x148] sm:$0xff] }
 0x2aa   :  { %v1735_v27 = vadd.f32 %v1734_v62, %v1645_v26  ;;  %v12438_v5 = vld [vmem:[%s20245_s3 + $0x3a4] sm:$0xf0]  ;;  %v1427_v62 = vpack.c.bf16 %v1383_v8, %v1381_v49 }
 0x2ab   :  { %v14631_v47 = vadd.f32 %v1911_v29, %v20373_v60  ;;  %v9775_v26 = vor.u32 %v12438_v5, %v9774_v21 }
 0x2ac   :  { %v14640_v32 = vadd.f32 %v1735_v27, %v20375_v46  ;;  %v1428_v46 = vpack.c.bf16 %v1384_v11, %v1382_v1 }
 0x2ad   :  { %20374 = vst [vmem:[#allocation29_spill] sm:$0xff] %v14631_v47  ;;  %2437 = vmatpush.bf16.msrb.mxu1 %v9775_v26 }
 0x2ae   :  { %20376 = vst [vmem:[#allocation25_spill] sm:$0xff] %v14640_v32 }
 0x2af   :  { %v1823_v29 = vpop.f32.mrf.mxu2 }
 0x2b0   :  { %v1912_v27 = vpop.f32.mrf.mxu3  ;;  %v1648_v60 = vpop.f32.mrf.mxu0 }
 0x2b1   :  { %v1913_v32 = vadd.f32 %v1912_v27, %v1823_v29  ;;  %v1737_v47 = vpop.f32.mrf.mxu1 }
 0x2b2   :  { %v1738_v44 = vadd.f32 %v1737_v47, %v1648_v60 }
 0x2b3   :  { %v14661_v18 = vadd.f32 %v1913_v32, %v14102_v52  ;;  %1687 = vmatmul.bf16.gmra.mxu0 %v1427_v62  ;;  %v1386_v52 = vld [vmem:[%s20247_s1 + $0x158] sm:$0xff] }
 0x2b4   :  { %v14664_v45 = vadd.f32 %v1738_v44, %v14104_v22  ;;  %1776 = vmatmul.bf16.gmra.mxu1 %v1428_v46  ;;  %1865 = vmatmul.bf16.gmra.mxu2 %v1427_v62  ;;  %v1385_v22 = vld [vmem:[%s20247_s1 + $0x150] sm:$0xff]  ;;  %v1430_v29 = vpack.c.bf16 %v14171_v15, %v1386_v52  ;;  %v9704_v15 = vld [vmem:[%s20245_s3 + $0x318] sm:$0xf0]  ;;  %v20377_v52 = vld [vmem:[#allocation42_spill] sm:$0xff] }
 0x2b5   :  { %1954 = vmatmul.bf16.gmra.mxu3 %v1428_v46  ;;  %v1429_v32 = vpack.c.bf16 %v14160_v16, %v1385_v22  ;;  %v12419_v16 = vld [vmem:[%s20245_s3 + $0x314] sm:$0xf] }
 0x2b6   :  { %v9707_v46 = vor.u32 %v12419_v16, %v9704_v15  ;;  %v1390_v16 = vld [vmem:[%s20247_s1 + $0x178] sm:$0xff]  ;;  %v1392_v15 = vld [vmem:[%s20247_s1 + $0x188] sm:$0xff] }
 0x2b7   :  { %v1826_v25 = vpop.f32.mrf.mxu2 }
 0x2b8   :  { %v1915_v49 = vpop.f32.mrf.mxu3  ;;  %v1650_v8 = vpop.f32.mrf.mxu0  ;;  %2527 = vmatpush.bf16.msrb.mxu2 %v9707_v46  ;;  %v12436_v46 = vld [vmem:[%s20245_s3 + $0x394] sm:$0xf0] }
 0x2b9   :  { %v1916_v21 = vadd.f32 %v1915_v49, %v1826_v25  ;;  %v1739_v36 = vpop.f32.mrf.mxu1 }
 0x2ba   :  { %v1740_v1 = vadd.f32 %v1739_v36, %v1650_v8 }
 0x2bb   :  { %v14667_v11 = vadd.f32 %v1916_v21, %v14108_v39 }
 0x2bc   :  { %v14670_v47 = vadd.f32 %v1740_v1, %v14110_v50 }
 0x2bf   :  { %v1828_v44 = vpop.f32.mrf.mxu2 }
 0x2c0   :  { %v1917_v5 = vpop.f32.mrf.mxu3  ;;  %v1653_v26 = vpop.f32.mrf.mxu0 }
 0x2c1   :  { %v1918_v39 = vadd.f32 %v1917_v5, %v1828_v44  ;;  %v1742_v62 = vpop.f32.mrf.mxu1  ;;  %v1391_v5 = vld [vmem:[%s20247_s1 + $0x180] sm:$0xff] }
 0x2c2   :  { %v1743_v27 = vadd.f32 %v1742_v62, %v1653_v26  ;;  %v20378_v26 = vld [vmem:[#allocation43_spill] sm:$0xff]  ;;  %v12420_v62 = vld [vmem:[%s20245_s3 + $0x314] sm:$0xf0] }
 0x2c3   :  { %v14681_v50 = vadd.f32 %v1918_v39, %v14126_v20  ;;  %1692 = vmatmul.bf16.gmra.mxu0 %v1429_v32  ;;  %v12435_v20 = vld [vmem:[%s20245_s3 + $0x394] sm:$0xf]  ;;  %v9702_v39 = vld [vmem:[%s20245_s3 + $0x310] sm:$0xf] }
 0x2c4   :  { %v14684_v60 = vadd.f32 %v1743_v27, %v14128_v48  ;;  %1781 = vmatmul.bf16.gmra.mxu1 %v1430_v29  ;;  %1870 = vmatmul.bf16.gmra.mxu2 %v1429_v32  ;;  %v9768_v48 = vld [vmem:[%s20245_s3 + $0x398] sm:$0xf0]  ;;  %v1389_v32 = vld [vmem:[%s20247_s1 + $0x170] sm:$0xff] }
 0x2c5   :  { %1959 = vmatmul.bf16.gmra.mxu3 %v1430_v29  ;;  %v9771_v49 = vor.u32 %v12435_v20, %v9768_v48  ;;  %v9766_v27 = vld [vmem:[%s20245_s3 + $0x390] sm:$0xf]  ;;  %v9703_v20 = vor.u32 %v12420_v62, %v9702_v39 }
 0x2c6   :  { %v9767_v48 = vor.u32 %v12436_v46, %v9766_v27 }
 0x2c7   :  { %v1831_v25 = vpop.f32.mrf.mxu2  ;;  %2616 = vmatpush.bf16.msrb.mxu3 %v9771_v49  ;;  %v1431_v49 = vpack.c.bf16 %v1391_v5, %v1389_v32  ;;  %2349 = vmatpush.bf16.msrb.mxu0 %v9703_v20 }
 0x2c8   :  { %v1920_v8 = vpop.f32.mrf.mxu3  ;;  %v1655_v21 = vpop.f32.mrf.mxu0  ;;  %2438 = vmatpush.bf16.msrb.mxu1 %v9767_v48 }
 0x2c9   :  { %v1921_v36 = vadd.f32 %v1920_v8, %v1831_v25  ;;  %v1744_v1 = vpop.f32.mrf.mxu1 }
 0x2ca   :  { %v1745_v22 = vadd.f32 %v1744_v1, %v1655_v21 }
 0x2cb   :  { %v14699_v44 = vadd.f32 %v1921_v36, %v20377_v52  ;;  %v1432_v36 = vpack.c.bf16 %v1392_v15, %v1390_v16 }
 0x2cc   :  { %v14708_v29 = vadd.f32 %v1745_v22, %v20378_v26 }
 0x2cf   :  { %v1833_v25 = vpop.f32.mrf.mxu2 }
 0x2d0   :  { %v1922_v8 = vpop.f32.mrf.mxu3  ;;  %v1658_v21 = vpop.f32.mrf.mxu0 }
 0x2d1   :  { %v1923_v1 = vadd.f32 %v1922_v8, %v1833_v25  ;;  %v1747_v22 = vpop.f32.mrf.mxu1 }
 0x2d2   :  { %v1748_v52 = vadd.f32 %v1747_v22, %v1658_v21 }
 0x2d3   :  { %v14729_v26 = vadd.f32 %v1923_v1, %v14180_v63  ;;  %1697 = vmatmul.bf16.gmra.mxu0 %v1431_v49  ;;  %v1394_v63 = vld [vmem:[%s20247_s1 + $0x198] sm:$0xff] }
 0x2d4   :  { %v14732_v39 = vadd.f32 %v1748_v52, %v14182_v13  ;;  %1786 = vmatmul.bf16.gmra.mxu1 %v1432_v36  ;;  %1875 = vmatmul.bf16.gmra.mxu2 %v1431_v49  ;;  %v1393_v13 = vld [vmem:[%s20247_s1 + $0x190] sm:$0xff]  ;;  %v1434_v21 = vpack.c.bf16 %v14249_v0, %v1394_v63  ;;  %v9696_v0 = vld [vmem:[%s20245_s3 + $0x308] sm:$0xf0]  ;;  %v20379_v63 = vld [vmem:[#allocation44_spill] sm:$0xff] }
 0x2d5   :  { %1964 = vmatmul.bf16.gmra.mxu3 %v1432_v36  ;;  %v1433_v25 = vpack.c.bf16 %v14238_v9, %v1393_v13  ;;  %v12417_v9 = vld [vmem:[%s20245_s3 + $0x304] sm:$0xf] }
 0x2d6   :  { %v9699_v52 = vor.u32 %v12417_v9, %v9696_v0  ;;  %v1398_v9 = vld [vmem:[%s20247_s1 + $0x1b8] sm:$0xff]  ;;  %v1400_v0 = vld [vmem:[%s20247_s1 + $0x1c8] sm:$0xff] }
 0x2d7   :  { %v1836_v62 = vpop.f32.mrf.mxu2 }
 0x2d8   :  { %v1925_v32 = vpop.f32.mrf.mxu3  ;;  %v1660_v5 = vpop.f32.mrf.mxu0  ;;  %2528 = vmatpush.bf16.msrb.mxu2 %v9699_v52  ;;  %v12434_v52 = vld [vmem:[%s20245_s3 + $0x384] sm:$0xf0] }
 0x2d9   :  { %v1926_v27 = vadd.f32 %v1925_v32, %v1836_v62  ;;  %v1749_v20 = vpop.f32.mrf.mxu1 }
 0x2da   :  { %v1750_v16 = vadd.f32 %v1749_v20, %v1660_v5 }
 0x2db   :  { %v14735_v15 = vadd.f32 %v1926_v27, %v14186_v33 }
 0x2dc   :  { %v14738_v46 = vadd.f32 %v1750_v16, %v14188_v37 }
 0x2df   :  { %v1838_v48 = vpop.f32.mrf.mxu2 }
 0x2e0   :  { %v1927_v49 = vpop.f32.mrf.mxu3  ;;  %v1663_v8 = vpop.f32.mrf.mxu0 }
 0x2e1   :  { %v1928_v33 = vadd.f32 %v1927_v49, %v1838_v48  ;;  %v1752_v36 = vpop.f32.mrf.mxu1  ;;  %v1399_v49 = vld [vmem:[%s20247_s1 + $0x1c0] sm:$0xff] }
 0x2e2   :  { %v1753_v1 = vadd.f32 %v1752_v36, %v1663_v8  ;;  %v20380_v8 = vld [vmem:[#allocation45_spill] sm:$0xff]  ;;  %v12418_v36 = vld [vmem:[%s20245_s3 + $0x304] sm:$0xf0] }
 0x2e3   :  { %v14749_v37 = vadd.f32 %v1928_v33, %v14204_v2  ;;  %1702 = vmatmul.bf16.gmra.mxu0 %v1433_v25  ;;  %v12433_v2 = vld [vmem:[%s20245_s3 + $0x384] sm:$0xf]  ;;  %v9694_v33 = vld [vmem:[%s20245_s3 + $0x300] sm:$0xf] }
 0x2e4   :  { %v14752_v22 = vadd.f32 %v1753_v1, %v14206_v35  ;;  %1791 = vmatmul.bf16.gmra.mxu1 %v1434_v21  ;;  %1880 = vmatmul.bf16.gmra.mxu2 %v1433_v25  ;;  %v9760_v35 = vld [vmem:[%s20245_s3 + $0x388] sm:$0xf0]  ;;  %v1397_v25 = vld [vmem:[%s20247_s1 + $0x1b0] sm:$0xff]  ;;  %v9758_v1 = vld [vmem:[%s20245_s3 + $0x380] sm:$0xf] }
 0x2e5   :  { %1969 = vmatmul.bf16.gmra.mxu3 %v1434_v21  ;;  %v9763_v32 = vor.u32 %v12433_v2, %v9760_v35  ;;  %v9695_v2 = vor.u32 %v12418_v36, %v9694_v33  ;;  %v9759_v35 = vor.u32 %v12434_v52, %v9758_v1 }
 0x2e7   :  { %v1841_v62 = vpop.f32.mrf.mxu2  ;;  %2617 = vmatpush.bf16.msrb.mxu3 %v9763_v32  ;;  %v1435_v32 = vpack.c.bf16 %v1399_v49, %v1397_v25  ;;  %2350 = vmatpush.bf16.msrb.mxu0 %v9695_v2 }
 0x2e8   :  { %v1930_v5 = vpop.f32.mrf.mxu3  ;;  %v1665_v27 = vpop.f32.mrf.mxu0  ;;  %2439 = vmatpush.bf16.msrb.mxu1 %v9759_v35 }
 0x2e9   :  { %v1931_v20 = vadd.f32 %v1930_v5, %v1841_v62  ;;  %v1754_v16 = vpop.f32.mrf.mxu1 }
 0x2ea   :  { %v1755_v13 = vadd.f32 %v1754_v16, %v1665_v27 }
 0x2eb   :  { %v14767_v48 = vadd.f32 %v1931_v20, %v20379_v63  ;;  %v1436_v20 = vpack.c.bf16 %v1400_v0, %v1398_v9 }
 0x2ec   :  { %v14776_v21 = vadd.f32 %v1755_v13, %v20380_v8 }
 0x2ef   :  { %v1843_v62 = vpop.f32.mrf.mxu2 }
 0x2f0   :  { %v1932_v5 = vpop.f32.mrf.mxu3  ;;  %v1668_v27 = vpop.f32.mrf.mxu0 }
 0x2f1   :  { %v1933_v16 = vadd.f32 %v1932_v5, %v1843_v62  ;;  %v1757_v13 = vpop.f32.mrf.mxu1 }
 0x2f2   :  { %v1758_v63 = vadd.f32 %v1757_v13, %v1668_v27 }
 0x2f3   :  { %v14797_v8 = vadd.f32 %v1933_v16, %v14258_v3  ;;  %1707 = vmatmul.bf16.gmra.mxu0 %v1435_v32  ;;  %v1402_v3 = vld [vmem:[%s20247_s1 + $0x1d8] sm:$0xff] }
 0x2f4   :  { %v14800_v33 = vadd.f32 %v1758_v63, %v14260_v30  ;;  %1796 = vmatmul.bf16.gmra.mxu1 %v1436_v20  ;;  %1885 = vmatmul.bf16.gmra.mxu2 %v1435_v32  ;;  %v1401_v30 = vld [vmem:[%s20247_s1 + $0x1d0] sm:$0xff]  ;;  %v1438_v27 = vpack.c.bf16 %v14327_v56, %v1402_v3  ;;  %v20381_v56 = vld [vmem:[#allocation46_spill] sm:$0xff]  ;;  %v1406_v3 = vld [vmem:[%s20247_s1 + $0x1f8] sm:$0xff] }
 0x2f5   :  { %1974 = vmatmul.bf16.gmra.mxu3 %v1436_v20  ;;  %v1437_v62 = vpack.c.bf16 %v14316_v12, %v1401_v30 }
 0x2f7   :  { %v1846_v36 = vpop.f32.mrf.mxu2 }
 0x2f8   :  { %v1935_v25 = vpop.f32.mrf.mxu3  ;;  %v1670_v49 = vpop.f32.mrf.mxu0 }
 0x2f9   :  { %v1936_v1 = vadd.f32 %v1935_v25, %v1846_v36  ;;  %v1759_v2 = vpop.f32.mrf.mxu1 }
 0x2fa   :  { %v1760_v9 = vadd.f32 %v1759_v2, %v1670_v49 }
 0x2fb   :  { %v14803_v0 = vadd.f32 %v1936_v1, %v14264_v54 }
 0x2fc   :  { %v14806_v52 = vadd.f32 %v1760_v9, %v14266_v31  ;;  %v20382_v9 = vld [vmem:[#allocation47_spill] sm:$0xff] }
 0x2ff   :  { %v1848_v35 = vpop.f32.mrf.mxu2 }
 0x300   :  { %v1937_v32 = vpop.f32.mrf.mxu3  ;;  %v1673_v5 = vpop.f32.mrf.mxu0 }
 0x301   :  { %v1938_v54 = vadd.f32 %v1937_v32, %v1848_v35  ;;  %v1762_v20 = vpop.f32.mrf.mxu1  ;;  %v1408_v35 = vld [vmem:[%s20247_s1 + $0x208] sm:$0xff] }
 0x302   :  { %v1763_v16 = vadd.f32 %v1762_v20, %v1673_v5 }
 0x303   :  { %v14817_v31 = vadd.f32 %v1938_v54, %v14282_v57  ;;  %1712 = vmatmul.bf16.gmra.mxu0 %v1437_v62  ;;  %v1405_v57 = vld [vmem:[%s20247_s1 + $0x1f0] sm:$0xff]  ;;  %v1440_v54 = vpack.c.bf16 %v1408_v35, %v1406_v3 }
 0x304   :  { %v14820_v13 = vadd.f32 %v1763_v16, %v14284_v28  ;;  %1801 = vmatmul.bf16.gmra.mxu1 %v1438_v27  ;;  %1890 = vmatmul.bf16.gmra.mxu2 %v1437_v62  ;;  %v1407_v28 = vld [vmem:[%s20247_s1 + $0x200] sm:$0xff] }
 0x305   :  { %1979 = vmatmul.bf16.gmra.mxu3 %v1438_v27  ;;  %v1439_v32 = vpack.c.bf16 %v1407_v28, %v1405_v57 }
 0x307   :  { %v1851_v63 = vpop.f32.mrf.mxu2 }
 0x308   :  { %v1940_v36 = vpop.f32.mrf.mxu3  ;;  %v1675_v12 = vpop.f32.mrf.mxu0 }
 0x309   :  { %v1941_v25 = vadd.f32 %v1940_v36, %v1851_v63  ;;  %v1764_v49 = vpop.f32.mrf.mxu1 }
 0x30a   :  { %v1765_v1 = vadd.f32 %v1764_v49, %v1675_v12  ;;  %v9912_v49 = vld [vmem:[%s20248_s4 + $0x178] sm:$0xf0] }
 0x30b   :  { %v14823_v2 = vadd.f32 %v1941_v25, %v20381_v56  ;;  %v12495_v25 = vld [vmem:[%s20248_s4 + $0x174] sm:$0xf] }
 0x30c   :  { %v14826_v30 = vadd.f32 %v1765_v1, %v20382_v9  ;;  %v9915_v1 = vor.u32 %v12495_v25, %v9912_v49  ;;  %v12512_v49 = vld [vmem:[%s20248_s4 + $0x1f4] sm:$0xf0] }
 0x30e   :  { %3516 = vmatpush.bf16.msra.mxu2 %v9915_v1 }
 0x30f   :  { %v1853_v62 = vpop.f32.mrf.mxu2 }
 0x310   :  { %v1942_v5 = vpop.f32.mrf.mxu3  ;;  %v1678_v27 = vpop.f32.mrf.mxu0 }
 0x311   :  { %v1943_v20 = vadd.f32 %v1942_v5, %v1853_v62  ;;  %v1767_v16 = vpop.f32.mrf.mxu1  ;;  %v2054_v5 = vld [vmem:[%s20246_s0 + $0x10] sm:$0xff] }
 0x312   :  { %v1768_v63 = vadd.f32 %v1767_v16, %v1678_v27  ;;  %v2056_v27 = vld [vmem:[%s20246_s0 + $0x20] sm:$0xff]  ;;  %v9974_v16 = vld [vmem:[%s20248_s4 + $0x1f0] sm:$0xf] }
 0x313   :  { %v14841_v36 = vadd.f32 %v1943_v20, %v14336_v61  ;;  %1717 = vmatmul.bf16.gmra.mxu0 %v1439_v32  ;;  %v12511_v61 = vld [vmem:[%s20248_s4 + $0x1f4] sm:$0xf]  ;;  %v9910_v20 = vld [vmem:[%s20248_s4 + $0x170] sm:$0xf] }
 0x314   :  { %v14844_v12 = vadd.f32 %v1768_v63, %v14338_v14  ;;  %1806 = vmatmul.bf16.gmra.mxu1 %v1440_v54  ;;  %1895 = vmatmul.bf16.gmra.mxu2 %v1439_v32  ;;  %v9976_v14 = vld [vmem:[%s20248_s4 + $0x1f8] sm:$0xf0] }
 0x315   :  { %1984 = vmatmul.bf16.gmra.mxu3 %v1440_v54  ;;  %v9979_v9 = vor.u32 %v12511_v61, %v9976_v14  ;;  %v2055_v63 = vld [vmem:[%s20246_s0 + $0x18] sm:$0xff]  ;;  %v9975_v61 = vor.u32 %v12512_v49, %v9974_v16  ;;  %v2118_v14 = vpack.c.bf16 %v2056_v27, %v2054_v5 }
 0x317   :  { %v1856_v56 = vpop.f32.mrf.mxu2  ;;  %3565 = vmatpush.bf16.msra.mxu3 %v9979_v9  ;;  %3467 = vmatpush.bf16.msra.mxu1 %v9975_v61  ;;  %v2059_v61 = vld [vmem:[%s20246_s0 + $0x38] sm:$0xff] }
 0x318   :  { %v1945_v57 = vpop.f32.mrf.mxu3  ;;  %v1680_v28 = vpop.f32.mrf.mxu0 }
 0x319   :  { %v1946_v3 = vadd.f32 %v1945_v57, %v1856_v56  ;;  %v1769_v35 = vpop.f32.mrf.mxu1 }
 0x31a   :  { %v1770_v62 = vadd.f32 %v1769_v35, %v1680_v28 }
 0x31b   :  { %v14859_v32 = vadd.f32 %v1946_v3, %v14342_v41  ;;  %v12496_v41 = vld [vmem:[%s20248_s4 + $0x174] sm:$0xf0] }
 0x31c   :  { %v14868_v54 = vadd.f32 %v1770_v62, %v14344_v42  ;;  %v2057_v42 = vld [vmem:[%s20246_s0 + $0x28] sm:$0xff]  ;;  %v9911_v25 = vor.u32 %v12496_v41, %v9910_v20 }
 0x31d   :  { %v2119_v57 = vpack.c.bf16 %v2057_v42, %v2055_v63 }
 0x31e   :  { %3418 = vmatpush.bf16.msra.mxu0 %v9911_v25 }
 0x31f   :  { %v1858_v1 = vpop.f32.mrf.mxu2 }
 0x320   :  { %v1947_v56 = vpop.f32.mrf.mxu3  ;;  %v1683_v9 = vpop.f32.mrf.mxu0 }
 0x321   :  { %v1948_v28 = vadd.f32 %v1947_v56, %v1858_v1  ;;  %v1772_v3 = vpop.f32.mrf.mxu1 }
 0x322   :  { %v1773_v35 = vadd.f32 %v1772_v3, %v1683_v9 }
 0x323   :  { %v14889_v62 = vadd.f32 %v1948_v28, %v14354_v4  ;;  %2351 = vmatmul.bf16.vlgmr.msrb.gmra.mxu0 %v2118_v14  ;;  %v2058_v4 = vld [vmem:[%s20246_s0 + $0x30] sm:$0xff] }
 0x324   :  { %v14892_v20 = vadd.f32 %v1773_v35, %v14356_v10  ;;  %2440 = vmatmul.bf16.vlgmr.msrb.gmra.mxu1 %v2119_v57  ;;  %2529 = vmatmul.bf16.vlgmr.msrb.gmra.mxu2 %v2118_v14  ;;  %v2060_v10 = vld [vmem:[%s20246_s0 + $0x40] sm:$0xff] }
 0x325   :  { %2618 = vmatmul.bf16.vlgmr.msrb.gmra.mxu3 %v2119_v57  ;;  %v2120_v14 = vpack.c.bf16 %v2060_v10, %v2058_v4 }
 0x327   :  { %v1861_v41 = vpop.f32.mrf.mxu2 }
 0x328   :  { %v1950_v5 = vpop.f32.mrf.mxu3  ;;  %v1685_v27 = vpop.f32.mrf.mxu0 }
 0x329   :  { %v1951_v16 = vadd.f32 %v1950_v5, %v1861_v41  ;;  %v1774_v25 = vpop.f32.mrf.mxu1  ;;  %v12493_v5 = vld [vmem:[%s20248_s4 + $0x164] sm:$0xf] }
 0x32a   :  { %v1775_v63 = vadd.f32 %v1774_v25, %v1685_v27  ;;  %v9904_v27 = vld [vmem:[%s20248_s4 + $0x168] sm:$0xf0] }
 0x32b   :  { %v14895_v42 = vadd.f32 %v1951_v16, %v14372_v58  ;;  %v2061_v58 = vld [vmem:[%s20246_s0 + $0x48] sm:$0xff]  ;;  %v9907_v16 = vor.u32 %v12493_v5, %v9904_v27 }
 0x32c   :  { %v14898_v49 = vadd.f32 %v1775_v63, %v14374_v40  ;;  %v2121_v9 = vpack.c.bf16 %v2061_v58, %v2059_v61  ;;  %v12510_v27 = vld [vmem:[%s20248_s4 + $0x1e4] sm:$0xf0] }
 0x32d   :  { %3517 = vmatpush.bf16.msra.mxu2 %v9907_v16 }
 0x32f   :  { %v1863_v1 = vpop.f32.mrf.mxu2 }
 0x330   :  { %v1952_v40 = vpop.f32.mrf.mxu3  ;;  %v1688_v56 = vpop.f32.mrf.mxu0 }
 0x331   :  { %v1953_v57 = vadd.f32 %v1952_v40, %v1863_v1  ;;  %v1777_v28 = vpop.f32.mrf.mxu1  ;;  %v2062_v40 = vld [vmem:[%s20246_s0 + $0x50] sm:$0xff] }
 0x332   :  { %v1778_v3 = vadd.f32 %v1777_v28, %v1688_v56  ;;  %v2064_v56 = vld [vmem:[%s20246_s0 + $0x60] sm:$0xff] }
 0x333   :  { %v14913_v35 = vadd.f32 %v1953_v57, %v14398_v43  ;;  %2356 = vmatmul.bf16.gmra.mxu0 %v2120_v14  ;;  %v12509_v43 = vld [vmem:[%s20248_s4 + $0x1e4] sm:$0xf]  ;;  %v9902_v57 = vld [vmem:[%s20248_s4 + $0x160] sm:$0xf] }
 0x334   :  { %v14916_v41 = vadd.f32 %v1778_v3, %v14400_v38  ;;  %2445 = vmatmul.bf16.gmra.mxu1 %v2121_v9  ;;  %2534 = vmatmul.bf16.gmra.mxu2 %v2120_v14  ;;  %v9968_v38 = vld [vmem:[%s20248_s4 + $0x1e8] sm:$0xf0]  ;;  %v9966_v28 = vld [vmem:[%s20248_s4 + $0x1e0] sm:$0xf]  ;;  %v2063_v3 = vld [vmem:[%s20246_s0 + $0x58] sm:$0xff] }
 0x335   :  { %2623 = vmatmul.bf16.gmra.mxu3 %v2121_v9  ;;  %v9971_v63 = vor.u32 %v12509_v43, %v9968_v38  ;;  %v9967_v43 = vor.u32 %v12510_v27, %v9966_v28  ;;  %v2122_v38 = vpack.c.bf16 %v2064_v56, %v2062_v40 }
 0x337   :  { %v1866_v25 = vpop.f32.mrf.mxu2  ;;  %3566 = vmatpush.bf16.msra.mxu3 %v9971_v63  ;;  %3468 = vmatpush.bf16.msra.mxu1 %v9967_v43  ;;  %v2067_v43 = vld [vmem:[%s20246_s0 + $0x78] sm:$0xff] }
 0x338   :  { %v1955_v4 = vpop.f32.mrf.mxu3  ;;  %v1690_v10 = vpop.f32.mrf.mxu0 }
 0x339   :  { %v1956_v61 = vadd.f32 %v1955_v4, %v1866_v25  ;;  %v1779_v58 = vpop.f32.mrf.mxu1 }
 0x33a   :  { %v1780_v1 = vadd.f32 %v1779_v58, %v1690_v10 }
 0x33b   :  { %v14931_v14 = vadd.f32 %v1956_v61, %v14404_v23  ;;  %v12494_v23 = vld [vmem:[%s20248_s4 + $0x164] sm:$0xf0] }
 0x33c   :  { %v14940_v9 = vadd.f32 %v1780_v1, %v14406_v6  ;;  %v2065_v6 = vld [vmem:[%s20246_s0 + $0x68] sm:$0xff]  ;;  %v9903_v5 = vor.u32 %v12494_v23, %v9902_v57 }
 0x33d   :  { %20383 = vst [vmem:[#allocation26_spill] sm:$0xff] %v14931_v14  ;;  %v2123_v4 = vpack.c.bf16 %v2065_v6, %v2063_v3 }
 0x33e   :  { %20384 = vst [vmem:[#allocation27_spill] sm:$0xff] %v14940_v9  ;;  %3419 = vmatpush.bf16.msra.mxu0 %v9903_v5 }
 0x33f   :  { %v1868_v16 = vpop.f32.mrf.mxu2 }
 0x340   :  { %v1957_v25 = vpop.f32.mrf.mxu3  ;;  %v1693_v63 = vpop.f32.mrf.mxu0 }
 0x341   :  { %v1958_v10 = vadd.f32 %v1957_v25, %v1868_v16  ;;  %v1782_v61 = vpop.f32.mrf.mxu1 }
 0x342   :  { %v1783_v58 = vadd.f32 %v1782_v61, %v1693_v63 }
 0x343   :  { %v14961_v1 = vadd.f32 %v1958_v10, %v14418_v59  ;;  %2361 = vmatmul.bf16.gmra.mxu0 %v2122_v38  ;;  %v2066_v59 = vld [vmem:[%s20246_s0 + $0x70] sm:$0xff] }
 0x344   :  { %v14964_v57 = vadd.f32 %v1783_v58, %v14420_v55  ;;  %2450 = vmatmul.bf16.gmra.mxu1 %v2123_v4  ;;  %2539 = vmatmul.bf16.gmra.mxu2 %v2122_v38  ;;  %v2068_v55 = vld [vmem:[%s20246_s0 + $0x80] sm:$0xff] }
 0x345   :  { %20385 = vst [vmem:[#allocation30_spill] sm:$0xff] %v14961_v1  ;;  %2628 = vmatmul.bf16.gmra.mxu3 %v2123_v4  ;;  %v2124_v38 = vpack.c.bf16 %v2068_v55, %v2066_v59  ;;  %v20389_v58 = vld [vmem:[#allocation9_spill] sm:$0xff]  ;;  %v9960_v55 = vld [vmem:[%s20248_s4 + $0x1d8] sm:$0xf0] }
 0x346   :  { %20386 = vst [vmem:[#allocation31_spill] sm:$0xff] %v14964_v57 }
 0x347   :  { %v1871_v23 = vpop.f32.mrf.mxu2 }
 0x348   :  { %v1960_v40 = vpop.f32.mrf.mxu3  ;;  %v1695_v56 = vpop.f32.mrf.mxu0 }
 0x349   :  { %v1961_v28 = vadd.f32 %v1960_v40, %v1871_v23  ;;  %v1784_v5 = vpop.f32.mrf.mxu1  ;;  %v20391_v40 = vld [vmem:[#allocation10_spill] sm:$0xff] }
 0x34a   :  { %v1785_v3 = vadd.f32 %v1784_v5, %v1695_v56  ;;  %v9896_v5 = vld [vmem:[%s20248_s4 + $0x158] sm:$0xf0] }
 0x34b   :  { %v14967_v6 = vadd.f32 %v1961_v28, %v14436_v17  ;;  %v2069_v17 = vld [vmem:[%s20246_s0 + $0x88] sm:$0xff]  ;;  %v12491_v28 = vld [vmem:[%s20248_s4 + $0x154] sm:$0xf] }
 0x34c   :  { %v14970_v27 = vadd.f32 %v1785_v3, %v14438_v7  ;;  %v2125_v63 = vpack.c.bf16 %v2069_v17, %v2067_v43  ;;  %v12507_v3 = vld [vmem:[%s20248_s4 + $0x1d4] sm:$0xf]  ;;  %v9899_v59 = vor.u32 %v12491_v28, %v9896_v5  ;;  %v9894_v5 = vld [vmem:[%s20248_s4 + $0x150] sm:$0xf] }
 0x34d   :  { %20387 = vst [vmem:[#allocation32_spill] sm:$0xff] %v14967_v6  ;;  %v9963_v17 = vor.u32 %v12507_v3, %v9960_v55  ;;  %v12492_v3 = vld [vmem:[%s20248_s4 + $0x154] sm:$0xf0] }
 0x34e   :  { %20388 = vst [vmem:[#allocation33_spill] sm:$0xff] %v14970_v27  ;;  %3518 = vmatpush.bf16.msra.mxu2 %v9899_v59  ;;  %v9958_v59 = vld [vmem:[%s20248_s4 + $0x1d0] sm:$0xf]  ;;  %v2071_v55 = vld [vmem:[%s20246_s0 + $0x98] sm:$0xff] }
 0x34f   :  { %v1873_v16 = vpop.f32.mrf.mxu2  ;;  %3567 = vmatpush.bf16.msra.mxu3 %v9963_v17  ;;  %v9895_v17 = vor.u32 %v12492_v3, %v9894_v5  ;;  %v20399_v5 = vld [vmem:[#allocation17_spill] sm:$0xff] }
 0x350   :  { %v1962_v7 = vpop.f32.mrf.mxu3  ;;  %v1698_v25 = vpop.f32.mrf.mxu0 }
 0x351   :  { %v1963_v4 = vadd.f32 %v1962_v7, %v1873_v16  ;;  %v1787_v10 = vpop.f32.mrf.mxu1  ;;  %3420 = vmatpush.bf16.msra.mxu0 %v9895_v17 }
 0x352   :  { %v1788_v61 = vadd.f32 %v1787_v10, %v1698_v25 }
 0x353   :  { %v14985_v23 = vadd.f32 %v1963_v4, %v20389_v58  ;;  %2366 = vmatmul.bf16.gmra.mxu0 %v2124_v38  ;;  %v20393_v4 = vld [vmem:[#allocation11_spill] sm:$0xff]  ;;  %v2072_v58 = vld [vmem:[%s20246_s0 + $0xa0] sm:$0xff] }
 0x354   :  { %v14988_v56 = vadd.f32 %v1788_v61, %v20391_v40  ;;  %2455 = vmatmul.bf16.gmra.mxu1 %v2125_v63  ;;  %2544 = vmatmul.bf16.gmra.mxu2 %v2124_v38  ;;  %v2070_v61 = vld [vmem:[%s20246_s0 + $0x90] sm:$0xff]  ;;  %v20395_v40 = vld [vmem:[#allocation16_spill] sm:$0xff] }
 0x355   :  { %20390 = vst [vmem:[#allocation34_spill] sm:$0xff] %v14985_v23  ;;  %2633 = vmatmul.bf16.gmra.mxu3 %v2125_v63  ;;  %v20397_v23 = vld [vmem:[#allocation12_spill] sm:$0xff] }
 0x356   :  { %20392 = vst [vmem:[#allocation35_spill] sm:$0xff] %v14988_v56 }
 0x357   :  { %v1876_v43 = vpop.f32.mrf.mxu2 }
 0x358   :  { %v1965_v16 = vpop.f32.mrf.mxu3  ;;  %v1700_v38 = vpop.f32.mrf.mxu0 }
 0x359   :  { %v1966_v7 = vadd.f32 %v1965_v16, %v1876_v43  ;;  %v1789_v25 = vpop.f32.mrf.mxu1  ;;  %v2073_v43 = vld [vmem:[%s20246_s0 + $0xa8] sm:$0xff]  ;;  %v12508_v16 = vld [vmem:[%s20248_s4 + $0x1d4] sm:$0xf0] }
 0x35a   :  { %v1790_v63 = vadd.f32 %v1789_v25, %v1700_v38  ;;  %v9959_v38 = vor.u32 %v12508_v16, %v9958_v59  ;;  %v2126_v25 = vpack.c.bf16 %v2072_v58, %v2070_v61 }
 0x35b   :  { %v15003_v10 = vadd.f32 %v1966_v7, %v20393_v4 }
 0x35c   :  { %v15012_v28 = vadd.f32 %v1790_v63, %v20395_v40  ;;  %v2127_v40 = vpack.c.bf16 %v2073_v43, %v2071_v55  ;;  %3469 = vmatpush.bf16.msra.mxu1 %v9959_v38  ;;  %v20401_v43 = vld [vmem:[#allocation13_spill] sm:$0xff] }
 0x35d   :  { %20394 = vst [vmem:[#allocation36_spill] sm:$0xff] %v15003_v10 }
 0x35e   :  { %20396 = vst [vmem:[#allocation37_spill] sm:$0xff] %v15012_v28 }
 0x35f   :  { %v1878_v7 = vpop.f32.mrf.mxu2 }
 0x360   :  { %v1967_v63 = vpop.f32.mrf.mxu3  ;;  %v1703_v4 = vpop.f32.mrf.mxu0 }
 0x361   :  { %v1968_v28 = vadd.f32 %v1967_v63, %v1878_v7  ;;  %v1792_v10 = vpop.f32.mrf.mxu1 }
 0x362   :  { %v1793_v56 = vadd.f32 %v1792_v10, %v1703_v4  ;;  %v20403_v10 = vld [vmem:[#allocation14_spill] sm:$0xff] }
 0x363   :  { %v15033_v27 = vadd.f32 %v1968_v28, %v20397_v23  ;;  %2371 = vmatmul.bf16.gmra.mxu0 %v2126_v25  ;;  %v2074_v23 = vld [vmem:[%s20246_s0 + $0xb0] sm:$0xff]  ;;  %v2075_v28 = vld [vmem:[%s20246_s0 + $0xb8] sm:$0xff] }
 0x364   :  { %v15036_v3 = vadd.f32 %v1793_v56, %v20399_v5  ;;  %2460 = vmatmul.bf16.gmra.mxu1 %v2127_v40  ;;  %2549 = vmatmul.bf16.gmra.mxu2 %v2126_v25  ;;  %v2076_v56 = vld [vmem:[%s20246_s0 + $0xc0] sm:$0xff]  ;;  %v2077_v25 = vld [vmem:[%s20246_s0 + $0xc8] sm:$0xff] }
 0x365   :  { %20398 = vst [vmem:[#allocation38_spill] sm:$0xff] %v15033_v27  ;;  %2638 = vmatmul.bf16.gmra.mxu3 %v2127_v40  ;;  %v2128_v4 = vpack.c.bf16 %v2076_v56, %v2074_v23  ;;  %v9888_v23 = vld [vmem:[%s20248_s4 + $0x148] sm:$0xf0] }
 0x366   :  { %20400 = vst [vmem:[#allocation39_spill] sm:$0xff] %v15036_v3 }
 0x367   :  { %v1881_v59 = vpop.f32.mrf.mxu2 }
 0x368   :  { %v1970_v61 = vpop.f32.mrf.mxu3  ;;  %v1705_v58 = vpop.f32.mrf.mxu0 }
 0x369   :  { %v1971_v17 = vadd.f32 %v1970_v61, %v1881_v59  ;;  %v1794_v16 = vpop.f32.mrf.mxu1  ;;  %v2129_v59 = vpack.c.bf16 %v2077_v25, %v2075_v28  ;;  %v9952_v28 = vld [vmem:[%s20248_s4 + $0x1c8] sm:$0xf0] }
 0x36a   :  { %v1795_v55 = vadd.f32 %v1794_v16, %v1705_v58 }
 0x36b   :  { %v15039_v38 = vadd.f32 %v1971_v17, %v20401_v43 }
 0x36c   :  { %v15042_v7 = vadd.f32 %v1795_v55, %v20403_v10  ;;  %v20406_v55 = vld [vmem:[#allocation15_spill] sm:$0xff]  ;;  %v12489_v10 = vld [vmem:[%s20248_s4 + $0x144] sm:$0xf] }
 0x36d   :  { %20402 = vst [vmem:[#allocation40_spill] sm:$0xff] %v15039_v38  ;;  %v9891_v56 = vor.u32 %v12489_v10, %v9888_v23  ;;  %v2080_v10 = vld [vmem:[%s20246_s0 + $0xe0] sm:$0xff]  ;;  %v20410_v23 = vld [vmem:[#allocation18_spill] sm:$0xff]  ;;  %v20412_v38 = vld [vmem:[#allocation23_spill] sm:$0xff] }
 0x36e   :  { %20404 = vst [vmem:[#allocation41_spill] sm:$0xff] %v15042_v7 }
 0x36f   :  { %v1883_v63 = vpop.f32.mrf.mxu2  ;;  %3519 = vmatpush.bf16.msra.mxu2 %v9891_v56  ;;  %v9886_v56 = vld [vmem:[%s20248_s4 + $0x140] sm:$0xf] }
 0x370   :  { %v1972_v40 = vpop.f32.mrf.mxu3  ;;  %v1708_v5 = vpop.f32.mrf.mxu0 }
 0x371   :  { %v1973_v61 = vadd.f32 %v1972_v40, %v1883_v63  ;;  %v1797_v58 = vpop.f32.mrf.mxu1 }
 0x372   :  { %v1798_v17 = vadd.f32 %v1797_v58, %v1708_v5  ;;  %v20408_v58 = vld [vmem:[#allocation22_spill] sm:$0xff] }
 0x373   :  { %v15057_v16 = vadd.f32 %v1973_v61, %v14526_v19  ;;  %2376 = vmatmul.bf16.gmra.mxu0 %v2128_v4  ;;  %v12505_v19 = vld [vmem:[%s20248_s4 + $0x1c4] sm:$0xf] }
 0x374   :  { %v15060_v43 = vadd.f32 %v1798_v17, %v20406_v55  ;;  %2465 = vmatmul.bf16.gmra.mxu1 %v2129_v59  ;;  %2554 = vmatmul.bf16.gmra.mxu2 %v2128_v4  ;;  %v9955_v63 = vor.u32 %v12505_v19, %v9952_v28  ;;  %v2078_v55 = vld [vmem:[%s20246_s0 + $0xd0] sm:$0xff]  ;;  %v12490_v28 = vld [vmem:[%s20248_s4 + $0x144] sm:$0xf0] }
 0x375   :  { %20405 = vst [vmem:[#allocation42_spill] sm:$0xff] %v15057_v16  ;;  %2643 = vmatmul.bf16.gmra.mxu3 %v2129_v59 }
 0x376   :  { %20407 = vst [vmem:[#allocation43_spill] sm:$0xff] %v15060_v43  ;;  %3568 = vmatpush.bf16.msra.mxu3 %v9955_v63  ;;  %v2079_v63 = vld [vmem:[%s20246_s0 + $0xd8] sm:$0xff] }
 0x377   :  { %v1886_v25 = vpop.f32.mrf.mxu2 }
 0x378   :  { %v1975_v4 = vpop.f32.mrf.mxu3  ;;  %v1710_v40 = vpop.f32.mrf.mxu0 }
 0x379   :  { %v1976_v5 = vadd.f32 %v1975_v4, %v1886_v25  ;;  %v1799_v59 = vpop.f32.mrf.mxu1  ;;  %v9950_v25 = vld [vmem:[%s20248_s4 + $0x1c0] sm:$0xf]  ;;  %v2081_v4 = vld [vmem:[%s20246_s0 + $0xe8] sm:$0xff] }
 0x37a   :  { %v1800_v61 = vadd.f32 %v1799_v59, %v1710_v40  ;;  %v9887_v40 = vor.u32 %v12490_v28, %v9886_v56  ;;  %v20414_v56 = vld [vmem:[#allocation19_spill] sm:$0xff] }
 0x37b   :  { %v15075_v17 = vadd.f32 %v1976_v5, %v20408_v58  ;;  %v12506_v5 = vld [vmem:[%s20248_s4 + $0x1c4] sm:$0xf0]  ;;  %v2130_v58 = vpack.c.bf16 %v2080_v10, %v2078_v55 }
 0x37c   :  { %v15084_v19 = vadd.f32 %v1800_v61, %v20410_v23  ;;  %v9951_v59 = vor.u32 %v12506_v5, %v9950_v25  ;;  %3421 = vmatpush.bf16.msra.mxu0 %v9887_v40 }
 0x37d   :  { %20409 = vst [vmem:[#allocation44_spill] sm:$0xff] %v15075_v17  ;;  %v2131_v17 = vpack.c.bf16 %v2081_v4, %v2079_v63  ;;  %v20416_v4 = vld [vmem:[#allocation20_spill] sm:$0xff] }
 0x37e   :  { %20411 = vst [vmem:[#allocation45_spill] sm:$0xff] %v15084_v19  ;;  %3470 = vmatpush.bf16.msra.mxu1 %v9951_v59 }
 0x37f   :  { %v1888_v61 = vpop.f32.mrf.mxu2 }
 0x380   :  { %v1977_v23 = vpop.f32.mrf.mxu3  ;;  %v1713_v19 = vpop.f32.mrf.mxu0 }
 0x381   :  { %v1978_v43 = vadd.f32 %v1977_v23, %v1888_v61  ;;  %v1802_v16 = vpop.f32.mrf.mxu1 }
 0x382   :  { %v1803_v7 = vadd.f32 %v1802_v16, %v1713_v19  ;;  %v20418_v16 = vld [vmem:[#allocation21_spill] sm:$0xff] }
 0x383   :  { %v15105_v3 = vadd.f32 %v1978_v43, %v20412_v38  ;;  %2381 = vmatmul.bf16.gmra.mxu0 %v2130_v58  ;;  %v2082_v38 = vld [vmem:[%s20246_s0 + $0xf0] sm:$0xff]  ;;  %v2083_v43 = vld [vmem:[%s20246_s0 + $0xf8] sm:$0xff] }
 0x384   :  { %v15108_v28 = vadd.f32 %v1803_v7, %v20414_v56  ;;  %2470 = vmatmul.bf16.gmra.mxu1 %v2131_v17  ;;  %2559 = vmatmul.bf16.gmra.mxu2 %v2130_v58  ;;  %v2084_v7 = vld [vmem:[%s20246_s0 + $0x100] sm:$0xff] }
 0x385   :  { %20413 = vst [vmem:[#allocation46_spill] sm:$0xff] %v15105_v3  ;;  %2648 = vmatmul.bf16.gmra.mxu3 %v2131_v17  ;;  %v2085_v17 = vld [vmem:[%s20246_s0 + $0x108] sm:$0xff]  ;;  %v2132_v58 = vpack.c.bf16 %v2084_v7, %v2082_v38 }
 0x386   :  { %20415 = vst [vmem:[#allocation47_spill] sm:$0xff] %v15108_v28 }
 0x387   :  { %v1891_v25 = vpop.f32.mrf.mxu2 }
 0x388   :  { %v1980_v55 = vpop.f32.mrf.mxu3  ;;  %v1715_v10 = vpop.f32.mrf.mxu0 }
 0x389   :  { %v1981_v40 = vadd.f32 %v1980_v55, %v1891_v25  ;;  %v1804_v5 = vpop.f32.mrf.mxu1  ;;  %v2133_v25 = vpack.c.bf16 %v2085_v17, %v2083_v43 }
 0x38a   :  { %v1805_v63 = vadd.f32 %v1804_v5, %v1715_v10 }
 0x38b   :  { %v15111_v59 = vadd.f32 %v1981_v40, %v20416_v4 }
 0x38c   :  { %v15114_v19 = vadd.f32 %v1805_v63, %v20418_v16 }
 0x38d   :  { %20417 = vst [vmem:[#allocation9_spill] sm:$0xff] %v15111_v59 }
 0x38e   :  { %20419 = vst [vmem:[#allocation10_spill] sm:$0xff] %v15114_v19 }
 0x38f   :  { %v1893_v61 = vpop.f32.mrf.mxu2 }
 0x390   :  { %v1982_v23 = vpop.f32.mrf.mxu3  ;;  %v1718_v56 = vpop.f32.mrf.mxu0 }
 0x391   :  { %v1983_v55 = vadd.f32 %v1982_v23, %v1893_v61  ;;  %v1807_v10 = vpop.f32.mrf.mxu1  ;;  %v2087_v61 = vld [vmem:[%s20246_s0 + $0x118] sm:$0xff] }
 0x392   :  { %v1808_v40 = vadd.f32 %v1807_v10, %v1718_v56 }
 0x393   :  { %v15129_v5 = vadd.f32 %v1983_v55, %v14594_v53  ;;  %2386 = vmatmul.bf16.gmra.mxu0 %v2132_v58  ;;  %v2086_v53 = vld [vmem:[%s20246_s0 + $0x110] sm:$0xff] }
 0x394   :  { %v15132_v63 = vadd.f32 %v1808_v40, %v14596_v34  ;;  %2475 = vmatmul.bf16.gmra.mxu1 %v2133_v25  ;;  %2564 = vmatmul.bf16.gmra.mxu2 %v2132_v58  ;;  %v2088_v34 = vld [vmem:[%s20246_s0 + $0x120] sm:$0xff] }
 0x395   :  { %20420 = vst [vmem:[#allocation11_spill] sm:$0xff] %v15129_v5  ;;  %2653 = vmatmul.bf16.gmra.mxu3 %v2133_v25  ;;  %v2134_v23 = vpack.c.bf16 %v2088_v34, %v2086_v53  ;;  %v9944_v25 = vld [vmem:[%s20248_s4 + $0x1b8] sm:$0xf0]  ;;  %v2763_v34 = vld [vmem:[%s20249_s8] sm:$0xf] }
 0x396   :  { %20421 = vst [vmem:[#allocation16_spill] sm:$0xff] %v15132_v63  ;;  %v20426_v63 = vld [vmem:[#allocation24_spill] sm:$0xff]  ;;  %v2836_v3 = vperm.slane %v2763_v34, 3 }
 0x397   :  { %v1896_v4 = vpop.f32.mrf.mxu2 }
 0x398   :  { %v1985_v16 = vpop.f32.mrf.mxu3  ;;  %v1720_v19 = vpop.f32.mrf.mxu0 }
 0x399   :  { %v1986_v38 = vadd.f32 %v1985_v16, %v1896_v4  ;;  %v1809_v7 = vpop.f32.mrf.mxu1 }
 0x39a   :  { %v1810_v59 = vadd.f32 %v1809_v7, %v1720_v19  ;;  %v12503_v19 = vld [vmem:[%s20248_s4 + $0x1b4] sm:$0xf] }
 0x39b   :  { %v15135_v43 = vadd.f32 %v1986_v38, %v14600_v24  ;;  %v2089_v24 = vld [vmem:[%s20246_s0 + $0x128] sm:$0xff]  ;;  %v9947_v4 = vor.u32 %v12503_v19, %v9944_v25 }
 0x39c   :  { %v15138_v17 = vadd.f32 %v1810_v59, %v14602_v51  ;;  %v12487_v51 = vld [vmem:[%s20248_s4 + $0x134] sm:$0xf]  ;;  %v9880_v59 = vld [vmem:[%s20248_s4 + $0x138] sm:$0xf0]  ;;  %v2135_v40 = vpack.c.bf16 %v2089_v24, %v2087_v61  ;;  %v9878_v61 = vld [vmem:[%s20248_s4 + $0x130] sm:$0xf] }
 0x39d   :  { %20422 = vst [vmem:[#allocation12_spill] sm:$0xff] %v15135_v43  ;;  %v9883_v56 = vor.u32 %v12487_v51, %v9880_v59  ;;  %3569 = vmatpush.bf16.msra.mxu3 %v9947_v4  ;;  %v12488_v24 = vld [vmem:[%s20248_s4 + $0x134] sm:$0xf0]  ;;  %v2765_v59 = vperm.slane %v2763_v34, 0  ;;  %v2835_v4 = vperm.slane %v2763_v34, 1 }
 0x39e   :  { %20423 = vst [vmem:[#allocation17_spill] sm:$0xff] %v15138_v17  ;;  %v20424_v17 = vld [vmem:[#allocation28_spill] sm:$0xff] }
 0x39f   :  { %v1898_v58 = vpop.f32.mrf.mxu2  ;;  %3520 = vmatpush.bf16.msra.mxu2 %v9883_v56  ;;  %v12504_v51 = vld [vmem:[%s20248_s4 + $0x1b4] sm:$0xf0] }
 0x3a0   :  { %v1987_v55 = vpop.f32.mrf.mxu3  ;;  %v2352_v10 = vpop.f32.mrf.mxu0 }
 0x3a1   :  { %v1988_v16 = vadd.f32 %v1987_v55, %v1898_v58  ;;  %v2441_v38 = vpop.f32.mrf.mxu1 }
 0x3a2   :  { %v2442_v7 = vadd.f32 %v2441_v38, %v2352_v10 }
 0x3a3   :  { %v15165_v43 = vadd.f32 %v1988_v16, %v20424_v17  ;;  %2391 = vmatmul.bf16.gmra.mxu0 %v2134_v23  ;;  %v9942_v17 = vld [vmem:[%s20248_s4 + $0x1b0] sm:$0xf]  ;;  %v20427_v16 = vld [vmem:[#allocation29_spill] sm:$0xff] }
 0x3a4   :  { %v2699_v53 = vadd.f32 %v2442_v7, %v20426_v63  ;;  %2480 = vmatmul.bf16.gmra.mxu1 %v2135_v40  ;;  %2569 = vmatmul.bf16.gmra.mxu2 %v2134_v23  ;;  %v9879_v63 = vor.u32 %v12488_v24, %v9878_v61  ;;  %v9943_v58 = vor.u32 %v12504_v51, %v9942_v17  ;;  %v20428_v7 = vld [vmem:[#allocation25_spill] sm:$0xff]  ;;  %v2090_v24 = vld [vmem:[%s20246_s0 + $0x130] sm:$0xff]  ;;  %v2093_v51 = vld [vmem:[%s20246_s0 + $0x148] sm:$0xff] }
 0x3a5   :  { %20425 = vst [vmem:[#allocation13_spill] sm:$0xff] %v15165_v43  ;;  %2658 = vmatmul.bf16.gmra.mxu3 %v2135_v40  ;;  %v15183_v40 = vperm.slane %v2765_v59, 0  ;;  %v2092_v17 = vld [vmem:[%s20246_s0 + $0x140] sm:$0xff] }
 0x3a6   :  { %3422 = vmatpush.bf16.msra.mxu0 %v9879_v63  ;;  %3471 = vmatpush.bf16.msra.mxu1 %v9943_v58  ;;  %v2091_v63 = vld [vmem:[%s20246_s0 + $0x138] sm:$0xff]  ;;  %v2766_v58 = vperm.slane %v2763_v34, 2 }
 0x3a7   :  { %v2530_v19 = vpop.f32.mrf.mxu2  ;;  %v2771_v59 = vmul.f32 %v15183_v40, %v2699_v53 }
 0x3a8   :  { %v2619_v23 = vpop.f32.mrf.mxu3  ;;  %v2354_v56 = vpop.f32.mrf.mxu0  ;;  %v15203_v28 = vperm.slane %v2766_v58, 0 }
 0x3a9   :  { %v2620_v25 = vadd.f32 %v2619_v23, %v2530_v19  ;;  %v2443_v55 = vpop.f32.mrf.mxu1  ;;  %v15200_v19 = vperm.slane %v2835_v4, 1 }
 0x3aa   :  { %v2444_v10 = vadd.f32 %v2443_v55, %v2354_v56  ;;  %v2136_v56 = vpack.c.bf16 %v2092_v17, %v2090_v24 }
 0x3ab   :  { %v2700_v38 = vadd.f32 %v2620_v25, %v20427_v16  ;;  %v2841_v5 = vadd.f32 %v15200_v19, %v2771_v59 }
 0x3ac   :  { %v2701_v61 = vadd.f32 %v2444_v10, %v20428_v7  ;;  %v2137_v10 = vpack.c.bf16 %v2093_v51, %v2091_v63  ;;  %v15209_v63 = vperm.slane %v2836_v3, 1  ;;  %v12501_v3 = vld [vmem:[%s20248_s4 + $0x1a4] sm:$0xf] }
 0x3ad   :  { %v2905_v24 = vmul.f32 0.2, %v2841_v5  ;;  %v2772_v17 = vmul.f32 %v15203_v28, %v2700_v38 }
 0x3ae   :  { %v2773_v51 = vmul.f32 %v15183_v40, %v2701_v61 }
 0x3af   :  { %v2532_v23 = vpop.f32.mrf.mxu2 }
 0x3b0   :  { %v2621_v25 = vpop.f32.mrf.mxu3  ;;  %v2357_v55 = vpop.f32.mrf.mxu0 }
 0x3b1   :  { %v2622_v16 = vadd.f32 %v2621_v25, %v2532_v23  ;;  %v2446_v7 = vpop.f32.mrf.mxu1 }
 0x3b2   :  { %v2447_v43 = vadd.f32 %v2446_v7, %v2357_v55  ;;  %v2843_v7 = vadd.f32 %v15200_v19, %v2773_v51  ;;  %v2097_v51 = vld [vmem:[%s20246_s0 + $0x168] sm:$0xff] }
 0x3b3   :  { %v2702_v27 = vadd.f32 %v2622_v16, %v14661_v18  ;;  %2396 = vmatmul.bf16.gmra.mxu0 %v2136_v56  ;;  %v2842_v16 = vadd.f32 %v15209_v63, %v2772_v17 }
 0x3b4   :  { %v2703_v53 = vadd.f32 %v2447_v43, %v14664_v45  ;;  %2485 = vmatmul.bf16.gmra.mxu1 %v2137_v10  ;;  %2574 = vmatmul.bf16.gmra.mxu2 %v2136_v56  ;;  %v12485_v45 = vld [vmem:[%s20248_s4 + $0x124] sm:$0xf]  ;;  %v9872_v43 = vld [vmem:[%s20248_s4 + $0x128] sm:$0xf0] }
 0x3b5   :  { %2663 = vmatmul.bf16.gmra.mxu3 %v2137_v10  ;;  %v9875_v61 = vor.u32 %v12485_v45, %v9872_v43  ;;  %v9936_v56 = vld [vmem:[%s20248_s4 + $0x1a8] sm:$0xf0] }
 0x3b6   :  { %v2775_v4 = vmul.f32 %v15183_v40, %v2703_v53  ;;  %v9939_v10 = vor.u32 %v12501_v3, %v9936_v56  ;;  %v2907_v3 = vmul.f32 0.2, %v2843_v7 }
 0x3b7   :  { %v2535_v59 = vpop.f32.mrf.mxu2  ;;  %3521 = vmatpush.bf16.msra.mxu2 %v9875_v61 }
 0x3b8   :  { %v2845_v34 = vadd.f32 %v15200_v19, %v2775_v4  ;;  %v2624_v58 = vpop.f32.mrf.mxu3  ;;  %v2359_v18 = vpop.f32.mrf.mxu0  ;;  %v2094_v4 = vld [vmem:[%s20246_s0 + $0x150] sm:$0xff]  ;;  %3570 = vmatpush.bf16.msra.mxu3 %v9939_v10  ;;  %v9870_v10 = vld [vmem:[%s20248_s4 + $0x120] sm:$0xf]  ;;  %v15265_v14 = vmax.f32 %v2843_v7, %v2907_v3 }
 0x3b9   :  { %v2625_v38 = vadd.f32 %v2624_v58, %v2535_v59  ;;  %v2448_v23 = vpop.f32.mrf.mxu1  ;;  %v2096_v59 = vld [vmem:[%s20246_s0 + $0x160] sm:$0xff]  ;;  %v2969_v58 = vmax.f32 %v2841_v5, %v2905_v24 }
 0x3ba   :  { %v2909_v25 = vmul.f32 0.2, %v2845_v34  ;;  %v2449_v55 = vadd.f32 %v2448_v23, %v2359_v18  ;;  %v2138_v24 = vpack.c.bf16 %v2096_v59, %v2094_v4 }
 0x3bb   :  { %v2704_v53 = vadd.f32 %v2625_v38, %v14667_v11  ;;  %v2095_v11 = vld [vmem:[%s20246_s0 + $0x158] sm:$0xff] }
 0x3bc   :  { %v15234_v45 = vmax.f32 %v2845_v34, %v2909_v25  ;;  %v2705_v18 = vadd.f32 %v2449_v55, %v14670_v47  ;;  %v2906_v34 = vmul.f32 0.2, %v2842_v16  ;;  %v2774_v47 = vmul.f32 %v15203_v28, %v2702_v27  ;;  %v9934_v27 = vld [vmem:[%s20248_s4 + $0x1a0] sm:$0xf] }
 0x3bd   :  { %v2776_v17 = vmul.f32 %v15203_v28, %v2704_v53  ;;  %v2139_v55 = vpack.c.bf16 %v2097_v51, %v2095_v11  ;;  %v12486_v53 = vld [vmem:[%s20248_s4 + $0x124] sm:$0xf0] }
 0x3be   :  { %v15245_v43 = vpack.c.bf16 %v15234_v45, %v2969_v58  ;;  %v2777_v5 = vmul.f32 %v15183_v40, %v2705_v18  ;;  %v9871_v18 = vor.u32 %v12486_v53, %v9870_v10  ;;  %v2970_v6 = vmax.f32 %v2842_v16, %v2906_v34 }
 0x3bf   :  { %v2846_v38 = vadd.f32 %v15209_v63, %v2776_v17  ;;  %v2537_v23 = vpop.f32.mrf.mxu2  ;;  %v12502_v17 = vld [vmem:[%s20248_s4 + $0x1a4] sm:$0xf0]  ;;  %v2844_v57 = vadd.f32 %v15209_v63, %v2774_v47 }
 0x3c0   :  { %v2847_v61 = vadd.f32 %v15200_v19, %v2777_v5  ;;  %v2626_v56 = vpop.f32.mrf.mxu3  ;;  %v2362_v25 = vpop.f32.mrf.mxu0  ;;  %v9935_v51 = vor.u32 %v12502_v17, %v9934_v27  ;;  %3423 = vmatpush.bf16.msra.mxu0 %v9871_v18  ;;  %v2100_v18 = vld [vmem:[%s20246_s0 + $0x180] sm:$0xff] }
 0x3c1   :  { %v2910_v4 = vmul.f32 0.2, %v2846_v38  ;;  %v2627_v59 = vadd.f32 %v2626_v56, %v2537_v23  ;;  %v2451_v58 = vpop.f32.mrf.mxu1 }
 0x3c2   :  { %v2452_v11 = vadd.f32 %v2451_v58, %v2362_v25  ;;  %v2911_v5 = vmul.f32 0.2, %v2847_v61  ;;  %3472 = vmatpush.bf16.msra.mxu1 %v9935_v51  ;;  %v2098_v58 = vld [vmem:[%s20246_s0 + $0x170] sm:$0xff] }
 0x3c3   :  { %v2974_v1 = vmax.f32 %v2846_v38, %v2910_v4  ;;  %v2706_v9 = vadd.f32 %v2627_v59, %v14681_v50  ;;  %2401 = vmatmul.bf16.gmra.mxu0 %v2138_v24  ;;  %v2908_v50 = vmul.f32 0.2, %v2844_v57 }
 0x3c4   :  { %v2707_v23 = vadd.f32 %v2452_v11, %v14684_v60  ;;  %2490 = vmatmul.bf16.gmra.mxu1 %v2139_v55  ;;  %2579 = vmatmul.bf16.gmra.mxu2 %v2138_v24  ;;  %v2975_v56 = vmax.f32 %v2847_v61, %v2911_v5 }
 0x3c5   :  { %v15268_v10 = vpack.c.bf16 %v2974_v1, %v2970_v6  ;;  %v2778_v25 = vmul.f32 %v15203_v28, %v2706_v9  ;;  %2668 = vmatmul.bf16.gmra.mxu3 %v2139_v55  ;;  %v15277_v53 = vmax.f32 %v2844_v57, %v2908_v50  ;;  %v2099_v57 = vld [vmem:[%s20246_s0 + $0x178] sm:$0xff] }
 0x3c6   :  { %v2779_v16 = vmul.f32 %v15183_v40, %v2707_v23  ;;  %v15273_v34 = vpack.c.bf16 %v2975_v56, %v15265_v14 }
 0x3c7   :  { %v2848_v7 = vadd.f32 %v15209_v63, %v2778_v25  ;;  %v2540_v3 = vpop.f32.mrf.mxu2 }
 0x3c8   :  { %v2849_v60 = vadd.f32 %v15200_v19, %v2779_v16  ;;  %v2629_v24 = vpop.f32.mrf.mxu3  ;;  %v2364_v47 = vpop.f32.mrf.mxu0  ;;  %v2140_v16 = vpack.c.bf16 %v2100_v18, %v2098_v58 }
 0x3c9   :  { %v2630_v6 = vadd.f32 %v2629_v24, %v2540_v3  ;;  %v2453_v38 = vpop.f32.mrf.mxu1  ;;  %v2912_v61 = vmul.f32 0.2, %v2848_v7 }
 0x3ca   :  { %v2454_v9 = vadd.f32 %v2453_v38, %v2364_v47  ;;  %v2913_v55 = vmul.f32 0.2, %v2849_v60 }
 0x3cb   :  { %v2708_v27 = vadd.f32 %v2630_v6, %v14699_v44  ;;  %v2976_v4 = vmax.f32 %v2848_v7, %v2912_v61  ;;  %v2101_v44 = vld [vmem:[%s20246_s0 + $0x188] sm:$0xff] }
 0x3cc   :  { %v2709_v59 = vadd.f32 %v2454_v9, %v14708_v29  ;;  %v2977_v17 = vmax.f32 %v2849_v60, %v2913_v55  ;;  %v2141_v60 = vpack.c.bf16 %v2101_v44, %v2099_v57 }
 0x3cd   :  { %v2780_v11 = vmul.f32 %v15203_v28, %v2708_v27  ;;  %v15295_v29 = vpack.c.bf16 %v2976_v4, %v15277_v53 }
 0x3ce   :  { %v2781_v51 = vmul.f32 %v15183_v40, %v2709_v59  ;;  %v15299_v5 = vpack.c.bf16 %v2977_v17, %v15234_v45 }
 0x3cf   :  { %v2850_v23 = vadd.f32 %v15209_v63, %v2780_v11  ;;  %v2542_v25 = vpop.f32.mrf.mxu2 }
 0x3d0   :  { %20429 = vst [vmem:[#allocation14_spill] sm:$0xff] %v15299_v5  ;;  %v2851_v50 = vadd.f32 %v15200_v19, %v2781_v51  ;;  %v2631_v7 = vpop.f32.mrf.mxu3  ;;  %v2367_v3 = vpop.f32.mrf.mxu0 }
 0x3d1   :  { %v2632_v24 = vadd.f32 %v2631_v7, %v2542_v25  ;;  %v2456_v47 = vpop.f32.mrf.mxu1  ;;  %v2914_v6 = vmul.f32 0.2, %v2850_v23  ;;  %v9928_v7 = vld [vmem:[%s20248_s4 + $0x198] sm:$0xf0] }
 0x3d2   :  { %v2457_v38 = vadd.f32 %v2456_v47, %v2367_v3  ;;  %v2915_v61 = vmul.f32 0.2, %v2851_v50 }
 0x3d3   :  { %v2710_v9 = vadd.f32 %v2632_v24, %v14729_v26  ;;  %2406 = vmatmul.bf16.gmra.mxu0 %v2140_v16  ;;  %v15304_v55 = vmax.f32 %v2850_v23, %v2914_v6  ;;  %v12483_v23 = vld [vmem:[%s20248_s4 + $0x114] sm:$0xf] }
 0x3d4   :  { %v2711_v45 = vadd.f32 %v2457_v38, %v14732_v39  ;;  %2495 = vmatmul.bf16.gmra.mxu1 %v2141_v60  ;;  %2584 = vmatmul.bf16.gmra.mxu2 %v2140_v16  ;;  %v15307_v27 = vmax.f32 %v2851_v50, %v2915_v61 }
 0x3d5   :  { %v2782_v59 = vmul.f32 %v15203_v28, %v2710_v9  ;;  %2673 = vmatmul.bf16.gmra.mxu3 %v2141_v60  ;;  %v15311_v58 = vpack.c.bf16 %v15304_v55, %v2974_v1  ;;  %v9864_v1 = vld [vmem:[%s20248_s4 + $0x118] sm:$0xf0]  ;;  %v2102_v9 = vld [vmem:[%s20246_s0 + $0x190] sm:$0xff] }
 0x3d6   :  { %v2783_v18 = vmul.f32 %v15183_v40, %v2711_v45  ;;  %v15315_v11 = vpack.c.bf16 %v15307_v27, %v2975_v56  ;;  %v12499_v56 = vld [vmem:[%s20248_s4 + $0x194] sm:$0xf]  ;;  %v9867_v50 = vor.u32 %v12483_v23, %v9864_v1  ;;  %v2104_v45 = vld [vmem:[%s20246_s0 + $0x1a0] sm:$0xff] }
 0x3d7   :  { %20430 = vst [vmem:[#allocation15_spill] sm:$0xff] %v15311_v58  ;;  %v2852_v26 = vadd.f32 %v15209_v63, %v2782_v59  ;;  %v2545_v57 = vpop.f32.mrf.mxu2  ;;  %v9931_v24 = vor.u32 %v12499_v56, %v9928_v7  ;;  %v2142_v23 = vpack.c.bf16 %v2104_v45, %v2102_v9 }
 0x3d8   :  { %v2853_v39 = vadd.f32 %v15200_v19, %v2783_v18  ;;  %v2634_v44 = vpop.f32.mrf.mxu3  ;;  %v2369_v51 = vpop.f32.mrf.mxu0  ;;  %3522 = vmatpush.bf16.msra.mxu2 %v9867_v50  ;;  %v9862_v50 = vld [vmem:[%s20248_s4 + $0x110] sm:$0xf] }
 0x3d9   :  { %v2635_v25 = vadd.f32 %v2634_v44, %v2545_v57  ;;  %v2458_v16 = vpop.f32.mrf.mxu1  ;;  %v2916_v3 = vmul.f32 0.2, %v2852_v26  ;;  %3571 = vmatpush.bf16.msra.mxu3 %v9931_v24  ;;  %v12500_v24 = vld [vmem:[%s20248_s4 + $0x194] sm:$0xf0] }
 0x3da   :  { %v2459_v60 = vadd.f32 %v2458_v16, %v2369_v51  ;;  %v2917_v47 = vmul.f32 0.2, %v2853_v39 }
 0x3db   :  { %v2712_v6 = vadd.f32 %v2635_v25, %v14735_v15  ;;  %v15332_v38 = vmax.f32 %v2852_v26, %v2916_v3  ;;  %v2103_v15 = vld [vmem:[%s20246_s0 + $0x198] sm:$0xff] }
 0x3dc   :  { %v2713_v61 = vadd.f32 %v2459_v60, %v14738_v46  ;;  %v2981_v59 = vmax.f32 %v2853_v39, %v2917_v47  ;;  %v2105_v46 = vld [vmem:[%s20246_s0 + $0x1a8] sm:$0xff] }
 0x3dd   :  { %v2784_v18 = vmul.f32 %v15203_v28, %v2712_v6  ;;  %v15349_v26 = vpack.c.bf16 %v15332_v38, %v2976_v4  ;;  %v2143_v16 = vpack.c.bf16 %v2105_v46, %v2103_v15  ;;  %v12484_v4 = vld [vmem:[%s20248_s4 + $0x114] sm:$0xf0] }
 0x3de   :  { %v2785_v57 = vmul.f32 %v15183_v40, %v2713_v61  ;;  %v15352_v44 = vpack.c.bf16 %v2981_v59, %v2977_v17  ;;  %v9926_v17 = vld [vmem:[%s20248_s4 + $0x190] sm:$0xf]  ;;  %v9863_v60 = vor.u32 %v12484_v4, %v9862_v50 }
 0x3df   :  { %v2854_v51 = vadd.f32 %v15209_v63, %v2784_v18  ;;  %v2547_v39 = vpop.f32.mrf.mxu2  ;;  %v9927_v61 = vor.u32 %v12500_v24, %v9926_v17  ;;  %v2108_v24 = vld [vmem:[%s20246_s0 + $0x1c0] sm:$0xff] }
 0x3e0   :  { %v2855_v1 = vadd.f32 %v15200_v19, %v2785_v57  ;;  %v2636_v56 = vpop.f32.mrf.mxu3  ;;  %v2372_v25 = vpop.f32.mrf.mxu0  ;;  %3424 = vmatpush.bf16.msra.mxu0 %v9863_v60 }
 0x3e1   :  { %v2637_v7 = vadd.f32 %v2636_v56, %v2547_v39  ;;  %v2461_v3 = vpop.f32.mrf.mxu1  ;;  %v2918_v47 = vmul.f32 0.2, %v2854_v51  ;;  %3473 = vmatpush.bf16.msra.mxu1 %v9927_v61  ;;  %v2107_v61 = vld [vmem:[%s20246_s0 + $0x1b8] sm:$0xff] }
 0x3e2   :  { %v2462_v6 = vadd.f32 %v2461_v3, %v2372_v25  ;;  %v2919_v9 = vmul.f32 0.2, %v2855_v1 }
 0x3e3   :  { %v2714_v45 = vadd.f32 %v2637_v7, %v14749_v37  ;;  %2411 = vmatmul.bf16.gmra.mxu0 %v2142_v23  ;;  %v2982_v18 = vmax.f32 %v2854_v51, %v2918_v47 }
 0x3e4   :  { %v2715_v15 = vadd.f32 %v2462_v6, %v14752_v22  ;;  %2500 = vmatmul.bf16.gmra.mxu1 %v2143_v16  ;;  %2589 = vmatmul.bf16.gmra.mxu2 %v2142_v23  ;;  %v2983_v46 = vmax.f32 %v2855_v1, %v2919_v9 }
 0x3e5   :  { %v2786_v57 = vmul.f32 %v15203_v28, %v2714_v45  ;;  %2678 = vmatmul.bf16.gmra.mxu3 %v2143_v16  ;;  %v15372_v39 = vpack.c.bf16 %v2982_v18, %v15304_v55 }
 0x3e6   :  { %v2787_v56 = vmul.f32 %v15183_v40, %v2715_v15  ;;  %v15376_v25 = vpack.c.bf16 %v2983_v46, %v15307_v27  ;;  %v2106_v27 = vld [vmem:[%s20246_s0 + $0x1b0] sm:$0xff] }
 0x3e7   :  { %v2856_v37 = vadd.f32 %v15209_v63, %v2786_v57  ;;  %v2550_v51 = vpop.f32.mrf.mxu2 }
 0x3e8   :  { %v2857_v22 = vadd.f32 %v15200_v19, %v2787_v56  ;;  %v2639_v23 = vpop.f32.mrf.mxu3  ;;  %v2374_v1 = vpop.f32.mrf.mxu0  ;;  %v2144_v56 = vpack.c.bf16 %v2108_v24, %v2106_v27 }
 0x3e9   :  { %v2640_v50 = vadd.f32 %v2639_v23, %v2550_v51  ;;  %v2463_v4 = vpop.f32.mrf.mxu1  ;;  %v2920_v16 = vmul.f32 0.2, %v2856_v37 }
 0x3ea   :  { %v2464_v17 = vadd.f32 %v2463_v4, %v2374_v1  ;;  %v2921_v7 = vmul.f32 0.2, %v2857_v22 }
 0x3eb   :  { %v2716_v55 = vadd.f32 %v2640_v50, %v14767_v48  ;;  %v2984_v3 = vmax.f32 %v2856_v37, %v2920_v16  ;;  %v2109_v48 = vld [vmem:[%s20246_s0 + $0x1c8] sm:$0xff] }
 0x3ec   :  { %v2717_v60 = vadd.f32 %v2464_v17, %v14776_v21  ;;  %v2985_v47 = vmax.f32 %v2857_v22, %v2921_v7  ;;  %v2145_v23 = vpack.c.bf16 %v2109_v48, %v2107_v61 }
 0x3ed   :  { %v2788_v6 = vmul.f32 %v15203_v28, %v2716_v55  ;;  %v15396_v21 = vpack.c.bf16 %v2984_v3, %v15332_v38 }
 0x3ee   :  { %v2789_v9 = vmul.f32 %v15183_v40, %v2717_v60  ;;  %v15399_v45 = vpack.c.bf16 %v2985_v47, %v2981_v59 }
 0x3ef   :  { %v2858_v15 = vadd.f32 %v15209_v63, %v2788_v6  ;;  %v2552_v57 = vpop.f32.mrf.mxu2 }
 0x3f0   :  { %20431 = vst [vmem:[#allocation22_spill] sm:$0xff] %v15399_v45  ;;  %v2859_v37 = vadd.f32 %v15200_v19, %v2789_v9  ;;  %v2641_v51 = vpop.f32.mrf.mxu3  ;;  %v2377_v22 = vpop.f32.mrf.mxu0  ;;  %v12518_v45 = vld [vmem:[%s20248_s4 + $0x224] sm:$0xf0] }
 0x3f1   :  { %v2642_v1 = vadd.f32 %v2641_v51, %v2552_v57  ;;  %v2466_v50 = vpop.f32.mrf.mxu1  ;;  %v2922_v4 = vmul.f32 0.2, %v2858_v15  ;;  %v9920_v51 = vld [vmem:[%s20248_s4 + $0x188] sm:$0xf0] }
 0x3f2   :  { %v2467_v16 = vadd.f32 %v2466_v50, %v2377_v22  ;;  %v2923_v17 = vmul.f32 0.2, %v2859_v37 }
 0x3f3   :  { %v2718_v38 = vadd.f32 %v2642_v1, %v14797_v8  ;;  %2416 = vmatmul.bf16.gmra.mxu0 %v2144_v56  ;;  %v15404_v7 = vmax.f32 %v2858_v15, %v2922_v4  ;;  %v12481_v15 = vld [vmem:[%s20248_s4 + $0x104] sm:$0xf] }
 0x3f4   :  { %v2719_v59 = vadd.f32 %v2467_v16, %v14800_v33  ;;  %2505 = vmatmul.bf16.gmra.mxu1 %v2145_v23  ;;  %2594 = vmatmul.bf16.gmra.mxu2 %v2144_v56  ;;  %v15407_v55 = vmax.f32 %v2859_v37, %v2923_v17 }
 0x3f5   :  { %v2790_v60 = vmul.f32 %v15203_v28, %v2718_v38  ;;  %2683 = vmatmul.bf16.gmra.mxu3 %v2145_v23  ;;  %v15411_v27 = vpack.c.bf16 %v15404_v7, %v2982_v18  ;;  %v9856_v18 = vld [vmem:[%s20248_s4 + $0x108] sm:$0xf0]  ;;  %v2110_v38 = vld [vmem:[%s20246_s0 + $0x1d0] sm:$0xff] }
 0x3f6   :  { %v2791_v24 = vmul.f32 %v15183_v40, %v2719_v59  ;;  %v15415_v6 = vpack.c.bf16 %v15407_v55, %v2983_v46  ;;  %v12497_v46 = vld [vmem:[%s20248_s4 + $0x184] sm:$0xf]  ;;  %v9859_v37 = vor.u32 %v12481_v15, %v9856_v18  ;;  %v9854_v18 = vld [vmem:[%s20248_s4 + $0x100] sm:$0xf] }
 0x3f7   :  { %20432 = vst [vmem:[#allocation18_spill] sm:$0xff] %v15411_v27  ;;  %v2860_v8 = vadd.f32 %v15209_v63, %v2790_v60  ;;  %v2555_v61 = vpop.f32.mrf.mxu2  ;;  %v9923_v1 = vor.u32 %v12497_v46, %v9920_v51  ;;  %v2112_v59 = vld [vmem:[%s20246_s0 + $0x1e0] sm:$0xff]  ;;  %v12482_v46 = vld [vmem:[%s20248_s4 + $0x104] sm:$0xf0] }
 0x3f8   :  { %v2861_v33 = vadd.f32 %v15200_v19, %v2791_v24  ;;  %v2644_v48 = vpop.f32.mrf.mxu3  ;;  %v2379_v9 = vpop.f32.mrf.mxu0  ;;  %3523 = vmatpush.bf16.msra.mxu2 %v9859_v37  ;;  %v2146_v15 = vpack.c.bf16 %v2112_v59, %v2110_v38  ;;  %v9855_v51 = vor.u32 %v12482_v46, %v9854_v18  ;;  %v10158_v27 = vld [vmem:[%s20248_s4 + $0x220] sm:$0xf] }
 0x3f9   :  { %v2645_v57 = vadd.f32 %v2644_v48, %v2555_v61  ;;  %v2468_v56 = vpop.f32.mrf.mxu1  ;;  %v2924_v22 = vmul.f32 0.2, %v2860_v8  ;;  %3572 = vmatpush.bf16.msra.mxu3 %v9923_v1 }
 0x3fa   :  { %v2469_v23 = vadd.f32 %v2468_v56, %v2379_v9  ;;  %v2925_v50 = vmul.f32 0.2, %v2861_v33  ;;  %3425 = vmatpush.bf16.msra.mxu0 %v9855_v51 }
 0x3fb   :  { %v2720_v4 = vadd.f32 %v2645_v57, %v14803_v0  ;;  %v15432_v16 = vmax.f32 %v2860_v8, %v2924_v22  ;;  %v2111_v0 = vld [vmem:[%s20246_s0 + $0x1d8] sm:$0xff]  ;;  %v12498_v22 = vld [vmem:[%s20248_s4 + $0x184] sm:$0xf0] }
 0x3fc   :  { %v2721_v17 = vadd.f32 %v2469_v23, %v14806_v52  ;;  %v2989_v60 = vmax.f32 %v2861_v33, %v2925_v50  ;;  %v2113_v52 = vld [vmem:[%s20246_s0 + $0x1e8] sm:$0xff] }
 0x3fd   :  { %v2792_v24 = vmul.f32 %v15203_v28, %v2720_v4  ;;  %v15449_v8 = vpack.c.bf16 %v15432_v16, %v2984_v3  ;;  %v9918_v3 = vld [vmem:[%s20248_s4 + $0x180] sm:$0xf]  ;;  %v2147_v37 = vpack.c.bf16 %v2113_v52, %v2111_v0 }
 0x3fe   :  { %v2793_v61 = vmul.f32 %v15183_v40, %v2721_v17  ;;  %v15452_v48 = vpack.c.bf16 %v2989_v60, %v2985_v47  ;;  %v9919_v50 = vor.u32 %v12498_v22, %v9918_v3 }
 0x3ff   :  { %v2862_v9 = vadd.f32 %v15209_v63, %v2792_v24  ;;  %v2557_v33 = vpop.f32.mrf.mxu2 }
 0x400   :  { %v2863_v57 = vadd.f32 %v15200_v19, %v2793_v61  ;;  %v2646_v47 = vpop.f32.mrf.mxu3  ;;  %v2382_v56 = vpop.f32.mrf.mxu0  ;;  %3474 = vmatpush.bf16.msra.mxu1 %v9919_v50 }
 0x401   :  { %v2647_v23 = vadd.f32 %v2646_v47, %v2557_v33  ;;  %v2471_v1 = vpop.f32.mrf.mxu1  ;;  %v2926_v4 = vmul.f32 0.2, %v2862_v9 }
 0x402   :  { %v2472_v17 = vadd.f32 %v2471_v1, %v2382_v56  ;;  %v2927_v38 = vmul.f32 0.2, %v2863_v57  ;;  %v2116_v1 = vld [vmem:[%s20246_s0 + $0x200] sm:$0xff] }
 0x403   :  { %v2722_v59 = vadd.f32 %v2647_v23, %v14817_v31  ;;  %2421 = vmatmul.bf16.gmra.mxu0 %v2146_v15  ;;  %v2990_v24 = vmax.f32 %v2862_v9, %v2926_v4 }
 0x404   :  { %v2723_v61 = vadd.f32 %v2472_v17, %v14820_v13  ;;  %2510 = vmatmul.bf16.gmra.mxu1 %v2147_v37  ;;  %2599 = vmatmul.bf16.gmra.mxu2 %v2146_v15  ;;  %v2991_v0 = vmax.f32 %v2863_v57, %v2927_v38  ;;  %v2115_v17 = vld [vmem:[%s20246_s0 + $0x1f8] sm:$0xff] }
 0x405   :  { %v2794_v52 = vmul.f32 %v15203_v28, %v2722_v59  ;;  %2688 = vmatmul.bf16.gmra.mxu3 %v2147_v37  ;;  %v15472_v33 = vpack.c.bf16 %v2990_v24, %v15404_v7 }
 0x406   :  { %v2795_v18 = vmul.f32 %v15183_v40, %v2723_v61  ;;  %v15476_v46 = vpack.c.bf16 %v2991_v0, %v15407_v55  ;;  %v2114_v55 = vld [vmem:[%s20246_s0 + $0x1f0] sm:$0xff] }
 0x407   :  { %v2864_v31 = vadd.f32 %v15209_v63, %v2794_v52  ;;  %v2560_v3 = vpop.f32.mrf.mxu2 }
 0x408   :  { %v2865_v9 = vadd.f32 %v15200_v19, %v2795_v18  ;;  %v2649_v13 = vpop.f32.mrf.mxu3  ;;  %v2384_v47 = vpop.f32.mrf.mxu0  ;;  %v2148_v18 = vpack.c.bf16 %v2116_v1, %v2114_v55 }
 0x409   :  { %v2650_v15 = vadd.f32 %v2649_v13, %v2560_v3  ;;  %v2473_v57 = vpop.f32.mrf.mxu1  ;;  %v2928_v56 = vmul.f32 0.2, %v2864_v31 }
 0x40a   :  { %v2474_v51 = vadd.f32 %v2473_v57, %v2384_v47  ;;  %v2929_v37 = vmul.f32 0.2, %v2865_v9 }
 0x40b   :  { %v2724_v7 = vadd.f32 %v2650_v15, %v14823_v2  ;;  %v2992_v22 = vmax.f32 %v2864_v31, %v2928_v56  ;;  %v2117_v2 = vld [vmem:[%s20246_s0 + $0x208] sm:$0xff] }
 0x40c   :  { %v2725_v23 = vadd.f32 %v2474_v51, %v14826_v30  ;;  %v2993_v50 = vmax.f32 %v2865_v9, %v2929_v37  ;;  %v2149_v13 = vpack.c.bf16 %v2117_v2, %v2115_v17 }
 0x40d   :  { %v2796_v4 = vmul.f32 %v15203_v28, %v2724_v7  ;;  %v15496_v30 = vpack.c.bf16 %v2992_v22, %v15432_v16 }
 0x40e   :  { %v2797_v38 = vmul.f32 %v15183_v40, %v2725_v23  ;;  %v15499_v59 = vpack.c.bf16 %v2993_v50, %v2989_v60 }
 0x40f   :  { %v2866_v61 = vadd.f32 %v15209_v63, %v2796_v4  ;;  %v2562_v52 = vpop.f32.mrf.mxu2 }
 0x410   :  { %20433 = vst [vmem:[#allocation23_spill] sm:$0xff] %v15499_v59  ;;  %v2867_v31 = vadd.f32 %v15200_v19, %v2797_v38  ;;  %v2651_v3 = vpop.f32.mrf.mxu3  ;;  %v2387_v9 = vpop.f32.mrf.mxu0 }
 0x411   :  { %v2652_v47 = vadd.f32 %v2651_v3, %v2562_v52  ;;  %v2476_v15 = vpop.f32.mrf.mxu1  ;;  %v2930_v57 = vmul.f32 0.2, %v2866_v61  ;;  %v10104_v3 = vld [vmem:[%s20248_s4 + $0xf8] sm:$0xf0] }
 0x412   :  { %v2477_v56 = vadd.f32 %v2476_v15, %v2387_v9  ;;  %v2931_v51 = vmul.f32 0.2, %v2867_v31 }
 0x413   :  { %v2726_v16 = vadd.f32 %v2652_v47, %v14841_v36  ;;  %2426 = vmatmul.bf16.gmra.mxu0 %v2148_v18  ;;  %v2994_v37 = vmax.f32 %v2866_v61, %v2930_v57 }
 0x414   :  { %v2727_v60 = vadd.f32 %v2477_v56, %v14844_v12  ;;  %2515 = vmatmul.bf16.gmra.mxu1 %v2149_v13  ;;  %2604 = vmatmul.bf16.gmra.mxu2 %v2148_v18  ;;  %v2995_v7 = vmax.f32 %v2867_v31, %v2931_v51  ;;  %v12463_v12 = vld [vmem:[%s20248_s4 + $0x74] sm:$0xf] }
 0x415   :  { %v2798_v23 = vmul.f32 %v15203_v28, %v2726_v16  ;;  %2693 = vmatmul.bf16.gmra.mxu3 %v2149_v13  ;;  %v15506_v55 = vpack.c.bf16 %v2994_v37, %v2990_v24  ;;  %v10040_v24 = vld [vmem:[%s20248_s4 + $0x78] sm:$0xf0] }
 0x416   :  { %v2799_v1 = vmul.f32 %v15183_v40, %v2727_v60  ;;  %v15509_v4 = vpack.c.bf16 %v2995_v7, %v2991_v0  ;;  %v12479_v0 = vld [vmem:[%s20248_s4 + $0xf4] sm:$0xf]  ;;  %v10043_v31 = vor.u32 %v12463_v12, %v10040_v24 }
 0x417   :  { %20434 = vst [vmem:[#allocation19_spill] sm:$0xff] %v15506_v55  ;;  %v2868_v17 = vadd.f32 %v15209_v63, %v2798_v23  ;;  %v2565_v2 = vpop.f32.mrf.mxu2  ;;  %v10107_v47 = vor.u32 %v12479_v0, %v10104_v3 }
 0x418   :  { %v2869_v36 = vadd.f32 %v15200_v19, %v2799_v1  ;;  %v2654_v38 = vpop.f32.mrf.mxu3  ;;  %v2389_v61 = vpop.f32.mrf.mxu0  ;;  %3872 = vmatpush.bf16.msrb.mxu2 %v10043_v31 }
 0x419   :  { %v2655_v52 = vadd.f32 %v2654_v38, %v2565_v2  ;;  %v2478_v18 = vpop.f32.mrf.mxu1  ;;  %v2932_v9 = vmul.f32 0.2, %v2868_v17  ;;  %3921 = vmatpush.bf16.msrb.mxu3 %v10107_v47 }
 0x41a   :  { %v2479_v13 = vadd.f32 %v2478_v18, %v2389_v61  ;;  %v2933_v15 = vmul.f32 0.2, %v2869_v36 }
 0x41b   :  { %v2728_v57 = vadd.f32 %v2655_v52, %v14859_v32  ;;  %v2996_v56 = vmax.f32 %v2868_v17, %v2932_v9  ;;  %v12480_v52 = vld [vmem:[%s20248_s4 + $0xf4] sm:$0xf0] }
 0x41c   :  { %v2729_v51 = vadd.f32 %v2479_v13, %v14868_v54  ;;  %v2997_v16 = vmax.f32 %v2869_v36, %v2933_v15  ;;  %v10038_v54 = vld [vmem:[%s20248_s4 + $0x70] sm:$0xf] }
 0x41d   :  { %v2800_v60 = vmul.f32 %v15203_v28, %v2728_v57  ;;  %v15528_v23 = vpack.c.bf16 %v2996_v56, %v2992_v22  ;;  %v12464_v22 = vld [vmem:[%s20248_s4 + $0x74] sm:$0xf0] }
 0x41e   :  { %v2801_v1 = vmul.f32 %v15183_v40, %v2729_v51  ;;  %v15531_v2 = vpack.c.bf16 %v2997_v16, %v2993_v50  ;;  %v10102_v50 = vld [vmem:[%s20248_s4 + $0xf0] sm:$0xf]  ;;  %v10039_v0 = vor.u32 %v12464_v22, %v10038_v54  ;;  %v10096_v22 = vld [vmem:[%s20248_s4 + $0xe8] sm:$0xf0] }
 0x41f   :  { %v2870_v38 = vadd.f32 %v15209_v63, %v2800_v60  ;;  %v2567_v61 = vpop.f32.mrf.mxu2  ;;  %v10103_v3 = vor.u32 %v12480_v52, %v10102_v50 }
 0x420   :  { %v2871_v12 = vadd.f32 %v15200_v19, %v2801_v1  ;;  %v2656_v32 = vpop.f32.mrf.mxu3  ;;  %v2392_v24 = vpop.f32.mrf.mxu0  ;;  %3774 = vmatpush.bf16.msrb.mxu0 %v10039_v0 }
 0x421   :  { %v2657_v17 = vadd.f32 %v2656_v32, %v2567_v61  ;;  %v2481_v36 = vpop.f32.mrf.mxu1  ;;  %v2934_v18 = vmul.f32 0.2, %v2870_v38  ;;  %3823 = vmatpush.bf16.msrb.mxu1 %v10103_v3 }
 0x422   :  { %v2482_v31 = vadd.f32 %v2481_v36, %v2392_v24  ;;  %v2935_v9 = vmul.f32 0.2, %v2871_v12 }
 0x423   :  { %v2730_v13 = vadd.f32 %v2657_v17, %v14889_v62  ;;  %3426 = vmatmul.bf16.vlgmr.msra.gmra.mxu0 %v15245_v43  ;;  %v15549_v47 = vmax.f32 %v2870_v38, %v2934_v18 }
 0x424   :  { %v2731_v15 = vadd.f32 %v2482_v31, %v14892_v20  ;;  %3475 = vmatmul.bf16.vlgmr.msra.gmra.mxu1 %v15268_v10  ;;  %3524 = vmatmul.bf16.vlgmr.msra.gmra.mxu2 %v15245_v43  ;;  %v15554_v57 = vmax.f32 %v2871_v12, %v2935_v9 }
 0x425   :  { %v2802_v51 = vmul.f32 %v15203_v28, %v2730_v13  ;;  %3573 = vmatmul.bf16.vlgmr.msra.gmra.mxu3 %v15268_v10  ;;  %v15559_v60 = vpack.c.bf16 %v15549_v47, %v2994_v37  ;;  %v12461_v10 = vld [vmem:[%s20248_s4 + $0x64] sm:$0xf]  ;;  %v10032_v37 = vld [vmem:[%s20248_s4 + $0x68] sm:$0xf0] }
 0x426   :  { %v2803_v62 = vmul.f32 %v15183_v40, %v2731_v15  ;;  %v15563_v1 = vpack.c.bf16 %v15554_v57, %v2995_v7  ;;  %v12477_v7 = vld [vmem:[%s20248_s4 + $0xe4] sm:$0xf]  ;;  %v10035_v54 = vor.u32 %v12461_v10, %v10032_v37  ;;  %v12478_v37 = vld [vmem:[%s20248_s4 + $0xe4] sm:$0xf0] }
 0x427   :  { %v2872_v20 = vadd.f32 %v15209_v63, %v2802_v51  ;;  %v2570_v38 = vpop.f32.mrf.mxu2  ;;  %v10099_v36 = vor.u32 %v12477_v7, %v10096_v22 }
 0x428   :  { %v2873_v43 = vadd.f32 %v15200_v19, %v2803_v62  ;;  %v2659_v61 = vpop.f32.mrf.mxu3  ;;  %v2394_v12 = vpop.f32.mrf.mxu0  ;;  %3873 = vmatpush.bf16.msrb.mxu2 %v10035_v54 }
 0x429   :  { %v2660_v32 = vadd.f32 %v2659_v61, %v2570_v38  ;;  %v2483_v24 = vpop.f32.mrf.mxu1  ;;  %v2936_v50 = vmul.f32 0.2, %v2872_v20  ;;  %3922 = vmatpush.bf16.msrb.mxu3 %v10099_v36 }
 0x42a   :  { %v2484_v17 = vadd.f32 %v2483_v24, %v2394_v12  ;;  %v2937_v0 = vmul.f32 0.2, %v2873_v43 }
 0x42b   :  { %v2732_v52 = vadd.f32 %v2660_v32, %v14895_v42  ;;  %v3000_v18 = vmax.f32 %v2872_v20, %v2936_v50 }
 0x42c   :  { %v2733_v31 = vadd.f32 %v2484_v17, %v14898_v49  ;;  %v3001_v3 = vmax.f32 %v2873_v43, %v2937_v0  ;;  %v10030_v49 = vld [vmem:[%s20248_s4 + $0x60] sm:$0xf] }
 0x42d   :  { %v2804_v9 = vmul.f32 %v15203_v28, %v2732_v52  ;;  %v15582_v13 = vpack.c.bf16 %v3000_v18, %v2996_v56  ;;  %v12462_v56 = vld [vmem:[%s20248_s4 + $0x64] sm:$0xf0] }
 0x42e   :  { %v2805_v15 = vmul.f32 %v15183_v40, %v2733_v31  ;;  %v15585_v51 = vpack.c.bf16 %v3001_v3, %v2997_v16  ;;  %v10094_v16 = vld [vmem:[%s20248_s4 + $0xe0] sm:$0xf]  ;;  %v10031_v10 = vor.u32 %v12462_v56, %v10030_v49 }
 0x42f   :  { %v2874_v62 = vadd.f32 %v15209_v63, %v2804_v9  ;;  %v2572_v38 = vpop.f32.mrf.mxu2  ;;  %v10095_v24 = vor.u32 %v12478_v37, %v10094_v16 }
 0x430   :  { %20435 = vst [vmem:[#allocation20_spill] sm:$0xff] %v15585_v51  ;;  %v2875_v61 = vadd.f32 %v15200_v19, %v2805_v15  ;;  %v2661_v42 = vpop.f32.mrf.mxu3  ;;  %v2397_v12 = vpop.f32.mrf.mxu0  ;;  %3775 = vmatpush.bf16.msrb.mxu0 %v10031_v10  ;;  %v12520_v51 = vld [vmem:[%s20248_s4 + $0x234] sm:$0xf0] }
 0x431   :  { %v2662_v20 = vadd.f32 %v2661_v42, %v2572_v38  ;;  %v2486_v43 = vpop.f32.mrf.mxu1  ;;  %v2938_v7 = vmul.f32 0.2, %v2874_v62  ;;  %3824 = vmatpush.bf16.msrb.mxu1 %v10095_v24 }
 0x432   :  { %v2487_v32 = vadd.f32 %v2486_v43, %v2397_v12  ;;  %v2939_v54 = vmul.f32 0.2, %v2875_v61  ;;  %v10088_v12 = vld [vmem:[%s20248_s4 + $0xd8] sm:$0xf0]  ;;  %v20437_v43 = vld [vmem:[#allocation26_spill] sm:$0xff] }
 0x433   :  { %v2734_v22 = vadd.f32 %v2662_v20, %v14913_v35  ;;  %3431 = vmatmul.bf16.gmra.mxu0 %v15352_v44  ;;  %v15603_v50 = vmax.f32 %v2874_v62, %v2938_v7  ;;  %v20438_v7 = vld [vmem:[#allocation27_spill] sm:$0xff] }
 0x434   :  { %v2735_v17 = vadd.f32 %v2487_v32, %v14916_v41  ;;  %3480 = vmatmul.bf16.gmra.mxu1 %v15372_v39  ;;  %3529 = vmatmul.bf16.gmra.mxu2 %v15352_v44  ;;  %v15608_v36 = vmax.f32 %v2875_v61, %v2939_v54 }
 0x435   :  { %v2806_v0 = vmul.f32 %v15203_v28, %v2734_v22  ;;  %3578 = vmatmul.bf16.gmra.mxu3 %v15372_v39  ;;  %v15614_v35 = vpack.c.bf16 %v15603_v50, %v15549_v47  ;;  %v12459_v39 = vld [vmem:[%s20248_s4 + $0x54] sm:$0xf]  ;;  %v10024_v47 = vld [vmem:[%s20248_s4 + $0x58] sm:$0xf0] }
 0x436   :  { %v2807_v52 = vmul.f32 %v15183_v40, %v2735_v17  ;;  %v15619_v41 = vpack.c.bf16 %v15608_v36, %v15554_v57  ;;  %v12475_v57 = vld [vmem:[%s20248_s4 + $0xd4] sm:$0xf]  ;;  %v10027_v42 = vor.u32 %v12459_v39, %v10024_v47 }
 0x437   :  { %20436 = vst [vmem:[#allocation21_spill] sm:$0xff] %v15614_v35  ;;  %v2876_v44 = vadd.f32 %v15209_v63, %v2806_v0  ;;  %v2575_v31 = vpop.f32.mrf.mxu2  ;;  %v10091_v16 = vor.u32 %v12475_v57, %v10088_v12 }
 0x438   :  { %v2877_v9 = vadd.f32 %v15200_v19, %v2807_v52  ;;  %v2664_v15 = vpop.f32.mrf.mxu3  ;;  %v2399_v62 = vpop.f32.mrf.mxu0  ;;  %3874 = vmatpush.bf16.msrb.mxu2 %v10027_v42 }
 0x439   :  { %v2665_v38 = vadd.f32 %v2664_v15, %v2575_v31  ;;  %v2488_v61 = vpop.f32.mrf.mxu1  ;;  %v2940_v49 = vmul.f32 0.2, %v2876_v44  ;;  %3923 = vmatpush.bf16.msrb.mxu3 %v10091_v16 }
 0x43a   :  { %v2489_v56 = vadd.f32 %v2488_v61, %v2399_v62  ;;  %v2941_v20 = vmul.f32 0.2, %v2877_v9 }
 0x43b   :  { %v2736_v10 = vadd.f32 %v2665_v38, %v20437_v43  ;;  %v3004_v37 = vmax.f32 %v2876_v44, %v2940_v49  ;;  %v10022_v44 = vld [vmem:[%s20248_s4 + $0x50] sm:$0xf]  ;;  %v12476_v38 = vld [vmem:[%s20248_s4 + $0xd4] sm:$0xf0] }
 0x43c   :  { %v2737_v32 = vadd.f32 %v2489_v56, %v20438_v7  ;;  %v3005_v24 = vmax.f32 %v2877_v9, %v2941_v20  ;;  %v20439_v56 = vld [vmem:[#allocation30_spill] sm:$0xff]  ;;  %v20440_v43 = vld [vmem:[#allocation31_spill] sm:$0xff] }
 0x43d   :  { %v2808_v54 = vmul.f32 %v15203_v28, %v2736_v10  ;;  %v15638_v22 = vpack.c.bf16 %v3004_v37, %v3000_v18  ;;  %v12460_v18 = vld [vmem:[%s20248_s4 + $0x54] sm:$0xf0] }
 0x43e   :  { %v2809_v17 = vmul.f32 %v15183_v40, %v2737_v32  ;;  %v15641_v0 = vpack.c.bf16 %v3005_v24, %v3001_v3  ;;  %v10086_v3 = vld [vmem:[%s20248_s4 + $0xd0] sm:$0xf]  ;;  %v10023_v57 = vor.u32 %v12460_v18, %v10022_v44 }
 0x43f   :  { %v2878_v52 = vadd.f32 %v15209_v63, %v2808_v54  ;;  %v2577_v31 = vpop.f32.mrf.mxu2  ;;  %v10087_v12 = vor.u32 %v12476_v38, %v10086_v3 }
 0x440   :  { %v2879_v15 = vadd.f32 %v15200_v19, %v2809_v17  ;;  %v2666_v62 = vpop.f32.mrf.mxu3  ;;  %v2402_v39 = vpop.f32.mrf.mxu0  ;;  %3776 = vmatpush.bf16.msrb.mxu0 %v10023_v57 }
 0x441   :  { %v2667_v9 = vadd.f32 %v2666_v62, %v2577_v31  ;;  %v2491_v47 = vpop.f32.mrf.mxu1  ;;  %v2942_v61 = vmul.f32 0.2, %v2878_v52  ;;  %3825 = vmatpush.bf16.msrb.mxu1 %v10087_v12 }
 0x442   :  { %v2492_v42 = vadd.f32 %v2491_v47, %v2402_v39  ;;  %v2943_v49 = vmul.f32 0.2, %v2879_v15 }
 0x443   :  { %v2738_v16 = vadd.f32 %v2667_v9, %v20439_v56  ;;  %3436 = vmatmul.bf16.gmra.mxu0 %v15452_v48  ;;  %v15659_v20 = vmax.f32 %v2878_v52, %v2942_v61  ;;  %v10080_v9 = vld [vmem:[%s20248_s4 + $0xc8] sm:$0xf0]  ;;  %v20442_v56 = vld [vmem:[#allocation33_spill] sm:$0xff] }
 0x444   :  { %v2739_v10 = vadd.f32 %v2492_v42, %v20440_v43  ;;  %3485 = vmatmul.bf16.gmra.mxu1 %v15472_v33  ;;  %3534 = vmatmul.bf16.gmra.mxu2 %v15452_v48  ;;  %v15664_v7 = vmax.f32 %v2879_v15, %v2943_v49  ;;  %v20441_v42 = vld [vmem:[#allocation32_spill] sm:$0xff] }
 0x445   :  { %v2810_v32 = vmul.f32 %v15203_v28, %v2738_v16  ;;  %3583 = vmatmul.bf16.gmra.mxu3 %v15472_v33  ;;  %v15670_v54 = vpack.c.bf16 %v15659_v20, %v15603_v50  ;;  %v12457_v33 = vld [vmem:[%s20248_s4 + $0x44] sm:$0xf]  ;;  %v10016_v50 = vld [vmem:[%s20248_s4 + $0x48] sm:$0xf0] }
 0x446   :  { %v2811_v17 = vmul.f32 %v15183_v40, %v2739_v10  ;;  %v15675_v52 = vpack.c.bf16 %v15664_v7, %v15608_v36  ;;  %v12473_v36 = vld [vmem:[%s20248_s4 + $0xc4] sm:$0xf]  ;;  %v10019_v3 = vor.u32 %v12457_v33, %v10016_v50 }
 0x447   :  { %v2880_v48 = vadd.f32 %v15209_v63, %v2810_v32  ;;  %v2580_v31 = vpop.f32.mrf.mxu2  ;;  %v10083_v38 = vor.u32 %v12473_v36, %v10080_v9 }
 0x448   :  { %v2881_v15 = vadd.f32 %v15200_v19, %v2811_v17  ;;  %v2669_v62 = vpop.f32.mrf.mxu3  ;;  %v2404_v39 = vpop.f32.mrf.mxu0  ;;  %3875 = vmatpush.bf16.msrb.mxu2 %v10019_v3  ;;  %v12474_v3 = vld [vmem:[%s20248_s4 + $0xc4] sm:$0xf0] }
 0x449   :  { %v2670_v44 = vadd.f32 %v2669_v62, %v2580_v31  ;;  %v2493_v18 = vpop.f32.mrf.mxu1  ;;  %v2944_v47 = vmul.f32 0.2, %v2880_v48  ;;  %3924 = vmatpush.bf16.msrb.mxu3 %v10083_v38 }
 0x44a   :  { %v2494_v57 = vadd.f32 %v2493_v18, %v2404_v39  ;;  %v2945_v61 = vmul.f32 0.2, %v2881_v15 }
 0x44b   :  { %v2740_v12 = vadd.f32 %v2670_v44, %v20441_v42  ;;  %v3008_v49 = vmax.f32 %v2880_v48, %v2944_v47  ;;  %v10014_v48 = vld [vmem:[%s20248_s4 + $0x40] sm:$0xf] }
 0x44c   :  { %v2741_v16 = vadd.f32 %v2494_v57, %v20442_v56  ;;  %v3009_v43 = vmax.f32 %v2881_v15, %v2945_v61  ;;  %v20444_v61 = vld [vmem:[#allocation34_spill] sm:$0xff]  ;;  %v20445_v56 = vld [vmem:[#allocation35_spill] sm:$0xff] }
 0x44d   :  { %v2812_v10 = vmul.f32 %v15203_v28, %v2740_v12  ;;  %v15694_v32 = vpack.c.bf16 %v3008_v49, %v3004_v37  ;;  %v12458_v37 = vld [vmem:[%s20248_s4 + $0x44] sm:$0xf0] }
 0x44e   :  { %v2813_v17 = vmul.f32 %v15183_v40, %v2741_v16  ;;  %v15697_v31 = vpack.c.bf16 %v3009_v43, %v3005_v24  ;;  %v10078_v24 = vld [vmem:[%s20248_s4 + $0xc0] sm:$0xf]  ;;  %v10015_v18 = vor.u32 %v12458_v37, %v10014_v48 }
 0x44f   :  { %v2882_v62 = vadd.f32 %v15209_v63, %v2812_v10  ;;  %v2582_v39 = vpop.f32.mrf.mxu2  ;;  %v10079_v57 = vor.u32 %v12474_v3, %v10078_v24 }
 0x450   :  { %20443 = vst [vmem:[#allocation28_spill] sm:$0xff] %v15697_v31  ;;  %v2883_v33 = vadd.f32 %v15200_v19, %v2813_v17  ;;  %v2671_v50 = vpop.f32.mrf.mxu3  ;;  %v2407_v36 = vpop.f32.mrf.mxu0  ;;  %3777 = vmatpush.bf16.msrb.mxu0 %v10015_v18  ;;  %v10072_v18 = vld [vmem:[%s20248_s4 + $0xb8] sm:$0xf0] }
 0x451   :  { %v2672_v15 = vadd.f32 %v2671_v50, %v2582_v39  ;;  %v2496_v44 = vpop.f32.mrf.mxu1  ;;  %v2946_v9 = vmul.f32 0.2, %v2882_v62  ;;  %3826 = vmatpush.bf16.msrb.mxu1 %v10079_v57 }
 0x452   :  { %v2497_v47 = vadd.f32 %v2496_v44, %v2407_v36  ;;  %v2947_v38 = vmul.f32 0.2, %v2883_v33 }
 0x453   :  { %v2742_v42 = vadd.f32 %v2672_v15, %v20444_v61  ;;  %3441 = vmatmul.bf16.gmra.mxu0 %v15531_v2  ;;  %v15715_v12 = vmax.f32 %v2882_v62, %v2946_v9 }
 0x454   :  { %v2743_v16 = vadd.f32 %v2497_v47, %v20445_v56  ;;  %3490 = vmatmul.bf16.gmra.mxu1 %v15559_v60  ;;  %3539 = vmatmul.bf16.gmra.mxu2 %v15531_v2  ;;  %v15720_v10 = vmax.f32 %v2883_v33, %v2947_v38  ;;  %v20447_v38 = vld [vmem:[#allocation36_spill] sm:$0xff]  ;;  %v20448_v56 = vld [vmem:[#allocation37_spill] sm:$0xff] }
 0x455   :  { %v2814_v17 = vmul.f32 %v15203_v28, %v2742_v42  ;;  %3588 = vmatmul.bf16.gmra.mxu3 %v15559_v60  ;;  %v15726_v39 = vpack.c.bf16 %v15715_v12, %v15659_v20  ;;  %v12455_v60 = vld [vmem:[%s20248_s4 + $0x34] sm:$0xf]  ;;  %v10008_v20 = vld [vmem:[%s20248_s4 + $0x38] sm:$0xf0] }
 0x456   :  { %v2815_v62 = vmul.f32 %v15183_v40, %v2743_v16  ;;  %v15731_v50 = vpack.c.bf16 %v15720_v10, %v15664_v7  ;;  %v12471_v7 = vld [vmem:[%s20248_s4 + $0xb4] sm:$0xf]  ;;  %v10011_v44 = vor.u32 %v12455_v60, %v10008_v20 }
 0x457   :  { %20446 = vst [vmem:[#allocation24_spill] sm:$0xff] %v15726_v39  ;;  %v2884_v2 = vadd.f32 %v15209_v63, %v2814_v17  ;;  %v2585_v33 = vpop.f32.mrf.mxu2  ;;  %v10075_v57 = vor.u32 %v12471_v7, %v10072_v18 }
 0x458   :  { %v2885_v36 = vadd.f32 %v15200_v19, %v2815_v62  ;;  %v2674_v48 = vpop.f32.mrf.mxu3  ;;  %v2409_v37 = vpop.f32.mrf.mxu0  ;;  %3876 = vmatpush.bf16.msrb.mxu2 %v10011_v44 }
 0x459   :  { %v2675_v24 = vadd.f32 %v2674_v48, %v2585_v33  ;;  %v2498_v15 = vpop.f32.mrf.mxu1  ;;  %v2948_v3 = vmul.f32 0.2, %v2884_v2  ;;  %3925 = vmatpush.bf16.msrb.mxu3 %v10075_v57 }
 0x45a   :  { %v2499_v9 = vadd.f32 %v2498_v15, %v2409_v37  ;;  %v2949_v47 = vmul.f32 0.2, %v2885_v36 }
 0x45b   :  { %v2744_v61 = vadd.f32 %v2675_v24, %v20447_v38  ;;  %v3012_v42 = vmax.f32 %v2884_v2, %v2948_v3  ;;  %v10006_v2 = vld [vmem:[%s20248_s4 + $0x30] sm:$0xf] }
 0x45c   :  { %v2745_v16 = vadd.f32 %v2499_v9, %v20448_v56  ;;  %v3013_v17 = vmax.f32 %v2885_v36, %v2949_v47  ;;  %v12472_v9 = vld [vmem:[%s20248_s4 + $0xb4] sm:$0xf0] }
 0x45d   :  { %v2816_v62 = vmul.f32 %v15203_v28, %v2744_v61  ;;  %v15750_v33 = vpack.c.bf16 %v3012_v42, %v3008_v49  ;;  %v12456_v49 = vld [vmem:[%s20248_s4 + $0x34] sm:$0xf0]  ;;  %v20449_v61 = vld [vmem:[#allocation38_spill] sm:$0xff] }
 0x45e   :  { %v2817_v48 = vmul.f32 %v15183_v40, %v2745_v16  ;;  %v15753_v60 = vpack.c.bf16 %v3013_v17, %v3009_v43  ;;  %v10070_v43 = vld [vmem:[%s20248_s4 + $0xb0] sm:$0xf]  ;;  %v10007_v3 = vor.u32 %v12456_v49, %v10006_v2 }
 0x45f   :  { %v2886_v37 = vadd.f32 %v15209_v63, %v2816_v62  ;;  %v2587_v20 = vpop.f32.mrf.mxu2  ;;  %v10071_v57 = vor.u32 %v12472_v9, %v10070_v43  ;;  %v20450_v62 = vld [vmem:[#allocation39_spill] sm:$0xff]  ;;  %v10064_v9 = vld [vmem:[%s20248_s4 + $0xa8] sm:$0xf0] }
 0x460   :  { %v2887_v7 = vadd.f32 %v15200_v19, %v2817_v48  ;;  %v2676_v24 = vpop.f32.mrf.mxu3  ;;  %v2412_v15 = vpop.f32.mrf.mxu0  ;;  %3778 = vmatpush.bf16.msrb.mxu0 %v10007_v3 }
 0x461   :  { %v2677_v36 = vadd.f32 %v2676_v24, %v2587_v20  ;;  %v2501_v44 = vpop.f32.mrf.mxu1  ;;  %v2950_v18 = vmul.f32 0.2, %v2886_v37  ;;  %3827 = vmatpush.bf16.msrb.mxu1 %v10071_v57 }
 0x462   :  { %v2502_v47 = vadd.f32 %v2501_v44, %v2412_v15  ;;  %v2951_v38 = vmul.f32 0.2, %v2887_v7 }
 0x463   :  { %v2746_v56 = vadd.f32 %v2677_v36, %v20449_v61  ;;  %3446 = vmatmul.bf16.gmra.mxu0 %v15641_v0  ;;  %v15771_v16 = vmax.f32 %v2886_v37, %v2950_v18 }
 0x464   :  { %v2747_v48 = vadd.f32 %v2502_v47, %v20450_v62  ;;  %3495 = vmatmul.bf16.gmra.mxu1 %v15670_v54  ;;  %3544 = vmatmul.bf16.gmra.mxu2 %v15641_v0  ;;  %v15776_v20 = vmax.f32 %v2887_v7, %v2951_v38 }
 0x465   :  { %v2818_v24 = vmul.f32 %v15203_v28, %v2746_v56  ;;  %3593 = vmatmul.bf16.gmra.mxu3 %v15670_v54  ;;  %v3220_v15 = vpack.c.bf16 %v15771_v16, %v15715_v12  ;;  %v12453_v54 = vld [vmem:[%s20248_s4 + $0x24] sm:$0xf]  ;;  %v10000_v12 = vld [vmem:[%s20248_s4 + $0x28] sm:$0xf0]  ;;  %v20451_v56 = vld [vmem:[#allocation40_spill] sm:$0xff] }
 0x466   :  { %v2819_v2 = vmul.f32 %v15183_v40, %v2747_v48  ;;  %v15785_v37 = vpack.c.bf16 %v15776_v20, %v15720_v10  ;;  %v12469_v10 = vld [vmem:[%s20248_s4 + $0xa4] sm:$0xf]  ;;  %v10003_v3 = vor.u32 %v12453_v54, %v10000_v12 }
 0x467   :  { %v2888_v49 = vadd.f32 %v15209_v63, %v2818_v24  ;;  %v2590_v0 = vpop.f32.mrf.mxu2  ;;  %v10067_v61 = vor.u32 %v12469_v10, %v10064_v9  ;;  %v20452_v24 = vld [vmem:[#allocation41_spill] sm:$0xff] }
 0x468   :  { %v2889_v7 = vadd.f32 %v15200_v19, %v2819_v2  ;;  %v2679_v43 = vpop.f32.mrf.mxu3  ;;  %v2414_v36 = vpop.f32.mrf.mxu0  ;;  %3877 = vmatpush.bf16.msrb.mxu2 %v10003_v3 }
 0x469   :  { %v2680_v44 = vadd.f32 %v2679_v43, %v2590_v0  ;;  %v2503_v18 = vpop.f32.mrf.mxu1  ;;  %v2952_v47 = vmul.f32 0.2, %v2888_v49  ;;  %3926 = vmatpush.bf16.msrb.mxu3 %v10067_v61 }
 0x46a   :  { %v2504_v57 = vadd.f32 %v2503_v18, %v2414_v36  ;;  %v2953_v38 = vmul.f32 0.2, %v2889_v7 }
 0x46b   :  { %v2748_v62 = vadd.f32 %v2680_v44, %v20451_v56  ;;  %v3016_v48 = vmax.f32 %v2888_v49, %v2952_v47  ;;  %v9998_v49 = vld [vmem:[%s20248_s4 + $0x20] sm:$0xf] }
 0x46c   :  { %v2749_v2 = vadd.f32 %v2504_v57, %v20452_v24  ;;  %v3017_v39 = vmax.f32 %v2889_v7, %v2953_v38  ;;  %v12470_v38 = vld [vmem:[%s20248_s4 + $0xa4] sm:$0xf0] }
 0x46d   :  { %v2820_v0 = vmul.f32 %v15203_v28, %v2748_v62  ;;  %v15804_v43 = vpack.c.bf16 %v3016_v48, %v3012_v42  ;;  %v12454_v42 = vld [vmem:[%s20248_s4 + $0x24] sm:$0xf0] }
 0x46e   :  { %v2821_v54 = vmul.f32 %v15183_v40, %v2749_v2  ;;  %v15807_v12 = vpack.c.bf16 %v3017_v39, %v3013_v17  ;;  %v10062_v17 = vld [vmem:[%s20248_s4 + $0xa0] sm:$0xf]  ;;  %v9999_v57 = vor.u32 %v12454_v42, %v9998_v49  ;;  %v20454_v24 = vld [vmem:[#allocation42_spill] sm:$0xff] }
 0x46f   :  { %v2890_v36 = vadd.f32 %v15209_v63, %v2820_v0  ;;  %v2592_v18 = vpop.f32.mrf.mxu2  ;;  %v10063_v56 = vor.u32 %v12470_v38, %v10062_v17 }
 0x470   :  { %20453 = vst [vmem:[#allocation29_spill] sm:$0xff] %v15807_v12  ;;  %v2891_v10 = vadd.f32 %v15200_v19, %v2821_v54  ;;  %v2681_v44 = vpop.f32.mrf.mxu3  ;;  %v2417_v3 = vpop.f32.mrf.mxu0  ;;  %v20455_v54 = vld [vmem:[#allocation43_spill] sm:$0xff]  ;;  %3779 = vmatpush.bf16.msrb.mxu0 %v9999_v57  ;;  %v10056_v57 = vld [vmem:[%s20248_s4 + $0x98] sm:$0xf0] }
 0x471   :  { %v2682_v7 = vadd.f32 %v2681_v44, %v2592_v18  ;;  %v2506_v9 = vpop.f32.mrf.mxu1  ;;  %v2954_v47 = vmul.f32 0.2, %v2890_v36  ;;  %3828 = vmatpush.bf16.msrb.mxu1 %v10063_v56 }
 0x472   :  { %v2507_v61 = vadd.f32 %v2506_v9, %v2417_v3  ;;  %v2955_v62 = vmul.f32 0.2, %v2891_v10 }
 0x473   :  { %v2750_v2 = vadd.f32 %v2682_v7, %v20454_v24  ;;  %3451 = vmatmul.bf16.gmra.mxu0 %v15753_v60  ;;  %v3018_v0 = vmax.f32 %v2890_v36, %v2954_v47  ;;  %v20457_v24 = vld [vmem:[#allocation44_spill] sm:$0xff] }
 0x474   :  { %v2751_v12 = vadd.f32 %v2507_v61, %v20455_v54  ;;  %3500 = vmatmul.bf16.gmra.mxu1 %v3220_v15  ;;  %3549 = vmatmul.bf16.gmra.mxu2 %v15753_v60  ;;  %v3019_v18 = vmax.f32 %v2891_v10, %v2955_v62 }
 0x475   :  { %v2822_v44 = vmul.f32 %v15203_v28, %v2750_v2  ;;  %3598 = vmatmul.bf16.gmra.mxu3 %v3220_v15  ;;  %v15829_v49 = vpack.c.bf16 %v3018_v0, %v15771_v16  ;;  %v12451_v15 = vld [vmem:[%s20248_s4 + $0x14] sm:$0xf]  ;;  %v9992_v16 = vld [vmem:[%s20248_s4 + $0x18] sm:$0xf0] }
 0x476   :  { %v2823_v3 = vmul.f32 %v15183_v40, %v2751_v12  ;;  %v15833_v42 = vpack.c.bf16 %v3019_v18, %v15776_v20  ;;  %v12467_v20 = vld [vmem:[%s20248_s4 + $0x94] sm:$0xf]  ;;  %v9995_v47 = vor.u32 %v12451_v15, %v9992_v16 }
 0x477   :  { %20456 = vst [vmem:[#allocation25_spill] sm:$0xff] %v15829_v49  ;;  %v2892_v36 = vadd.f32 %v15209_v63, %v2822_v44  ;;  %v2595_v17 = vpop.f32.mrf.mxu2  ;;  %v10059_v62 = vor.u32 %v12467_v20, %v10056_v57  ;;  %v20458_v44 = vld [vmem:[#allocation45_spill] sm:$0xff] }
 0x478   :  { %v2893_v7 = vadd.f32 %v15200_v19, %v2823_v3  ;;  %v2684_v60 = vpop.f32.mrf.mxu3  ;;  %v2419_v10 = vpop.f32.mrf.mxu0  ;;  %3878 = vmatpush.bf16.msrb.mxu2 %v9995_v47  ;;  %v10054_v47 = vld [vmem:[%s20248_s4 + $0x90] sm:$0xf] }
 0x479   :  { %v2685_v12 = vadd.f32 %v2684_v60, %v2595_v17  ;;  %v2508_v9 = vpop.f32.mrf.mxu1  ;;  %v2956_v38 = vmul.f32 0.2, %v2892_v36  ;;  %3927 = vmatpush.bf16.msrb.mxu3 %v10059_v62 }
 0x47a   :  { %v2509_v61 = vadd.f32 %v2508_v9, %v2419_v10  ;;  %v2957_v56 = vmul.f32 0.2, %v2893_v7 }
 0x47b   :  { %v2752_v2 = vadd.f32 %v2685_v12, %v20457_v24  ;;  %v15850_v54 = vmax.f32 %v2892_v36, %v2956_v38 }
 0x47c   :  { %v2753_v3 = vadd.f32 %v2509_v61, %v20458_v44  ;;  %v15853_v49 = vmax.f32 %v2893_v7, %v2957_v56  ;;  %v9990_v7 = vld [vmem:[%s20248_s4 + $0x10] sm:$0xf]  ;;  %v12468_v56 = vld [vmem:[%s20248_s4 + $0x94] sm:$0xf0]  ;;  %v20459_v44 = vld [vmem:[#allocation46_spill] sm:$0xff] }
 0x47d   :  { %v2824_v17 = vmul.f32 %v15203_v28, %v2752_v2  ;;  %v15857_v60 = vpack.c.bf16 %v15850_v54, %v3016_v48  ;;  %v12452_v48 = vld [vmem:[%s20248_s4 + $0x14] sm:$0xf0]  ;;  %v10055_v24 = vor.u32 %v12468_v56, %v10054_v47 }
 0x47e   :  { %v2825_v15 = vmul.f32 %v15183_v40, %v2753_v3  ;;  %v3221_v10 = vpack.c.bf16 %v15853_v49, %v3017_v39  ;;  %v9991_v61 = vor.u32 %v12452_v48, %v9990_v7 }
 0x47f   :  { %v2894_v16 = vadd.f32 %v15209_v63, %v2824_v17  ;;  %v2597_v20 = vpop.f32.mrf.mxu2  ;;  %3829 = vmatpush.bf16.msrb.mxu1 %v10055_v24 }
 0x480   :  { %v2895_v36 = vadd.f32 %v15200_v19, %v2825_v15  ;;  %v2686_v12 = vpop.f32.mrf.mxu3  ;;  %v2422_v9 = vpop.f32.mrf.mxu0  ;;  %v20460_v15 = vld [vmem:[#allocation47_spill] sm:$0xff]  ;;  %3780 = vmatpush.bf16.msrb.mxu0 %v9991_v61 }
 0x481   :  { %v2687_v39 = vadd.f32 %v2686_v12, %v2597_v20  ;;  %v2511_v57 = vpop.f32.mrf.mxu1  ;;  %v2958_v38 = vmul.f32 0.2, %v2894_v16 }
 0x482   :  { %v2512_v62 = vadd.f32 %v2511_v57, %v2422_v9  ;;  %v2959_v2 = vmul.f32 0.2, %v2895_v36  ;;  %v10048_v57 = vld [vmem:[%s20248_s4 + $0x88] sm:$0xf0] }
 0x483   :  { %v2754_v3 = vadd.f32 %v2687_v39, %v20459_v44  ;;  %3456 = vmatmul.bf16.gmra.mxu0 %v3221_v10  ;;  %v3022_v17 = vmax.f32 %v2894_v16, %v2958_v38  ;;  %v12449_v16 = vld [vmem:[%s20248_s4 + $0x4] sm:$0xf]  ;;  %v9982_v44 = vld [vmem:[%s20248_s4] sm:$0xf] }
 0x484   :  { %v2755_v31 = vadd.f32 %v2512_v62, %v20460_v15  ;;  %3554 = vmatmul.bf16.gmra.mxu2 %v3221_v10  ;;  %v3023_v35 = vmax.f32 %v2895_v36, %v2959_v2  ;;  %v9984_v10 = vld [vmem:[%s20248_s4 + $0x8] sm:$0xf0]  ;;  %v20462_v15 = vld [vmem:[#allocation9_spill] sm:$0xff] }
 0x485   :  { %v2826_v20 = vmul.f32 %v15203_v28, %v2754_v3  ;;  %v3222_v12 = vpack.c.bf16 %v3022_v17, %v3018_v0  ;;  %v12465_v0 = vld [vmem:[%s20248_s4 + $0x84] sm:$0xf]  ;;  %v9987_v39 = vor.u32 %v12449_v16, %v9984_v10  ;;  %v12450_v3 = vld [vmem:[%s20248_s4 + $0x4] sm:$0xf0] }
 0x486   :  { %v2827_v7 = vmul.f32 %v15183_v40, %v2755_v31  ;;  %v15879_v48 = vpack.c.bf16 %v3023_v35, %v3019_v18  ;;  %v10051_v56 = vor.u32 %v12465_v0, %v10048_v57  ;;  %v20463_v10 = vld [vmem:[#allocation10_spill] sm:$0xff] }
 0x487   :  { %v2896_v9 = vadd.f32 %v15209_v63, %v2826_v20  ;;  %3505 = vmatmul.bf16.gmra.mxu1 %v3222_v12  ;;  %3603 = vmatmul.bf16.gmra.mxu3 %v3222_v12  ;;  %v2600_v47 = vpop.f32.mrf.mxu2  ;;  %v9983_v12 = vor.u32 %v12450_v3, %v9982_v44 }
 0x488   :  { %20461 = vst [vmem:[#allocation26_spill] sm:$0xff] %v15879_v48  ;;  %v2897_v31 = vadd.f32 %v15200_v19, %v2827_v7  ;;  %v2689_v18 = vpop.f32.mrf.mxu3  ;;  %v2424_v36 = vpop.f32.mrf.mxu0  ;;  %3879 = vmatpush.bf16.msrb.mxu2 %v9987_v39  ;;  %3928 = vmatpush.bf16.msrb.mxu3 %v10051_v56  ;;  %v10046_v7 = vld [vmem:[%s20248_s4 + $0x80] sm:$0xf] }
 0x489   :  { %v2690_v38 = vadd.f32 %v2689_v18, %v2600_v47  ;;  %v2513_v61 = vpop.f32.mrf.mxu1  ;;  %v2960_v62 = vmul.f32 0.2, %v2896_v9  ;;  %v12466_v47 = vld [vmem:[%s20248_s4 + $0x84] sm:$0xf0]  ;;  %3781 = vmatpush.bf16.msrb.mxu0 %v9983_v12 }
 0x48a   :  { %v2514_v24 = vadd.f32 %v2513_v61, %v2424_v36  ;;  %v2961_v2 = vmul.f32 0.2, %v2897_v31  ;;  %v10047_v36 = vor.u32 %v12466_v47, %v10046_v7  ;;  %v20467_v47 = vld [vmem:[#allocation16_spill] sm:$0xff] }
 0x48b   :  { %v2756_v20 = vadd.f32 %v2690_v38, %v20462_v15  ;;  %v3024_v16 = vmax.f32 %v2896_v9, %v2960_v62 }
 0x48c   :  { %v2757_v0 = vadd.f32 %v2514_v24, %v20463_v10  ;;  %v3025_v18 = vmax.f32 %v2897_v31, %v2961_v2  ;;  %3830 = vmatpush.bf16.msrb.mxu1 %v10047_v36 }
 0x48d   :  { %v2828_v39 = vmul.f32 %v15203_v28, %v2756_v20  ;;  %v15911_v57 = vpack.c.bf16 %v3024_v16, %v15850_v54  ;;  %v20466_v54 = vld [vmem:[#allocation11_spill] sm:$0xff] }
 0x48e   :  { %v2829_v38 = vmul.f32 %v15183_v40, %v2757_v0  ;;  %v15915_v61 = vpack.c.bf16 %v3025_v18, %v15853_v49 }
 0x48f   :  { %20464 = vst [vmem:[#allocation27_spill] sm:$0xff] %v15911_v57  ;;  %v2898_v56 = vadd.f32 %v15209_v63, %v2828_v39  ;;  %v2602_v44 = vpop.f32.mrf.mxu2 }
 0x490   :  { %20465 = vst [vmem:[#allocation30_spill] sm:$0xff] %v15915_v61  ;;  %v2899_v9 = vadd.f32 %v15200_v19, %v2829_v38  ;;  %v2691_v62 = vpop.f32.mrf.mxu3  ;;  %v2427_v31 = vpop.f32.mrf.mxu0 }
 0x491   :  { %v2692_v24 = vadd.f32 %v2691_v62, %v2602_v44  ;;  %v2516_v2 = vpop.f32.mrf.mxu1  ;;  %v2962_v3 = vmul.f32 0.2, %v2898_v56 }
 0x492   :  { %v2517_v15 = vadd.f32 %v2516_v2, %v2427_v31  ;;  %v2963_v20 = vmul.f32 0.2, %v2899_v9  ;;  %v12527_v31 = vld [vmem:[%s20248_s4 + $0x274] sm:$0xf] }
 0x493   :  { %v2758_v12 = vadd.f32 %v2692_v24, %v20466_v54  ;;  %v3026_v7 = vmax.f32 %v2898_v56, %v2962_v3  ;;  %v10200_v56 = vld [vmem:[%s20248_s4 + $0x278] sm:$0xf0] }
 0x494   :  { %v2759_v10 = vadd.f32 %v2517_v15, %v20467_v47  ;;  %v3027_v0 = vmax.f32 %v2899_v9, %v2963_v20  ;;  %v10203_v2 = vor.u32 %v12527_v31, %v10200_v56  ;;  %v10264_v3 = vld [vmem:[%s20248_s4 + $0x2f8] sm:$0xf0] }
 0x495   :  { %v2830_v49 = vmul.f32 %v15203_v28, %v2758_v12  ;;  %v15922_v36 = vpack.c.bf16 %v3026_v7, %v3022_v17  ;;  %v12543_v17 = vld [vmem:[%s20248_s4 + $0x2f4] sm:$0xf]  ;;  %v20469_v31 = vld [vmem:[#allocation12_spill] sm:$0xff] }
 0x496   :  { %v2831_v39 = vmul.f32 %v15183_v40, %v2759_v10  ;;  %v15925_v38 = vpack.c.bf16 %v3027_v0, %v3023_v35  ;;  %v10267_v54 = vor.u32 %v12543_v17, %v10264_v3  ;;  %4309 = vmatpush.bf16.msra.mxu2 %v10203_v2  ;;  %v12544_v17 = vld [vmem:[%s20248_s4 + $0x2f4] sm:$0xf0] }
 0x497   :  { %20468 = vst [vmem:[#allocation31_spill] sm:$0xff] %v15922_v36  ;;  %v2900_v44 = vadd.f32 %v15209_v63, %v2830_v49  ;;  %v2605_v62 = vpop.f32.mrf.mxu2  ;;  %v10198_v49 = vld [vmem:[%s20248_s4 + $0x270] sm:$0xf] }
 0x498   :  { %v2901_v9 = vadd.f32 %v15200_v19, %v2831_v39  ;;  %v2694_v24 = vpop.f32.mrf.mxu3  ;;  %v2429_v35 = vpop.f32.mrf.mxu0  ;;  %v12528_v39 = vld [vmem:[%s20248_s4 + $0x274] sm:$0xf0]  ;;  %4358 = vmatpush.bf16.msra.mxu3 %v10267_v54 }
 0x499   :  { %v2695_v15 = vadd.f32 %v2694_v24, %v2605_v62  ;;  %v2518_v20 = vpop.f32.mrf.mxu1  ;;  %v2964_v12 = vmul.f32 0.2, %v2900_v44  ;;  %v10199_v36 = vor.u32 %v12528_v39, %v10198_v49  ;;  %v10262_v62 = vld [vmem:[%s20248_s4 + $0x2f0] sm:$0xf] }
 0x49a   :  { %v2519_v47 = vadd.f32 %v2518_v20, %v2429_v35  ;;  %v2965_v10 = vmul.f32 0.2, %v2901_v9  ;;  %v20470_v35 = vld [vmem:[#allocation17_spill] sm:$0xff]  ;;  %v10263_v20 = vor.u32 %v12544_v17, %v10262_v62 }
 0x49b   :  { %v2760_v56 = vadd.f32 %v2695_v15, %v20469_v31  ;;  %v3028_v24 = vmax.f32 %v2900_v44, %v2964_v12  ;;  %4211 = vmatpush.bf16.msra.mxu0 %v10199_v36  ;;  %v20472_v62 = vld [vmem:[#allocation13_spill] sm:$0xff] }
 0x49c   :  { %v2761_v2 = vadd.f32 %v2519_v47, %v20470_v35  ;;  %v15955_v3 = vmax.f32 %v2901_v9, %v2965_v10  ;;  %4260 = vmatpush.bf16.msra.mxu1 %v10263_v20 }
 0x49d   :  { %v2832_v61 = vmul.f32 %v15203_v28, %v2760_v56  ;;  %v15958_v15 = vpack.c.bf16 %v3028_v24, %v3024_v16 }
 0x49e   :  { %20471 = vst [vmem:[#allocation32_spill] sm:$0xff] %v15955_v3  ;;  %v2833_v54 = vmul.f32 %v15183_v40, %v2761_v2  ;;  %v3223_v49 = vpack.c.bf16 %v15955_v3, %v3025_v18  ;;  %v10166_v3 = vld [vmem:[%s20248_s4 + $0x230] sm:$0xf] }
 0x49f   :  { %v2902_v39 = vadd.f32 %v15209_v63, %v2832_v61  ;;  %v2607_v31 = vpop.f32.mrf.mxu2 }
 0x4a0   :  { %v2903_v44 = vadd.f32 %v15200_v19, %v2833_v54  ;;  %v2696_v12 = vpop.f32.mrf.mxu3  ;;  %3461 = vmatmul.bf16.gmra.mxu0 %v3223_v49  ;;  %3559 = vmatmul.bf16.gmra.mxu2 %v3223_v49  ;;  %v3427_v9 = vpop.f32.mrf.mxu0  ;;  %v12525_v54 = vld [vmem:[%s20248_s4 + $0x264] sm:$0xf]  ;;  %v10192_v49 = vld [vmem:[%s20248_s4 + $0x268] sm:$0xf0] }
 0x4a1   :  { %v2697_v47 = vadd.f32 %v2696_v12, %v2607_v31  ;;  %v3476_v10 = vpop.f32.mrf.mxu1  ;;  %v2966_v56 = vmul.f32 0.2, %v2902_v39 }
 0x4a2   :  { %v15964_v36 = vadd.f32 %v3476_v10, %v3427_v9  ;;  %v2967_v16 = vmul.f32 0.2, %v2903_v44  ;;  %v12526_v10 = vld [vmem:[%s20248_s4 + $0x264] sm:$0xf0] }
 0x4a3   :  { %v2762_v40 = vadd.f32 %v2697_v47, %v20472_v62  ;;  %v15967_v17 = vmax.f32 %v2902_v39, %v2966_v56  ;;  %v10195_v39 = vor.u32 %v12525_v54, %v10192_v49  ;;  %v10190_v47 = vld [vmem:[%s20248_s4 + $0x260] sm:$0xf]  ;;  %v12542_v62 = vld [vmem:[%s20248_s4 + $0x2e4] sm:$0xf0] }
 0x4a4   :  { %v3031_v18 = vmax.f32 %v2903_v44, %v2967_v16  ;;  %v10254_v56 = vld [vmem:[%s20248_s4 + $0x2e0] sm:$0xf]  ;;  %v10191_v16 = vor.u32 %v12526_v10, %v10190_v47 }
 0x4a5   :  { %20473 = vst [vmem:[#allocation33_spill] sm:$0xff] %v15967_v17  ;;  %v2834_v61 = vmul.f32 %v15203_v28, %v2762_v40  ;;  %v3224_v35 = vpack.c.bf16 %v15967_v17, %v3026_v7  ;;  %v12541_v28 = vld [vmem:[%s20248_s4 + $0x2e4] sm:$0xf]  ;;  %4310 = vmatpush.bf16.msra.mxu2 %v10195_v39 }
 0x4a6   :  { %v15971_v19 = vpack.c.bf16 %v3031_v18, %v3027_v0  ;;  %v10255_v18 = vor.u32 %v12542_v62, %v10254_v56  ;;  %4212 = vmatpush.bf16.msra.mxu0 %v10191_v16 }
 0x4a7   :  { %v2904_v2 = vadd.f32 %v15209_v63, %v2834_v61  ;;  %3510 = vmatmul.bf16.gmra.mxu1 %v3224_v35  ;;  %3608 = vmatmul.bf16.gmra.mxu3 %v3224_v35  ;;  %v3525_v20 = vpop.f32.mrf.mxu2  ;;  %v10256_v63 = vld [vmem:[%s20248_s4 + $0x2e8] sm:$0xf0]  ;;  %v20270_v35 = vmov 0.0  }
 0x4a8   :  { %20474 = vst [vmem:[#allocation34_spill] sm:$0xff] %v15971_v19  ;;  %v3574_v7 = vpop.f32.mrf.mxu3  ;;  %v15983_v0 = vpop.f32.mrf.mxu0  ;;  %v10259_v12 = vor.u32 %v12541_v28, %v10256_v63  ;;  %4261 = vmatpush.bf16.msra.mxu1 %v10255_v18  ;;  %v10184_v63 = vld [vmem:[%s20248_s4 + $0x258] sm:$0xf0]  ;;  %v12524_v18 = vld [vmem:[%s20248_s4 + $0x254] sm:$0xf0] }
 0x4a9   :  { %v15988_v31 = vadd.f32 %v3574_v7, %v3525_v20  ;;  %v15990_v44 = vpop.f32.mrf.mxu1  ;;  %v2968_v9 = vmul.f32 0.2, %v2904_v2  ;;  %v3129_v20 = vpack.c.bf16 %v15265_v14, %v20270_v35  ;;  %v12523_v14 = vld [vmem:[%s20248_s4 + $0x254] sm:$0xf] }
 0x4aa   :  { %4359 = vmatpush.bf16.msra.mxu3 %v10259_v12  ;;  %v12539_v12 = vld [vmem:[%s20248_s4 + $0x2d4] sm:$0xf]  ;;  %v10187_v10 = vor.u32 %v12523_v14, %v10184_v63 }
 0x4ab   :  { %v3032_v40 = vmax.f32 %v2904_v2, %v2968_v9  ;;  %v3130_v2 = vpack.c.bf16 %v15277_v53, %v20270_v35  ;;  %v10248_v53 = vld [vmem:[%s20248_s4 + $0x2d8] sm:$0xf0] }
 0x4ac   :  { %v10251_v62 = vor.u32 %v12539_v12, %v10248_v53  ;;  %4311 = vmatpush.bf16.msra.mxu2 %v10187_v10  ;;  %v12521_v53 = vld [vmem:[%s20248_s4 + $0x244] sm:$0xf] }
 0x4ad   :  { %v16004_v61 = vpack.c.bf16 %v3032_v40, %v3028_v24  ;;  %v10182_v40 = vld [vmem:[%s20248_s4 + $0x250] sm:$0xf] }
 0x4ae   :  { %4360 = vmatpush.bf16.msra.mxu3 %v10251_v62  ;;  %v10176_v62 = vld [vmem:[%s20248_s4 + $0x248] sm:$0xf0] }
 0x4af   :  { %20475 = vst [vmem:[#allocation35_spill] sm:$0xff] %v16004_v61  ;;  %v16008_v54 = vpop.f32.mrf.mxu2 }
 0x4b0   :  { %v16010_v49 = vpop.f32.mrf.mxu3  ;;  %3782 = vmatmul.bf16.vlgmr.msrb.gmra.mxu0 %v3129_v20  ;;  %3880 = vmatmul.bf16.vlgmr.msrb.gmra.mxu2 %v3129_v20  ;;  %v3432_v28 = vpop.f32.mrf.mxu0  ;;  %v10246_v20 = vld [vmem:[%s20248_s4 + $0x2d0] sm:$0xf] }
 0x4b1   :  { %v3481_v7 = vpop.f32.mrf.mxu1 }
 0x4b2   :  { %v16012_v39 = vadd.f32 %v3481_v7, %v3432_v28  ;;  %v10183_v28 = vor.u32 %v12524_v18, %v10182_v40  ;;  %v12540_v7 = vld [vmem:[%s20248_s4 + $0x2d4] sm:$0xf0] }
 0x4b4   :  { %4213 = vmatpush.bf16.msra.mxu0 %v10183_v28 }
 0x4b7   :  { %3831 = vmatmul.bf16.vlgmr.msrb.gmra.mxu1 %v3130_v2  ;;  %3929 = vmatmul.bf16.vlgmr.msrb.gmra.mxu3 %v3130_v2  ;;  %v3530_v24 = vpop.f32.mrf.mxu2  ;;  %v10247_v2 = vor.u32 %v12540_v7, %v10246_v20  ;;  %v10179_v20 = vor.u32 %v12521_v53, %v10176_v62  ;;  %v10238_v53 = vld [vmem:[%s20248_s4 + $0x2c0] sm:$0xf] }
 0x4b8   :  { %v3579_v9 = vpop.f32.mrf.mxu3  ;;  %v16025_v47 = vpop.f32.mrf.mxu0 }
 0x4b9   :  { %v16030_v56 = vadd.f32 %v3579_v9, %v3530_v24  ;;  %v16032_v16 = vpop.f32.mrf.mxu1  ;;  %4262 = vmatpush.bf16.msra.mxu1 %v10247_v2  ;;  %4312 = vmatpush.bf16.msra.mxu2 %v10179_v20 }
 0x4bf   :  { %v16046_v24 = vpop.f32.mrf.mxu2 }
 0x4c0   :  { %v16048_v14 = vpop.f32.mrf.mxu3  ;;  %3787 = vmatmul.bf16.gmra.mxu0 %v15315_v11  ;;  %3885 = vmatmul.bf16.gmra.mxu2 %v15315_v11  ;;  %v3437_v63 = vpop.f32.mrf.mxu0  ;;  %v12537_v11 = vld [vmem:[%s20248_s4 + $0x2c4] sm:$0xf] }
 0x4c1   :  { %v3486_v12 = vpop.f32.mrf.mxu1 }
 0x4c2   :  { %v16052_v9 = vadd.f32 %v3486_v12, %v3437_v63  ;;  %v10174_v63 = vld [vmem:[%s20248_s4 + $0x240] sm:$0xf]  ;;  %v12522_v12 = vld [vmem:[%s20248_s4 + $0x244] sm:$0xf0] }
 0x4c3   :  { %v10175_v62 = vor.u32 %v12522_v12, %v10174_v63  ;;  %v12519_v63 = vld [vmem:[%s20248_s4 + $0x234] sm:$0xf]  ;;  %v10168_v12 = vld [vmem:[%s20248_s4 + $0x238] sm:$0xf0] }
 0x4c5   :  { %4214 = vmatpush.bf16.msra.mxu0 %v10175_v62  ;;  %v10171_v62 = vor.u32 %v12519_v63, %v10168_v12  ;;  %v10230_v63 = vld [vmem:[%s20248_s4 + $0x2b0] sm:$0xf]  ;;  %v10167_v12 = vor.u32 %v12520_v51, %v10166_v3  ;;  %v12517_v3 = vld [vmem:[%s20248_s4 + $0x224] sm:$0xf] }
 0x4c7   :  { %3836 = vmatmul.bf16.gmra.mxu1 %v15349_v26  ;;  %3934 = vmatmul.bf16.gmra.mxu3 %v15349_v26  ;;  %v3535_v10 = vpop.f32.mrf.mxu2  ;;  %v10240_v26 = vld [vmem:[%s20248_s4 + $0x2c8] sm:$0xf0] }
 0x4c8   :  { %v3584_v40 = vpop.f32.mrf.mxu3  ;;  %v16065_v18 = vpop.f32.mrf.mxu0  ;;  %v10243_v2 = vor.u32 %v12537_v11, %v10240_v26  ;;  %4313 = vmatpush.bf16.msra.mxu2 %v10171_v62 }
 0x4c9   :  { %v16070_v28 = vadd.f32 %v3584_v40, %v3535_v10  ;;  %v16072_v7 = vpop.f32.mrf.mxu1  ;;  %v12538_v10 = vld [vmem:[%s20248_s4 + $0x2c4] sm:$0xf0]  ;;  %4215 = vmatpush.bf16.msra.mxu0 %v10167_v12 }
 0x4ca   :  { %4361 = vmatpush.bf16.msra.mxu3 %v10243_v2  ;;  %v10239_v11 = vor.u32 %v12538_v10, %v10238_v53 }
 0x4cc   :  { %4263 = vmatpush.bf16.msra.mxu1 %v10239_v11 }
 0x4cf   :  { %v16086_v40 = vpop.f32.mrf.mxu2 }
 0x4d0   :  { %v16088_v20 = vpop.f32.mrf.mxu3  ;;  %3792 = vmatmul.bf16.gmra.mxu0 %v15415_v6  ;;  %3890 = vmatmul.bf16.gmra.mxu2 %v15415_v6  ;;  %v3442_v26 = vpop.f32.mrf.mxu0  ;;  %v12535_v6 = vld [vmem:[%s20248_s4 + $0x2b4] sm:$0xf] }
 0x4d1   :  { %v3491_v35 = vpop.f32.mrf.mxu1 }
 0x4d2   :  { %v16092_v17 = vadd.f32 %v3491_v35, %v3442_v26 }
 0x4d7   :  { %3841 = vmatmul.bf16.gmra.mxu1 %v15449_v8  ;;  %3939 = vmatmul.bf16.gmra.mxu3 %v15449_v8  ;;  %v3540_v2 = vpop.f32.mrf.mxu2  ;;  %v10232_v8 = vld [vmem:[%s20248_s4 + $0x2b8] sm:$0xf0] }
 0x4d8   :  { %v3589_v53 = vpop.f32.mrf.mxu3  ;;  %v16105_v35 = vpop.f32.mrf.mxu0  ;;  %v10235_v26 = vor.u32 %v12535_v6, %v10232_v8 }
 0x4d9   :  { %v16110_v10 = vadd.f32 %v3589_v53, %v3540_v2  ;;  %v16112_v11 = vpop.f32.mrf.mxu1  ;;  %v12536_v2 = vld [vmem:[%s20248_s4 + $0x2b4] sm:$0xf0] }
 0x4da   :  { %4362 = vmatpush.bf16.msra.mxu3 %v10235_v26  ;;  %v10231_v6 = vor.u32 %v12536_v2, %v10230_v63  ;;  %v10160_v26 = vld [vmem:[%s20248_s4 + $0x228] sm:$0xf0] }
 0x4db   :  { %v10163_v12 = vor.u32 %v12517_v3, %v10160_v26  ;;  %v10222_v3 = vld [vmem:[%s20248_s4 + $0x2a0] sm:$0xf]  ;;  %v10159_v26 = vor.u32 %v12518_v45, %v10158_v27  ;;  %v12515_v27 = vld [vmem:[%s20248_s4 + $0x214] sm:$0xf] }
 0x4dc   :  { %4264 = vmatpush.bf16.msra.mxu1 %v10231_v6 }
 0x4dd   :  { %4314 = vmatpush.bf16.msra.mxu2 %v10163_v12  ;;  %4216 = vmatpush.bf16.msra.mxu0 %v10159_v26 }
 0x4df   :  { %v16126_v53 = vpop.f32.mrf.mxu2 }
 0x4e0   :  { %v16128_v62 = vpop.f32.mrf.mxu3  ;;  %3797 = vmatmul.bf16.gmra.mxu0 %v15509_v4  ;;  %3895 = vmatmul.bf16.gmra.mxu2 %v15509_v4  ;;  %v3447_v8 = vpop.f32.mrf.mxu0  ;;  %v12533_v4 = vld [vmem:[%s20248_s4 + $0x2a4] sm:$0xf] }
 0x4e1   :  { %v3496_v55 = vpop.f32.mrf.mxu1 }
 0x4e2   :  { %v16132_v59 = vadd.f32 %v3496_v55, %v3447_v8 }
 0x4e7   :  { %3846 = vmatmul.bf16.gmra.mxu1 %v15528_v23  ;;  %3944 = vmatmul.bf16.gmra.mxu3 %v15528_v23  ;;  %v3545_v51 = vpop.f32.mrf.mxu2  ;;  %v10224_v23 = vld [vmem:[%s20248_s4 + $0x2a8] sm:$0xf0] }
 0x4e8   :  { %v3594_v63 = vpop.f32.mrf.mxu3  ;;  %v16145_v55 = vpop.f32.mrf.mxu0  ;;  %v10227_v8 = vor.u32 %v12533_v4, %v10224_v23 }
 0x4e9   :  { %v16150_v2 = vadd.f32 %v3594_v63, %v3545_v51  ;;  %v16152_v6 = vpop.f32.mrf.mxu1  ;;  %v12534_v51 = vld [vmem:[%s20248_s4 + $0x2a4] sm:$0xf0] }
 0x4ea   :  { %4363 = vmatpush.bf16.msra.mxu3 %v10227_v8  ;;  %v10223_v63 = vor.u32 %v12534_v51, %v10222_v3  ;;  %v10152_v3 = vld [vmem:[%s20248_s4 + $0x218] sm:$0xf0] }
 0x4eb   :  { %v10155_v51 = vor.u32 %v12515_v27, %v10152_v3  ;;  %v10214_v27 = vld [vmem:[%s20248_s4 + $0x290] sm:$0xf]  ;;  %v12532_v3 = vld [vmem:[%s20248_s4 + $0x294] sm:$0xf0] }
 0x4ec   :  { %4265 = vmatpush.bf16.msra.mxu1 %v10223_v63  ;;  %v10216_v63 = vld [vmem:[%s20248_s4 + $0x298] sm:$0xf0]  ;;  %v10215_v57 = vor.u32 %v12532_v3, %v10214_v27 }
 0x4ed   :  { %4315 = vmatpush.bf16.msra.mxu2 %v10155_v51  ;;  %v10208_v51 = vld [vmem:[%s20248_s4 + $0x288] sm:$0xf0] }
 0x4ef   :  { %v16166_v4 = vpop.f32.mrf.mxu2 }
 0x4f0   :  { %v16168_v12 = vpop.f32.mrf.mxu3  ;;  %3802 = vmatmul.bf16.gmra.mxu0 %v15619_v41  ;;  %3900 = vmatmul.bf16.gmra.mxu2 %v15619_v41  ;;  %v3452_v23 = vpop.f32.mrf.mxu0  ;;  %v12531_v41 = vld [vmem:[%s20248_s4 + $0x294] sm:$0xf] }
 0x4f1   :  { %v3501_v8 = vpop.f32.mrf.mxu1  ;;  %v10219_v5 = vor.u32 %v12531_v41, %v10216_v63  ;;  %4266 = vmatpush.bf16.msra.mxu1 %v10215_v57  ;;  %v10144_v57 = vld [vmem:[%s20248_s4 + $0x208] sm:$0xf0] }
 0x4f2   :  { %v16172_v58 = vadd.f32 %v3501_v8, %v3452_v23  ;;  %v12516_v23 = vld [vmem:[%s20248_s4 + $0x214] sm:$0xf0] }
 0x4f3   :  { %4364 = vmatpush.bf16.msra.mxu3 %v10219_v5  ;;  %v12513_v5 = vld [vmem:[%s20248_s4 + $0x204] sm:$0xf] }
 0x4f7   :  { %3851 = vmatmul.bf16.gmra.mxu1 %v15638_v22  ;;  %3949 = vmatmul.bf16.gmra.mxu3 %v15638_v22  ;;  %v3550_v45 = vpop.f32.mrf.mxu2  ;;  %v10150_v22 = vld [vmem:[%s20248_s4 + $0x210] sm:$0xf] }
 0x4f8   :  { %v3599_v26 = vpop.f32.mrf.mxu3  ;;  %v10151_v61 = vor.u32 %v12516_v23, %v10150_v22  ;;  %v16202_v19 = vpop.f32.mrf.mxu0 }
 0x4f9   :  { %v16194_v8 = vadd.f32 %v3599_v26, %v3550_v45  ;;  %v16204_v48 = vpop.f32.mrf.mxu1 }
 0x4fa   :  { %4217 = vmatpush.bf16.msra.mxu0 %v10151_v61  ;;  %v10147_v61 = vor.u32 %v12513_v5, %v10144_v57  ;;  %v10206_v57 = vld [vmem:[%s20248_s4 + $0x280] sm:$0xf] }
 0x4fc   :  { %4316 = vmatpush.bf16.msra.mxu2 %v10147_v61 }
 0x4ff   :  { %v16206_v45 = vpop.f32.mrf.mxu2 }
 0x500   :  { %3807 = vmatmul.bf16.gmra.mxu0 %v15731_v50  ;;  %3905 = vmatmul.bf16.gmra.mxu2 %v15731_v50  ;;  %v16210_v41 = vpop.f32.mrf.mxu3  ;;  %v3457_v26 = vpop.f32.mrf.mxu0  ;;  %v12529_v50 = vld [vmem:[%s20248_s4 + $0x284] sm:$0xf] }
 0x501   :  { %v10211_v23 = vor.u32 %v12529_v50, %v10208_v51  ;;  %v12530_v50 = vld [vmem:[%s20248_s4 + $0x284] sm:$0xf0] }
 0x502   :  { %v10207_v61 = vor.u32 %v12530_v50, %v10206_v57  ;;  %v10358_v50 = vld [vmem:[%s20248_s4 + $0x370] sm:$0xf] }
 0x503   :  { %4365 = vmatpush.bf16.msra.mxu3 %v10211_v23  ;;  %v12559_v23 = vld [vmem:[%s20248_s4 + $0x374] sm:$0xf] }
 0x504   :  { %v3506_v63 = vpop.f32.mrf.mxu1  ;;  %4267 = vmatpush.bf16.msra.mxu1 %v10207_v61  ;;  %v12560_v61 = vld [vmem:[%s20248_s4 + $0x374] sm:$0xf0] }
 0x505   :  { %v16212_v22 = vadd.f32 %v3506_v63, %v3457_v26  ;;  %v10142_v26 = vld [vmem:[%s20248_s4 + $0x200] sm:$0xf]  ;;  %v12514_v63 = vld [vmem:[%s20248_s4 + $0x204] sm:$0xf0] }
 0x506   :  { %v10143_v5 = vor.u32 %v12514_v63, %v10142_v26  ;;  %v10424_v26 = vld [vmem:[%s20248_s4 + $0x3f8] sm:$0xf0] }
 0x507   :  { %3856 = vmatmul.bf16.gmra.mxu1 %v15750_v33  ;;  %3954 = vmatmul.bf16.gmra.mxu3 %v15750_v33  ;;  %v3555_v27 = vpop.f32.mrf.mxu2 }
 0x508   :  { %4218 = vmatpush.bf16.msra.mxu0 %v10143_v5  ;;  %v16244_v51 = vpop.f32.mrf.mxu0 }
 0x509   :  { %20477 = vst [vmem:[#allocation37_spill] sm:$0xff] %v16244_v51 }
 0x50a   :  { %v3604_v33 = vpop.f32.mrf.mxu3 }
 0x50b   :  { %v16228_v3 = vadd.f32 %v3604_v33, %v3555_v27  ;;  %v10360_v27 = vld [vmem:[%s20248_s4 + $0x378] sm:$0xf0]  ;;  %v12575_v33 = vld [vmem:[%s20248_s4 + $0x3f4] sm:$0xf] }
 0x50c   :  { %v10427_v63 = vor.u32 %v12575_v33, %v10424_v26  ;;  %v16262_v5 = vpop.f32.mrf.mxu1  ;;  %v12576_v33 = vld [vmem:[%s20248_s4 + $0x3f4] sm:$0xf0] }
 0x50d   :  { %20476 = vst [vmem:[#allocation36_spill] sm:$0xff] %v16228_v3  ;;  %v10350_v3 = vld [vmem:[%s20248_s4 + $0x360] sm:$0xf] }
 0x50e   :  { %4827 = vmatpush.bf16.msrb.mxu3 %v10427_v63  ;;  %20479 = vst [vmem:[#allocation39_spill] sm:$0xff] %v16262_v5 }
 0x510   :  { %3812 = vmatmul.bf16.gmra.mxu0 %v15833_v42  ;;  %3910 = vmatmul.bf16.gmra.mxu2 %v15833_v42  ;;  %v10363_v42 = vor.u32 %v12559_v23, %v10360_v27  ;;  %v10422_v23 = vld [vmem:[%s20248_s4 + $0x3f0] sm:$0xf]  ;;  %v10359_v27 = vor.u32 %v12560_v61, %v10358_v50  ;;  %v12557_v50 = vld [vmem:[%s20248_s4 + $0x364] sm:$0xf] }
 0x511   :  { %v12573_v61 = vld [vmem:[%s20248_s4 + $0x3e4] sm:$0xf] }
 0x512   :  { %4778 = vmatpush.bf16.msrb.mxu2 %v10363_v42  ;;  %v10423_v42 = vor.u32 %v12576_v33, %v10422_v23  ;;  %4680 = vmatpush.bf16.msrb.mxu0 %v10359_v27  ;;  %v16278_v26 = vpop.f32.mrf.mxu3 }
 0x513   :  { %20480 = vst [vmem:[#allocation40_spill] sm:$0xff] %v16278_v26 }
 0x514   :  { %4729 = vmatpush.bf16.msrb.mxu1 %v10423_v42 }
 0x517   :  { %3861 = vmatmul.bf16.gmra.mxu1 %v15857_v60  ;;  %3959 = vmatmul.bf16.gmra.mxu3 %v15857_v60  ;;  %v16260_v60 = vpop.f32.mrf.mxu2 }
 0x518   :  { %20478 = vst [vmem:[#allocation38_spill] sm:$0xff] %v16260_v60 }
 0x51d   :  { %v3462_v57 = vpop.f32.mrf.mxu0 }
 0x520   :  { %3817 = vmatmul.bf16.gmra.mxu0 %v15925_v38  ;;  %3915 = vmatmul.bf16.gmra.mxu2 %v15925_v38  ;;  %v10352_v38 = vld [vmem:[%s20248_s4 + $0x368] sm:$0xf0] }
 0x521   :  { %v10355_v23 = vor.u32 %v12557_v50, %v10352_v38  ;;  %v12558_v50 = vld [vmem:[%s20248_s4 + $0x364] sm:$0xf0]  ;;  %v10414_v38 = vld [vmem:[%s20248_s4 + $0x3e0] sm:$0xf] }
 0x523   :  { %v3560_v63 = vpop.f32.mrf.mxu2  ;;  %4779 = vmatpush.bf16.msrb.mxu2 %v10355_v23 }
 0x524   :  { %v3511_v60 = vpop.f32.mrf.mxu1 }
 0x525   :  { %v16280_v5 = vadd.f32 %v3511_v60, %v3462_v57  ;;  %v3464_v51 = vpop.f32.mrf.mxu0  ;;  %v10416_v60 = vld [vmem:[%s20248_s4 + $0x3e8] sm:$0xf0] }
 0x526   :  { %v10419_v57 = vor.u32 %v12573_v61, %v10416_v60  ;;  %v10351_v61 = vor.u32 %v12558_v50, %v10350_v3  ;;  %v10408_v50 = vld [vmem:[%s20248_s4 + $0x3d8] sm:$0xf0] }
 0x527   :  { %20481 = vst [vmem:[#allocation41_spill] sm:$0xff] %v16280_v5  ;;  %3866 = vmatmul.bf16.gmra.mxu1 %v15958_v15  ;;  %3964 = vmatmul.bf16.gmra.mxu3 %v15958_v15 }
 0x528   :  { %4828 = vmatpush.bf16.msrb.mxu3 %v10419_v57  ;;  %4681 = vmatpush.bf16.msrb.mxu0 %v10351_v61 }
 0x52a   :  { %v3609_v27 = vpop.f32.mrf.mxu3 }
 0x52b   :  { %v16296_v15 = vadd.f32 %v3609_v27, %v3560_v63  ;;  %v3562_v33 = vpop.f32.mrf.mxu2 }
 0x52c   :  { %v3513_v42 = vpop.f32.mrf.mxu1 }
 0x52d   :  { %v16298_v5 = vadd.f32 %v3513_v42, %v3464_v51  ;;  %v3783_v26 = vpop.f32.mrf.mxu0  ;;  %v12574_v51 = vld [vmem:[%s20248_s4 + $0x3e4] sm:$0xf0] }
 0x52e   :  { %v3784_v63 = vadd.f32 %v3783_v26, %v15964_v36  ;;  %v10415_v23 = vor.u32 %v12574_v51, %v10414_v38  ;;  %v10344_v26 = vld [vmem:[%s20248_s4 + $0x358] sm:$0xf0] }
 0x52f   :  { %20482 = vst [vmem:[#allocation42_spill] sm:$0xff] %v16298_v5 }
 0x530   :  { %4219 = vmatmul.bf16.vlgmr.msra.gmra.mxu0 %v15273_v34  ;;  %4317 = vmatmul.bf16.vlgmr.msra.gmra.mxu2 %v15273_v34  ;;  %v12555_v34 = vld [vmem:[%s20248_s4 + $0x354] sm:$0xf] }
 0x531   :  { %4730 = vmatpush.bf16.msrb.mxu1 %v10415_v23 }
 0x532   :  { %v3611_v60 = vpop.f32.mrf.mxu3 }
 0x533   :  { %v16315_v57 = vadd.f32 %v3611_v60, %v3562_v33  ;;  %v3881_v27 = vpop.f32.mrf.mxu2  ;;  %v12571_v33 = vld [vmem:[%s20248_s4 + $0x3d4] sm:$0xf] }
 0x534   :  { %v3832_v42 = vpop.f32.mrf.mxu1  ;;  %v3882_v5 = vadd.f32 %v3881_v27, %v15988_v31  ;;  %v10347_v31 = vor.u32 %v12555_v34, %v10344_v26  ;;  %v10411_v38 = vor.u32 %v12571_v33, %v10408_v50 }
 0x535   :  { %v16318_v36 = vadd.f32 %v3832_v42, %v3784_v63  ;;  %v3785_v3 = vpop.f32.mrf.mxu0  ;;  %v3577_v63 = vadd.f32 %v16010_v49, %v16008_v54  ;;  %v10406_v54 = vld [vmem:[%s20248_s4 + $0x3d0] sm:$0xf] }
 0x536   :  { %4780 = vmatpush.bf16.msrb.mxu2 %v10347_v31  ;;  %4829 = vmatpush.bf16.msrb.mxu3 %v10411_v38 }
 0x537   :  { %4268 = vmatmul.bf16.vlgmr.msra.gmra.mxu1 %v15295_v29  ;;  %4366 = vmatmul.bf16.vlgmr.msra.gmra.mxu3 %v15295_v29  ;;  %v3479_v29 = vadd.f32 %v15990_v44, %v15983_v0  ;;  %v10342_v0 = vld [vmem:[%s20248_s4 + $0x350] sm:$0xf]  ;;  %v12556_v44 = vld [vmem:[%s20248_s4 + $0x354] sm:$0xf0] }
 0x539   :  { %v3786_v51 = vadd.f32 %v3785_v3, %v3479_v29  ;;  %v12572_v3 = vld [vmem:[%s20248_s4 + $0x3d4] sm:$0xf0] }
 0x53a   :  { %v3930_v61 = vpop.f32.mrf.mxu3  ;;  %v10407_v33 = vor.u32 %v12572_v3, %v10406_v54 }
 0x53b   :  { %v16338_v23 = vadd.f32 %v3930_v61, %v3882_v5  ;;  %v3883_v60 = vpop.f32.mrf.mxu2  ;;  %v10343_v5 = vor.u32 %v12556_v44, %v10342_v0 }
 0x53c   :  { %v3834_v27 = vpop.f32.mrf.mxu1  ;;  %v3884_v42 = vadd.f32 %v3883_v60, %v3577_v63  ;;  %4731 = vmatpush.bf16.msrb.mxu1 %v10407_v33  ;;  %v12569_v60 = vld [vmem:[%s20248_s4 + $0x3c4] sm:$0xf] }
 0x53d   :  { %v16340_v34 = vadd.f32 %v3834_v27, %v3786_v51  ;;  %v3788_v26 = vpop.f32.mrf.mxu0  ;;  %4682 = vmatpush.bf16.msrb.mxu0 %v10343_v5  ;;  %v10336_v51 = vld [vmem:[%s20248_s4 + $0x348] sm:$0xf0] }
 0x53e   :  { %v3789_v49 = vadd.f32 %v3788_v26, %v16012_v39  ;;  %v10400_v27 = vld [vmem:[%s20248_s4 + $0x3c8] sm:$0xf0]  ;;  %v3582_v26 = vadd.f32 %v16048_v14, %v16046_v24  ;;  %v10398_v24 = vld [vmem:[%s20248_s4 + $0x3c0] sm:$0xf] }
 0x540   :  { %4224 = vmatmul.bf16.gmra.mxu0 %v15376_v25  ;;  %4322 = vmatmul.bf16.gmra.mxu2 %v15376_v25  ;;  %v12553_v25 = vld [vmem:[%s20248_s4 + $0x344] sm:$0xf] }
 0x542   :  { %v3932_v31 = vpop.f32.mrf.mxu3 }
 0x543   :  { %v16357_v50 = vadd.f32 %v3932_v31, %v3884_v42  ;;  %v3886_v29 = vpop.f32.mrf.mxu2  ;;  %v10403_v42 = vor.u32 %v12569_v60, %v10400_v27 }
 0x544   :  { %v3837_v38 = vpop.f32.mrf.mxu1  ;;  %v3887_v63 = vadd.f32 %v3886_v29, %v16030_v56  ;;  %v10339_v56 = vor.u32 %v12553_v25, %v10336_v51 }
 0x545   :  { %v16360_v39 = vadd.f32 %v3837_v38, %v3789_v49  ;;  %v3790_v61 = vpop.f32.mrf.mxu0  ;;  %4830 = vmatpush.bf16.msrb.mxu3 %v10403_v42  ;;  %v12570_v38 = vld [vmem:[%s20248_s4 + $0x3c4] sm:$0xf0]  ;;  %v12567_v42 = vld [vmem:[%s20248_s4 + $0x3b4] sm:$0xf] }
 0x546   :  { %4781 = vmatpush.bf16.msrb.mxu2 %v10339_v56 }
 0x547   :  { %4273 = vmatmul.bf16.gmra.mxu1 %v15396_v21  ;;  %4371 = vmatmul.bf16.gmra.mxu3 %v15396_v21  ;;  %v3484_v21 = vadd.f32 %v16032_v16, %v16025_v47  ;;  %v10334_v47 = vld [vmem:[%s20248_s4 + $0x340] sm:$0xf]  ;;  %v12554_v16 = vld [vmem:[%s20248_s4 + $0x344] sm:$0xf0] }
 0x548   :  { %v10335_v29 = vor.u32 %v12554_v16, %v10334_v47 }
 0x549   :  { %v3791_v44 = vadd.f32 %v3790_v61, %v3484_v21  ;;  %v10328_v21 = vld [vmem:[%s20248_s4 + $0x338] sm:$0xf0] }
 0x54a   :  { %v3935_v0 = vpop.f32.mrf.mxu3  ;;  %4683 = vmatpush.bf16.msrb.mxu0 %v10335_v29 }
 0x54b   :  { %v16380_v54 = vadd.f32 %v3935_v0, %v3887_v63  ;;  %v3888_v49 = vpop.f32.mrf.mxu2  ;;  %v10399_v63 = vor.u32 %v12570_v38, %v10398_v24  ;;  %v12568_v38 = vld [vmem:[%s20248_s4 + $0x3b4] sm:$0xf0] }
 0x54c   :  { %v3839_v5 = vpop.f32.mrf.mxu1  ;;  %v3889_v3 = vadd.f32 %v3888_v49, %v3582_v26  ;;  %v10392_v26 = vld [vmem:[%s20248_s4 + $0x3b8] sm:$0xf0] }
 0x54d   :  { %v16382_v33 = vadd.f32 %v3839_v5, %v3791_v44  ;;  %v3793_v31 = vpop.f32.mrf.mxu0  ;;  %4732 = vmatpush.bf16.msrb.mxu1 %v10399_v63  ;;  %v10395_v0 = vor.u32 %v12567_v42, %v10392_v26  ;;  %v3587_v44 = vadd.f32 %v16088_v20, %v16086_v40  ;;  %v10390_v40 = vld [vmem:[%s20248_s4 + $0x3b0] sm:$0xf]  ;;  %v12565_v42 = vld [vmem:[%s20248_s4 + $0x3a4] sm:$0xf] }
 0x54e   :  { %v3794_v14 = vadd.f32 %v3793_v31, %v16052_v9  ;;  %v10391_v63 = vor.u32 %v12568_v38, %v10390_v40 }
 0x54f   :  { %4831 = vmatpush.bf16.msrb.mxu3 %v10395_v0 }
 0x550   :  { %4229 = vmatmul.bf16.gmra.mxu0 %v15476_v46  ;;  %4327 = vmatmul.bf16.gmra.mxu2 %v15476_v46  ;;  %v12551_v46 = vld [vmem:[%s20248_s4 + $0x334] sm:$0xf] }
 0x551   :  { %4733 = vmatpush.bf16.msrb.mxu1 %v10391_v63 }
 0x552   :  { %v3937_v61 = vpop.f32.mrf.mxu3 }
 0x553   :  { %v16399_v25 = vadd.f32 %v3937_v61, %v3889_v3  ;;  %v3891_v51 = vpop.f32.mrf.mxu2 }
 0x554   :  { %v3842_v60 = vpop.f32.mrf.mxu1  ;;  %v3892_v56 = vadd.f32 %v3891_v51, %v16070_v28  ;;  %v10331_v28 = vor.u32 %v12551_v46, %v10328_v21  ;;  %v10320_v21 = vld [vmem:[%s20248_s4 + $0x328] sm:$0xf0] }
 0x555   :  { %v16402_v9 = vadd.f32 %v3842_v60, %v3794_v14  ;;  %v3795_v27 = vpop.f32.mrf.mxu0 }
 0x556   :  { %4782 = vmatpush.bf16.msrb.mxu2 %v10331_v28  ;;  %v10384_v28 = vld [vmem:[%s20248_s4 + $0x3a8] sm:$0xf0] }
 0x557   :  { %4278 = vmatmul.bf16.gmra.mxu1 %v15496_v30  ;;  %4376 = vmatmul.bf16.gmra.mxu3 %v15496_v30  ;;  %v3489_v30 = vadd.f32 %v16072_v7, %v16065_v18  ;;  %v10326_v18 = vld [vmem:[%s20248_s4 + $0x330] sm:$0xf]  ;;  %v12552_v7 = vld [vmem:[%s20248_s4 + $0x334] sm:$0xf0]  ;;  %v10387_v26 = vor.u32 %v12565_v42, %v10384_v28 }
 0x558   :  { %v10327_v29 = vor.u32 %v12552_v7, %v10326_v18  ;;  %v12566_v7 = vld [vmem:[%s20248_s4 + $0x3a4] sm:$0xf0] }
 0x559   :  { %v3796_v5 = vadd.f32 %v3795_v27, %v3489_v30  ;;  %v3592_v30 = vadd.f32 %v16128_v62, %v16126_v53  ;;  %4832 = vmatpush.bf16.msrb.mxu3 %v10387_v26  ;;  %v10382_v53 = vld [vmem:[%s20248_s4 + $0x3a0] sm:$0xf] }
 0x55a   :  { %v3940_v49 = vpop.f32.mrf.mxu3  ;;  %4684 = vmatpush.bf16.msrb.mxu0 %v10327_v29  ;;  %v10383_v40 = vor.u32 %v12566_v7, %v10382_v53  ;;  %v10304_v7 = vld [vmem:[%s20248_s4 + $0x308] sm:$0xf0] }
 0x55b   :  { %v16422_v3 = vadd.f32 %v3940_v49, %v3892_v56  ;;  %v3893_v31 = vpop.f32.mrf.mxu2 }
 0x55c   :  { %v3844_v47 = vpop.f32.mrf.mxu1  ;;  %v3894_v16 = vadd.f32 %v3893_v31, %v3587_v44  ;;  %4734 = vmatpush.bf16.msrb.mxu1 %v10383_v40  ;;  %v12561_v40 = vld [vmem:[%s20248_s4 + $0x384] sm:$0xf] }
 0x55d   :  { %v16424_v24 = vadd.f32 %v3844_v47, %v3796_v5  ;;  %v3798_v14 = vpop.f32.mrf.mxu0 }
 0x55e   :  { %v3799_v20 = vadd.f32 %v3798_v14, %v16092_v17 }
 0x560   :  { %4234 = vmatmul.bf16.gmra.mxu0 %v15563_v1  ;;  %4332 = vmatmul.bf16.gmra.mxu2 %v15563_v1  ;;  %v12549_v1 = vld [vmem:[%s20248_s4 + $0x324] sm:$0xf] }
 0x562   :  { %v3942_v61 = vpop.f32.mrf.mxu3 }
 0x563   :  { %v16441_v51 = vadd.f32 %v3942_v61, %v3894_v16  ;;  %v3896_v60 = vpop.f32.mrf.mxu2 }
 0x564   :  { %v3847_v56 = vpop.f32.mrf.mxu1  ;;  %v3897_v27 = vadd.f32 %v3896_v60, %v16110_v10  ;;  %v10323_v10 = vor.u32 %v12549_v1, %v10320_v21  ;;  %v3597_v21 = vadd.f32 %v16168_v12, %v16166_v4  ;;  %v10374_v4 = vld [vmem:[%s20248_s4 + $0x390] sm:$0xf] }
 0x565   :  { %v16444_v17 = vadd.f32 %v3847_v56, %v3799_v20  ;;  %v3800_v46 = vpop.f32.mrf.mxu0  ;;  %v10312_v56 = vld [vmem:[%s20248_s4 + $0x318] sm:$0xf0] }
 0x566   :  { %4783 = vmatpush.bf16.msrb.mxu2 %v10323_v10 }
 0x567   :  { %4283 = vmatmul.bf16.gmra.mxu1 %v15582_v13  ;;  %4381 = vmatmul.bf16.gmra.mxu3 %v15582_v13  ;;  %v3494_v13 = vadd.f32 %v16112_v11, %v16105_v35  ;;  %v10318_v35 = vld [vmem:[%s20248_s4 + $0x320] sm:$0xf]  ;;  %v12550_v11 = vld [vmem:[%s20248_s4 + $0x324] sm:$0xf0] }
 0x568   :  { %v10319_v18 = vor.u32 %v12550_v11, %v10318_v35 }
 0x569   :  { %v3801_v44 = vadd.f32 %v3800_v46, %v3494_v13  ;;  %v10376_v46 = vld [vmem:[%s20248_s4 + $0x398] sm:$0xf0] }
 0x56a   :  { %v3945_v0 = vpop.f32.mrf.mxu3  ;;  %4685 = vmatpush.bf16.msrb.mxu0 %v10319_v18 }
 0x56b   :  { %v16464_v49 = vadd.f32 %v3945_v0, %v3897_v27  ;;  %v3898_v5 = vpop.f32.mrf.mxu2  ;;  %v12563_v27 = vld [vmem:[%s20248_s4 + $0x394] sm:$0xf] }
 0x56c   :  { %v3849_v31 = vpop.f32.mrf.mxu1  ;;  %v3899_v47 = vadd.f32 %v3898_v5, %v3592_v30  ;;  %v10379_v1 = vor.u32 %v12563_v27, %v10376_v46  ;;  %v10302_v27 = vld [vmem:[%s20248_s4 + $0x300] sm:$0xf] }
 0x56d   :  { %v16466_v16 = vadd.f32 %v3849_v31, %v3801_v44  ;;  %v3803_v14 = vpop.f32.mrf.mxu0  ;;  %v12564_v31 = vld [vmem:[%s20248_s4 + $0x394] sm:$0xf0] }
 0x56e   :  { %v3804_v62 = vadd.f32 %v3803_v14, %v16132_v59  ;;  %4833 = vmatpush.bf16.msrb.mxu3 %v10379_v1  ;;  %v12562_v1 = vld [vmem:[%s20248_s4 + $0x384] sm:$0xf0] }
 0x570   :  { %4239 = vmatmul.bf16.gmra.mxu0 %v15675_v52  ;;  %4337 = vmatmul.bf16.gmra.mxu2 %v15675_v52  ;;  %v12547_v52 = vld [vmem:[%s20248_s4 + $0x314] sm:$0xf] }
 0x572   :  { %v3947_v20 = vpop.f32.mrf.mxu3 }
 0x573   :  { %v16483_v29 = vadd.f32 %v3947_v20, %v3899_v47  ;;  %v3901_v38 = vpop.f32.mrf.mxu2  ;;  %v10375_v47 = vor.u32 %v12564_v31, %v10374_v4  ;;  %v10368_v20 = vld [vmem:[%s20248_s4 + $0x388] sm:$0xf0]  ;;  %v20487_v31 = vld [vmem:[#allocation39_spill] sm:$0xff] }
 0x574   :  { %v3852_v63 = vpop.f32.mrf.mxu1  ;;  %v3902_v61 = vadd.f32 %v3901_v38, %v16150_v2  ;;  %v10315_v2 = vor.u32 %v12547_v52, %v10312_v56  ;;  %v10371_v38 = vor.u32 %v12561_v40, %v10368_v20 }
 0x575   :  { %v16486_v59 = vadd.f32 %v3852_v63, %v3804_v62  ;;  %v3805_v60 = vpop.f32.mrf.mxu0  ;;  %4735 = vmatpush.bf16.msrb.mxu1 %v10375_v47  ;;  %v3602_v63 = vadd.f32 %v16210_v41, %v16206_v45  ;;  %v10366_v41 = vld [vmem:[%s20248_s4 + $0x380] sm:$0xf] }
 0x576   :  { %4784 = vmatpush.bf16.msrb.mxu2 %v10315_v2  ;;  %4834 = vmatpush.bf16.msrb.mxu3 %v10371_v38  ;;  %v12546_v2 = vld [vmem:[%s20248_s4 + $0x304] sm:$0xf0]  ;;  %v20490_v38 = vld [vmem:[#allocation41_spill] sm:$0xff] }
 0x577   :  { %4288 = vmatmul.bf16.gmra.mxu1 %v15694_v32  ;;  %4386 = vmatmul.bf16.gmra.mxu3 %v15694_v32  ;;  %v3499_v32 = vadd.f32 %v16152_v6, %v16145_v55  ;;  %v10310_v55 = vld [vmem:[%s20248_s4 + $0x310] sm:$0xf]  ;;  %v12548_v6 = vld [vmem:[%s20248_s4 + $0x314] sm:$0xf0]  ;;  %v10303_v46 = vor.u32 %v12546_v2, %v10302_v27 }
 0x578   :  { %v10311_v5 = vor.u32 %v12548_v6, %v10310_v55  ;;  %v20484_v55 = vld [vmem:[#allocation36_spill] sm:$0xff] }
 0x579   :  { %v3806_v10 = vadd.f32 %v3805_v60, %v3499_v32 }
 0x57a   :  { %v3950_v42 = vpop.f32.mrf.mxu3  ;;  %4686 = vmatpush.bf16.msrb.mxu0 %v10311_v5  ;;  %v20485_v5 = vld [vmem:[#allocation27_spill] sm:$0xff] }
 0x57b   :  { %v16506_v28 = vadd.f32 %v3950_v42, %v3902_v61  ;;  %v3903_v13 = vpop.f32.mrf.mxu2  ;;  %v10367_v42 = vor.u32 %v12562_v1, %v10366_v41  ;;  %v20493_v1 = vld [vmem:[#allocation35_spill] sm:$0xff] }
 0x57c   :  { %v3854_v26 = vpop.f32.mrf.mxu1  ;;  %v3904_v30 = vadd.f32 %v3903_v13, %v3597_v21 }
 0x57d   :  { %v16508_v0 = vadd.f32 %v3854_v26, %v3806_v10  ;;  %v3808_v44 = vpop.f32.mrf.mxu0  ;;  %v20483_v10 = vld [vmem:[#allocation26_spill] sm:$0xff]  ;;  %4736 = vmatpush.bf16.msrb.mxu1 %v10367_v42 }
 0x57e   :  { %v3809_v12 = vadd.f32 %v3808_v44, %v16172_v58  ;;  %4687 = vmatpush.bf16.msrb.mxu0 %v10303_v46 }
 0x580   :  { %4244 = vmatmul.bf16.gmra.mxu0 %v15785_v37  ;;  %4342 = vmatmul.bf16.gmra.mxu2 %v15785_v37  ;;  %v12545_v37 = vld [vmem:[%s20248_s4 + $0x304] sm:$0xf] }
 0x582   :  { %v3952_v14 = vpop.f32.mrf.mxu3 }
 0x583   :  { %v16525_v35 = vadd.f32 %v3952_v14, %v3904_v30  ;;  %v3906_v11 = vpop.f32.mrf.mxu2  ;;  %v20488_v14 = vld [vmem:[#allocation38_spill] sm:$0xff] }
 0x584   :  { %v3857_v53 = vpop.f32.mrf.mxu1  ;;  %v3907_v62 = vadd.f32 %v3906_v11, %v16194_v8  ;;  %v10307_v8 = vor.u32 %v12545_v37, %v10304_v7  ;;  %v20489_v11 = vld [vmem:[#allocation40_spill] sm:$0xff] }
 0x585   :  { %v16528_v58 = vadd.f32 %v3857_v53, %v3809_v12  ;;  %v3810_v18 = vpop.f32.mrf.mxu0  ;;  %v3607_v53 = vadd.f32 %v20489_v11, %v20488_v14  ;;  %v20497_v11 = vld [vmem:[#allocation15_spill] sm:$0xff] }
 0x586   :  { %4785 = vmatpush.bf16.msrb.mxu2 %v10307_v8 }
 0x587   :  { %4293 = vmatmul.bf16.gmra.mxu1 %v15804_v43  ;;  %4391 = vmatmul.bf16.gmra.mxu3 %v15804_v43  ;;  %v3504_v43 = vadd.f32 %v16204_v48, %v16202_v19 }
 0x589   :  { %v3811_v60 = vadd.f32 %v3810_v18, %v3504_v43 }
 0x58a   :  { %v3955_v61 = vpop.f32.mrf.mxu3 }
 0x58b   :  { %v16548_v52 = vadd.f32 %v3955_v61, %v3907_v62  ;;  %v3908_v56 = vpop.f32.mrf.mxu2  ;;  %v20491_v61 = vld [vmem:[#allocation34_spill] sm:$0xff] }
 0x58c   :  { %v3859_v48 = vpop.f32.mrf.mxu1  ;;  %v3909_v19 = vadd.f32 %v3908_v56, %v3602_v63 }
 0x58d   :  { %v16556_v32 = vadd.f32 %v3859_v48, %v3811_v60  ;;  %v3813_v45 = vpop.f32.mrf.mxu0 }
 0x58e   :  { %v3814_v21 = vadd.f32 %v3813_v45, %v16212_v22  ;;  %v20486_v22 = vld [vmem:[#allocation37_spill] sm:$0xff]  ;;  %v20492_v45 = vld [vmem:[#allocation42_spill] sm:$0xff] }
 0x58f   :  { %v3509_v47 = vadd.f32 %v20487_v31, %v20486_v22 }
 0x590   :  { %4249 = vmatmul.bf16.gmra.mxu0 %v20483_v10  ;;  %4347 = vmatmul.bf16.gmra.mxu2 %v20483_v10 }
 0x592   :  { %v3957_v13 = vpop.f32.mrf.mxu3 }
 0x593   :  { %v16567_v26 = vadd.f32 %v3957_v13, %v3909_v19  ;;  %v3911_v30 = vpop.f32.mrf.mxu2 }
 0x594   :  { %v3862_v44 = vpop.f32.mrf.mxu1  ;;  %v3912_v6 = vadd.f32 %v3911_v30, %v20484_v55 }
 0x595   :  { %v16570_v4 = vadd.f32 %v3862_v44, %v3814_v21  ;;  %v3815_v12 = vpop.f32.mrf.mxu0 }
 0x596   :  { %v3816_v18 = vadd.f32 %v3815_v12, %v3509_v47 }
 0x597   :  { %4298 = vmatmul.bf16.gmra.mxu1 %v20485_v5  ;;  %4396 = vmatmul.bf16.gmra.mxu3 %v20485_v5 }
 0x59a   :  { %v3960_v62 = vpop.f32.mrf.mxu3 }
 0x59b   :  { %v16578_v37 = vadd.f32 %v3960_v62, %v3912_v6  ;;  %v3913_v7 = vpop.f32.mrf.mxu2 }
 0x59c   :  { %v3864_v40 = vpop.f32.mrf.mxu1  ;;  %v3914_v8 = vadd.f32 %v3913_v7, %v3607_v53 }
 0x59d   :  { %v16580_v20 = vadd.f32 %v3864_v40, %v3816_v18  ;;  %v3818_v43 = vpop.f32.mrf.mxu0 }
 0x59e   :  { %v3819_v63 = vadd.f32 %v3818_v43, %v20490_v38  ;;  %v20498_v38 = vld [vmem:[#allocation22_spill] sm:$0xff] }
 0x5a0   :  { %4254 = vmatmul.bf16.gmra.mxu0 %v20491_v61  ;;  %4352 = vmatmul.bf16.gmra.mxu2 %v20491_v61 }
 0x5a2   :  { %v3962_v60 = vpop.f32.mrf.mxu3 }
 0x5a3   :  { %v16585_v56 = vadd.f32 %v3962_v60, %v3914_v8  ;;  %v3916_v27 = vpop.f32.mrf.mxu2 }
 0x5a4   :  { %v3867_v2 = vpop.f32.mrf.mxu1  ;;  %v3917_v48 = vadd.f32 %v3916_v27, %v16296_v15  ;;  %v20495_v15 = vld [vmem:[#allocation14_spill] sm:$0xff] }
 0x5a5   :  { %v16588_v19 = vadd.f32 %v3867_v2, %v3819_v63  ;;  %v3820_v46 = vpop.f32.mrf.mxu0 }
 0x5a6   :  { %v3821_v41 = vadd.f32 %v3820_v46, %v20492_v45  ;;  %v20499_v46 = vld [vmem:[#allocation18_spill] sm:$0xff] }
 0x5a7   :  { %4303 = vmatmul.bf16.gmra.mxu1 %v20493_v1  ;;  %4401 = vmatmul.bf16.gmra.mxu3 %v20493_v1 }
 0x5aa   :  { %v3965_v21 = vpop.f32.mrf.mxu3 }
 0x5ab   :  { %v16593_v42 = vadd.f32 %v3965_v21, %v3917_v48  ;;  %v3918_v10 = vpop.f32.mrf.mxu2 }
 0x5ac   :  { %v3869_v13 = vpop.f32.mrf.mxu1  ;;  %v3919_v30 = vadd.f32 %v3918_v10, %v16315_v57 }
 0x5ad   :  { %v16596_v44 = vadd.f32 %v3869_v13, %v3821_v41  ;;  %v4220_v55 = vpop.f32.mrf.mxu0 }
 0x5af   :  { %20494 = vst [vmem:[#allocation43_spill] sm:$0xff] %v16596_v44 }
 0x5b0   :  { %4688 = vmatmul.bf16.vlgmr.msrb.gmra.mxu0 %v20495_v15  ;;  %4786 = vmatmul.bf16.vlgmr.msrb.gmra.mxu2 %v20495_v15 }
 0x5b2   :  { %v3967_v6 = vpop.f32.mrf.mxu3 }
 0x5b3   :  { %v16600_v12 = vadd.f32 %v3967_v6, %v3919_v30  ;;  %v4318_v5 = vpop.f32.mrf.mxu2  ;;  %v20500_v30 = vld [vmem:[#allocation23_spill] sm:$0xff] }
 0x5b4   :  { %v4269_v22 = vpop.f32.mrf.mxu1 }
 0x5b5   :  { %20496 = vst [vmem:[#allocation44_spill] sm:$0xff] %v16600_v12  ;;  %v4270_v31 = vadd.f32 %v4269_v22, %v4220_v55  ;;  %v4222_v47 = vpop.f32.mrf.mxu0 }
 0x5b7   :  { %v16603_v14 = vadd.f32 %v4270_v31, %v16318_v36  ;;  %4737 = vmatmul.bf16.vlgmr.msrb.gmra.mxu1 %v20497_v11  ;;  %4835 = vmatmul.bf16.vlgmr.msrb.gmra.mxu3 %v20497_v11 }
 0x5ba   :  { %v4367_v57 = vpop.f32.mrf.mxu3 }
 0x5bb   :  { %v4368_v53 = vadd.f32 %v4367_v57, %v4318_v5  ;;  %v4320_v62 = vpop.f32.mrf.mxu2 }
 0x5bc   :  { %v4271_v18 = vpop.f32.mrf.mxu1 }
 0x5bd   :  { %v16608_v7 = vadd.f32 %v4368_v53, %v16338_v23  ;;  %v4272_v40 = vadd.f32 %v4271_v18, %v4222_v47  ;;  %v4225_v8 = vpop.f32.mrf.mxu0  ;;  %v20501_v47 = vld [vmem:[#allocation19_spill] sm:$0xff] }
 0x5bf   :  { %v16611_v43 = vadd.f32 %v4272_v40, %v16340_v34 }
 0x5c0   :  { %4693 = vmatmul.bf16.gmra.mxu0 %v20498_v38  ;;  %4791 = vmatmul.bf16.gmra.mxu2 %v20498_v38 }
 0x5c2   :  { %v4369_v36 = vpop.f32.mrf.mxu3 }
 0x5c3   :  { %v4370_v63 = vadd.f32 %v4369_v36, %v4320_v62  ;;  %v4323_v61 = vpop.f32.mrf.mxu2 }
 0x5c4   :  { %v4274_v60 = vpop.f32.mrf.mxu1 }
 0x5c5   :  { %v16616_v27 = vadd.f32 %v4370_v63, %v16357_v50  ;;  %v4275_v2 = vadd.f32 %v4274_v60, %v4225_v8  ;;  %v4227_v48 = vpop.f32.mrf.mxu0  ;;  %v20502_v8 = vld [vmem:[#allocation20_spill] sm:$0xff] }
 0x5c7   :  { %v16619_v23 = vadd.f32 %v4275_v2, %v16360_v39  ;;  %4742 = vmatmul.bf16.gmra.mxu1 %v20499_v46  ;;  %4840 = vmatmul.bf16.gmra.mxu3 %v20499_v46  ;;  %v10521_v46 = vld [vmem:[%s20250_s5 + $0x178] sm:$0xf0] }
 0x5ca   :  { %v4372_v34 = vpop.f32.mrf.mxu3 }
 0x5cb   :  { %v4373_v45 = vadd.f32 %v4372_v34, %v4323_v61  ;;  %v4325_v41 = vpop.f32.mrf.mxu2 }
 0x5cc   :  { %v4276_v1 = vpop.f32.mrf.mxu1 }
 0x5cd   :  { %v16624_v21 = vadd.f32 %v4373_v45, %v16380_v54  ;;  %v4277_v10 = vadd.f32 %v4276_v1, %v4227_v48  ;;  %v4230_v13 = vpop.f32.mrf.mxu0  ;;  %v20503_v48 = vld [vmem:[#allocation21_spill] sm:$0xff] }
 0x5cf   :  { %v16627_v50 = vadd.f32 %v4277_v10, %v16382_v33 }
 0x5d0   :  { %4698 = vmatmul.bf16.gmra.mxu0 %v20500_v30  ;;  %4796 = vmatmul.bf16.gmra.mxu2 %v20500_v30 }
 0x5d2   :  { %v4374_v39 = vpop.f32.mrf.mxu3 }
 0x5d3   :  { %v4375_v55 = vadd.f32 %v4374_v39, %v4325_v41  ;;  %v4328_v15 = vpop.f32.mrf.mxu2 }
 0x5d4   :  { %v4279_v6 = vpop.f32.mrf.mxu1 }
 0x5d5   :  { %v16632_v5 = vadd.f32 %v4375_v55, %v16399_v25  ;;  %v4280_v22 = vadd.f32 %v4279_v6, %v4230_v13  ;;  %v4232_v31 = vpop.f32.mrf.mxu0  ;;  %v10519_v6 = vld [vmem:[%s20250_s5 + $0x170] sm:$0xf] }
 0x5d7   :  { %v16635_v54 = vadd.f32 %v4280_v22, %v16402_v9  ;;  %4747 = vmatmul.bf16.gmra.mxu1 %v20501_v47  ;;  %4845 = vmatmul.bf16.gmra.mxu3 %v20501_v47  ;;  %v12624_v22 = vld [vmem:[%s20250_s5 + $0x174] sm:$0xf0] }
 0x5d8   :  { %v20504_v47 = vld [vmem:[#allocation28_spill] sm:$0xff] }
 0x5da   :  { %v4377_v33 = vpop.f32.mrf.mxu3 }
 0x5db   :  { %v4378_v11 = vadd.f32 %v4377_v33, %v4328_v15  ;;  %v4330_v57 = vpop.f32.mrf.mxu2 }
 0x5dc   :  { %v4281_v53 = vpop.f32.mrf.mxu1 }
 0x5dd   :  { %v16640_v62 = vadd.f32 %v4378_v11, %v16422_v3  ;;  %v4282_v18 = vadd.f32 %v4281_v53, %v4232_v31  ;;  %v4235_v40 = vpop.f32.mrf.mxu0  ;;  %v10583_v31 = vld [vmem:[%s20250_s5 + $0x1f0] sm:$0xf] }
 0x5df   :  { %v16643_v25 = vadd.f32 %v4282_v18, %v16424_v24  ;;  %v12623_v24 = vld [vmem:[%s20250_s5 + $0x174] sm:$0xf] }
 0x5e0   :  { %4703 = vmatmul.bf16.gmra.mxu0 %v20502_v8  ;;  %4801 = vmatmul.bf16.gmra.mxu2 %v20502_v8  ;;  %v10524_v34 = vor.u32 %v12623_v24, %v10521_v46 }
 0x5e2   :  { %v4379_v9 = vpop.f32.mrf.mxu3  ;;  %5414 = vmatpush.bf16.msra.mxu2 %v10524_v34 }
 0x5e3   :  { %v4380_v38 = vadd.f32 %v4379_v9, %v4330_v57  ;;  %v4333_v36 = vpop.f32.mrf.mxu2 }
 0x5e4   :  { %v4284_v63 = vpop.f32.mrf.mxu1 }
 0x5e5   :  { %v16648_v61 = vadd.f32 %v4380_v38, %v16441_v51  ;;  %v4285_v60 = vadd.f32 %v4284_v63, %v4235_v40  ;;  %v4237_v2 = vpop.f32.mrf.mxu0  ;;  %v12639_v51 = vld [vmem:[%s20250_s5 + $0x1f4] sm:$0xf]  ;;  %v12621_v63 = vld [vmem:[%s20250_s5 + $0x164] sm:$0xf] }
 0x5e7   :  { %v16651_v3 = vadd.f32 %v4285_v60, %v16444_v17  ;;  %4752 = vmatmul.bf16.gmra.mxu1 %v20503_v48  ;;  %4850 = vmatmul.bf16.gmra.mxu3 %v20503_v48  ;;  %v10585_v17 = vld [vmem:[%s20250_s5 + $0x1f8] sm:$0xf0]  ;;  %v10513_v60 = vld [vmem:[%s20250_s5 + $0x168] sm:$0xf0] }
 0x5e8   :  { %v10588_v45 = vor.u32 %v12639_v51, %v10585_v17 }
 0x5ea   :  { %v4382_v41 = vpop.f32.mrf.mxu3  ;;  %5443 = vmatpush.bf16.msra.mxu3 %v10588_v45 }
 0x5eb   :  { %v4383_v1 = vadd.f32 %v4382_v41, %v4333_v36  ;;  %v4335_v10 = vpop.f32.mrf.mxu2  ;;  %v20505_v36 = vld [vmem:[#allocation24_spill] sm:$0xff]  ;;  %v10511_v41 = vld [vmem:[%s20250_s5 + $0x160] sm:$0xf] }
 0x5ec   :  { %v4286_v13 = vpop.f32.mrf.mxu1 }
 0x5ed   :  { %v16668_v30 = vadd.f32 %v4383_v1, %v16464_v49  ;;  %v4287_v39 = vadd.f32 %v4286_v13, %v4237_v2  ;;  %v4240_v55 = vpop.f32.mrf.mxu0  ;;  %v10520_v49 = vor.u32 %v12624_v22, %v10519_v6  ;;  %v10516_v2 = vor.u32 %v12621_v63, %v10513_v60  ;;  %v12622_v1 = vld [vmem:[%s20250_s5 + $0x164] sm:$0xf0]  ;;  %v20506_v13 = vld [vmem:[#allocation29_spill] sm:$0xff] }
 0x5ef   :  { %v16671_v15 = vadd.f32 %v4287_v39, %v16466_v16  ;;  %v12640_v16 = vld [vmem:[%s20250_s5 + $0x1f4] sm:$0xf0]  ;;  %5356 = vmatpush.bf16.msra.mxu0 %v10520_v49  ;;  %5415 = vmatpush.bf16.msra.mxu2 %v10516_v2  ;;  %v10512_v39 = vor.u32 %v12622_v1, %v10511_v41 }
 0x5f0   :  { %4708 = vmatmul.bf16.gmra.mxu0 %v20504_v47  ;;  %4806 = vmatmul.bf16.gmra.mxu2 %v20504_v47  ;;  %v10584_v33 = vor.u32 %v12640_v16, %v10583_v31 }
 0x5f2   :  { %v4384_v11 = vpop.f32.mrf.mxu3  ;;  %5385 = vmatpush.bf16.msra.mxu1 %v10584_v33  ;;  %v20507_v33 = vld [vmem:[#allocation25_spill] sm:$0xff] }
 0x5f3   :  { %v4385_v57 = vadd.f32 %v4384_v11, %v4335_v10  ;;  %v4338_v53 = vpop.f32.mrf.mxu2  ;;  %v10575_v10 = vld [vmem:[%s20250_s5 + $0x1e0] sm:$0xf]  ;;  %5357 = vmatpush.bf16.msra.mxu0 %v10512_v39  ;;  %v12619_v11 = vld [vmem:[%s20250_s5 + $0x154] sm:$0xf] }
 0x5f4   :  { %v4289_v18 = vpop.f32.mrf.mxu1 }
 0x5f5   :  { %v16688_v40 = vadd.f32 %v4385_v57, %v16483_v29  ;;  %v4290_v8 = vadd.f32 %v4289_v18, %v4240_v55  ;;  %v16690_v9 = vpop.f32.mrf.mxu0  ;;  %v12637_v29 = vld [vmem:[%s20250_s5 + $0x1e4] sm:$0xf]  ;;  %v10505_v57 = vld [vmem:[%s20250_s5 + $0x158] sm:$0xf0] }
 0x5f6   :  { %v10508_v18 = vor.u32 %v12619_v11, %v10505_v57 }
 0x5f7   :  { %v16693_v38 = vadd.f32 %v4290_v8, %v16486_v59  ;;  %4757 = vmatmul.bf16.gmra.mxu1 %v20505_v36  ;;  %4855 = vmatmul.bf16.gmra.mxu3 %v20505_v36  ;;  %v10577_v59 = vld [vmem:[%s20250_s5 + $0x1e8] sm:$0xf0] }
 0x5f8   :  { %v10580_v48 = vor.u32 %v12637_v29, %v10577_v59  ;;  %5416 = vmatpush.bf16.msra.mxu2 %v10508_v18 }
 0x5fa   :  { %v4387_v24 = vpop.f32.mrf.mxu3  ;;  %5444 = vmatpush.bf16.msra.mxu3 %v10580_v48  ;;  %v10503_v48 = vld [vmem:[%s20250_s5 + $0x150] sm:$0xf] }
 0x5fb   :  { %v4388_v46 = vadd.f32 %v4387_v24, %v4338_v53  ;;  %v16709_v51 = vpop.f32.mrf.mxu2  ;;  %v12635_v53 = vld [vmem:[%s20250_s5 + $0x1d4] sm:$0xf]  ;;  %v12620_v24 = vld [vmem:[%s20250_s5 + $0x154] sm:$0xf0] }
 0x5fc   :  { %v16711_v34 = vpop.f32.mrf.mxu1  ;;  %v10504_v41 = vor.u32 %v12620_v24, %v10503_v48  ;;  %v12633_v48 = vld [vmem:[%s20250_s5 + $0x1c4] sm:$0xf]  ;;  %v10561_v24 = vld [vmem:[%s20250_s5 + $0x1c8] sm:$0xf0] }
 0x5fd   :  { %v16714_v17 = vadd.f32 %v4388_v46, %v16506_v28  ;;  %v4245_v45 = vpop.f32.mrf.mxu0  ;;  %v12638_v28 = vld [vmem:[%s20250_s5 + $0x1e4] sm:$0xf0]  ;;  %v10567_v46 = vld [vmem:[%s20250_s5 + $0x1d0] sm:$0xf] }
 0x5fe   :  { %v10576_v55 = vor.u32 %v12638_v28, %v10575_v10  ;;  %5358 = vmatpush.bf16.msra.mxu0 %v10504_v41  ;;  %v10487_v41 = vld [vmem:[%s20250_s5 + $0x130] sm:$0xf] }
 0x600   :  { %4713 = vmatmul.bf16.gmra.mxu0 %v20506_v13  ;;  %4811 = vmatmul.bf16.gmra.mxu2 %v20506_v13 }
 0x601   :  { %5386 = vmatpush.bf16.msra.mxu1 %v10576_v55 }
 0x602   :  { %v16730_v6 = vpop.f32.mrf.mxu3 }
 0x603   :  { %v4343_v22 = vpop.f32.mrf.mxu2 }
 0x604   :  { %v4294_v31 = vpop.f32.mrf.mxu1 }
 0x605   :  { %v4295_v47 = vadd.f32 %v4294_v31, %v4245_v45  ;;  %v16732_v49 = vpop.f32.mrf.mxu0  ;;  %v20508_v45 = vld [vmem:[#allocation30_spill] sm:$0xff]  ;;  %v20509_v31 = vld [vmem:[#allocation31_spill] sm:$0xff] }
 0x607   :  { %v16735_v16 = vadd.f32 %v4295_v47, %v16528_v58  ;;  %4762 = vmatmul.bf16.gmra.mxu1 %v20507_v33  ;;  %4860 = vmatmul.bf16.gmra.mxu3 %v20507_v33  ;;  %v10569_v58 = vld [vmem:[%s20250_s5 + $0x1d8] sm:$0xf0] }
 0x608   :  { %v10572_v8 = vor.u32 %v12635_v53, %v10569_v58  ;;  %v12617_v58 = vld [vmem:[%s20250_s5 + $0x144] sm:$0xf] }
 0x60a   :  { %v4392_v36 = vpop.f32.mrf.mxu3  ;;  %5445 = vmatpush.bf16.msra.mxu3 %v10572_v8  ;;  %v20510_v8 = vld [vmem:[#allocation32_spill] sm:$0xff] }
 0x60b   :  { %v4393_v63 = vadd.f32 %v4392_v36, %v4343_v22  ;;  %v16751_v60 = vpop.f32.mrf.mxu2  ;;  %v4485_v36 = vpack.c.bf16 0.0, %v20510_v8  ;;  %v20511_v8 = vld [vmem:[#allocation33_spill] sm:$0xff] }
 0x60c   :  { %v16753_v29 = vpop.f32.mrf.mxu1 }
 0x60d   :  { %v16756_v2 = vadd.f32 %v4393_v63, %v16548_v52  ;;  %v4250_v59 = vpop.f32.mrf.mxu0  ;;  %v12636_v52 = vld [vmem:[%s20250_s5 + $0x1d4] sm:$0xf0] }
 0x60e   :  { %v10568_v1 = vor.u32 %v12636_v52, %v10567_v46  ;;  %v12616_v52 = vld [vmem:[%s20250_s5 + $0x134] sm:$0xf0] }
 0x610   :  { %4718 = vmatmul.bf16.gmra.mxu0 %v20508_v45  ;;  %4816 = vmatmul.bf16.gmra.mxu2 %v20508_v45  ;;  %v10564_v45 = vor.u32 %v12633_v48, %v10561_v24  ;;  %v10479_v48 = vld [vmem:[%s20250_s5 + $0x120] sm:$0xf]  ;;  %v12614_v24 = vld [vmem:[%s20250_s5 + $0x124] sm:$0xf0] }
 0x611   :  { %5387 = vmatpush.bf16.msra.mxu1 %v10568_v1  ;;  %v12615_v1 = vld [vmem:[%s20250_s5 + $0x134] sm:$0xf] }
 0x612   :  { %v16772_v10 = vpop.f32.mrf.mxu3  ;;  %5446 = vmatpush.bf16.msra.mxu3 %v10564_v45  ;;  %v10480_v45 = vor.u32 %v12614_v24, %v10479_v48 }
 0x613   :  { %v4348_v13 = vpop.f32.mrf.mxu2 }
 0x614   :  { %v4299_v39 = vpop.f32.mrf.mxu1 }
 0x615   :  { %v4300_v28 = vadd.f32 %v4299_v39, %v4250_v59  ;;  %v16774_v55 = vpop.f32.mrf.mxu0  ;;  %v10495_v59 = vld [vmem:[%s20250_s5 + $0x140] sm:$0xf]  ;;  %v10488_v39 = vor.u32 %v12616_v52, %v10487_v41 }
 0x617   :  { %v16777_v22 = vadd.f32 %v4300_v28, %v16570_v4  ;;  %4767 = vmatmul.bf16.gmra.mxu1 %v20509_v31  ;;  %4865 = vmatmul.bf16.gmra.mxu3 %v20509_v31  ;;  %v10497_v4 = vld [vmem:[%s20250_s5 + $0x148] sm:$0xf0]  ;;  %v10489_v28 = vld [vmem:[%s20250_s5 + $0x138] sm:$0xf0] }
 0x618   :  { %v10500_v63 = vor.u32 %v12617_v58, %v10497_v4  ;;  %v10492_v58 = vor.u32 %v12615_v1, %v10489_v28  ;;  %v12631_v1 = vld [vmem:[%s20250_s5 + $0x1b4] sm:$0xf]  ;;  %v10551_v28 = vld [vmem:[%s20250_s5 + $0x1b0] sm:$0xf] }
 0x61a   :  { %v4397_v47 = vpop.f32.mrf.mxu3  ;;  %5417 = vmatpush.bf16.msra.mxu2 %v10500_v63 }
 0x61b   :  { %v4398_v33 = vadd.f32 %v4397_v47, %v4348_v13  ;;  %v16781_v11 = vpop.f32.mrf.mxu2  ;;  %v10559_v47 = vld [vmem:[%s20250_s5 + $0x1c0] sm:$0xf] }
 0x61c   :  { %v16783_v57 = vpop.f32.mrf.mxu1 }
 0x61d   :  { %v16786_v53 = vadd.f32 %v4398_v33, %v16578_v37  ;;  %v4255_v18 = vpop.f32.mrf.mxu0  ;;  %v12618_v37 = vld [vmem:[%s20250_s5 + $0x144] sm:$0xf0] }
 0x61e   :  { %v10496_v46 = vor.u32 %v12618_v37, %v10495_v59  ;;  %v12634_v33 = vld [vmem:[%s20250_s5 + $0x1c4] sm:$0xf0]  ;;  %5418 = vmatpush.bf16.msra.mxu2 %v10492_v58  ;;  %v10471_v58 = vld [vmem:[%s20250_s5 + $0x110] sm:$0xf] }
 0x61f   :  { %v10560_v63 = vor.u32 %v12634_v33, %v10559_v47 }
 0x620   :  { %4723 = vmatmul.bf16.gmra.mxu0 %v4485_v36  ;;  %4821 = vmatmul.bf16.gmra.mxu2 %v4485_v36  ;;  %v4486_v36 = vpack.c.bf16 0.0, %v20511_v8  ;;  %v12611_v8 = vld [vmem:[%s20250_s5 + $0x114] sm:$0xf] }
 0x621   :  { %5359 = vmatpush.bf16.msra.mxu0 %v10496_v46  ;;  %v12613_v46 = vld [vmem:[%s20250_s5 + $0x124] sm:$0xf]  ;;  %5388 = vmatpush.bf16.msra.mxu1 %v10560_v63 }
 0x622   :  { %v16816_v13 = vpop.f32.mrf.mxu3 }
 0x623   :  { %v4353_v31 = vpop.f32.mrf.mxu2 }
 0x624   :  { %v4304_v4 = vpop.f32.mrf.mxu1 }
 0x625   :  { %v4305_v59 = vadd.f32 %v4304_v4, %v4255_v18  ;;  %v16828_v37 = vpop.f32.mrf.mxu0  ;;  %5360 = vmatpush.bf16.msra.mxu0 %v10488_v39  ;;  %v10481_v18 = vld [vmem:[%s20250_s5 + $0x128] sm:$0xf0]  ;;  %v10553_v39 = vld [vmem:[%s20250_s5 + $0x1b8] sm:$0xf0]  ;;  %v12612_v4 = vld [vmem:[%s20250_s5 + $0x114] sm:$0xf0] }
 0x626   :  { %20512 = vst [vmem:[#allocation45_spill] sm:$0xff] %v16828_v37  ;;  %v10484_v52 = vor.u32 %v12613_v46, %v10481_v18  ;;  %v10556_v47 = vor.u32 %v12631_v1, %v10553_v39  ;;  %v10472_v63 = vor.u32 %v12612_v4, %v10471_v58  ;;  %v12630_v18 = vld [vmem:[%s20250_s5 + $0x1a4] sm:$0xf0]  ;;  %v12609_v4 = vld [vmem:[%s20250_s5 + $0x104] sm:$0xf] }
 0x627   :  { %v16843_v41 = vadd.f32 %v4305_v59, %v16588_v19  ;;  %4772 = vmatmul.bf16.gmra.mxu1 %v4486_v36  ;;  %4870 = vmatmul.bf16.gmra.mxu3 %v4486_v36  ;;  %v12632_v19 = vld [vmem:[%s20250_s5 + $0x1b4] sm:$0xf0]  ;;  %v10473_v59 = vld [vmem:[%s20250_s5 + $0x118] sm:$0xf0]  ;;  %v12610_v58 = vld [vmem:[%s20250_s5 + $0x104] sm:$0xf0] }
 0x628   :  { %5419 = vmatpush.bf16.msra.mxu2 %v10484_v52  ;;  %v10552_v33 = vor.u32 %v12632_v19, %v10551_v28  ;;  %5447 = vmatpush.bf16.msra.mxu3 %v10556_v47  ;;  %v10476_v46 = vor.u32 %v12611_v8, %v10473_v59  ;;  %v12629_v52 = vld [vmem:[%s20250_s5 + $0x1a4] sm:$0xf]  ;;  %v12628_v59 = vld [vmem:[%s20250_s5 + $0x194] sm:$0xf0] }
 0x629   :  { %20513 = vst [vmem:[#allocation46_spill] sm:$0xff] %v16843_v41  ;;  %5361 = vmatpush.bf16.msra.mxu0 %v10480_v45  ;;  %v10543_v45 = vld [vmem:[%s20250_s5 + $0x1a0] sm:$0xf] }
 0x62a   :  { %v4402_v36 = vpop.f32.mrf.mxu3  ;;  %5389 = vmatpush.bf16.msra.mxu1 %v10552_v33  ;;  %v10544_v39 = vor.u32 %v12630_v18, %v10543_v45  ;;  %v10463_v33 = vld [vmem:[%s20250_s5 + $0x100] sm:$0xf]  ;;  %v10537_v45 = vld [vmem:[%s20250_s5 + $0x198] sm:$0xf0] }
 0x62b   :  { %v4403_v48 = vadd.f32 %v4402_v36, %v4353_v31  ;;  %v16869_v24 = vpop.f32.mrf.mxu2  ;;  %v10545_v31 = vld [vmem:[%s20250_s5 + $0x1a8] sm:$0xf0]  ;;  %v10464_v8 = vor.u32 %v12610_v58, %v10463_v33  ;;  %v12625_v33 = vld [vmem:[%s20250_s5 + $0x184] sm:$0xf] }
 0x62c   :  { %20514 = vst [vmem:[#allocation47_spill] sm:$0xff] %v16869_v24  ;;  %v16880_v1 = vpop.f32.mrf.mxu1  ;;  %5420 = vmatpush.bf16.msra.mxu2 %v10476_v46  ;;  %v10548_v19 = vor.u32 %v12629_v52, %v10545_v31  ;;  %v10527_v31 = vld [vmem:[%s20250_s5 + $0x180] sm:$0xf] }
 0x62d   :  { %20515 = vst [vmem:[#allocation9_spill] sm:$0xff] %v16880_v1  ;;  %v16886_v28 = vadd.f32 %v4403_v48, %v16593_v42  ;;  %v4689_v47 = vpop.f32.mrf.mxu0  ;;  %5362 = vmatpush.bf16.msra.mxu0 %v10472_v63  ;;  %v10465_v42 = vld [vmem:[%s20250_s5 + $0x108] sm:$0xf0]  ;;  %v10535_v63 = vld [vmem:[%s20250_s5 + $0x190] sm:$0xf] }
 0x62e   :  { %5390 = vmatpush.bf16.msra.mxu1 %v10544_v39  ;;  %5448 = vmatpush.bf16.msra.mxu3 %v10548_v19  ;;  %v10468_v36 = vor.u32 %v12609_v4, %v10465_v42  ;;  %v12627_v48 = vld [vmem:[%s20250_s5 + $0x194] sm:$0xf]  ;;  %v10536_v46 = vor.u32 %v12628_v59, %v10535_v63  ;;  %v12626_v19 = vld [vmem:[%s20250_s5 + $0x184] sm:$0xf0]  ;;  %v10428_v63 = vld [vmem:[%s20249_s8 + $0x4] sm:$0xf] }
 0x62f   :  { %20516 = vst [vmem:[#allocation10_spill] sm:$0xff] %v16886_v28  ;;  %v10540_v18 = vor.u32 %v12627_v48, %v10537_v45  ;;  %v10528_v4 = vor.u32 %v12626_v19, %v10527_v31  ;;  %v4912_v28 = vperm.slane %v10428_v63, 2  ;;  %v4950_v1 = vperm.slane %v10428_v63, 3 }
 0x630   :  { %5421 = vmatpush.bf16.msra.mxu2 %v10468_v36 }
 0x631   :  { %5363 = vmatpush.bf16.msra.mxu0 %v10464_v8  ;;  %v10529_v8 = vld [vmem:[%s20250_s5 + $0x188] sm:$0xf0] }
 0x632   :  { %v16912_v52 = vpop.f32.mrf.mxu3  ;;  %5391 = vmatpush.bf16.msra.mxu1 %v10536_v46  ;;  %5449 = vmatpush.bf16.msra.mxu3 %v10540_v18  ;;  %v10532_v36 = vor.u32 %v12625_v33, %v10529_v8  ;;  %v4911_v46 = vperm.slane %v10428_v63, 0 }
 0x633   :  { %20517 = vst [vmem:[#allocation11_spill] sm:$0xff] %v16912_v52  ;;  %v4787_v39 = vpop.f32.mrf.mxu2  ;;  %v4949_v52 = vperm.slane %v10428_v63, 1 }
 0x634   :  { %v4738_v58 = vpop.f32.mrf.mxu1  ;;  %v16930_v19 = vperm.slane %v4911_v46, 0  ;;  %v16942_v46 = vperm.slane %v4950_v1, 1 }
 0x635   :  { %v4691_v42 = vpop.f32.mrf.mxu0  ;;  %v4739_v48 = vadd.f32 %v4738_v58, %v4689_v47  ;;  %v16936_v58 = vperm.slane %v4912_v28, 0 }
 0x636   :  { %5392 = vmatpush.bf16.msra.mxu1 %v10528_v4  ;;  %5450 = vmatpush.bf16.msra.mxu3 %v10532_v36  ;;  %v16933_v36 = vperm.slane %v4949_v52, 1 }
 0x637   :  { %v4876_v31 = vadd.f32 %v4739_v48, %v16603_v14 }
 0x639   :  { %v4917_v8 = vmul.f32 %v16930_v19, %v4876_v31 }
 0x63a   :  { %v4836_v59 = vpop.f32.mrf.mxu3 }
 0x63b   :  { %v4789_v45 = vpop.f32.mrf.mxu2  ;;  %v4837_v24 = vadd.f32 %v4836_v59, %v4787_v39  ;;  %v4955_v39 = vadd.f32 %v16933_v36, %v4917_v8 }
 0x63c   :  { %v4740_v18 = vpop.f32.mrf.mxu1 }
 0x63d   :  { %v4694_v12 = vpop.f32.mrf.mxu0  ;;  %v4741_v33 = vadd.f32 %v4740_v18, %v4691_v42  ;;  %v4877_v47 = vadd.f32 %v4837_v24, %v16608_v7  ;;  %v4987_v28 = vmul.f32 0.2, %v4955_v39 }
 0x63f   :  { %v4878_v48 = vadd.f32 %v4741_v33, %v16611_v43  ;;  %v4918_v59 = vmul.f32 %v16936_v58, %v4877_v47  ;;  %v5019_v8 = vmax.f32 %v4955_v39, %v4987_v28 }
 0x641   :  { %v4919_v7 = vmul.f32 %v16930_v19, %v4878_v48  ;;  %v4956_v43 = vadd.f32 %v16942_v46, %v4918_v59 }
 0x642   :  { %v4838_v4 = vpop.f32.mrf.mxu3 }
 0x643   :  { %v4792_v44 = vpop.f32.mrf.mxu2  ;;  %v4839_v52 = vadd.f32 %v4838_v4, %v4789_v45  ;;  %v4957_v4 = vadd.f32 %v16933_v36, %v4919_v7 }
 0x644   :  { %v4743_v37 = vpop.f32.mrf.mxu1 }
 0x645   :  { %v4744_v41 = vadd.f32 %v4743_v37, %v4694_v12  ;;  %v4696_v14 = vpop.f32.mrf.mxu0  ;;  %v4879_v31 = vadd.f32 %v4839_v52, %v16616_v27 }
 0x647   :  { %v4880_v42 = vadd.f32 %v4744_v41, %v16619_v23 }
 0x649   :  { %v4921_v18 = vmul.f32 %v16930_v19, %v4880_v42 }
 0x64a   :  { %v4841_v24 = vpop.f32.mrf.mxu3 }
 0x64b   :  { %v4959_v12 = vadd.f32 %v16933_v36, %v4921_v18  ;;  %v4842_v37 = vadd.f32 %v4841_v24, %v4792_v44  ;;  %v4794_v63 = vpop.f32.mrf.mxu2  ;;  %v4988_v44 = vmul.f32 0.2, %v4956_v43  ;;  %v4920_v18 = vmul.f32 %v16936_v58, %v4879_v31 }
 0x64c   :  { %v4745_v23 = vpop.f32.mrf.mxu1  ;;  %v4989_v24 = vmul.f32 0.2, %v4957_v4 }
 0x64d   :  { %v4991_v41 = vmul.f32 0.2, %v4959_v12  ;;  %v4881_v1 = vadd.f32 %v4842_v37, %v16624_v21  ;;  %v4746_v33 = vadd.f32 %v4745_v23, %v4696_v14  ;;  %v4699_v45 = vpop.f32.mrf.mxu0  ;;  %v5020_v28 = vmax.f32 %v4956_v43, %v4988_v44 }
 0x64f   :  { %v5023_v47 = vmax.f32 %v4959_v12, %v4991_v41  ;;  %v4922_v48 = vmul.f32 %v16936_v58, %v4881_v1  ;;  %v4882_v42 = vadd.f32 %v4746_v33, %v16627_v50  ;;  %v4958_v50 = vadd.f32 %v16942_v46, %v4920_v18 }
 0x651   :  { %v5155_v59 = vpack.c.bf16 %v5023_v47, %v5019_v8  ;;  %v4960_v27 = vadd.f32 %v16942_v46, %v4922_v48  ;;  %v4923_v52 = vmul.f32 %v16930_v19, %v4882_v42  ;;  %v16959_v8 = vmax.f32 %v4957_v4, %v4989_v24 }
 0x652   :  { %v4843_v21 = vpop.f32.mrf.mxu3 }
 0x653   :  { %v4992_v14 = vmul.f32 0.2, %v4960_v27  ;;  %v4961_v37 = vadd.f32 %v16933_v36, %v4923_v52  ;;  %v4844_v7 = vadd.f32 %v4843_v21, %v4794_v63  ;;  %5364 = vmatmul.bf16.vlgmr.msra.gmra.mxu0 %v5155_v59  ;;  %5422 = vmatmul.bf16.vlgmr.msra.gmra.mxu2 %v5155_v59  ;;  %v4797_v39 = vpop.f32.mrf.mxu2  ;;  %v4990_v59 = vmul.f32 0.2, %v4958_v50 }
 0x654   :  { %v4748_v12 = vpop.f32.mrf.mxu1 }
 0x655   :  { %v5024_v23 = vmax.f32 %v4960_v27, %v4992_v14  ;;  %v4883_v31 = vadd.f32 %v4844_v7, %v16632_v5  ;;  %v4749_v41 = vadd.f32 %v4748_v12, %v4699_v45  ;;  %v4701_v1 = vpop.f32.mrf.mxu0  ;;  %v4993_v33 = vmul.f32 0.2, %v4961_v37 }
 0x656   :  { %v16969_v21 = vmax.f32 %v4958_v50, %v4990_v59 }
 0x657   :  { %v5156_v48 = vpack.c.bf16 %v5024_v23, %v5020_v28  ;;  %v4924_v42 = vmul.f32 %v16936_v58, %v4883_v31  ;;  %v4884_v63 = vadd.f32 %v4749_v41, %v16635_v54  ;;  %v5025_v52 = vmax.f32 %v4961_v37, %v4993_v33 }
 0x659   :  { %v4962_v43 = vadd.f32 %v16942_v46, %v4924_v42  ;;  %v4925_v44 = vmul.f32 %v16930_v19, %v4884_v63  ;;  %5393 = vmatmul.bf16.vlgmr.msra.gmra.mxu1 %v5156_v48  ;;  %5451 = vmatmul.bf16.vlgmr.msra.gmra.mxu3 %v5156_v48  ;;  %v16966_v5 = vpack.c.bf16 %v5025_v52, %v16959_v8 }
 0x65a   :  { %v4846_v45 = vpop.f32.mrf.mxu3 }
 0x65b   :  { %v4963_v4 = vadd.f32 %v16933_v36, %v4925_v44  ;;  %v4847_v18 = vadd.f32 %v4846_v45, %v4797_v39  ;;  %v4799_v27 = vpop.f32.mrf.mxu2  ;;  %v4994_v24 = vmul.f32 0.2, %v4962_v43 }
 0x65c   :  { %v4750_v54 = vpop.f32.mrf.mxu1 }
 0x65d   :  { %v4885_v14 = vadd.f32 %v4847_v18, %v16640_v62  ;;  %v4751_v37 = vadd.f32 %v4750_v54, %v4701_v1  ;;  %v4704_v7 = vpop.f32.mrf.mxu0  ;;  %v4995_v28 = vmul.f32 0.2, %v4963_v4  ;;  %v5026_v12 = vmax.f32 %v4962_v43, %v4994_v24 }
 0x65f   :  { %v4926_v31 = vmul.f32 %v16936_v58, %v4885_v14  ;;  %v4886_v41 = vadd.f32 %v4751_v37, %v16643_v25  ;;  %v5027_v33 = vmax.f32 %v4963_v4, %v4995_v28  ;;  %v16975_v48 = vpack.c.bf16 %v5026_v12, %v16969_v21 }
 0x661   :  { %v4964_v39 = vadd.f32 %v16942_v46, %v4926_v31  ;;  %v4927_v50 = vmul.f32 %v16930_v19, %v4886_v41  ;;  %v16979_v42 = vpack.c.bf16 %v5027_v33, %v5023_v47 }
 0x662   :  { %v4848_v63 = vpop.f32.mrf.mxu3 }
 0x663   :  { %v4965_v62 = vadd.f32 %v16933_v36, %v4927_v50  ;;  %v4849_v1 = vadd.f32 %v4848_v63, %v4799_v27  ;;  %v4802_v59 = vpop.f32.mrf.mxu2  ;;  %v4996_v43 = vmul.f32 0.2, %v4964_v39  ;;  %v12607_v50 = vld [vmem:[%s20250_s5 + $0xf4] sm:$0xf] }
 0x664   :  { %v4753_v44 = vpop.f32.mrf.mxu1 }
 0x665   :  { %v4887_v45 = vadd.f32 %v4849_v1, %v16648_v61  ;;  %v4754_v25 = vadd.f32 %v4753_v44, %v4704_v7  ;;  %v4706_v4 = vpop.f32.mrf.mxu0  ;;  %v16983_v18 = vmax.f32 %v4964_v39, %v4996_v43  ;;  %v4997_v24 = vmul.f32 0.2, %v4965_v62 }
 0x667   :  { %v4928_v54 = vmul.f32 %v16936_v58, %v4887_v45  ;;  %v4888_v14 = vadd.f32 %v4754_v25, %v16651_v3  ;;  %v16988_v47 = vpack.c.bf16 %v16983_v18, %v5024_v23  ;;  %v16990_v37 = vmax.f32 %v4965_v62, %v4997_v24  ;;  %v12591_v3 = vld [vmem:[%s20250_s5 + $0x74] sm:$0xf]  ;;  %v10649_v23 = vld [vmem:[%s20250_s5 + $0x78] sm:$0xf0] }
 0x668   :  { %v10713_v62 = vld [vmem:[%s20250_s5 + $0xf8] sm:$0xf0] }
 0x669   :  { %v4966_v27 = vadd.f32 %v16942_v46, %v4928_v54  ;;  %v4929_v28 = vmul.f32 %v16930_v19, %v4888_v14  ;;  %v16995_v61 = vpack.c.bf16 %v16990_v37, %v5025_v52  ;;  %v10652_v52 = vor.u32 %v12591_v3, %v10649_v23 }
 0x66a   :  { %v4851_v7 = vpop.f32.mrf.mxu3  ;;  %v10716_v25 = vor.u32 %v12607_v50, %v10713_v62  ;;  %v12589_v62 = vld [vmem:[%s20250_s5 + $0x64] sm:$0xf] }
 0x66b   :  { %v4967_v31 = vadd.f32 %v16933_v36, %v4929_v28  ;;  %v4852_v41 = vadd.f32 %v4851_v7, %v4802_v59  ;;  %v4804_v39 = vpop.f32.mrf.mxu2  ;;  %v4998_v1 = vmul.f32 0.2, %v4966_v27  ;;  %5690 = vmatpush.bf16.msrb.mxu2 %v10652_v52 }
 0x66c   :  { %v4755_v63 = vpop.f32.mrf.mxu1  ;;  %5719 = vmatpush.bf16.msrb.mxu3 %v10716_v25 }
 0x66d   :  { %v4889_v59 = vadd.f32 %v4852_v41, %v16668_v30  ;;  %v4756_v43 = vadd.f32 %v4755_v63, %v4706_v4  ;;  %v4709_v44 = vpop.f32.mrf.mxu0  ;;  %v4999_v45 = vmul.f32 0.2, %v4967_v31  ;;  %v17011_v24 = vmax.f32 %v4966_v27, %v4998_v1 }
 0x66f   :  { %v4930_v54 = vmul.f32 %v16936_v58, %v4889_v59  ;;  %v4890_v14 = vadd.f32 %v4756_v43, %v16671_v15  ;;  %v17015_v28 = vmax.f32 %v4967_v31, %v4999_v45  ;;  %v17018_v7 = vpack.c.bf16 %v17011_v24, %v5026_v12  ;;  %v10647_v31 = vld [vmem:[%s20250_s5 + $0x70] sm:$0xf]  ;;  %v12592_v12 = vld [vmem:[%s20250_s5 + $0x74] sm:$0xf0] }
 0x670   :  { %v10648_v52 = vor.u32 %v12592_v12, %v10647_v31 }
 0x671   :  { %v4968_v3 = vadd.f32 %v16942_v46, %v4930_v54  ;;  %v4931_v30 = vmul.f32 %v16930_v19, %v4890_v14  ;;  %v5157_v4 = vpack.c.bf16 %v17015_v28, %v5027_v33  ;;  %v10711_v33 = vld [vmem:[%s20250_s5 + $0xf0] sm:$0xf]  ;;  %v10641_v54 = vld [vmem:[%s20250_s5 + $0x68] sm:$0xf0]  ;;  %v12605_v14 = vld [vmem:[%s20250_s5 + $0xe4] sm:$0xf] }
 0x672   :  { %v4853_v41 = vpop.f32.mrf.mxu3  ;;  %5632 = vmatpush.bf16.msrb.mxu0 %v10648_v52 }
 0x673   :  { %v4969_v27 = vadd.f32 %v16933_v36, %v4931_v30  ;;  %v4854_v23 = vadd.f32 %v4853_v41, %v4804_v39  ;;  %5369 = vmatmul.bf16.gmra.mxu0 %v5157_v4  ;;  %5427 = vmatmul.bf16.gmra.mxu2 %v5157_v4  ;;  %v4807_v50 = vpop.f32.mrf.mxu2  ;;  %v5000_v15 = vmul.f32 0.2, %v4968_v3  ;;  %v12608_v39 = vld [vmem:[%s20250_s5 + $0xf4] sm:$0xf0]  ;;  %v10705_v30 = vld [vmem:[%s20250_s5 + $0xe8] sm:$0xf0]  ;;  %v10644_v4 = vor.u32 %v12589_v62, %v10641_v54 }
 0x674   :  { %v4758_v63 = vpop.f32.mrf.mxu1  ;;  %v10712_v25 = vor.u32 %v12608_v39, %v10711_v33 }
 0x675   :  { %v4891_v1 = vadd.f32 %v4854_v23, %v16688_v40  ;;  %v4759_v59 = vadd.f32 %v4758_v63, %v4709_v44  ;;  %v4711_v43 = vpop.f32.mrf.mxu0  ;;  %v17040_v45 = vmax.f32 %v4968_v3, %v5000_v15  ;;  %v10708_v40 = vor.u32 %v12605_v14, %v10705_v30  ;;  %5691 = vmatpush.bf16.msrb.mxu2 %v10644_v4 }
 0x676   :  { %v5001_v44 = vmul.f32 0.2, %v4969_v27  ;;  %5661 = vmatpush.bf16.msrb.mxu1 %v10712_v25  ;;  %v4292_v15 = vadd.f32 %v16711_v34, %v16690_v9  ;;  %v10639_v9 = vld [vmem:[%s20250_s5 + $0x60] sm:$0xf]  ;;  %v12590_v34 = vld [vmem:[%s20250_s5 + $0x64] sm:$0xf0] }
 0x677   :  { %v4932_v3 = vmul.f32 %v16936_v58, %v4891_v1  ;;  %v4892_v41 = vadd.f32 %v4759_v59, %v16693_v38  ;;  %v5158_v23 = vpack.c.bf16 %v17040_v45, %v16983_v18  ;;  %5720 = vmatpush.bf16.msrb.mxu3 %v10708_v40  ;;  %v10640_v1 = vor.u32 %v12590_v34, %v10639_v9  ;;  %v12587_v59 = vld [vmem:[%s20250_s5 + $0x54] sm:$0xf]  ;;  %v10633_v25 = vld [vmem:[%s20250_s5 + $0x58] sm:$0xf0] }
 0x678   :  { %v17057_v31 = vmax.f32 %v4969_v27, %v5001_v44  ;;  %v10703_v27 = vld [vmem:[%s20250_s5 + $0xe0] sm:$0xf]  ;;  %v4425_v62 = vadd.f32 %v4292_v15, %v16508_v0  ;;  %v12603_v40 = vld [vmem:[%s20250_s5 + $0xd4] sm:$0xf]  ;;  %v10697_v44 = vld [vmem:[%s20250_s5 + $0xd8] sm:$0xf0]  ;;  %v4390_v15 = vadd.f32 %v16730_v6, %v16709_v51 }
 0x679   :  { %v4933_v12 = vmul.f32 %v16930_v19, %v4892_v41  ;;  %5398 = vmatmul.bf16.gmra.mxu1 %v5158_v23  ;;  %5456 = vmatmul.bf16.gmra.mxu3 %v5158_v23  ;;  %v4970_v63 = vadd.f32 %v16942_v46, %v4932_v3  ;;  %v10636_v3 = vor.u32 %v12587_v59, %v10633_v25 }
 0x67a   :  { %v4856_v52 = vpop.f32.mrf.mxu3  ;;  %v17063_v38 = vpack.c.bf16 %v17057_v31, %v16990_v37  ;;  %5633 = vmatpush.bf16.msrb.mxu0 %v10640_v1  ;;  %v10700_v41 = vor.u32 %v12603_v40, %v10697_v44  ;;  %v4426_v6 = vadd.f32 %v4390_v15, %v16525_v35  ;;  %v10631_v1 = vld [vmem:[%s20250_s5 + $0x50] sm:$0xf]  ;;  %v12604_v35 = vld [vmem:[%s20250_s5 + $0xd4] sm:$0xf0]  ;;  %v10625_v40 = vld [vmem:[%s20250_s5 + $0x48] sm:$0xf0] }
 0x67b   :  { %v4971_v18 = vadd.f32 %v16933_v36, %v4933_v12  ;;  %v4857_v33 = vadd.f32 %v4856_v52, %v4807_v50  ;;  %v4809_v39 = vpop.f32.mrf.mxu2  ;;  %v12606_v50 = vld [vmem:[%s20250_s5 + $0xe4] sm:$0xf0]  ;;  %v5002_v23 = vmul.f32 0.2, %v4970_v63  ;;  %5692 = vmatpush.bf16.msrb.mxu2 %v10636_v3  ;;  %v12601_v44 = vld [vmem:[%s20250_s5 + $0xc4] sm:$0xf] }
 0x67c   :  { %v4760_v37 = vpop.f32.mrf.mxu1  ;;  %v10704_v0 = vor.u32 %v12606_v50, %v10703_v27  ;;  %5721 = vmatpush.bf16.msrb.mxu3 %v10700_v41  ;;  %v10689_v3 = vld [vmem:[%s20250_s5 + $0xc8] sm:$0xf0] }
 0x67d   :  { %v4893_v54 = vadd.f32 %v4857_v33, %v16714_v17  ;;  %v4761_v14 = vadd.f32 %v4760_v37, %v4711_v43  ;;  %v4714_v30 = vpop.f32.mrf.mxu0  ;;  %v5003_v4 = vmul.f32 0.2, %v4971_v18  ;;  %v17097_v52 = vmax.f32 %v4970_v63, %v5002_v23 }
 0x67e   :  { %5662 = vmatpush.bf16.msrb.mxu1 %v10704_v0  ;;  %v10692_v23 = vor.u32 %v12601_v44, %v10689_v3 }
 0x67f   :  { %v4934_v17 = vmul.f32 %v16936_v58, %v4893_v54  ;;  %v4894_v43 = vadd.f32 %v4761_v14, %v4425_v62  ;;  %v17095_v12 = vmax.f32 %v4971_v18, %v5003_v4  ;;  %v17107_v51 = vpack.c.bf16 %v17097_v52, %v17011_v24  ;;  %v10695_v24 = vld [vmem:[%s20250_s5 + $0xd0] sm:$0xf] }
 0x680   :  { %v10696_v0 = vor.u32 %v12604_v35, %v10695_v24  ;;  %5722 = vmatpush.bf16.msrb.mxu3 %v10692_v23  ;;  %v10617_v24 = vld [vmem:[%s20250_s5 + $0x38] sm:$0xf0]  ;;  %v4395_v23 = vadd.f32 %v16772_v10, %v16751_v60  ;;  %v10615_v60 = vld [vmem:[%s20250_s5 + $0x30] sm:$0xf]  ;;  %v12584_v10 = vld [vmem:[%s20250_s5 + $0x34] sm:$0xf0] }
 0x681   :  { %v4972_v33 = vadd.f32 %v16942_v46, %v4934_v17  ;;  %v4935_v9 = vmul.f32 %v16930_v19, %v4894_v43  ;;  %v17103_v34 = vpack.c.bf16 %v17095_v12, %v17015_v28  ;;  %v12588_v28 = vld [vmem:[%s20250_s5 + $0x54] sm:$0xf0] }
 0x682   :  { %v4858_v27 = vpop.f32.mrf.mxu3  ;;  %v10632_v59 = vor.u32 %v12588_v28, %v10631_v1  ;;  %5663 = vmatpush.bf16.msrb.mxu1 %v10696_v0  ;;  %v10681_v0 = vld [vmem:[%s20250_s5 + $0xb8] sm:$0xf0] }
 0x683   :  { %v4973_v18 = vadd.f32 %v16933_v36, %v4935_v9  ;;  %v4859_v62 = vadd.f32 %v4858_v27, %v4809_v39  ;;  %v4812_v63 = vpop.f32.mrf.mxu2  ;;  %v5004_v37 = vmul.f32 0.2, %v4972_v33  ;;  %v12585_v39 = vld [vmem:[%s20250_s5 + $0x44] sm:$0xf] }
 0x684   :  { %v4763_v50 = vpop.f32.mrf.mxu1  ;;  %5634 = vmatpush.bf16.msrb.mxu0 %v10632_v59  ;;  %v10628_v41 = vor.u32 %v12585_v39, %v10625_v40  ;;  %v12583_v59 = vld [vmem:[%s20250_s5 + $0x34] sm:$0xf] }
 0x685   :  { %v4895_v25 = vadd.f32 %v4859_v62, %v4426_v6  ;;  %v4764_v54 = vadd.f32 %v4763_v50, %v4714_v30  ;;  %v4716_v14 = vpop.f32.mrf.mxu0  ;;  %v17126_v4 = vmax.f32 %v4972_v33, %v5004_v37  ;;  %v5005_v30 = vmul.f32 0.2, %v4973_v18 }
 0x686   :  { %v4297_v33 = vadd.f32 %v16753_v29, %v16732_v49  ;;  %5693 = vmatpush.bf16.msrb.mxu2 %v10628_v41  ;;  %v10623_v49 = vld [vmem:[%s20250_s5 + $0x40] sm:$0xf]  ;;  %v12586_v29 = vld [vmem:[%s20250_s5 + $0x44] sm:$0xf0]  ;;  %v10620_v44 = vor.u32 %v12583_v59, %v10617_v24 }
 0x687   :  { %v4936_v15 = vmul.f32 %v16936_v58, %v4895_v25  ;;  %v4896_v17 = vadd.f32 %v4764_v54, %v16735_v16  ;;  %v17141_v43 = vpack.c.bf16 %v17126_v4, %v17040_v45  ;;  %v17145_v9 = vmax.f32 %v4973_v18, %v5005_v30  ;;  %v10687_v18 = vld [vmem:[%s20250_s5 + $0xc0] sm:$0xf] }
 0x688   :  { %v4429_v28 = vadd.f32 %v4297_v33, %v16556_v32  ;;  %v10624_v50 = vor.u32 %v12586_v29, %v10623_v49  ;;  %v12599_v32 = vld [vmem:[%s20250_s5 + $0xb4] sm:$0xf] }
 0x689   :  { %v4937_v27 = vmul.f32 %v16930_v19, %v4896_v17  ;;  %v4974_v6 = vadd.f32 %v16942_v46, %v4936_v15  ;;  %v17151_v16 = vpack.c.bf16 %v17145_v9, %v17057_v31  ;;  %v10684_v3 = vor.u32 %v12599_v32, %v10681_v0  ;;  %v12582_v32 = vld [vmem:[%s20250_s5 + $0x24] sm:$0xf0] }
 0x68a   :  { %v4861_v62 = vpop.f32.mrf.mxu3  ;;  %5635 = vmatpush.bf16.msrb.mxu0 %v10624_v50  ;;  %5694 = vmatpush.bf16.msrb.mxu2 %v10620_v44 }
 0x68b   :  { %v4975_v37 = vadd.f32 %v16933_v36, %v4937_v27  ;;  %v4862_v45 = vadd.f32 %v4861_v62, %v4812_v63  ;;  %v4814_v1 = vpop.f32.mrf.mxu2  ;;  %v12602_v63 = vld [vmem:[%s20250_s5 + $0xc4] sm:$0xf0]  ;;  %v5006_v41 = vmul.f32 0.2, %v4974_v6  ;;  %5723 = vmatpush.bf16.msrb.mxu3 %v10684_v3 }
 0x68c   :  { %v4765_v31 = vpop.f32.mrf.mxu1  ;;  %v10688_v54 = vor.u32 %v12602_v63, %v10687_v18  ;;  %v10679_v18 = vld [vmem:[%s20250_s5 + $0xb0] sm:$0xf]  ;;  %v12597_v63 = vld [vmem:[%s20250_s5 + $0xa4] sm:$0xf] }
 0x68d   :  { %v4897_v35 = vadd.f32 %v4862_v45, %v16756_v2  ;;  %v4766_v39 = vadd.f32 %v4765_v31, %v4716_v14  ;;  %v5007_v25 = vmul.f32 0.2, %v4975_v37  ;;  %v4719_v40 = vpop.f32.mrf.mxu0  ;;  %v17185_v15 = vmax.f32 %v4974_v6, %v5006_v41 }
 0x68e   :  { %5664 = vmatpush.bf16.msrb.mxu1 %v10688_v54  ;;  %v4430_v45 = vadd.f32 %v4395_v23, %v16567_v26  ;;  %v12581_v26 = vld [vmem:[%s20250_s5 + $0x24] sm:$0xf]  ;;  %v10607_v54 = vld [vmem:[%s20250_s5 + $0x20] sm:$0xf] }
 0x68f   :  { %v4938_v2 = vmul.f32 %v16936_v58, %v4897_v35  ;;  %v4898_v14 = vadd.f32 %v4766_v39, %v4429_v28  ;;  %v17183_v30 = vmax.f32 %v4975_v37, %v5007_v25  ;;  %v10616_v37 = vor.u32 %v12584_v10, %v10615_v60  ;;  %v12600_v28 = vld [vmem:[%s20250_s5 + $0xb4] sm:$0xf0]  ;;  %v10673_v25 = vld [vmem:[%s20250_s5 + $0xa8] sm:$0xf0]  ;;  %v10601_v10 = vld [vmem:[%s20250_s5 + $0x18] sm:$0xf0] }
 0x690   :  { %v17199_v6 = vpack.c.bf16 %v17185_v15, %v17097_v52  ;;  %v10680_v52 = vor.u32 %v12600_v28, %v10679_v18  ;;  %v10676_v0 = vor.u32 %v12597_v63, %v10673_v25  ;;  %v10608_v44 = vor.u32 %v12582_v32, %v10607_v54  ;;  %v10599_v28 = vld [vmem:[%s20250_s5 + $0x10] sm:$0xf]  ;;  %v10591_v63 = vld [vmem:[%s20250_s5] sm:$0xf]  ;;  %v12577_v54 = vld [vmem:[%s20250_s5 + $0x4] sm:$0xf] }
 0x691   :  { %v4976_v17 = vadd.f32 %v16942_v46, %v4938_v2  ;;  %v4939_v33 = vmul.f32 %v16930_v19, %v4898_v14  ;;  %v5159_v27 = vpack.c.bf16 %v17183_v30, %v17095_v12  ;;  %5636 = vmatpush.bf16.msrb.mxu0 %v10616_v37  ;;  %v4302_v2 = vadd.f32 %v16783_v57, %v16774_v55  ;;  %v12579_v55 = vld [vmem:[%s20250_s5 + $0x14] sm:$0xf]  ;;  %v10665_v37 = vld [vmem:[%s20250_s5 + $0x98] sm:$0xf0]  ;;  %v10593_v32 = vld [vmem:[%s20250_s5 + $0x8] sm:$0xf0] }
 0x692   :  { %v4863_v62 = vpop.f32.mrf.mxu3  ;;  %5665 = vmatpush.bf16.msrb.mxu1 %v10680_v52  ;;  %5724 = vmatpush.bf16.msrb.mxu3 %v10676_v0  ;;  %v10663_v52 = vld [vmem:[%s20250_s5 + $0x90] sm:$0xf]  ;;  %v4400_v0 = vadd.f32 %v16816_v13, %v16781_v11 }
 0x693   :  { %v4977_v49 = vadd.f32 %v16933_v36, %v4939_v33  ;;  %v4864_v29 = vadd.f32 %v4863_v62, %v4814_v1  ;;  %5374 = vmatmul.bf16.gmra.mxu0 %v5159_v27  ;;  %5432 = vmatmul.bf16.gmra.mxu2 %v5159_v27  ;;  %v5008_v12 = vmul.f32 0.2, %v4976_v17  ;;  %v4817_v50 = vpop.f32.mrf.mxu2  ;;  %v10609_v1 = vld [vmem:[%s20250_s5 + $0x28] sm:$0xf0]  ;;  %v12595_v62 = vld [vmem:[%s20250_s5 + $0x94] sm:$0xf] }
 0x694   :  { %v4768_v31 = vpop.f32.mrf.mxu1  ;;  %v10612_v39 = vor.u32 %v12581_v26, %v10609_v1  ;;  %v10668_v18 = vor.u32 %v12595_v62, %v10665_v37 }
 0x695   :  { %v4899_v59 = vadd.f32 %v4864_v29, %v4430_v45  ;;  %v4769_v24 = vadd.f32 %v4768_v31, %v4719_v40  ;;  %v17218_v35 = vmax.f32 %v4976_v17, %v5008_v12  ;;  %v5009_v3 = vmul.f32 0.2, %v4977_v49  ;;  %v4721_v14 = vpop.f32.mrf.mxu0  ;;  %5637 = vmatpush.bf16.msrb.mxu0 %v10608_v44  ;;  %v12580_v31 = vld [vmem:[%s20250_s5 + $0x14] sm:$0xf0] }
 0x696   :  { %5695 = vmatpush.bf16.msrb.mxu2 %v10612_v39  ;;  %v10604_v12 = vor.u32 %v12579_v55, %v10601_v10  ;;  %v10600_v1 = vor.u32 %v12580_v31, %v10599_v28  ;;  %5725 = vmatpush.bf16.msrb.mxu3 %v10668_v18 }
 0x697   :  { %v4940_v40 = vmul.f32 %v16936_v58, %v4899_v59  ;;  %v4900_v41 = vadd.f32 %v4769_v24, %v16777_v22  ;;  %v5160_v23 = vpack.c.bf16 %v17218_v35, %v17126_v4  ;;  %v17235_v17 = vmax.f32 %v4977_v49, %v5009_v3  ;;  %v10671_v22 = vld [vmem:[%s20250_s5 + $0xa0] sm:$0xf]  ;;  %v12598_v4 = vld [vmem:[%s20250_s5 + $0xa4] sm:$0xf0] }
 0x698   :  { %v10672_v60 = vor.u32 %v12598_v4, %v10671_v22  ;;  %v12578_v59 = vld [vmem:[%s20250_s5 + $0x4] sm:$0xf0] }
 0x699   :  { %v4941_v33 = vmul.f32 %v16930_v19, %v4900_v41  ;;  %5403 = vmatmul.bf16.gmra.mxu1 %v5160_v23  ;;  %5461 = vmatmul.bf16.gmra.mxu3 %v5160_v23  ;;  %v4978_v57 = vadd.f32 %v16942_v46, %v4940_v40  ;;  %v17259_v45 = vpack.c.bf16 %v17235_v17, %v17145_v9  ;;  %v12593_v40 = vld [vmem:[%s20250_s5 + $0x84] sm:$0xf]  ;;  %v10657_v41 = vld [vmem:[%s20250_s5 + $0x88] sm:$0xf0] }
 0x69a   :  { %v4866_v27 = vpop.f32.mrf.mxu3  ;;  %v4433_v9 = vadd.f32 %v4302_v2, %v16580_v20  ;;  %5666 = vmatpush.bf16.msrb.mxu1 %v10672_v60  ;;  %5696 = vmatpush.bf16.msrb.mxu2 %v10604_v12  ;;  %v10592_v3 = vor.u32 %v12578_v59, %v10591_v63  ;;  %v10660_v22 = vor.u32 %v12593_v40, %v10657_v41  ;;  %v20519_v59 = vld [vmem:[#allocation45_spill] sm:$0xff]  ;;  %v10807_v40 = vld [vmem:[%s20250_s5 + $0x270] sm:$0xf]  ;;  %v12656_v41 = vld [vmem:[%s20250_s5 + $0x274] sm:$0xf0] }
 0x69b   :  { %v4979_v49 = vadd.f32 %v16933_v36, %v4941_v33  ;;  %v4867_v29 = vadd.f32 %v4866_v27, %v4817_v50  ;;  %v12596_v50 = vld [vmem:[%s20250_s5 + $0x94] sm:$0xf0]  ;;  %v4819_v44 = vpop.f32.mrf.mxu2  ;;  %5638 = vmatpush.bf16.msrb.mxu0 %v10600_v1  ;;  %v5010_v23 = vmul.f32 0.2, %v4978_v57 }
 0x69c   :  { %v4770_v26 = vpop.f32.mrf.mxu1  ;;  %v10664_v20 = vor.u32 %v12596_v50, %v10663_v52  ;;  %5726 = vmatpush.bf16.msrb.mxu3 %v10660_v22  ;;  %v10871_v22 = vld [vmem:[%s20250_s5 + $0x2f0] sm:$0xf] }
 0x69d   :  { %v4901_v24 = vadd.f32 %v4867_v29, %v16786_v53  ;;  %v4771_v39 = vadd.f32 %v4770_v26, %v4721_v14  ;;  %v5011_v25 = vmul.f32 0.2, %v4979_v49  ;;  %v10596_v53 = vor.u32 %v12577_v54, %v10593_v32  ;;  %v4724_v27 = vpop.f32.mrf.mxu0  ;;  %v10655_v29 = vld [vmem:[%s20250_s5 + $0x80] sm:$0xf]  ;;  %v12655_v54 = vld [vmem:[%s20250_s5 + $0x274] sm:$0xf] }
 0x69e   :  { %5667 = vmatpush.bf16.msrb.mxu1 %v10664_v20  ;;  %v17299_v11 = vmax.f32 %v4978_v57, %v5010_v23  ;;  %v4434_v57 = vadd.f32 %v4400_v0, %v16585_v56  ;;  %v10809_v32 = vld [vmem:[%s20250_s5 + $0x278] sm:$0xf0] }
 0x69f   :  { %v4942_v2 = vmul.f32 %v16936_v58, %v4901_v24  ;;  %v4902_v14 = vadd.f32 %v4771_v39, %v4433_v9  ;;  %v17297_v33 = vmax.f32 %v4979_v49, %v5011_v25  ;;  %5697 = vmatpush.bf16.msrb.mxu2 %v10596_v53  ;;  %5639 = vmatpush.bf16.msrb.mxu0 %v10592_v3  ;;  %v20518_v9 = vld [vmem:[#allocation46_spill] sm:$0xff]  ;;  %v20520_v24 = vld [vmem:[#allocation9_spill] sm:$0xff]  ;;  %v10873_v53 = vld [vmem:[%s20250_s5 + $0x2f8] sm:$0xf0] }
 0x6a0   :  { %v17309_v10 = vpack.c.bf16 %v17299_v11, %v17185_v15  ;;  %v4307_v39 = vadd.f32 %v20520_v24, %v20519_v59  ;;  %v10812_v3 = vor.u32 %v12655_v54, %v10809_v32  ;;  %v10801_v59 = vld [vmem:[%s20250_s5 + $0x268] sm:$0xf0]  ;;  %v12669_v24 = vld [vmem:[%s20250_s5 + $0x2e4] sm:$0xf] }
 0x6a1   :  { %v4980_v13 = vadd.f32 %v16942_v46, %v4942_v2  ;;  %v4943_v4 = vmul.f32 %v16930_v19, %v4902_v14  ;;  %v17305_v55 = vpack.c.bf16 %v17297_v33, %v17183_v30  ;;  %v12594_v30 = vld [vmem:[%s20250_s5 + $0x84] sm:$0xf0] }
 0x6a2   :  { %v4868_v60 = vpop.f32.mrf.mxu3  ;;  %v10656_v18 = vor.u32 %v12594_v30, %v10655_v29 }
 0x6a3   :  { %v4981_v62 = vadd.f32 %v16933_v36, %v4943_v4  ;;  %v4869_v37 = vadd.f32 %v4868_v60, %v4819_v44  ;;  %v5012_v49 = vmul.f32 0.2, %v4980_v13  ;;  %v4822_v63 = vpop.f32.mrf.mxu2  ;;  %6023 = vmatpush.bf16.msra.mxu2 %v10812_v3 }
 0x6a4   :  { %v4773_v12 = vpop.f32.mrf.mxu1  ;;  %5668 = vmatpush.bf16.msrb.mxu1 %v10656_v18 }
 0x6a5   :  { %v4903_v28 = vadd.f32 %v4869_v37, %v4434_v57  ;;  %v4774_v31 = vadd.f32 %v4773_v12, %v4724_v27  ;;  %v17319_v15 = vmax.f32 %v4980_v13, %v5012_v49  ;;  %v5013_v52 = vmul.f32 0.2, %v4981_v62  ;;  %v12672_v13 = vld [vmem:[%s20250_s5 + $0x2f4] sm:$0xf0]  ;;  %v4726_v4 = vpop.f32.mrf.mxu0  ;;  %v20522_v49 = vld [vmem:[#allocation10_spill] sm:$0xff] }
 0x6a6   :  { %v10872_v60 = vor.u32 %v12672_v13, %v10871_v22  ;;  %v10799_v13 = vld [vmem:[%s20250_s5 + $0x260] sm:$0xf] }
 0x6a7   :  { %v4944_v56 = vmul.f32 %v16936_v58, %v4903_v28  ;;  %v4904_v26 = vadd.f32 %v4774_v31, %v20518_v9  ;;  %v17323_v1 = vmax.f32 %v4981_v62, %v5013_v52  ;;  %v17327_v50 = vpack.c.bf16 %v17319_v15, %v17218_v35  ;;  %v12671_v35 = vld [vmem:[%s20250_s5 + $0x2f4] sm:$0xf] }
 0x6a8   :  { %v10876_v14 = vor.u32 %v12671_v35, %v10873_v53  ;;  %v20521_v62 = vld [vmem:[#allocation43_spill] sm:$0xff]  ;;  %5994 = vmatpush.bf16.msra.mxu1 %v10872_v60  ;;  %v10865_v35 = vld [vmem:[%s20250_s5 + $0x2e8] sm:$0xf0] }
 0x6a9   :  { %v4982_v25 = vadd.f32 %v16942_v46, %v4944_v56  ;;  %v4945_v20 = vmul.f32 %v16930_v19, %v4904_v26  ;;  %v17344_v0 = vpack.c.bf16 %v17323_v1, %v17235_v17  ;;  %v10808_v17 = vor.u32 %v12656_v41, %v10807_v40  ;;  %v20523_v28 = vld [vmem:[#allocation47_spill] sm:$0xff]  ;;  %v20525_v40 = vld [vmem:[#allocation44_spill] sm:$0xff] }
 0x6aa   :  { %v4871_v44 = vpop.f32.mrf.mxu3  ;;  %v4437_v37 = vadd.f32 %v4307_v39, %v20521_v62  ;;  %6052 = vmatpush.bf16.msra.mxu3 %v10876_v14  ;;  %v20524_v31 = vld [vmem:[#allocation11_spill] sm:$0xff]  ;;  %v10868_v53 = vor.u32 %v12669_v24, %v10865_v35  ;;  %v12649_v24 = vld [vmem:[%s20250_s5 + $0x244] sm:$0xf] }
 0x6ab   :  { %v4983_v23 = vadd.f32 %v16933_v36, %v4945_v20  ;;  %v4872_v2 = vadd.f32 %v4871_v44, %v4822_v63  ;;  %v5014_v57 = vmul.f32 0.2, %v4982_v25  ;;  %5965 = vmatpush.bf16.msra.mxu0 %v10808_v17  ;;  %v4405_v52 = vadd.f32 %v20524_v31, %v20523_v28  ;;  %v12653_v63 = vld [vmem:[%s20250_s5 + $0x264] sm:$0xf]  ;;  %v4824_v44 = vpop.f32.mrf.mxu2  ;;  %v12651_v62 = vld [vmem:[%s20250_s5 + $0x254] sm:$0xf] }
 0x6ac   :  { %v4775_v27 = vpop.f32.mrf.mxu1  ;;  %v10804_v32 = vor.u32 %v12653_v63, %v10801_v59  ;;  %v12668_v59 = vld [vmem:[%s20250_s5 + $0x2d4] sm:$0xf0] }
 0x6ad   :  { %v4905_v29 = vadd.f32 %v4872_v2, %v20522_v49  ;;  %v4776_v30 = vadd.f32 %v4775_v27, %v4726_v4  ;;  %v5015_v12 = vmul.f32 0.2, %v4983_v23  ;;  %v5046_v18 = vmax.f32 %v4982_v25, %v5014_v57  ;;  %v10863_v4 = vld [vmem:[%s20250_s5 + $0x2e0] sm:$0xf]  ;;  %v12667_v49 = vld [vmem:[%s20250_s5 + $0x2d4] sm:$0xf] }
 0x6ae   :  { %v4438_v41 = vadd.f32 %v4405_v52, %v20525_v40  ;;  %6024 = vmatpush.bf16.msra.mxu2 %v10804_v32  ;;  %6053 = vmatpush.bf16.msra.mxu3 %v10868_v53  ;;  %v10791_v52 = vld [vmem:[%s20250_s5 + $0x250] sm:$0xf]  ;;  %v12650_v53 = vld [vmem:[%s20250_s5 + $0x244] sm:$0xf0]  ;;  %v10847_v40 = vld [vmem:[%s20250_s5 + $0x2c0] sm:$0xf] }
 0x6af   :  { %v4946_v56 = vmul.f32 %v16936_v58, %v4905_v29  ;;  %v4906_v9 = vadd.f32 %v4776_v30, %v4437_v37  ;;  %v17367_v26 = vmax.f32 %v4983_v23, %v5015_v12  ;;  %v17379_v39 = vpack.c.bf16 %v5046_v18, %v17299_v11  ;;  %v10793_v37 = vld [vmem:[%s20250_s5 + $0x258] sm:$0xf0] }
 0x6b0   :  { %v10857_v30 = vld [vmem:[%s20250_s5 + $0x2d8] sm:$0xf0] }
 0x6b1   :  { %v4984_v25 = vadd.f32 %v16942_v46, %v4946_v56  ;;  %v4947_v20 = vmul.f32 %v16930_v19, %v4906_v9  ;;  %v5161_v54 = vpack.c.bf16 %v17367_v26, %v17297_v33  ;;  %v10860_v12 = vor.u32 %v12667_v49, %v10857_v30  ;;  %v10855_v56 = vld [vmem:[%s20250_s5 + $0x2d0] sm:$0xf] }
 0x6b2   :  { %v4873_v3 = vpop.f32.mrf.mxu3  ;;  %v10856_v32 = vor.u32 %v12668_v59, %v10855_v56  ;;  %v10831_v56 = vld [vmem:[%s20250_s5 + $0x2a0] sm:$0xf] }
 0x6b3   :  { %v4985_v11 = vadd.f32 %v16933_v36, %v4947_v20  ;;  %v4874_v23 = vadd.f32 %v4873_v3, %v4824_v44  ;;  %5379 = vmatmul.bf16.gmra.mxu0 %v5161_v54  ;;  %5437 = vmatmul.bf16.gmra.mxu2 %v5161_v54  ;;  %v5016_v2 = vmul.f32 0.2, %v4984_v25  ;;  %v12654_v36 = vld [vmem:[%s20250_s5 + $0x264] sm:$0xf0]  ;;  %v20526_v20 = vmov 0.0  }
 0x6b4   :  { %v10800_v60 = vor.u32 %v12654_v36, %v10799_v13  ;;  %6054 = vmatpush.bf16.msra.mxu3 %v10860_v12  ;;  %v5099_v54 = vpack.c.bf16 %v16959_v8, %v20526_v20  ;;  %v10849_v44 = vld [vmem:[%s20250_s5 + $0x2c8] sm:$0xf0]  ;;  %v10783_v8 = vld [vmem:[%s20250_s5 + $0x240] sm:$0xf]  ;;  %v10775_v13 = vld [vmem:[%s20250_s5 + $0x230] sm:$0xf] }
 0x6b5   :  { %v4907_v19 = vadd.f32 %v4874_v23, %v4438_v41  ;;  %v17390_v33 = vmax.f32 %v4984_v25, %v5016_v2  ;;  %v5017_v14 = vmul.f32 0.2, %v4985_v11  ;;  %v10785_v25 = vld [vmem:[%s20250_s5 + $0x248] sm:$0xf0]  ;;  %v10784_v41 = vor.u32 %v12650_v53, %v10783_v8  ;;  %v12648_v36 = vld [vmem:[%s20250_s5 + $0x234] sm:$0xf0] }
 0x6b6   :  { %5966 = vmatpush.bf16.msra.mxu0 %v10800_v60  ;;  %v10788_v35 = vor.u32 %v12649_v24, %v10785_v25  ;;  %v5100_v23 = vpack.c.bf16 %v16969_v21, %v20526_v20  ;;  %v10841_v21 = vld [vmem:[%s20250_s5 + $0x2b8] sm:$0xf0]  ;;  %v10839_v60 = vld [vmem:[%s20250_s5 + $0x2b0] sm:$0xf]  ;;  %v12643_v24 = vld [vmem:[%s20250_s5 + $0x214] sm:$0xf] }
 0x6b7   :  { %v4948_v17 = vmul.f32 %v16936_v58, %v4907_v19  ;;  %v5162_v22 = vpack.c.bf16 %v17390_v33, %v17319_v15  ;;  %v5049_v27 = vmax.f32 %v4985_v11, %v5017_v14  ;;  %v12670_v58 = vld [vmem:[%s20250_s5 + $0x2e4] sm:$0xf0]  ;;  %v12647_v19 = vld [vmem:[%s20250_s5 + $0x234] sm:$0xf]  ;;  %v10777_v14 = vld [vmem:[%s20250_s5 + $0x238] sm:$0xf0] }
 0x6b8   :  { %v10864_v57 = vor.u32 %v12670_v58, %v10863_v4  ;;  %v12666_v11 = vld [vmem:[%s20250_s5 + $0x2c4] sm:$0xf0]  ;;  %v12664_v58 = vld [vmem:[%s20250_s5 + $0x2b4] sm:$0xf0]  ;;  %v10761_v25 = vld [vmem:[%s20250_s5 + $0x218] sm:$0xf0] }
 0x6b9   :  { %v4986_v15 = vadd.f32 %v16942_v46, %v4948_v17  ;;  %5408 = vmatmul.bf16.gmra.mxu1 %v5162_v22  ;;  %5466 = vmatmul.bf16.gmra.mxu3 %v5162_v22  ;;  %v17418_v29 = vpack.c.bf16 %v5049_v27, %v17323_v1  ;;  %v10796_v46 = vor.u32 %v12651_v62, %v10793_v37  ;;  %v12652_v1 = vld [vmem:[%s20250_s5 + $0x254] sm:$0xf0]  ;;  %v12663_v17 = vld [vmem:[%s20250_s5 + $0x2b4] sm:$0xf]  ;;  %v10769_v62 = vld [vmem:[%s20250_s5 + $0x228] sm:$0xf0] }
 0x6ba   :  { %5995 = vmatpush.bf16.msra.mxu1 %v10864_v57  ;;  %v10792_v63 = vor.u32 %v12652_v1, %v10791_v52  ;;  %v10848_v2 = vor.u32 %v12666_v11, %v10847_v40  ;;  %v10780_v22 = vor.u32 %v12647_v19, %v10777_v14  ;;  %v10844_v4 = vor.u32 %v12663_v17, %v10841_v21  ;;  %v12645_v57 = vld [vmem:[%s20250_s5 + $0x224] sm:$0xf]  ;;  %v10767_v52 = vld [vmem:[%s20250_s5 + $0x220] sm:$0xf]  ;;  %v12646_v1 = vld [vmem:[%s20250_s5 + $0x224] sm:$0xf0] }
 0x6bb   :  { %v5018_v28 = vmul.f32 0.2, %v4986_v15  ;;  %6025 = vmatpush.bf16.msra.mxu2 %v10796_v46  ;;  %v10776_v27 = vor.u32 %v12648_v36, %v10775_v13  ;;  %v12661_v37 = vld [vmem:[%s20250_s5 + $0x2a4] sm:$0xf]  ;;  %v10772_v49 = vor.u32 %v12645_v57, %v10769_v62  ;;  %v10833_v46 = vld [vmem:[%s20250_s5 + $0x2a8] sm:$0xf0] }
 0x6bc   :  { %5967 = vmatpush.bf16.msra.mxu0 %v10792_v63  ;;  %v10836_v30 = vor.u32 %v12661_v37, %v10833_v46  ;;  %v10768_v63 = vor.u32 %v12646_v1, %v10767_v52  ;;  %v12644_v8 = vld [vmem:[%s20250_s5 + $0x214] sm:$0xf0]  ;;  %v12642_v19 = vld [vmem:[%s20250_s5 + $0x204] sm:$0xf0]  ;;  %v12641_v14 = vld [vmem:[%s20250_s5 + $0x204] sm:$0xf] }
 0x6bd   :  { %v5050_v31 = vmax.f32 %v4986_v15, %v5018_v28  ;;  %v10840_v15 = vor.u32 %v12664_v58, %v10839_v60  ;;  %v12660_v11 = vld [vmem:[%s20250_s5 + $0x294] sm:$0xf0]  ;;  %v10753_v17 = vld [vmem:[%s20250_s5 + $0x208] sm:$0xf0]  ;;  %v12657_v13 = vld [vmem:[%s20250_s5 + $0x284] sm:$0xf] }
 0x6be   :  { %5996 = vmatpush.bf16.msra.mxu1 %v10856_v32  ;;  %v10764_v32 = vor.u32 %v12643_v24, %v10761_v25  ;;  %v10756_v21 = vor.u32 %v12641_v14, %v10753_v17  ;;  %v10817_v36 = vld [vmem:[%s20250_s5 + $0x288] sm:$0xf0]  ;;  %v12658_v60 = vld [vmem:[%s20250_s5 + $0x284] sm:$0xf0]  ;;  %v12703_v57 = vld [vmem:[%s20250_s5 + $0x3f4] sm:$0xf] }
 0x6bf   :  { %v17432_v9 = vpack.c.bf16 %v5050_v31, %v5046_v18  ;;  %v12665_v18 = vld [vmem:[%s20250_s5 + $0x2c4] sm:$0xf]  ;;  %6026 = vmatpush.bf16.msra.mxu2 %v10788_v35  ;;  %v10825_v35 = vld [vmem:[%s20250_s5 + $0x298] sm:$0xf0]  ;;  %v11025_v25 = vld [vmem:[%s20250_s5 + $0x3e8] sm:$0xf0] }
 0x6c0   :  { %v10852_v3 = vor.u32 %v12665_v18, %v10849_v44  ;;  %5968 = vmatpush.bf16.msra.mxu0 %v10784_v41  ;;  %v10823_v41 = vld [vmem:[%s20250_s5 + $0x290] sm:$0xf]  ;;  %v11033_v37 = vld [vmem:[%s20250_s5 + $0x3f8] sm:$0xf0] }
 0x6c1   :  { %v11036_v46 = vor.u32 %v12703_v57, %v11033_v37  ;;  %v11017_v17 = vld [vmem:[%s20250_s5 + $0x3d8] sm:$0xf0]  ;;  %v12697_v37 = vld [vmem:[%s20250_s5 + $0x3c4] sm:$0xf] }
 0x6c2   :  { %6055 = vmatpush.bf16.msra.mxu3 %v10852_v3  ;;  %5997 = vmatpush.bf16.msra.mxu1 %v10848_v2  ;;  %v10759_v3 = vld [vmem:[%s20250_s5 + $0x210] sm:$0xf]  ;;  %v10824_v2 = vor.u32 %v12660_v11, %v10823_v41  ;;  %v12702_v41 = vld [vmem:[%s20250_s5 + $0x3e4] sm:$0xf0] }
 0x6c3   :  { %5640 = vmatmul.bf16.vlgmr.msrb.gmra.mxu0 %v5099_v54  ;;  %5698 = vmatmul.bf16.vlgmr.msrb.gmra.mxu2 %v5099_v54  ;;  %v12659_v54 = vld [vmem:[%s20250_s5 + $0x294] sm:$0xf]  ;;  %v10760_v40 = vor.u32 %v12644_v8, %v10759_v3  ;;  %v10959_v3 = vld [vmem:[%s20250_s5 + $0x360] sm:$0xf]  ;;  %v12686_v8 = vld [vmem:[%s20250_s5 + $0x364] sm:$0xf0] }
 0x6c4   :  { %6027 = vmatpush.bf16.msra.mxu2 %v10780_v22  ;;  %5969 = vmatpush.bf16.msra.mxu0 %v10776_v27  ;;  %v10815_v27 = vld [vmem:[%s20250_s5 + $0x280] sm:$0xf] }
 0x6c5   :  { %v10816_v58 = vor.u32 %v12658_v60, %v10815_v27  ;;  %v11015_v27 = vld [vmem:[%s20250_s5 + $0x3d0] sm:$0xf] }
 0x6c6   :  { %6056 = vmatpush.bf16.msra.mxu3 %v10844_v4  ;;  %5998 = vmatpush.bf16.msra.mxu1 %v10840_v15  ;;  %v10820_v4 = vor.u32 %v12657_v13, %v10817_v36  ;;  %v10969_v15 = vld [vmem:[%s20250_s5 + $0x378] sm:$0xf0]  ;;  %v10951_v36 = vld [vmem:[%s20250_s5 + $0x350] sm:$0xf] }
 0x6c8   :  { %6028 = vmatpush.bf16.msra.mxu2 %v10772_v49  ;;  %5970 = vmatpush.bf16.msra.mxu0 %v10768_v63  ;;  %v12688_v49 = vld [vmem:[%s20250_s5 + $0x374] sm:$0xf0]  ;;  %v12685_v63 = vld [vmem:[%s20250_s5 + $0x364] sm:$0xf] }
 0x6c9   :  { %5669 = vmatmul.bf16.vlgmr.msrb.gmra.mxu1 %v5100_v23  ;;  %5727 = vmatmul.bf16.vlgmr.msrb.gmra.mxu3 %v5100_v23  ;;  %v10751_v23 = vld [vmem:[%s20250_s5 + $0x200] sm:$0xf] }
 0x6ca   :  { %6057 = vmatpush.bf16.msra.mxu3 %v10836_v30  ;;  %v10752_v22 = vor.u32 %v12642_v19, %v10751_v23  ;;  %v12683_v23 = vld [vmem:[%s20250_s5 + $0x354] sm:$0xf] }
 0x6cb   :  { %v12699_v19 = vld [vmem:[%s20250_s5 + $0x3d4] sm:$0xf] }
 0x6cc   :  { %6029 = vmatpush.bf16.msra.mxu2 %v10764_v32  ;;  %5971 = vmatpush.bf16.msra.mxu0 %v10760_v40  ;;  %v10960_v40 = vor.u32 %v12686_v8, %v10959_v3  ;;  %v10999_v3 = vld [vmem:[%s20250_s5 + $0x3b0] sm:$0xf]  ;;  %v12696_v8 = vld [vmem:[%s20250_s5 + $0x3b4] sm:$0xf0] }
 0x6d0   :  { %v5365_v12 = vpop.f32.mrf.mxu0  ;;  %5972 = vmatpush.bf16.msra.mxu0 %v10752_v22  ;;  %6030 = vmatpush.bf16.msra.mxu2 %v10756_v21 }
 0x6d3   :  { %5645 = vmatmul.bf16.gmra.mxu0 %v16995_v61  ;;  %5703 = vmatmul.bf16.gmra.mxu2 %v16995_v61  ;;  %v12662_v61 = vld [vmem:[%s20250_s5 + $0x2a4] sm:$0xf0] }
 0x6d4   :  { %v10832_v59 = vor.u32 %v12662_v61, %v10831_v56  ;;  %v10961_v61 = vld [vmem:[%s20250_s5 + $0x368] sm:$0xf0] }
 0x6d5   :  { %v10964_v24 = vor.u32 %v12685_v63, %v10961_v61  ;;  %v12679_v63 = vld [vmem:[%s20250_s5 + $0x334] sm:$0xf]  ;;  %v10937_v61 = vld [vmem:[%s20250_s5 + $0x338] sm:$0xf0] }
 0x6d6   :  { %v5394_v28 = vpop.f32.mrf.mxu1  ;;  %5999 = vmatpush.bf16.msra.mxu1 %v10832_v59  ;;  %v5423_v18 = vpop.f32.mrf.mxu2  ;;  %v12701_v59 = vld [vmem:[%s20250_s5 + $0x3e4] sm:$0xf] }
 0x6d7   :  { %v17503_v31 = vadd.f32 %v5394_v28, %v5365_v12  ;;  %v11031_v12 = vld [vmem:[%s20250_s5 + $0x3f0] sm:$0xf]  ;;  %v12704_v28 = vld [vmem:[%s20250_s5 + $0x3f4] sm:$0xf0] }
 0x6d8   :  { %v11032_v52 = vor.u32 %v12704_v28, %v11031_v12  ;;  %v17597_v1 = vpop.f32.mrf.mxu0  ;;  %v11007_v12 = vld [vmem:[%s20250_s5 + $0x3c0] sm:$0xf] }
 0x6d9   :  { %5674 = vmatmul.bf16.gmra.mxu1 %v17018_v7  ;;  %5732 = vmatmul.bf16.gmra.mxu3 %v17018_v7  ;;  %v10828_v7 = vor.u32 %v12659_v54, %v10825_v35  ;;  %v11028_v54 = vor.u32 %v12701_v59, %v11025_v25  ;;  %v12695_v59 = vld [vmem:[%s20250_s5 + $0x3b4] sm:$0xf]  ;;  %v11001_v25 = vld [vmem:[%s20250_s5 + $0x3b8] sm:$0xf0] }
 0x6da   :  { %6000 = vmatpush.bf16.msra.mxu1 %v10824_v2  ;;  %v10953_v2 = vld [vmem:[%s20250_s5 + $0x358] sm:$0xf0] }
 0x6db   :  { %6058 = vmatpush.bf16.msra.mxu3 %v10828_v7  ;;  %v10956_v14 = vor.u32 %v12683_v23, %v10953_v2  ;;  %v10929_v23 = vld [vmem:[%s20250_s5 + $0x328] sm:$0xf0]  ;;  %v12693_v2 = vld [vmem:[%s20250_s5 + $0x3a4] sm:$0xf] }
 0x6dc   :  { %v5452_v44 = vpop.f32.mrf.mxu3 }
 0x6dd   :  { %v17537_v53 = vadd.f32 %v5452_v44, %v5423_v18 }
 0x6de   :  { %6001 = vmatpush.bf16.msra.mxu1 %v10816_v58  ;;  %v17599_v56 = vpop.f32.mrf.mxu1  ;;  %v17615_v32 = vpop.f32.mrf.mxu2  ;;  %v12700_v58 = vld [vmem:[%s20250_s5 + $0x3d4] sm:$0xf0] }
 0x6df   :  { %6059 = vmatpush.bf16.msra.mxu3 %v10820_v4  ;;  %v12684_v4 = vld [vmem:[%s20250_s5 + $0x354] sm:$0xf0]  ;;  %v11016_v57 = vor.u32 %v12700_v58, %v11015_v27  ;;  %v10927_v27 = vld [vmem:[%s20250_s5 + $0x320] sm:$0xf] }
 0x6e0   :  { %v10952_v60 = vor.u32 %v12684_v4, %v10951_v36 }
 0x6e2   :  { %6343 = vmatpush.bf16.msrb.mxu1 %v11032_v52 }
 0x6e3   :  { %5650 = vmatmul.bf16.gmra.mxu0 %v17151_v16  ;;  %5708 = vmatmul.bf16.gmra.mxu2 %v17151_v16  ;;  %v12687_v16 = vld [vmem:[%s20250_s5 + $0x374] sm:$0xf] }
 0x6e4   :  { %v10972_v62 = vor.u32 %v12687_v16, %v10969_v15  ;;  %6401 = vmatpush.bf16.msrb.mxu3 %v11036_v46  ;;  %v17617_v35 = vpop.f32.mrf.mxu3  ;;  %v12681_v16 = vld [vmem:[%s20250_s5 + $0x344] sm:$0xf]  ;;  %v10945_v15 = vld [vmem:[%s20250_s5 + $0x348] sm:$0xf0]  ;;  %v10943_v46 = vld [vmem:[%s20250_s5 + $0x340] sm:$0xf] }
 0x6e6   :  { %6372 = vmatpush.bf16.msrb.mxu2 %v10972_v62  ;;  %v10948_v62 = vor.u32 %v12681_v16, %v10945_v15  ;;  %v12694_v16 = vld [vmem:[%s20250_s5 + $0x3a4] sm:$0xf0] }
 0x6e8   :  { %6402 = vmatpush.bf16.msrb.mxu3 %v11028_v54  ;;  %v12680_v54 = vld [vmem:[%s20250_s5 + $0x334] sm:$0xf0] }
 0x6e9   :  { %5679 = vmatmul.bf16.gmra.mxu1 %v17199_v6  ;;  %5737 = vmatmul.bf16.gmra.mxu3 %v17199_v6  ;;  %v10967_v6 = vld [vmem:[%s20250_s5 + $0x370] sm:$0xf] }
 0x6ea   :  { %v10968_v30 = vor.u32 %v12688_v49, %v10967_v6  ;;  %6373 = vmatpush.bf16.msrb.mxu2 %v10964_v24  ;;  %v11009_v6 = vld [vmem:[%s20250_s5 + $0x3c8] sm:$0xf0]  ;;  %v10940_v24 = vor.u32 %v12679_v63, %v10937_v61  ;;  %v10983_v63 = vld [vmem:[%s20250_s5 + $0x390] sm:$0xf]  ;;  %v12692_v61 = vld [vmem:[%s20250_s5 + $0x394] sm:$0xf0] }
 0x6eb   :  { %v11012_v49 = vor.u32 %v12697_v37, %v11009_v6  ;;  %v12691_v37 = vld [vmem:[%s20250_s5 + $0x394] sm:$0xf] }
 0x6ec   :  { %6314 = vmatpush.bf16.msrb.mxu0 %v10968_v30  ;;  %v12682_v30 = vld [vmem:[%s20250_s5 + $0x344] sm:$0xf0] }
 0x6ed   :  { %v10944_v28 = vor.u32 %v12682_v30, %v10943_v46 }
 0x6ee   :  { %6374 = vmatpush.bf16.msrb.mxu2 %v10956_v14  ;;  %v10993_v14 = vld [vmem:[%s20250_s5 + $0x3a8] sm:$0xf0] }
 0x6f0   :  { %v5370_v7 = vpop.f32.mrf.mxu0  ;;  %6315 = vmatpush.bf16.msrb.mxu0 %v10960_v40 }
 0x6f2   :  { %6375 = vmatpush.bf16.msrb.mxu2 %v10948_v62  ;;  %v10921_v62 = vld [vmem:[%s20250_s5 + $0x318] sm:$0xf0] }
 0x6f3   :  { %5655 = vmatmul.bf16.gmra.mxu0 %v17344_v0  ;;  %5713 = vmatmul.bf16.gmra.mxu2 %v17344_v0  ;;  %v11023_v0 = vld [vmem:[%s20250_s5 + $0x3e0] sm:$0xf] }
 0x6f4   :  { %v11024_v11 = vor.u32 %v12702_v41, %v11023_v0  ;;  %6316 = vmatpush.bf16.msrb.mxu0 %v10952_v60  ;;  %v11000_v0 = vor.u32 %v12696_v8, %v10999_v3  ;;  %v12678_v60 = vld [vmem:[%s20250_s5 + $0x324] sm:$0xf0]  ;;  %v10977_v3 = vld [vmem:[%s20250_s5 + $0x388] sm:$0xf0] }
 0x6f5   :  { %v10928_v58 = vor.u32 %v12678_v60, %v10927_v27 }
 0x6f6   :  { %v5399_v18 = vpop.f32.mrf.mxu1  ;;  %6344 = vmatpush.bf16.msrb.mxu1 %v11024_v11  ;;  %v5428_v22 = vpop.f32.mrf.mxu2  ;;  %6376 = vmatpush.bf16.msrb.mxu2 %v10940_v24  ;;  %v12677_v11 = vld [vmem:[%s20250_s5 + $0x324] sm:$0xf]  ;;  %v10911_v24 = vld [vmem:[%s20250_s5 + $0x300] sm:$0xf] }
 0x6f7   :  { %v17619_v44 = vadd.f32 %v5399_v18, %v5370_v7  ;;  %v11004_v7 = vor.u32 %v12695_v59, %v11001_v25  ;;  %v10984_v59 = vor.u32 %v12692_v61, %v10983_v63  ;;  %v12674_v25 = vld [vmem:[%s20250_s5 + $0x304] sm:$0xf0] }
 0x6f8   :  { %6317 = vmatpush.bf16.msrb.mxu0 %v10944_v28  ;;  %v17713_v40 = vpop.f32.mrf.mxu0  ;;  %v12676_v28 = vld [vmem:[%s20250_s5 + $0x314] sm:$0xf0] }
 0x6f9   :  { %5684 = vmatmul.bf16.gmra.mxu1 %v17379_v39  ;;  %5742 = vmatmul.bf16.gmra.mxu3 %v17379_v39  ;;  %v11020_v39 = vor.u32 %v12699_v19, %v11017_v17  ;;  %v10932_v19 = vor.u32 %v12677_v11, %v10929_v23  ;;  %v10996_v17 = vor.u32 %v12693_v2, %v10993_v14  ;;  %v10975_v11 = vld [vmem:[%s20250_s5 + $0x380] sm:$0xf]  ;;  %v12690_v23 = vld [vmem:[%s20250_s5 + $0x384] sm:$0xf0] }
 0x6fa   :  { %6345 = vmatpush.bf16.msrb.mxu1 %v11016_v57  ;;  %v12675_v57 = vld [vmem:[%s20250_s5 + $0x314] sm:$0xf]  ;;  %v10976_v2 = vor.u32 %v12690_v23, %v10975_v11 }
 0x6fb   :  { %6403 = vmatpush.bf16.msrb.mxu3 %v11020_v39  ;;  %6377 = vmatpush.bf16.msrb.mxu2 %v10932_v19  ;;  %v10924_v6 = vor.u32 %v12675_v57, %v10921_v62 }
 0x6fc   :  { %v5457_v21 = vpop.f32.mrf.mxu3 }
 0x6fd   :  { %v17647_v13 = vadd.f32 %v5457_v21, %v5428_v22 }
 0x6fe   :  { %v17715_v41 = vpop.f32.mrf.mxu1  ;;  %v17731_v39 = vpop.f32.mrf.mxu2 }
 0x6ff   :  { %6404 = vmatpush.bf16.msrb.mxu3 %v11012_v49  ;;  %v10985_v49 = vld [vmem:[%s20250_s5 + $0x398] sm:$0xf0]  ;;  %6378 = vmatpush.bf16.msrb.mxu2 %v10924_v6 }
 0x703   :  { %5973 = vmatmul.bf16.vlgmr.msra.gmra.mxu0 %v16966_v5  ;;  %6031 = vmatmul.bf16.vlgmr.msra.gmra.mxu2 %v16966_v5  ;;  %v12698_v5 = vld [vmem:[%s20250_s5 + $0x3c4] sm:$0xf0] }
 0x704   :  { %v11008_v52 = vor.u32 %v12698_v5, %v11007_v12  ;;  %6405 = vmatpush.bf16.msrb.mxu3 %v11004_v7  ;;  %v17733_v22 = vpop.f32.mrf.mxu3  ;;  %v10919_v12 = vld [vmem:[%s20250_s5 + $0x310] sm:$0xf]  ;;  %v10913_v7 = vld [vmem:[%s20250_s5 + $0x308] sm:$0xf0] }
 0x706   :  { %6346 = vmatpush.bf16.msrb.mxu1 %v11008_v52  ;;  %v10920_v52 = vor.u32 %v12676_v28, %v10919_v12 }
 0x708   :  { %6406 = vmatpush.bf16.msrb.mxu3 %v10996_v17 }
 0x709   :  { %6002 = vmatmul.bf16.vlgmr.msra.gmra.mxu1 %v16975_v48  ;;  %6060 = vmatmul.bf16.vlgmr.msra.gmra.mxu3 %v16975_v48  ;;  %v10935_v48 = vld [vmem:[%s20250_s5 + $0x330] sm:$0xf] }
 0x70a   :  { %v10936_v18 = vor.u32 %v12680_v54, %v10935_v48  ;;  %6347 = vmatpush.bf16.msrb.mxu1 %v11000_v0  ;;  %v12673_v48 = vld [vmem:[%s20250_s5 + $0x304] sm:$0xf]  ;;  %v10912_v54 = vor.u32 %v12674_v25, %v10911_v24 }
 0x70b   :  { %v10916_v8 = vor.u32 %v12673_v48, %v10913_v7 }
 0x70c   :  { %6318 = vmatpush.bf16.msrb.mxu0 %v10936_v18  ;;  %v12689_v18 = vld [vmem:[%s20250_s5 + $0x384] sm:$0xf] }
 0x70d   :  { %v10980_v0 = vor.u32 %v12689_v18, %v10977_v3  ;;  %6379 = vmatpush.bf16.msrb.mxu2 %v10916_v8 }
 0x710   :  { %v5375_v21 = vpop.f32.mrf.mxu0  ;;  %6319 = vmatpush.bf16.msrb.mxu0 %v10928_v58 }
 0x713   :  { %5978 = vmatmul.bf16.gmra.mxu0 %v17063_v38  ;;  %6036 = vmatmul.bf16.gmra.mxu2 %v17063_v38  ;;  %v10991_v38 = vld [vmem:[%s20250_s5 + $0x3a0] sm:$0xf] }
 0x714   :  { %v10992_v15 = vor.u32 %v12694_v16, %v10991_v38  ;;  %6320 = vmatpush.bf16.msrb.mxu0 %v10920_v52 }
 0x716   :  { %v5404_v36 = vpop.f32.mrf.mxu1  ;;  %6348 = vmatpush.bf16.msrb.mxu1 %v10992_v15  ;;  %v5433_v46 = vpop.f32.mrf.mxu2 }
 0x717   :  { %v17735_v4 = vadd.f32 %v5404_v36, %v5375_v21 }
 0x718   :  { %6321 = vmatpush.bf16.msrb.mxu0 %v10912_v54  ;;  %v17803_v19 = vpop.f32.mrf.mxu0 }
 0x719   :  { %6007 = vmatmul.bf16.gmra.mxu1 %v17107_v51  ;;  %6065 = vmatmul.bf16.gmra.mxu3 %v17107_v51  ;;  %v10988_v51 = vor.u32 %v12691_v37, %v10985_v49 }
 0x71a   :  { %6349 = vmatpush.bf16.msrb.mxu1 %v10984_v59 }
 0x71b   :  { %6407 = vmatpush.bf16.msrb.mxu3 %v10988_v51 }
 0x71c   :  { %v5462_v30 = vpop.f32.mrf.mxu3 }
 0x71d   :  { %v17769_v5 = vadd.f32 %v5462_v30, %v5433_v46 }
 0x71e   :  { %6350 = vmatpush.bf16.msrb.mxu1 %v10976_v2  ;;  %v17809_v14 = vpop.f32.mrf.mxu2 }
 0x71f   :  { %6408 = vmatpush.bf16.msrb.mxu3 %v10980_v0 }
 0x723   :  { %5983 = vmatmul.bf16.gmra.mxu0 %v17259_v45  ;;  %6041 = vmatmul.bf16.gmra.mxu2 %v17259_v45  ;;  %v17807_v45 = vpop.f32.mrf.mxu1 }
 0x724   :  { %v17813_v21 = vpop.f32.mrf.mxu3 }
 0x729   :  { %6012 = vmatmul.bf16.gmra.mxu1 %v17309_v10  ;;  %6070 = vmatmul.bf16.gmra.mxu3 %v17309_v10 }
 0x730   :  { %v5380_v17 = vpop.f32.mrf.mxu0 }
 0x733   :  { %5988 = vmatmul.bf16.gmra.mxu0 %v17418_v29  ;;  %6046 = vmatmul.bf16.gmra.mxu2 %v17418_v29 }
 0x736   :  { %v5409_v36 = vpop.f32.mrf.mxu1  ;;  %v5438_v27 = vpop.f32.mrf.mxu2 }
 0x737   :  { %v5410_v60 = vadd.f32 %v5409_v36, %v5380_v17 }
 0x738   :  { %v5382_v38 = vpop.f32.mrf.mxu0 }
 0x739   :  { %6017 = vmatmul.bf16.gmra.mxu1 %v17432_v9  ;;  %6075 = vmatmul.bf16.gmra.mxu3 %v17432_v9 }
 0x73c   :  { %v5467_v10 = vpop.f32.mrf.mxu3 }
 0x73d   :  { %v5468_v58 = vadd.f32 %v5467_v10, %v5438_v27  ;;  %v6119_v27 = vpack.c.bf16 0.0, %v17367_v26 }
 0x73e   :  { %v5411_v16 = vpop.f32.mrf.mxu1  ;;  %v5440_v15 = vpop.f32.mrf.mxu2 }
 0x73f   :  { %v17817_v57 = vadd.f32 %v5411_v16, %v5382_v38 }
 0x740   :  { %v5641_v62 = vpop.f32.mrf.mxu0 }
 0x741   :  { %v5642_v37 = vadd.f32 %v5641_v62, %v17503_v31 }
 0x743   :  { %6322 = vmatmul.bf16.vlgmr.msrb.gmra.mxu0 %v16979_v42  ;;  %6380 = vmatmul.bf16.vlgmr.msrb.gmra.mxu2 %v16979_v42 }
 0x744   :  { %v5469_v29 = vpop.f32.mrf.mxu3 }
 0x745   :  { %v17822_v6 = vadd.f32 %v5469_v29, %v5440_v15  ;;  %v6120_v15 = vpack.c.bf16 0.0, %v17390_v33 }
 0x746   :  { %v5670_v49 = vpop.f32.mrf.mxu1  ;;  %v5699_v51 = vpop.f32.mrf.mxu2 }
 0x747   :  { %v17824_v46 = vadd.f32 %v5670_v49, %v5642_v37  ;;  %v5700_v9 = vadd.f32 %v5699_v51, %v17537_v53 }
 0x748   :  { %v17827_v30 = vpop.f32.mrf.mxu0 }
 0x749   :  { %6351 = vmatmul.bf16.vlgmr.msrb.gmra.mxu1 %v16988_v47  ;;  %6409 = vmatmul.bf16.vlgmr.msrb.gmra.mxu3 %v16988_v47 }
 0x74c   :  { %v5728_v31 = vpop.f32.mrf.mxu3 }
 0x74d   :  { %v17831_v12 = vadd.f32 %v5728_v31, %v5700_v9 }
 0x74e   :  { %v17833_v28 = vpop.f32.mrf.mxu1  ;;  %v17835_v42 = vpop.f32.mrf.mxu2 }
 0x750   :  { %v5646_v52 = vpop.f32.mrf.mxu0 }
 0x751   :  { %v5647_v63 = vadd.f32 %v5646_v52, %v17619_v44 }
 0x753   :  { %6327 = vmatmul.bf16.gmra.mxu0 %v17103_v34  ;;  %6385 = vmatmul.bf16.gmra.mxu2 %v17103_v34 }
 0x754   :  { %v17840_v53 = vpop.f32.mrf.mxu3 }
 0x756   :  { %v5675_v61 = vpop.f32.mrf.mxu1  ;;  %v5704_v59 = vpop.f32.mrf.mxu2 }
 0x757   :  { %v17842_v24 = vadd.f32 %v5675_v61, %v5647_v63  ;;  %v5705_v47 = vadd.f32 %v5704_v59, %v17647_v13 }
 0x758   :  { %v17845_v25 = vpop.f32.mrf.mxu0 }
 0x759   :  { %6356 = vmatmul.bf16.gmra.mxu1 %v17141_v43  ;;  %6414 = vmatmul.bf16.gmra.mxu3 %v17141_v43 }
 0x75c   :  { %v5733_v48 = vpop.f32.mrf.mxu3 }
 0x75d   :  { %v17849_v44 = vadd.f32 %v5733_v48, %v5705_v47 }
 0x75e   :  { %v17851_v54 = vpop.f32.mrf.mxu1  ;;  %v17853_v34 = vpop.f32.mrf.mxu2 }
 0x760   :  { %v5651_v7 = vpop.f32.mrf.mxu0 }
 0x761   :  { %v5652_v18 = vadd.f32 %v5651_v7, %v17735_v4 }
 0x763   :  { %6332 = vmatmul.bf16.gmra.mxu0 %v17305_v55  ;;  %6390 = vmatmul.bf16.gmra.mxu2 %v17305_v55 }
 0x764   :  { %v17858_v13 = vpop.f32.mrf.mxu3 }
 0x766   :  { %v5680_v3 = vpop.f32.mrf.mxu1  ;;  %v5709_v8 = vpop.f32.mrf.mxu2 }
 0x767   :  { %v17860_v0 = vadd.f32 %v5680_v3, %v5652_v18  ;;  %v5710_v43 = vadd.f32 %v5709_v8, %v17769_v5 }
 0x768   :  { %v17863_v11 = vpop.f32.mrf.mxu0 }
 0x769   :  { %6361 = vmatmul.bf16.gmra.mxu1 %v17327_v50  ;;  %6419 = vmatmul.bf16.gmra.mxu3 %v17327_v50 }
 0x76c   :  { %v5738_v23 = vpop.f32.mrf.mxu3 }
 0x76d   :  { %v17867_v4 = vadd.f32 %v5738_v23, %v5710_v43  ;;  %v11130_v23 = vld [vmem:[%s20251_s6 + $0x178] sm:$0xf0] }
 0x76e   :  { %v17869_v2 = vpop.f32.mrf.mxu1  ;;  %v17871_v55 = vpop.f32.mrf.mxu2 }
 0x770   :  { %v5656_v17 = vpop.f32.mrf.mxu0 }
 0x771   :  { %v5657_v36 = vadd.f32 %v5656_v17, %v5410_v60 }
 0x773   :  { %6337 = vmatmul.bf16.gmra.mxu0 %v6119_v27  ;;  %6395 = vmatmul.bf16.gmra.mxu2 %v6119_v27 }
 0x774   :  { %v17874_v5 = vpop.f32.mrf.mxu3 }
 0x776   :  { %v5685_v38 = vpop.f32.mrf.mxu1  ;;  %v5714_v10 = vpop.f32.mrf.mxu2 }
 0x777   :  { %v17876_v16 = vadd.f32 %v5685_v38, %v5657_v36  ;;  %v5715_v50 = vadd.f32 %v5714_v10, %v5468_v58  ;;  %v11194_v36 = vld [vmem:[%s20251_s6 + $0x1f8] sm:$0xf0] }
 0x778   :  { %v17879_v62 = vpop.f32.mrf.mxu0 }
 0x779   :  { %20527 = vst [vmem:[#allocation16_spill] sm:$0xff] %v17876_v16  ;;  %6366 = vmatmul.bf16.gmra.mxu1 %v6120_v15  ;;  %6424 = vmatmul.bf16.gmra.mxu3 %v6120_v15  ;;  %v12744_v16 = vld [vmem:[%s20251_s6 + $0x134] sm:$0xf0] }
 0x77c   :  { %v5743_v37 = vpop.f32.mrf.mxu3 }
 0x77d   :  { %v17881_v29 = vadd.f32 %v5743_v37, %v5715_v50  ;;  %v11128_v37 = vld [vmem:[%s20251_s6 + $0x170] sm:$0xf] }
 0x77e   :  { %v17883_v60 = vpop.f32.mrf.mxu1  ;;  %v17885_v26 = vpop.f32.mrf.mxu2 }
 0x77f   :  { %20528 = vst [vmem:[#allocation12_spill] sm:$0xff] %v17881_v29 }
 0x780   :  { %v5974_v49 = vpop.f32.mrf.mxu0 }
 0x784   :  { %v17887_v51 = vpop.f32.mrf.mxu3 }
 0x785   :  { %20529 = vst [vmem:[#allocation17_spill] sm:$0xff] %v17887_v51 }
 0x786   :  { %v6003_v9 = vpop.f32.mrf.mxu1  ;;  %v6032_v31 = vpop.f32.mrf.mxu2 }
 0x787   :  { %v6004_v52 = vadd.f32 %v6003_v9, %v5974_v49  ;;  %v12752_v49 = vld [vmem:[%s20251_s6 + $0x174] sm:$0xf0]  ;;  %v11192_v9 = vld [vmem:[%s20251_s6 + $0x1f0] sm:$0xf] }
 0x788   :  { %v17889_v58 = vpop.f32.mrf.mxu0 }
 0x789   :  { %v17892_v33 = vadd.f32 %v6004_v52, %v17824_v46  ;;  %v12751_v46 = vld [vmem:[%s20251_s6 + $0x174] sm:$0xf]  ;;  %v12768_v52 = vld [vmem:[%s20251_s6 + $0x1f4] sm:$0xf0] }
 0x78a   :  { %v11133_v17 = vor.u32 %v12751_v46, %v11130_v23  ;;  %v11193_v46 = vor.u32 %v12768_v52, %v11192_v9 }
 0x78c   :  { %v6061_v63 = vpop.f32.mrf.mxu3  ;;  %6828 = vmatpush.bf16.msra.mxu2 %v11133_v17  ;;  %v11186_v17 = vld [vmem:[%s20251_s6 + $0x1e8] sm:$0xf0]  ;;  %6809 = vmatpush.bf16.msra.mxu1 %v11193_v46 }
 0x78d   :  { %v6062_v61 = vadd.f32 %v6061_v63, %v6032_v31  ;;  %v11129_v31 = vor.u32 %v12752_v49, %v11128_v37  ;;  %v12749_v63 = vld [vmem:[%s20251_s6 + $0x164] sm:$0xf] }
 0x78e   :  { %v17894_v59 = vpop.f32.mrf.mxu1  ;;  %v17896_v47 = vpop.f32.mrf.mxu2 }
 0x78f   :  { %20530 = vst [vmem:[#allocation13_spill] sm:$0xff] %v17896_v47  ;;  %v17899_v48 = vadd.f32 %v6062_v61, %v17831_v12  ;;  %v12767_v12 = vld [vmem:[%s20251_s6 + $0x1f4] sm:$0xf]  ;;  %v11122_v61 = vld [vmem:[%s20251_s6 + $0x168] sm:$0xf0]  ;;  %6790 = vmatpush.bf16.msra.mxu0 %v11129_v31 }
 0x790   :  { %v17901_v7 = vpop.f32.mrf.mxu0  ;;  %v11197_v27 = vor.u32 %v12767_v12, %v11194_v36  ;;  %v11125_v23 = vor.u32 %v12749_v63, %v11122_v61  ;;  %v12765_v12 = vld [vmem:[%s20251_s6 + $0x1e4] sm:$0xf]  ;;  %v11120_v63 = vld [vmem:[%s20251_s6 + $0x160] sm:$0xf]  ;;  %v12750_v31 = vld [vmem:[%s20251_s6 + $0x164] sm:$0xf0] }
 0x791   :  { %v11121_v61 = vor.u32 %v12750_v31, %v11120_v63  ;;  %v11184_v31 = vld [vmem:[%s20251_s6 + $0x1e0] sm:$0xf] }
 0x792   :  { %6847 = vmatpush.bf16.msra.mxu3 %v11197_v27  ;;  %v11189_v27 = vor.u32 %v12765_v12, %v11186_v17  ;;  %6829 = vmatpush.bf16.msra.mxu2 %v11125_v23  ;;  %v11112_v17 = vld [vmem:[%s20251_s6 + $0x150] sm:$0xf] }
 0x793   :  { %6791 = vmatpush.bf16.msra.mxu0 %v11121_v61  ;;  %v12766_v61 = vld [vmem:[%s20251_s6 + $0x1e4] sm:$0xf0] }
 0x794   :  { %v17903_v18 = vpop.f32.mrf.mxu3  ;;  %v11185_v29 = vor.u32 %v12766_v61, %v11184_v31  ;;  %v11106_v31 = vld [vmem:[%s20251_s6 + $0x148] sm:$0xf0] }
 0x795   :  { %20531 = vst [vmem:[#allocation26_spill] sm:$0xff] %v17903_v18 }
 0x796   :  { %v17905_v3 = vpop.f32.mrf.mxu1  ;;  %v17907_v8 = vpop.f32.mrf.mxu2  ;;  %6848 = vmatpush.bf16.msra.mxu3 %v11189_v27  ;;  %6810 = vmatpush.bf16.msra.mxu1 %v11185_v29  ;;  %v12764_v29 = vld [vmem:[%s20251_s6 + $0x1d4] sm:$0xf0] }
 0x798   :  { %v17909_v43 = vpop.f32.mrf.mxu0 }
 0x79c   :  { %v17923_v38 = vpop.f32.mrf.mxu3 }
 0x79e   :  { %v17925_v10 = vpop.f32.mrf.mxu1  ;;  %v17927_v50 = vpop.f32.mrf.mxu2 }
 0x7a0   :  { %v5984_v15 = vpop.f32.mrf.mxu0 }
 0x7a4   :  { %v17953_v36 = vpop.f32.mrf.mxu3 }
 0x7a6   :  { %v6013_v37 = vpop.f32.mrf.mxu1  ;;  %v6042_v49 = vpop.f32.mrf.mxu2 }
 0x7a7   :  { %v6014_v20 = vadd.f32 %v6013_v37, %v5984_v15 }
 0x7a8   :  { %v17955_v9 = vpop.f32.mrf.mxu0 }
 0x7a9   :  { %v17958_v52 = vadd.f32 %v6014_v20, %v17860_v0  ;;  %v12747_v20 = vld [vmem:[%s20251_s6 + $0x154] sm:$0xf]  ;;  %v11114_v0 = vld [vmem:[%s20251_s6 + $0x158] sm:$0xf0] }
 0x7aa   :  { %v11117_v37 = vor.u32 %v12747_v20, %v11114_v0  ;;  %v11104_v0 = vld [vmem:[%s20251_s6 + $0x140] sm:$0xf] }
 0x7ac   :  { %v6071_v46 = vpop.f32.mrf.mxu3  ;;  %6830 = vmatpush.bf16.msra.mxu2 %v11117_v37 }
 0x7ad   :  { %v6072_v23 = vadd.f32 %v6071_v46, %v6042_v49  ;;  %v12748_v49 = vld [vmem:[%s20251_s6 + $0x154] sm:$0xf0] }
 0x7ae   :  { %v17966_v12 = vpop.f32.mrf.mxu1  ;;  %v17968_v15 = vpop.f32.mrf.mxu2  ;;  %v11113_v46 = vor.u32 %v12748_v49, %v11112_v17  ;;  %v12746_v17 = vld [vmem:[%s20251_s6 + $0x144] sm:$0xf0]  ;;  %v12745_v49 = vld [vmem:[%s20251_s6 + $0x144] sm:$0xf] }
 0x7af   :  { %20532 = vst [vmem:[#allocation36_spill] sm:$0xff] %v17966_v12  ;;  %v17980_v27 = vadd.f32 %v6072_v23, %v17867_v4  ;;  %v12763_v4 = vld [vmem:[%s20251_s6 + $0x1d4] sm:$0xf]  ;;  %v11178_v23 = vld [vmem:[%s20251_s6 + $0x1d8] sm:$0xf0]  ;;  %v11105_v37 = vor.u32 %v12746_v17, %v11104_v0 }
 0x7b0   :  { %20533 = vst [vmem:[#allocation27_spill] sm:$0xff] %v17968_v15  ;;  %v17985_v63 = vpop.f32.mrf.mxu0  ;;  %v11181_v20 = vor.u32 %v12763_v4, %v11178_v23  ;;  %6792 = vmatpush.bf16.msra.mxu0 %v11113_v46  ;;  %v11176_v46 = vld [vmem:[%s20251_s6 + $0x1d0] sm:$0xf]  ;;  %v11109_v4 = vor.u32 %v12745_v49, %v11106_v31  ;;  %v11098_v31 = vld [vmem:[%s20251_s6 + $0x138] sm:$0xf0] }
 0x7b1   :  { %20534 = vst [vmem:[#allocation37_spill] sm:$0xff] %v17980_v27  ;;  %v11177_v23 = vor.u32 %v12764_v29, %v11176_v46  ;;  %v12761_v46 = vld [vmem:[%s20251_s6 + $0x1c4] sm:$0xf]  ;;  %v11170_v29 = vld [vmem:[%s20251_s6 + $0x1c8] sm:$0xf0] }
 0x7b2   :  { %20535 = vst [vmem:[#allocation39_spill] sm:$0xff] %v17985_v63  ;;  %6849 = vmatpush.bf16.msra.mxu3 %v11181_v20  ;;  %6831 = vmatpush.bf16.msra.mxu2 %v11109_v4  ;;  %v11096_v20 = vld [vmem:[%s20251_s6 + $0x130] sm:$0xf]  ;;  %v12743_v63 = vld [vmem:[%s20251_s6 + $0x134] sm:$0xf] }
 0x7b3   :  { %6811 = vmatpush.bf16.msra.mxu1 %v11177_v23  ;;  %v11097_v49 = vor.u32 %v12744_v16, %v11096_v20  ;;  %v11101_v4 = vor.u32 %v12743_v63, %v11098_v31  ;;  %v11168_v23 = vld [vmem:[%s20251_s6 + $0x1c0] sm:$0xf]  ;;  %v11173_v16 = vor.u32 %v12761_v46, %v11170_v29  ;;  %v12762_v20 = vld [vmem:[%s20251_s6 + $0x1c4] sm:$0xf0]  ;;  %v12741_v31 = vld [vmem:[%s20251_s6 + $0x124] sm:$0xf] }
 0x7b4   :  { %v18011_v61 = vpop.f32.mrf.mxu3  ;;  %6793 = vmatpush.bf16.msra.mxu0 %v11105_v37  ;;  %v12742_v63 = vld [vmem:[%s20251_s6 + $0x124] sm:$0xf0] }
 0x7b5   :  { %20536 = vst [vmem:[#allocation38_spill] sm:$0xff] %v18011_v61 }
 0x7b6   :  { %v18019_v0 = vpop.f32.mrf.mxu1  ;;  %v18021_v17 = vpop.f32.mrf.mxu2  ;;  %6832 = vmatpush.bf16.msra.mxu2 %v11101_v4  ;;  %6850 = vmatpush.bf16.msra.mxu3 %v11173_v16 }
 0x7b7   :  { %20537 = vst [vmem:[#allocation40_spill] sm:$0xff] %v18019_v0  ;;  %v12740_v0 = vld [vmem:[%s20251_s6 + $0x114] sm:$0xf0] }
 0x7b8   :  { %20538 = vst [vmem:[#allocation41_spill] sm:$0xff] %v18021_v17  ;;  %v18035_v37 = vpop.f32.mrf.mxu0  ;;  %6794 = vmatpush.bf16.msra.mxu0 %v11097_v49  ;;  %v11088_v17 = vld [vmem:[%s20251_s6 + $0x120] sm:$0xf]  ;;  %v11090_v49 = vld [vmem:[%s20251_s6 + $0x128] sm:$0xf0] }
 0x7b9   :  { %20539 = vst [vmem:[#allocation34_spill] sm:$0xff] %v18035_v37  ;;  %v11169_v37 = vor.u32 %v12762_v20, %v11168_v23  ;;  %v11089_v46 = vor.u32 %v12742_v63, %v11088_v17  ;;  %v11093_v4 = vor.u32 %v12741_v31, %v11090_v49  ;;  %v12759_v23 = vld [vmem:[%s20251_s6 + $0x1b4] sm:$0xf]  ;;  %v11162_v20 = vld [vmem:[%s20251_s6 + $0x1b8] sm:$0xf0] }
 0x7ba   :  { %v11160_v17 = vld [vmem:[%s20251_s6 + $0x1b0] sm:$0xf]  ;;  %v11165_v16 = vor.u32 %v12759_v23, %v11162_v20  ;;  %v12760_v63 = vld [vmem:[%s20251_s6 + $0x1b4] sm:$0xf0]  ;;  %v12739_v23 = vld [vmem:[%s20251_s6 + $0x114] sm:$0xf] }
 0x7bb   :  { %6812 = vmatpush.bf16.msra.mxu1 %v11169_v37  ;;  %6833 = vmatpush.bf16.msra.mxu2 %v11093_v4  ;;  %v11161_v31 = vor.u32 %v12760_v63, %v11160_v17  ;;  %v11080_v49 = vld [vmem:[%s20251_s6 + $0x110] sm:$0xf]  ;;  %v11152_v63 = vld [vmem:[%s20251_s6 + $0x1a0] sm:$0xf] }
 0x7bc   :  { %v18061_v29 = vpop.f32.mrf.mxu3  ;;  %6795 = vmatpush.bf16.msra.mxu0 %v11089_v46  ;;  %6851 = vmatpush.bf16.msra.mxu3 %v11165_v16  ;;  %v11081_v20 = vor.u32 %v12740_v0, %v11080_v49  ;;  %v11082_v46 = vld [vmem:[%s20251_s6 + $0x118] sm:$0xf0]  ;;  %v12757_v16 = vld [vmem:[%s20251_s6 + $0x1a4] sm:$0xf]  ;;  %v11154_v49 = vld [vmem:[%s20251_s6 + $0x1a8] sm:$0xf0] }
 0x7bd   :  { %20540 = vst [vmem:[#allocation42_spill] sm:$0xff] %v18061_v29  ;;  %v11085_v17 = vor.u32 %v12739_v23, %v11082_v46  ;;  %v11072_v23 = vld [vmem:[%s20251_s6 + $0x100] sm:$0xf]  ;;  %v12738_v46 = vld [vmem:[%s20251_s6 + $0x104] sm:$0xf0] }
 0x7be   :  { %v18075_v29 = vpop.f32.mrf.mxu1  ;;  %v18077_v37 = vpop.f32.mrf.mxu2 }
 0x7bf   :  { %20541 = vst [vmem:[#allocation35_spill] sm:$0xff] %v18075_v29  ;;  %6813 = vmatpush.bf16.msra.mxu1 %v11161_v31  ;;  %6834 = vmatpush.bf16.msra.mxu2 %v11085_v17  ;;  %v11157_v31 = vor.u32 %v12757_v16, %v11154_v49  ;;  %v12737_v29 = vld [vmem:[%s20251_s6 + $0x104] sm:$0xf]  ;;  %v11144_v16 = vld [vmem:[%s20251_s6 + $0x190] sm:$0xf] }
 0x7c0   :  { %20542 = vst [vmem:[#allocation14_spill] sm:$0xff] %v18077_v37  ;;  %v6323_v4 = vpop.f32.mrf.mxu0  ;;  %v12758_v37 = vld [vmem:[%s20251_s6 + $0x1a4] sm:$0xf0]  ;;  %6796 = vmatpush.bf16.msra.mxu0 %v11081_v20  ;;  %v12756_v49 = vld [vmem:[%s20251_s6 + $0x194] sm:$0xf0] }
 0x7c1   :  { %v11153_v0 = vor.u32 %v12758_v37, %v11152_v63  ;;  %v11073_v37 = vor.u32 %v12738_v46, %v11072_v23  ;;  %v11074_v63 = vld [vmem:[%s20251_s6 + $0x108] sm:$0xf0]  ;;  %6852 = vmatpush.bf16.msra.mxu3 %v11157_v31  ;;  %v12755_v23 = vld [vmem:[%s20251_s6 + $0x194] sm:$0xf]  ;;  %v11145_v46 = vor.u32 %v12756_v49, %v11144_v16  ;;  %v11136_v16 = vld [vmem:[%s20251_s6 + $0x180] sm:$0xf] }
 0x7c2   :  { %v11077_v17 = vor.u32 %v12737_v29, %v11074_v63  ;;  %v11037_v63 = vld [vmem:[%s20249_s8 + $0x8] sm:$0xf] }
 0x7c3   :  { %6814 = vmatpush.bf16.msra.mxu1 %v11153_v0  ;;  %v12754_v49 = vld [vmem:[%s20251_s6 + $0x184] sm:$0xf0]  ;;  %v6471_v51 = vperm.slane %v11037_v63, 1  ;;  %v6450_v12 = vperm.slane %v11037_v63, 2 }
 0x7c4   :  { %v18115_v20 = vpop.f32.mrf.mxu3  ;;  %6797 = vmatpush.bf16.msra.mxu0 %v11073_v37  ;;  %6835 = vmatpush.bf16.msra.mxu2 %v11077_v17  ;;  %v12753_v37 = vld [vmem:[%s20251_s6 + $0x184] sm:$0xf]  ;;  %v11138_v17 = vld [vmem:[%s20251_s6 + $0x188] sm:$0xf0] }
 0x7c5   :  { %20543 = vst [vmem:[#allocation15_spill] sm:$0xff] %v18115_v20  ;;  %v11146_v20 = vld [vmem:[%s20251_s6 + $0x198] sm:$0xf0] }
 0x7c6   :  { %v6352_v0 = vpop.f32.mrf.mxu1  ;;  %v6381_v31 = vpop.f32.mrf.mxu2  ;;  %v11149_v29 = vor.u32 %v12755_v23, %v11146_v20  ;;  %v11137_v20 = vor.u32 %v12754_v49, %v11136_v16  ;;  %v11141_v23 = vor.u32 %v12753_v37, %v11138_v17  ;;  %v6009_v37 = vadd.f32 %v17905_v3, %v17901_v7 }
 0x7c7   :  { %6815 = vmatpush.bf16.msra.mxu1 %v11145_v46  ;;  %v6353_v46 = vadd.f32 %v6352_v0, %v6323_v4  ;;  %v18156_v0 = vperm.slane %v6471_v51, 1  ;;  %v5402_v7 = vadd.f32 %v17715_v41, %v17713_v40  ;;  %v5460_v51 = vadd.f32 %v17733_v22, %v17731_v39  ;;  %v12719_v40 = vld [vmem:[%s20251_s6 + $0x74] sm:$0xf] }
 0x7c8   :  { %v18132_v61 = vpop.f32.mrf.mxu0  ;;  %6853 = vmatpush.bf16.msra.mxu3 %v11149_v29  ;;  %v6449_v29 = vperm.slane %v11037_v63, 0  ;;  %v6085_v39 = vadd.f32 %v6009_v37, %v17842_v24 }
 0x7c9   :  { %20544 = vst [vmem:[#allocation22_spill] sm:$0xff] %v18132_v61  ;;  %v6430_v18 = vadd.f32 %v6353_v46, %v17892_v33  ;;  %v5455_v33 = vadd.f32 %v17617_v35, %v17615_v32  ;;  %v18165_v46 = vperm.slane %v6450_v12, 0  ;;  %v11256_v32 = vld [vmem:[%s20251_s6 + $0x70] sm:$0xf]  ;;  %v12720_v35 = vld [vmem:[%s20251_s6 + $0x74] sm:$0xf0] }
 0x7ca   :  { %v18151_v47 = vperm.slane %v6449_v29, 0 }
 0x7cb   :  { %6816 = vmatpush.bf16.msra.mxu1 %v11137_v20  ;;  %v5397_v20 = vadd.f32 %v17599_v56, %v17597_v1  ;;  %v5702_v41 = vadd.f32 %v17835_v42, %v5455_v33  ;;  %v5465_v42 = vadd.f32 %v17813_v21, %v17809_v14  ;;  %v12718_v14 = vld [vmem:[%s20251_s6 + $0x64] sm:$0xf0]  ;;  %v12717_v21 = vld [vmem:[%s20251_s6 + $0x64] sm:$0xf] }
 0x7cc   :  { %v6410_v61 = vpop.f32.mrf.mxu3  ;;  %6854 = vmatpush.bf16.msra.mxu3 %v11141_v23  ;;  %v6455_v4 = vmul.f32 %v18151_v47, %v6430_v18  ;;  %v5407_v18 = vadd.f32 %v17807_v45, %v17803_v19  ;;  %v11258_v45 = vld [vmem:[%s20251_s6 + $0x78] sm:$0xf0] }
 0x7cd   :  { %v6411_v49 = vadd.f32 %v6410_v61, %v6381_v31  ;;  %v6472_v61 = vperm.slane %v11037_v63, 3  ;;  %v5644_v1 = vadd.f32 %v17827_v30, %v5397_v20  ;;  %v5649_v30 = vadd.f32 %v17845_v25, %v5402_v7 }
 0x7ce   :  { %v18146_v15 = vpop.f32.mrf.mxu1  ;;  %v18148_v27 = vpop.f32.mrf.mxu2  ;;  %v18186_v22 = vadd.f32 %v18156_v0, %v6455_v4  ;;  %v11257_v31 = vor.u32 %v12720_v35, %v11256_v32  ;;  %v11261_v63 = vor.u32 %v12719_v40, %v11258_v45  ;;  %v18203_v37 = vadd.f32 %v17840_v53, %v5702_v41  ;;  %v11250_v4 = vld [vmem:[%s20251_s6 + $0x68] sm:$0xf0] }
 0x7cf   :  { %v6431_v23 = vadd.f32 %v6411_v49, %v17899_v48  ;;  %v6067_v48 = vadd.f32 %v17923_v38, %v17907_v8  ;;  %v18197_v29 = vperm.slane %v6472_v61, 1  ;;  %v18200_v49 = vadd.f32 %v17833_v28, %v5644_v1  ;;  %v11248_v8 = vld [vmem:[%s20251_s6 + $0x60] sm:$0xf]  ;;  %v11320_v1 = vld [vmem:[%s20251_s6 + $0xf0] sm:$0xf] }
 0x7d0   :  { %v6328_v16 = vpop.f32.mrf.mxu0  ;;  %v5678_v25 = vadd.f32 %v17851_v54, %v5649_v30  ;;  %7026 = vmatpush.bf16.msrb.mxu0 %v11257_v31  ;;  %7064 = vmatpush.bf16.msrb.mxu2 %v11261_v63  ;;  %v6011_v28 = vadd.f32 %v17925_v10, %v17909_v43  ;;  %v6493_v53 = vmul.f32 0.2, %v18186_v22  ;;  %v11249_v38 = vor.u32 %v12718_v14, %v11248_v8  ;;  %v12735_v43 = vld [vmem:[%s20251_s6 + $0xf4] sm:$0xf]  ;;  %v11322_v10 = vld [vmem:[%s20251_s6 + $0xf8] sm:$0xf0] }
 0x7d1   :  { %v6456_v24 = vmul.f32 %v18165_v46, %v6431_v23  ;;  %v5707_v20 = vadd.f32 %v17853_v34, %v5460_v51  ;;  %v5654_v33 = vadd.f32 %v17863_v11, %v5407_v18  ;;  %v6086_v23 = vadd.f32 %v6067_v48, %v17849_v44  ;;  %v12736_v18 = vld [vmem:[%s20251_s6 + $0xf4] sm:$0xf0]  ;;  %v11242_v48 = vld [vmem:[%s20251_s6 + $0x58] sm:$0xf0]  ;;  %v11312_v14 = vld [vmem:[%s20251_s6 + $0xe0] sm:$0xf] }
 0x7d2   :  { %v11253_v7 = vor.u32 %v12717_v21, %v11250_v4  ;;  %v11325_v51 = vor.u32 %v12735_v43, %v11322_v10  ;;  %v11321_v41 = vor.u32 %v12736_v18, %v11320_v1  ;;  %v6069_v31 = vadd.f32 %v17953_v36, %v17927_v50  ;;  %v11232_v4 = vld [vmem:[%s20251_s6 + $0x40] sm:$0xf]  ;;  %v11304_v18 = vld [vmem:[%s20251_s6 + $0xd0] sm:$0xf] }
 0x7d3   :  { %v18235_v34 = vadd.f32 %v18197_v29, %v6456_v24  ;;  %v18243_v32 = vadd.f32 %v17869_v2, %v5654_v33  ;;  %v6509_v63 = vmax.f32 %v18186_v22, %v6493_v53  ;;  %v5712_v53 = vadd.f32 %v17871_v55, %v5465_v42  ;;  %v12713_v33 = vld [vmem:[%s20251_s6 + $0x44] sm:$0xf] }
 0x7d4   :  { %v18160_v17 = vpop.f32.mrf.mxu3  ;;  %7027 = vmatpush.bf16.msrb.mxu0 %v11249_v38  ;;  %7065 = vmatpush.bf16.msrb.mxu2 %v11253_v7  ;;  %v11234_v7 = vld [vmem:[%s20251_s6 + $0x48] sm:$0xf0] }
 0x7d5   :  { %7083 = vmatpush.bf16.msrb.mxu3 %v11325_v51  ;;  %7045 = vmatpush.bf16.msrb.mxu1 %v11321_v41  ;;  %v6494_v50 = vmul.f32 0.2, %v18235_v34  ;;  %v18293_v43 = vadd.f32 %v17874_v5, %v5712_v53  ;;  %v11306_v51 = vld [vmem:[%s20251_s6 + $0xd8] sm:$0xf0] }
 0x7d6   :  { %v6357_v56 = vpop.f32.mrf.mxu1  ;;  %v6386_v3 = vpop.f32.mrf.mxu2 }
 0x7d7   :  { %v6358_v19 = vadd.f32 %v6357_v56, %v6328_v16  ;;  %v5736_v56 = vadd.f32 %v17858_v13, %v5707_v20  ;;  %v12715_v13 = vld [vmem:[%s20251_s6 + $0x54] sm:$0xf]  ;;  %v12714_v20 = vld [vmem:[%s20251_s6 + $0x44] sm:$0xf0] }
 0x7d8   :  { %v6330_v12 = vpop.f32.mrf.mxu0  ;;  %v11245_v8 = vor.u32 %v12715_v13, %v11242_v48  ;;  %v6510_v13 = vmax.f32 %v18235_v34, %v6494_v50  ;;  %v12711_v48 = vld [vmem:[%s20251_s6 + $0x34] sm:$0xf] }
 0x7d9   :  { %v6434_v16 = vadd.f32 %v6358_v19, %v6085_v39  ;;  %v11240_v39 = vld [vmem:[%s20251_s6 + $0x50] sm:$0xf]  ;;  %v6087_v19 = vadd.f32 %v6011_v28, %v5678_v25  ;;  %v12733_v25 = vld [vmem:[%s20251_s6 + $0xe4] sm:$0xf]  ;;  %v12734_v28 = vld [vmem:[%s20251_s6 + $0xe4] sm:$0xf0]  ;;  %v6088_v10 = vadd.f32 %v6069_v31, %v5736_v56 }
 0x7da   :  { %7066 = vmatpush.bf16.msrb.mxu2 %v11245_v8  ;;  %v11313_v38 = vor.u32 %v12734_v28, %v11312_v14  ;;  %v6006_v8 = vadd.f32 %v17894_v59, %v17889_v58  ;;  %v11296_v14 = vld [vmem:[%s20251_s6 + $0xc0] sm:$0xf]  ;;  %v20545_v28 = vld [vmem:[#allocation36_spill] sm:$0xff] }
 0x7db   :  { %v6459_v54 = vmul.f32 %v18151_v47, %v6434_v16  ;;  %v6016_v53 = vadd.f32 %v20545_v28, %v17955_v9  ;;  %v12705_v28 = vld [vmem:[%s20251_s6 + $0x4] sm:$0xf] }
 0x7dc   :  { %v6415_v61 = vpop.f32.mrf.mxu3  ;;  %7046 = vmatpush.bf16.msrb.mxu1 %v11313_v38 }
 0x7dd   :  { %v6481_v11 = vadd.f32 %v18156_v0, %v6459_v54  ;;  %v6416_v44 = vadd.f32 %v6415_v61, %v6386_v3  ;;  %v12716_v3 = vld [vmem:[%s20251_s6 + $0x54] sm:$0xf0]  ;;  %v11233_v61 = vor.u32 %v12714_v20, %v11232_v4  ;;  %v11216_v4 = vld [vmem:[%s20251_s6 + $0x20] sm:$0xf]  ;;  %v12709_v20 = vld [vmem:[%s20251_s6 + $0x24] sm:$0xf] }
 0x7de   :  { %v6359_v35 = vpop.f32.mrf.mxu1  ;;  %v6388_v40 = vpop.f32.mrf.mxu2  ;;  %v11241_v16 = vor.u32 %v12716_v3, %v11240_v39  ;;  %v12732_v39 = vld [vmem:[%s20251_s6 + $0xd4] sm:$0xf0]  ;;  %v5659_v3 = vadd.f32 %v17879_v62, %v17817_v57 }
 0x7df   :  { %v6497_v2 = vmul.f32 0.2, %v6481_v11  ;;  %v6435_v45 = vadd.f32 %v6416_v44, %v6086_v23  ;;  %v6360_v30 = vadd.f32 %v6359_v35, %v6330_v12  ;;  %v11314_v12 = vld [vmem:[%s20251_s6 + $0xe8] sm:$0xf0]  ;;  %v12731_v44 = vld [vmem:[%s20251_s6 + $0xd4] sm:$0xf] }
 0x7e0   :  { %v6333_v24 = vpop.f32.mrf.mxu0  ;;  %7028 = vmatpush.bf16.msrb.mxu0 %v11241_v16  ;;  %v11317_v54 = vor.u32 %v12733_v25, %v11314_v12  ;;  %v11309_v41 = vor.u32 %v12731_v44, %v11306_v51  ;;  %v18328_v16 = vadd.f32 %v17883_v60, %v5659_v3  ;;  %v12729_v12 = vld [vmem:[%s20251_s6 + $0xc4] sm:$0xf]  ;;  %v12728_v44 = vld [vmem:[%s20251_s6 + $0xb4] sm:$0xf0]  ;;  %v11208_v51 = vld [vmem:[%s20251_s6 + $0x10] sm:$0xf] }
 0x7e1   :  { %v18270_v36 = vmax.f32 %v6481_v11, %v6497_v2  ;;  %v6460_v22 = vmul.f32 %v18165_v46, %v6435_v45  ;;  %v6436_v21 = vadd.f32 %v6360_v30, %v6087_v19  ;;  %v11237_v11 = vor.u32 %v12713_v33, %v11234_v7  ;;  %v12712_v30 = vld [vmem:[%s20251_s6 + $0x34] sm:$0xf0]  ;;  %v11218_v33 = vld [vmem:[%s20251_s6 + $0x28] sm:$0xf0]  ;;  %v12707_v3 = vld [vmem:[%s20251_s6 + $0x14] sm:$0xf] }
 0x7e2   :  { %7084 = vmatpush.bf16.msrb.mxu3 %v11317_v54  ;;  %v11305_v45 = vor.u32 %v12732_v39, %v11304_v18  ;;  %v18386_v18 = vadd.f32 %v6006_v8, %v18200_v49  ;;  %v12708_v39 = vld [vmem:[%s20251_s6 + $0x14] sm:$0xf0] }
 0x7e3   :  { %v6593_v23 = vpack.c.bf16 %v18270_v36, %v6509_v63  ;;  %v6482_v55 = vadd.f32 %v18197_v29, %v6460_v22  ;;  %v6461_v42 = vmul.f32 %v18151_v47, %v6436_v21  ;;  %7067 = vmatpush.bf16.msrb.mxu2 %v11237_v11  ;;  %v11226_v63 = vld [vmem:[%s20251_s6 + $0x38] sm:$0xf0]  ;;  %v12730_v22 = vld [vmem:[%s20251_s6 + $0xc4] sm:$0xf0]  ;;  %v5717_v21 = vadd.f32 %v17885_v26, %v17822_v6  ;;  %v11288_v11 = vld [vmem:[%s20251_s6 + $0xb0] sm:$0xf] }
 0x7e4   :  { %v6417_v1 = vpop.f32.mrf.mxu3  ;;  %7029 = vmatpush.bf16.msrb.mxu0 %v11233_v61  ;;  %7047 = vmatpush.bf16.msrb.mxu1 %v11305_v45  ;;  %v11229_v25 = vor.u32 %v12711_v48, %v11226_v63  ;;  %v11297_v38 = vor.u32 %v12730_v22, %v11296_v14  ;;  %v20548_v45 = vld [vmem:[#allocation26_spill] sm:$0xff]  ;;  %v12725_v48 = vld [vmem:[%s20251_s6 + $0xa4] sm:$0xf]  ;;  %v11200_v14 = vld [vmem:[%s20251_s6] sm:$0xf] }
 0x7e5   :  { %v6498_v35 = vmul.f32 0.2, %v6482_v55  ;;  %v18305_v5 = vadd.f32 %v18156_v0, %v6461_v42  ;;  %v6418_v56 = vadd.f32 %v6417_v1, %v6388_v40  ;;  %6798 = vmatmul.bf16.vlgmr.msra.gmra.mxu0 %v6593_v23  ;;  %6836 = vmatmul.bf16.vlgmr.msra.gmra.mxu2 %v6593_v23  ;;  %v11224_v40 = vld [vmem:[%s20251_s6 + $0x30] sm:$0xf]  ;;  %v12727_v23 = vld [vmem:[%s20251_s6 + $0xb4] sm:$0xf] }
 0x7e6   :  { %v6362_v19 = vpop.f32.mrf.mxu1  ;;  %v6391_v2 = vpop.f32.mrf.mxu2  ;;  %v11225_v31 = vor.u32 %v12712_v30, %v11224_v40  ;;  %7085 = vmatpush.bf16.msrb.mxu3 %v11309_v41  ;;  %v20546_v42 = vld [vmem:[#allocation17_spill] sm:$0xff]  ;;  %v11289_v41 = vor.u32 %v12728_v44, %v11288_v11  ;;  %v12724_v11 = vld [vmem:[%s20251_s6 + $0x94] sm:$0xf0] }
 0x7e7   :  { %v18322_v57 = vmax.f32 %v6482_v55, %v6498_v35  ;;  %v6437_v62 = vadd.f32 %v6418_v56, %v6088_v10  ;;  %v6363_v34 = vadd.f32 %v6362_v19, %v6333_v24  ;;  %v11298_v24 = vld [vmem:[%s20251_s6 + $0xc8] sm:$0xf0]  ;;  %7068 = vmatpush.bf16.msrb.mxu2 %v11229_v25  ;;  %v11290_v55 = vld [vmem:[%s20251_s6 + $0xb8] sm:$0xf0]  ;;  %v18374_v61 = vadd.f32 %v20546_v42, %v5717_v21  ;;  %v20547_v19 = vld [vmem:[#allocation13_spill] sm:$0xff] }
 0x7e8   :  { %v11301_v59 = vor.u32 %v12729_v12, %v11298_v24  ;;  %v6335_v54 = vpop.f32.mrf.mxu0  ;;  %7030 = vmatpush.bf16.msrb.mxu0 %v11225_v31  ;;  %7048 = vmatpush.bf16.msrb.mxu1 %v11297_v38  ;;  %v11221_v10 = vor.u32 %v12709_v20, %v11218_v33  ;;  %v11293_v1 = vor.u32 %v12727_v23, %v11290_v55  ;;  %v20549_v63 = vld [vmem:[#allocation37_spill] sm:$0xff]  ;;  %v12726_v24 = vld [vmem:[%s20251_s6 + $0xa4] sm:$0xf0]  ;;  %v20553_v38 = vld [vmem:[#allocation40_spill] sm:$0xff] }
 0x7e9   :  { %v6594_v60 = vpack.c.bf16 %v18322_v57, %v6510_v13  ;;  %v6462_v50 = vmul.f32 %v18165_v46, %v6437_v62  ;;  %v6438_v58 = vadd.f32 %v6363_v34, %v17958_v52  ;;  %v12710_v52 = vld [vmem:[%s20251_s6 + $0x24] sm:$0xf0]  ;;  %v11210_v13 = vld [vmem:[%s20251_s6 + $0x18] sm:$0xf0]  ;;  %v6064_v49 = vadd.f32 %v20548_v45, %v20547_v19  ;;  %v11282_v62 = vld [vmem:[%s20251_s6 + $0xa8] sm:$0xf0] }
 0x7ea   :  { %v11217_v9 = vor.u32 %v12710_v52, %v11216_v4  ;;  %7086 = vmatpush.bf16.msrb.mxu3 %v11301_v59  ;;  %v11213_v30 = vor.u32 %v12707_v3, %v11210_v13  ;;  %v11280_v34 = vld [vmem:[%s20251_s6 + $0xa0] sm:$0xf]  ;;  %v6091_v31 = vadd.f32 %v6016_v53, %v18243_v32  ;;  %v11285_v22 = vor.u32 %v12725_v48, %v11282_v62  ;;  %v12706_v21 = vld [vmem:[%s20251_s6 + $0x4] sm:$0xf0]  ;;  %v11202_v53 = vld [vmem:[%s20251_s6 + $0x8] sm:$0xf0] }
 0x7eb   :  { %v18361_v6 = vadd.f32 %v18197_v29, %v6462_v50  ;;  %v6463_v26 = vmul.f32 %v18151_v47, %v6438_v58  ;;  %6817 = vmatmul.bf16.vlgmr.msra.gmra.mxu1 %v6594_v60  ;;  %6855 = vmatmul.bf16.vlgmr.msra.gmra.mxu3 %v6594_v60  ;;  %v20550_v60 = vld [vmem:[#allocation27_spill] sm:$0xff]  ;;  %v20551_v50 = vld [vmem:[#allocation38_spill] sm:$0xff]  ;;  %v11281_v32 = vor.u32 %v12726_v24, %v11280_v34  ;;  %v11274_v33 = vld [vmem:[%s20251_s6 + $0x98] sm:$0xf0]  ;;  %v6499_v45 = vmul.f32 0.2, %v18305_v5 }
 0x7ec   :  { %v6420_v7 = vpop.f32.mrf.mxu3  ;;  %7031 = vmatpush.bf16.msrb.mxu0 %v11217_v9  ;;  %7069 = vmatpush.bf16.msrb.mxu2 %v11221_v10  ;;  %v6074_v58 = vadd.f32 %v20551_v50, %v20550_v60  ;;  %v12723_v9 = vld [vmem:[%s20251_s6 + $0x94] sm:$0xf]  ;;  %v11272_v23 = vld [vmem:[%s20251_s6 + $0x90] sm:$0xf]  ;;  %v20554_v55 = vld [vmem:[#allocation41_spill] sm:$0xff]  ;;  %v11201_v10 = vor.u32 %v12706_v21, %v11200_v14  ;;  %v6084_v44 = vadd.f32 %v6064_v49, %v18203_v37 }
 0x7ed   :  { %v6485_v35 = vadd.f32 %v18156_v0, %v6463_v26  ;;  %v6421_v56 = vadd.f32 %v6420_v7, %v6391_v2  ;;  %v11209_v2 = vor.u32 %v12708_v39, %v11208_v51  ;;  %7049 = vmatpush.bf16.msrb.mxu1 %v11289_v41  ;;  %v20555_v42 = vld [vmem:[#allocation42_spill] sm:$0xff]  ;;  %v11277_v13 = vor.u32 %v12723_v9, %v11274_v33  ;;  %v20557_v48 = vld [vmem:[#allocation12_spill] sm:$0xff]  ;;  %v12721_v24 = vld [vmem:[%s20251_s6 + $0x84] sm:$0xf] }
 0x7ee   :  { %v6364_v40 = vpop.f32.mrf.mxu1  ;;  %v6393_v59 = vpop.f32.mrf.mxu2  ;;  %7087 = vmatpush.bf16.msrb.mxu3 %v11293_v1  ;;  %v6077_v7 = vadd.f32 %v20555_v42, %v20554_v55  ;;  %v11205_v1 = vor.u32 %v12705_v28, %v11202_v53  ;;  %v6092_v41 = vadd.f32 %v6074_v58, %v18293_v43  ;;  %v11273_v19 = vor.u32 %v12724_v11, %v11272_v23  ;;  %v12784_v43 = vld [vmem:[%s20251_s6 + $0x274] sm:$0xf0]  ;;  %v20558_v34 = vld [vmem:[#allocation22_spill] sm:$0xff]  ;;  %v11408_v53 = vld [vmem:[%s20251_s6 + $0x260] sm:$0xf] }
 0x7ef   :  { %v6439_v8 = vadd.f32 %v6421_v56, %v20549_v63  ;;  %v6365_v25 = vadd.f32 %v6364_v40, %v6335_v54  ;;  %v6501_v12 = vmul.f32 0.2, %v6485_v35  ;;  %v20552_v54 = vld [vmem:[#allocation39_spill] sm:$0xff]  ;;  %v20556_v40 = vld [vmem:[#allocation16_spill] sm:$0xff]  ;;  %v11266_v58 = vld [vmem:[%s20251_s6 + $0x88] sm:$0xf0] }
 0x7f0   :  { %v6019_v4 = vadd.f32 %v20553_v38, %v20552_v54  ;;  %7032 = vmatpush.bf16.msrb.mxu0 %v11209_v2  ;;  %7070 = vmatpush.bf16.msrb.mxu2 %v11213_v30  ;;  %v6338_v39 = vpop.f32.mrf.mxu0  ;;  %v18465_v62 = vadd.f32 %v6077_v7, %v20557_v48  ;;  %v11269_v21 = vor.u32 %v12721_v24, %v11266_v58  ;;  %v12782_v54 = vld [vmem:[%s20251_s6 + $0x264] sm:$0xf0]  ;;  %v12781_v38 = vld [vmem:[%s20251_s6 + $0x264] sm:$0xf]  ;;  %v20560_v33 = vld [vmem:[#allocation35_spill] sm:$0xff] }
 0x7f1   :  { %v6464_v52 = vmul.f32 %v18165_v46, %v6439_v8  ;;  %v6440_v20 = vadd.f32 %v6365_v25, %v6091_v31  ;;  %v18431_v26 = vmax.f32 %v6485_v35, %v6501_v12  ;;  %7050 = vmatpush.bf16.msrb.mxu1 %v11281_v32  ;;  %v6355_v31 = vadd.f32 %v18146_v15, %v20558_v34  ;;  %v12783_v25 = vld [vmem:[%s20251_s6 + $0x274] sm:$0xf]  ;;  %v11418_v12 = vld [vmem:[%s20251_s6 + $0x278] sm:$0xf0]  ;;  %v20559_v9 = vld [vmem:[#allocation34_spill] sm:$0xff] }
 0x7f2   :  { %7088 = vmatpush.bf16.msrb.mxu3 %v11285_v22  ;;  %v6093_v37 = vadd.f32 %v6019_v4, %v20556_v40  ;;  %v11421_v15 = vor.u32 %v12783_v25, %v11418_v12  ;;  %v12722_v22 = vld [vmem:[%s20251_s6 + $0x84] sm:$0xf0]  ;;  %v6413_v32 = vadd.f32 %v18160_v17, %v18148_v27  ;;  %v11410_v17 = vld [vmem:[%s20251_s6 + $0x268] sm:$0xf0]  ;;  %v6021_v23 = vadd.f32 %v20560_v33, %v20559_v9  ;;  %v11400_v40 = vld [vmem:[%s20251_s6 + $0x250] sm:$0xf] }
 0x7f3   :  { %v6486_v51 = vadd.f32 %v18197_v29, %v6464_v52  ;;  %v6465_v35 = vmul.f32 %v18151_v47, %v6440_v20  ;;  %v18452_v56 = vpack.c.bf16 %v18431_v26, %v18270_v36  ;;  %v11416_v36 = vld [vmem:[%s20251_s6 + $0x270] sm:$0xf]  ;;  %v11409_v42 = vor.u32 %v12782_v54, %v11408_v53  ;;  %v12797_v48 = vld [vmem:[%s20251_s6 + $0x2e4] sm:$0xf]  ;;  %v11472_v25 = vld [vmem:[%s20251_s6 + $0x2e0] sm:$0xf] }
 0x7f4   :  { %v6422_v3 = vpop.f32.mrf.mxu3  ;;  %7033 = vmatpush.bf16.msrb.mxu0 %v11201_v10  ;;  %7071 = vmatpush.bf16.msrb.mxu2 %v11205_v1  ;;  %v11417_v8 = vor.u32 %v12784_v43, %v11416_v36  ;;  %v11413_v7 = vor.u32 %v12781_v38, %v11410_v17  ;;  %v18511_v10 = vmul.f32 0.2, %v18361_v6  ;;  %v6432_v1 = vadd.f32 %v6355_v31, %v18386_v18  ;;  %v12779_v36 = vld [vmem:[%s20251_s6 + $0x254] sm:$0xf]  ;;  %v11402_v43 = vld [vmem:[%s20251_s6 + $0x258] sm:$0xf0] }
 0x7f5   :  { %v6487_v49 = vadd.f32 %v18156_v0, %v6465_v35  ;;  %v6423_v2 = vadd.f32 %v6422_v3, %v6393_v59  ;;  %v6502_v30 = vmul.f32 0.2, %v6486_v51  ;;  %v11264_v59 = vld [vmem:[%s20251_s6 + $0x80] sm:$0xf]  ;;  %7051 = vmatpush.bf16.msrb.mxu1 %v11273_v19  ;;  %v11482_v35 = vld [vmem:[%s20251_s6 + $0x2f8] sm:$0xf0]  ;;  %v6433_v18 = vadd.f32 %v6413_v32, %v6084_v44 }
 0x7f6   :  { %v6367_v63 = vpop.f32.mrf.mxu1  ;;  %7089 = vmatpush.bf16.msrb.mxu3 %v11277_v13  ;;  %v11265_v28 = vor.u32 %v12722_v22, %v11264_v59  ;;  %v6396_v55 = vpop.f32.mrf.mxu2  ;;  %v12800_v19 = vld [vmem:[%s20251_s6 + $0x2f4] sm:$0xf0]  ;;  %v12798_v12 = vld [vmem:[%s20251_s6 + $0x2e4] sm:$0xf0]  ;;  %v11392_v58 = vld [vmem:[%s20251_s6 + $0x240] sm:$0xf] }
 0x7f7   :  { %v6441_v14 = vadd.f32 %v6423_v2, %v6092_v41  ;;  %v6368_v60 = vadd.f32 %v6367_v63, %v6338_v39  ;;  %v18478_v50 = vmax.f32 %v6486_v51, %v6502_v30  ;;  %v6503_v20 = vmul.f32 0.2, %v6487_v49  ;;  %v12799_v51 = vld [vmem:[%s20251_s6 + $0x2f4] sm:$0xf]  ;;  %v11480_v41 = vld [vmem:[%s20251_s6 + $0x2f0] sm:$0xf] }
 0x7f8   :  { %7307 = vmatpush.bf16.msra.mxu0 %v11417_v8  ;;  %7345 = vmatpush.bf16.msra.mxu2 %v11421_v15  ;;  %v11485_v13 = vor.u32 %v12799_v51, %v11482_v35  ;;  %v11481_v30 = vor.u32 %v12800_v19, %v11480_v41  ;;  %v11405_v63 = vor.u32 %v12779_v36, %v11402_v43  ;;  %v11474_v8 = vld [vmem:[%s20251_s6 + $0x2e8] sm:$0xf0]  ;;  %v12778_v59 = vld [vmem:[%s20251_s6 + $0x244] sm:$0xf0]  ;;  %v20562_v32 = vld [vmem:[#allocation15_spill] sm:$0xff] }
 0x7f9   :  { %v6466_v4 = vmul.f32 %v18165_v46, %v6441_v14  ;;  %v6442_v52 = vadd.f32 %v6368_v60, %v6093_v37  ;;  %v18503_v27 = vpack.c.bf16 %v18478_v50, %v18322_v57  ;;  %v18527_v39 = vmax.f32 %v6487_v49, %v6503_v20  ;;  %7052 = vmatpush.bf16.msrb.mxu1 %v11265_v28  ;;  %v12780_v37 = vld [vmem:[%s20251_s6 + $0x254] sm:$0xf0]  ;;  %v20561_v22 = vld [vmem:[#allocation14_spill] sm:$0xff]  ;;  %v12777_v54 = vld [vmem:[%s20251_s6 + $0x244] sm:$0xf] }
 0x7fa   :  { %7090 = vmatpush.bf16.msrb.mxu3 %v11269_v21  ;;  %v18539_v49 = vmax.f32 %v18305_v5, %v6499_v45  ;;  %v6095_v5 = vadd.f32 %v6021_v23, %v18328_v16  ;;  %v6340_v45 = vpop.f32.mrf.mxu0  ;;  %v11401_v31 = vor.u32 %v12780_v37, %v11400_v40  ;;  %v11477_v15 = vor.u32 %v12797_v48, %v11474_v8  ;;  %v11394_v38 = vld [vmem:[%s20251_s6 + $0x248] sm:$0xf0]  ;;  %v11466_v9 = vld [vmem:[%s20251_s6 + $0x2d8] sm:$0xf0]  ;;  %v11464_v33 = vld [vmem:[%s20251_s6 + $0x2d0] sm:$0xf] }
 0x7fb   :  { %v18515_v57 = vadd.f32 %v18197_v29, %v6466_v4  ;;  %v6467_v11 = vmul.f32 %v18151_v47, %v6442_v52  ;;  %v6079_v21 = vadd.f32 %v20562_v32, %v20561_v22  ;;  %v6457_v28 = vmul.f32 %v18151_v47, %v6432_v1  ;;  %v12795_v4 = vld [vmem:[%s20251_s6 + $0x2d4] sm:$0xf]  ;;  %v12796_v23 = vld [vmem:[%s20251_s6 + $0x2d4] sm:$0xf0] }
 0x7fc   :  { %v6425_v3 = vpop.f32.mrf.mxu3  ;;  %7308 = vmatpush.bf16.msra.mxu0 %v11409_v42  ;;  %7346 = vmatpush.bf16.msra.mxu2 %v11413_v7  ;;  %v18563_v16 = vpack.c.bf16 %v18527_v39, %v18539_v49  ;;  %v6458_v53 = vmul.f32 %v18165_v46, %v6433_v18  ;;  %v11397_v42 = vor.u32 %v12777_v54, %v11394_v38  ;;  %v11368_v38 = vld [vmem:[%s20251_s6 + $0x210] sm:$0xf] }
 0x7fd   :  { %v6489_v44 = vadd.f32 %v18156_v0, %v6467_v11  ;;  %v6426_v2 = vadd.f32 %v6425_v3, %v6396_v55  ;;  %7326 = vmatpush.bf16.msra.mxu1 %v11481_v30  ;;  %v11393_v55 = vor.u32 %v12778_v59, %v11392_v58  ;;  %v11469_v7 = vor.u32 %v12795_v4, %v11466_v9  ;;  %v12793_v30 = vld [vmem:[%s20251_s6 + $0x2c4] sm:$0xf]  ;;  %v12772_v4 = vld [vmem:[%s20251_s6 + $0x214] sm:$0xf0]  ;;  %v11370_v9 = vld [vmem:[%s20251_s6 + $0x218] sm:$0xf0] }
 0x7fe   :  { %v6369_v34 = vpop.f32.mrf.mxu1  ;;  %7364 = vmatpush.bf16.msra.mxu3 %v11485_v13  ;;  %v6504_v1 = vmul.f32 0.2, %v18515_v57  ;;  %v11465_v41 = vor.u32 %v12796_v23, %v11464_v33  ;;  %v6096_v18 = vadd.f32 %v6079_v21, %v18374_v61  ;;  %v6398_v3 = vpop.f32.mrf.mxu2  ;;  %v18605_v19 = vmax.f32 %v18361_v6, %v18511_v10  ;;  %v11384_v61 = vld [vmem:[%s20251_s6 + $0x230] sm:$0xf]  ;;  %v12776_v6 = vld [vmem:[%s20251_s6 + $0x234] sm:$0xf0] }
 0x7ff   :  { %v6443_v24 = vadd.f32 %v6426_v2, %v18465_v62  ;;  %v6370_v14 = vadd.f32 %v6369_v34, %v6340_v45  ;;  %v6505_v60 = vmul.f32 0.2, %v6489_v44  ;;  %v11473_v62 = vor.u32 %v12798_v12, %v11472_v25  ;;  %v11386_v2 = vld [vmem:[%s20251_s6 + $0x238] sm:$0xf0]  ;;  %v11458_v45 = vld [vmem:[%s20251_s6 + $0x2c8] sm:$0xf0] }
 0x800   :  { %7309 = vmatpush.bf16.msra.mxu0 %v11401_v31  ;;  %7347 = vmatpush.bf16.msra.mxu2 %v11405_v63  ;;  %v18608_v40 = vmax.f32 %v18515_v57, %v6504_v1  ;;  %v18611_v37 = vadd.f32 %v18156_v0, %v6457_v28  ;;  %v18621_v10 = vadd.f32 %v18197_v29, %v6458_v53  ;;  %v11456_v34 = vld [vmem:[%s20251_s6 + $0x2c0] sm:$0xf]  ;;  %v12794_v31 = vld [vmem:[%s20251_s6 + $0x2c4] sm:$0xf0]  ;;  %v11448_v53 = vld [vmem:[%s20251_s6 + $0x2b0] sm:$0xf] }
 0x801   :  { %v6468_v52 = vmul.f32 %v18165_v46, %v6443_v24  ;;  %v6444_v17 = vadd.f32 %v6370_v14, %v6095_v5  ;;  %v18586_v20 = vmax.f32 %v6489_v44, %v6505_v60  ;;  %7327 = vmatpush.bf16.msra.mxu1 %v11473_v62  ;;  %v11385_v57 = vor.u32 %v12776_v6, %v11384_v61  ;;  %v11376_v25 = vld [vmem:[%s20251_s6 + $0x220] sm:$0xf]  ;;  %v12774_v12 = vld [vmem:[%s20251_s6 + $0x224] sm:$0xf0]  ;;  %v12773_v24 = vld [vmem:[%s20251_s6 + $0x224] sm:$0xf] }
 0x802   :  { %7365 = vmatpush.bf16.msra.mxu3 %v11477_v15  ;;  %v18634_v36 = vpack.c.bf16 %v18608_v40, %v18605_v19  ;;  %v11461_v63 = vor.u32 %v12793_v30, %v11458_v45  ;;  %v11457_v8 = vor.u32 %v12794_v31, %v11456_v34  ;;  %v11378_v15 = vld [vmem:[%s20251_s6 + $0x228] sm:$0xf0]  ;;  %v6495_v59 = vmul.f32 0.2, %v18611_v37  ;;  %v12789_v33 = vld [vmem:[%s20251_s6 + $0x2a4] sm:$0xf] }
 0x803   :  { %v6490_v11 = vadd.f32 %v18197_v29, %v6468_v52  ;;  %v6469_v51 = vmul.f32 %v18151_v47, %v6444_v17  ;;  %v6595_v35 = vpack.c.bf16 %v18586_v20, %v18431_v26  ;;  %v6496_v22 = vmul.f32 0.2, %v18621_v10  ;;  %v12771_v17 = vld [vmem:[%s20251_s6 + $0x214] sm:$0xf]  ;;  %v11440_v1 = vld [vmem:[%s20251_s6 + $0x2a0] sm:$0xf] }
 0x804   :  { %v6427_v13 = vpop.f32.mrf.mxu3  ;;  %7310 = vmatpush.bf16.msra.mxu0 %v11393_v55  ;;  %7348 = vmatpush.bf16.msra.mxu2 %v11397_v42  ;;  %v11377_v32 = vor.u32 %v12774_v12, %v11376_v25  ;;  %v11381_v21 = vor.u32 %v12773_v24, %v11378_v15  ;;  %v11369_v55 = vor.u32 %v12772_v4, %v11368_v38  ;;  %v11576_v34 = vld [vmem:[%s20251_s6 + $0x370] sm:$0xf]  ;;  %v12816_v31 = vld [vmem:[%s20251_s6 + $0x374] sm:$0xf0]  ;;  %v11578_v25 = vld [vmem:[%s20251_s6 + $0x378] sm:$0xf0] }
 0x805   :  { %v6491_v47 = vadd.f32 %v18156_v0, %v6469_v51  ;;  %v6428_v44 = vadd.f32 %v6427_v13, %v6398_v3  ;;  %6803 = vmatmul.bf16.gmra.mxu0 %v6595_v35  ;;  %6841 = vmatmul.bf16.gmra.mxu2 %v6595_v35  ;;  %v6506_v26 = vmul.f32 0.2, %v6490_v11  ;;  %v12775_v0 = vld [vmem:[%s20251_s6 + $0x234] sm:$0xf]  ;;  %v11373_v42 = vor.u32 %v12771_v17, %v11370_v9  ;;  %v12770_v35 = vld [vmem:[%s20251_s6 + $0x204] sm:$0xf0] }
 0x806   :  { %7366 = vmatpush.bf16.msra.mxu3 %v11469_v7  ;;  %7328 = vmatpush.bf16.msra.mxu1 %v11465_v41  ;;  %v11389_v5 = vor.u32 %v12775_v0, %v11386_v2  ;;  %v11442_v7 = vld [vmem:[%s20251_s6 + $0x2a8] sm:$0xf0]  ;;  %v18705_v51 = vmax.f32 %v18611_v37, %v6495_v59  ;;  %v12769_v41 = vld [vmem:[%s20251_s6 + $0x204] sm:$0xf]  ;;  %v12787_v37 = vld [vmem:[%s20251_s6 + $0x294] sm:$0xf]  ;;  %v18734_v45 = vmax.f32 %v18621_v10, %v6496_v22 }
 0x807   :  { %v6445_v43 = vadd.f32 %v6428_v44, %v6096_v18  ;;  %v18636_v48 = vmax.f32 %v6490_v11, %v6506_v26  ;;  %v6507_v58 = vmul.f32 0.2, %v6491_v47  ;;  %v12790_v11 = vld [vmem:[%s20251_s6 + $0x2a4] sm:$0xf0]  ;;  %v11445_v18 = vor.u32 %v12789_v33, %v11442_v7  ;;  %v11362_v13 = vld [vmem:[%s20251_s6 + $0x208] sm:$0xf0] }
 0x808   :  { %7311 = vmatpush.bf16.msra.mxu0 %v11385_v57  ;;  %7349 = vmatpush.bf16.msra.mxu2 %v11389_v5  ;;  %v11441_v3 = vor.u32 %v12790_v11, %v11440_v1  ;;  %v11432_v44 = vld [vmem:[%s20251_s6 + $0x290] sm:$0xf]  ;;  %v12788_v26 = vld [vmem:[%s20251_s6 + $0x294] sm:$0xf0]  ;;  %v11365_v57 = vor.u32 %v12769_v41, %v11362_v13  ;;  %v20563_v0 = vmov 0.0   ;;  %v11577_v10 = vor.u32 %v12816_v31, %v11576_v34 }
 0x809   :  { %v6470_v14 = vmul.f32 %v18165_v46, %v6445_v43  ;;  %v6596_v60 = vpack.c.bf16 %v18636_v48, %v18478_v50  ;;  %v12791_v46 = vld [vmem:[%s20251_s6 + $0x2b4] sm:$0xf]  ;;  %v11450_v50 = vld [vmem:[%s20251_s6 + $0x2b8] sm:$0xf0]  ;;  %v6523_v62 = vmax.f32 %v6491_v47, %v6507_v58  ;;  %v6549_v2 = vpack.c.bf16 %v18705_v51, %v20563_v0  ;;  %v12785_v12 = vld [vmem:[%s20251_s6 + $0x284] sm:$0xf] }
 0x80a   :  { %7367 = vmatpush.bf16.msra.mxu3 %v11461_v63  ;;  %7329 = vmatpush.bf16.msra.mxu1 %v11457_v8  ;;  %v11453_v54 = vor.u32 %v12791_v46, %v11450_v50  ;;  %v11434_v47 = vld [vmem:[%s20251_s6 + $0x298] sm:$0xf0]  ;;  %v11433_v5 = vor.u32 %v12788_v26, %v11432_v44  ;;  %v12815_v63 = vld [vmem:[%s20251_s6 + $0x374] sm:$0xf]  ;;  %v11426_v24 = vld [vmem:[%s20251_s6 + $0x288] sm:$0xf0] }
 0x80b   :  { %v6492_v28 = vadd.f32 %v18197_v29, %v6470_v14  ;;  %6822 = vmatmul.bf16.gmra.mxu1 %v6596_v60  ;;  %6860 = vmatmul.bf16.gmra.mxu3 %v6596_v60  ;;  %v12792_v29 = vld [vmem:[%s20251_s6 + $0x2b4] sm:$0xf0]  ;;  %v18693_v23 = vpack.c.bf16 %v6523_v62, %v18527_v39  ;;  %v11360_v39 = vld [vmem:[%s20251_s6 + $0x200] sm:$0xf]  ;;  %v11437_v43 = vor.u32 %v12787_v37, %v11434_v47  ;;  %v12786_v60 = vld [vmem:[%s20251_s6 + $0x284] sm:$0xf0] }
 0x80c   :  { %v11449_v52 = vor.u32 %v12792_v29, %v11448_v53  ;;  %7312 = vmatpush.bf16.msra.mxu0 %v11377_v32  ;;  %7350 = vmatpush.bf16.msra.mxu2 %v11381_v21  ;;  %v11361_v6 = vor.u32 %v12770_v35, %v11360_v39  ;;  %v11581_v14 = vor.u32 %v12815_v63, %v11578_v25  ;;  %v11568_v15 = vld [vmem:[%s20251_s6 + $0x360] sm:$0xf]  ;;  %v12814_v22 = vld [vmem:[%s20251_s6 + $0x364] sm:$0xf0]  ;;  %v12813_v32 = vld [vmem:[%s20251_s6 + $0x364] sm:$0xf] }
 0x80d   :  { %v6508_v61 = vmul.f32 0.2, %v6492_v28  ;;  %v11429_v58 = vor.u32 %v12785_v12, %v11426_v24  ;;  %v11570_v21 = vld [vmem:[%s20251_s6 + $0x368] sm:$0xf0]  ;;  %v11569_v46 = vor.u32 %v12814_v22, %v11568_v15  ;;  %v12831_v53 = vld [vmem:[%s20251_s6 + $0x3f4] sm:$0xf] }
 0x80e   :  { %7368 = vmatpush.bf16.msra.mxu3 %v11453_v54  ;;  %7330 = vmatpush.bf16.msra.mxu1 %v11449_v52  ;;  %v11573_v50 = vor.u32 %v12813_v32, %v11570_v21  ;;  %v11642_v62 = vld [vmem:[%s20251_s6 + $0x3f8] sm:$0xf0]  ;;  %v11640_v54 = vld [vmem:[%s20251_s6 + $0x3f0] sm:$0xf]  ;;  %v12832_v38 = vld [vmem:[%s20251_s6 + $0x3f4] sm:$0xf0] }
 0x80f   :  { %v6524_v30 = vmax.f32 %v6492_v28, %v6508_v61  ;;  %v6550_v28 = vpack.c.bf16 %v18734_v45, %v20563_v0  ;;  %v11645_v29 = vor.u32 %v12831_v53, %v11642_v62  ;;  %v11560_v4 = vld [vmem:[%s20251_s6 + $0x350] sm:$0xf]  ;;  %v12812_v52 = vld [vmem:[%s20251_s6 + $0x354] sm:$0xf0]  ;;  %v11641_v17 = vor.u32 %v12832_v38, %v11640_v54  ;;  %v12811_v33 = vld [vmem:[%s20251_s6 + $0x354] sm:$0xf] }
 0x810   :  { %7313 = vmatpush.bf16.msra.mxu0 %v11369_v55  ;;  %7351 = vmatpush.bf16.msra.mxu2 %v11373_v42  ;;  %v11561_v9 = vor.u32 %v12812_v52, %v11560_v4  ;;  %v11562_v55 = vld [vmem:[%s20251_s6 + $0x358] sm:$0xf0]  ;;  %v12829_v42 = vld [vmem:[%s20251_s6 + $0x3e4] sm:$0xf]  ;;  %v11634_v1 = vld [vmem:[%s20251_s6 + $0x3e8] sm:$0xf0] }
 0x811   :  { %v18746_v8 = vpack.c.bf16 %v6524_v30, %v18608_v40  ;;  %v11424_v40 = vld [vmem:[%s20251_s6 + $0x280] sm:$0xf]  ;;  %v11565_v7 = vor.u32 %v12811_v33, %v11562_v55  ;;  %v12830_v39 = vld [vmem:[%s20251_s6 + $0x3e4] sm:$0xf0]  ;;  %v11637_v35 = vor.u32 %v12829_v42, %v11634_v1  ;;  %v12809_v13 = vld [vmem:[%s20251_s6 + $0x344] sm:$0xf] }
 0x812   :  { %7369 = vmatpush.bf16.msra.mxu3 %v11445_v18  ;;  %7331 = vmatpush.bf16.msra.mxu1 %v11441_v3  ;;  %v11425_v59 = vor.u32 %v12786_v60, %v11424_v40  ;;  %v11632_v11 = vld [vmem:[%s20251_s6 + $0x3e0] sm:$0xf]  ;;  %v12810_v3 = vld [vmem:[%s20251_s6 + $0x344] sm:$0xf0]  ;;  %v11554_v37 = vld [vmem:[%s20251_s6 + $0x348] sm:$0xf0] }
 0x813   :  { %v11633_v41 = vor.u32 %v12830_v39, %v11632_v11  ;;  %v11552_v18 = vld [vmem:[%s20251_s6 + $0x340] sm:$0xf]  ;;  %v12827_v47 = vld [vmem:[%s20251_s6 + $0x3d4] sm:$0xf]  ;;  %v11626_v44 = vld [vmem:[%s20251_s6 + $0x3d8] sm:$0xf0] }
 0x814   :  { %7314 = vmatpush.bf16.msra.mxu0 %v11361_v6  ;;  %7352 = vmatpush.bf16.msra.mxu2 %v11365_v57  ;;  %v11624_v26 = vld [vmem:[%s20251_s6 + $0x3d0] sm:$0xf]  ;;  %v12828_v61 = vld [vmem:[%s20251_s6 + $0x3d4] sm:$0xf0]  ;;  %v11553_v6 = vor.u32 %v12810_v3, %v11552_v18  ;;  %v11557_v57 = vor.u32 %v12809_v13, %v11554_v37  ;;  %v12807_v34 = vld [vmem:[%s20251_s6 + $0x334] sm:$0xf] }
 0x815   :  { %7034 = vmatmul.bf16.vlgmr.msrb.gmra.mxu0 %v6549_v2  ;;  %7072 = vmatmul.bf16.vlgmr.msrb.gmra.mxu2 %v6549_v2  ;;  %v11629_v2 = vor.u32 %v12827_v47, %v11626_v44  ;;  %v11625_v30 = vor.u32 %v12828_v61, %v11624_v26  ;;  %v11546_v63 = vld [vmem:[%s20251_s6 + $0x338] sm:$0xf0]  ;;  %v11616_v12 = vld [vmem:[%s20251_s6 + $0x3c0] sm:$0xf]  ;;  %v12826_v24 = vld [vmem:[%s20251_s6 + $0x3c4] sm:$0xf0]  ;;  %v7110_v44 = vpack.c.bf16 %v18539_v49, %v18705_v51 }
 0x816   :  { %7370 = vmatpush.bf16.msra.mxu3 %v11437_v43  ;;  %7332 = vmatpush.bf16.msra.mxu1 %v11433_v5  ;;  %v11544_v43 = vld [vmem:[%s20251_s6 + $0x330] sm:$0xf]  ;;  %v12808_v5 = vld [vmem:[%s20251_s6 + $0x334] sm:$0xf0]  ;;  %v11549_v25 = vor.u32 %v12807_v34, %v11546_v63  ;;  %v11617_v60 = vor.u32 %v12826_v24, %v11616_v12  ;;  %v12806_v15 = vld [vmem:[%s20251_s6 + $0x324] sm:$0xf0] }
 0x817   :  { %v11545_v31 = vor.u32 %v12808_v5, %v11544_v43  ;;  %v12823_v21 = vld [vmem:[%s20251_s6 + $0x3b4] sm:$0xf]  ;;  %v12824_v53 = vld [vmem:[%s20251_s6 + $0x3b4] sm:$0xf0]  ;;  %v11530_v38 = vld [vmem:[%s20251_s6 + $0x318] sm:$0xf0]  ;;  %v7111_v43 = vpack.c.bf16 %v18605_v19, %v18734_v45 }
 0x818   :  { %7596 = vmatpush.bf16.msrb.mxu0 %v11577_v10  ;;  %7634 = vmatpush.bf16.msrb.mxu2 %v11581_v14  ;;  %v11618_v10 = vld [vmem:[%s20251_s6 + $0x3c8] sm:$0xf0]  ;;  %v11536_v14 = vld [vmem:[%s20251_s6 + $0x320] sm:$0xf]  ;;  %v12804_v62 = vld [vmem:[%s20251_s6 + $0x314] sm:$0xf0] }
 0x819   :  { %v11537_v22 = vor.u32 %v12806_v15, %v11536_v14  ;;  %v12821_v4 = vld [vmem:[%s20251_s6 + $0x3a4] sm:$0xf]  ;;  %v11600_v33 = vld [vmem:[%s20251_s6 + $0x3a0] sm:$0xf]  ;;  %v12822_v55 = vld [vmem:[%s20251_s6 + $0x3a4] sm:$0xf0] }
 0x81a   :  { %7371 = vmatpush.bf16.msra.mxu3 %v11429_v58  ;;  %7333 = vmatpush.bf16.msra.mxu1 %v11425_v59  ;;  %v12805_v58 = vld [vmem:[%s20251_s6 + $0x324] sm:$0xf]  ;;  %v11538_v59 = vld [vmem:[%s20251_s6 + $0x328] sm:$0xf0]  ;;  %v11520_v42 = vld [vmem:[%s20251_s6 + $0x300] sm:$0xf]  ;;  %v11601_v39 = vor.u32 %v12822_v55, %v11600_v33 }
 0x81b   :  { %7053 = vmatmul.bf16.vlgmr.msrb.gmra.mxu1 %v6550_v28  ;;  %7091 = vmatmul.bf16.vlgmr.msrb.gmra.mxu3 %v6550_v28  ;;  %v11541_v32 = vor.u32 %v12805_v58, %v11538_v59  ;;  %v11610_v28 = vld [vmem:[%s20251_s6 + $0x3b8] sm:$0xf0]  ;;  %v12801_v1 = vld [vmem:[%s20251_s6 + $0x304] sm:$0xf]  ;;  %v11592_v3 = vld [vmem:[%s20251_s6 + $0x390] sm:$0xf] }
 0x81c   :  { %7597 = vmatpush.bf16.msrb.mxu0 %v11569_v46  ;;  %7635 = vmatpush.bf16.msrb.mxu2 %v11573_v50  ;;  %v11608_v46 = vld [vmem:[%s20251_s6 + $0x3b0] sm:$0xf]  ;;  %v11613_v50 = vor.u32 %v12823_v21, %v11610_v28  ;;  %v11594_v18 = vld [vmem:[%s20251_s6 + $0x398] sm:$0xf0]  ;;  %v12820_v13 = vld [vmem:[%s20251_s6 + $0x394] sm:$0xf0] }
 0x81d   :  { %v11609_v54 = vor.u32 %v12824_v53, %v11608_v46  ;;  %v11593_v61 = vor.u32 %v12820_v13, %v11592_v3  ;;  %v12818_v49 = vld [vmem:[%s20251_s6 + $0x384] sm:$0xf0]  ;;  %v7401_v19 = vpack.c.bf16 0.0, %v18586_v20  ;;  %v12928_v14 = vld [vmem:[%s20252_s7 + $0x2f4] sm:$0xf0] }
 0x81e   :  { %7653 = vmatpush.bf16.msrb.mxu3 %v11645_v29  ;;  %7615 = vmatpush.bf16.msrb.mxu1 %v11641_v17  ;;  %v12803_v29 = vld [vmem:[%s20251_s6 + $0x314] sm:$0xf]  ;;  %v11873_v15 = vld [vmem:[%s20252_s7 + $0x2e0] sm:$0xf]  ;;  %v12926_v58 = vld [vmem:[%s20252_s7 + $0x2e4] sm:$0xf0] }
 0x81f   :  { %v11533_v17 = vor.u32 %v12803_v29, %v11530_v38  ;;  %v11874_v59 = vor.u32 %v12926_v58, %v11873_v15  ;;  %v11865_v46 = vld [vmem:[%s20252_s7 + $0x2d0] sm:$0xf]  ;;  %v12920_v33 = vld [vmem:[%s20252_s7 + $0x2b4] sm:$0xf0]  ;;  %v11841_v55 = vld [vmem:[%s20252_s7 + $0x2a0] sm:$0xf] }
 0x820   :  { %7598 = vmatpush.bf16.msrb.mxu0 %v11561_v9  ;;  %7636 = vmatpush.bf16.msrb.mxu2 %v11565_v7  ;;  %v11602_v9 = vld [vmem:[%s20251_s6 + $0x3a8] sm:$0xf0]  ;;  %v12802_v7 = vld [vmem:[%s20251_s6 + $0x304] sm:$0xf0]  ;;  %v12916_v3 = vld [vmem:[%s20252_s7 + $0x294] sm:$0xf0] }
 0x821   :  { %v11605_v11 = vor.u32 %v12821_v4, %v11602_v9  ;;  %v11521_v37 = vor.u32 %v12802_v7, %v11520_v42  ;;  %v11849_v9 = vld [vmem:[%s20252_s7 + $0x2b0] sm:$0xf]  ;;  %v12918_v7 = vld [vmem:[%s20252_s7 + $0x2a4] sm:$0xf0]  ;;  %v11825_v13 = vld [vmem:[%s20252_s7 + $0x280] sm:$0xf] }
 0x822   :  { %7654 = vmatpush.bf16.msrb.mxu3 %v11637_v35  ;;  %7616 = vmatpush.bf16.msrb.mxu1 %v11633_v41  ;;  %v11522_v35 = vld [vmem:[%s20251_s6 + $0x308] sm:$0xf0]  ;;  %v12819_v41 = vld [vmem:[%s20251_s6 + $0x394] sm:$0xf]  ;;  %v11850_v42 = vor.u32 %v12920_v33, %v11849_v9  ;;  %v11929_v15 = vld [vmem:[%s20252_s7 + $0x50] sm:$0xf] }
 0x823   :  { %v11525_v47 = vor.u32 %v12801_v1, %v11522_v35  ;;  %v11597_v26 = vor.u32 %v12819_v41, %v11594_v18  ;;  %v11833_v18 = vld [vmem:[%s20252_s7 + $0x290] sm:$0xf]  ;;  %v12844_v58 = vld [vmem:[%s20252_s7 + $0x54] sm:$0xf0]  ;;  %v11921_v9 = vld [vmem:[%s20252_s7 + $0x40] sm:$0xf] }
 0x824   :  { %7599 = vmatpush.bf16.msrb.mxu0 %v11553_v6  ;;  %7637 = vmatpush.bf16.msrb.mxu2 %v11557_v57  ;;  %v12817_v6 = vld [vmem:[%s20251_s6 + $0x384] sm:$0xf]  ;;  %v11586_v57 = vld [vmem:[%s20251_s6 + $0x388] sm:$0xf0]  ;;  %v12842_v33 = vld [vmem:[%s20252_s7 + $0x44] sm:$0xf0] }
 0x825   :  { %7039 = vmatmul.bf16.gmra.mxu0 %v18563_v16  ;;  %7077 = vmatmul.bf16.gmra.mxu2 %v18563_v16  ;;  %v12825_v16 = vld [vmem:[%s20251_s6 + $0x3c4] sm:$0xf]  ;;  %v11589_v51 = vor.u32 %v12817_v6, %v11586_v57 }
 0x826   :  { %7655 = vmatpush.bf16.msrb.mxu3 %v11629_v2  ;;  %7617 = vmatpush.bf16.msrb.mxu1 %v11625_v30  ;;  %v11621_v40 = vor.u32 %v12825_v16, %v11618_v10  ;;  %v11584_v2 = vld [vmem:[%s20251_s6 + $0x380] sm:$0xf] }
 0x827   :  { %v11585_v30 = vor.u32 %v12818_v49, %v11584_v2  ;;  %v7735_v57 = vld [vmem:[%s20253_s2] sm:$0xff] }
 0x828   :  { %7600 = vmatpush.bf16.msrb.mxu0 %v11545_v31  ;;  %7638 = vmatpush.bf16.msrb.mxu2 %v11549_v25  ;;  %v19062_v49 = vpack.c.bf16 %v7735_v57, %v7735_v57 }
 0x82a   :  { %7656 = vmatpush.bf16.msrb.mxu3 %v11621_v40  ;;  %7618 = vmatpush.bf16.msrb.mxu1 %v11617_v60 }
 0x82b   :  { %7058 = vmatmul.bf16.gmra.mxu1 %v18634_v36  ;;  %7096 = vmatmul.bf16.gmra.mxu3 %v18634_v36  ;;  %v11528_v36 = vld [vmem:[%s20251_s6 + $0x310] sm:$0xf] }
 0x82c   :  { %7601 = vmatpush.bf16.msrb.mxu0 %v11537_v22  ;;  %7639 = vmatpush.bf16.msrb.mxu2 %v11541_v32  ;;  %v11529_v52 = vor.u32 %v12804_v62, %v11528_v36  ;;  %v11857_v62 = vld [vmem:[%s20252_s7 + $0x2c0] sm:$0xf] }
 0x82e   :  { %7657 = vmatpush.bf16.msrb.mxu3 %v11613_v50  ;;  %7619 = vmatpush.bf16.msrb.mxu1 %v11609_v54  ;;  %v12924_v50 = vld [vmem:[%s20252_s7 + $0x2d4] sm:$0xf0]  ;;  %v12922_v54 = vld [vmem:[%s20252_s7 + $0x2c4] sm:$0xf0] }
 0x82f   :  { %v11866_v36 = vor.u32 %v12924_v50, %v11865_v46  ;;  %v11858_v29 = vor.u32 %v12922_v54, %v11857_v62  ;;  %v11745_v46 = vld [vmem:[%s20252_s7 + $0x1e0] sm:$0xf]  ;;  %v12894_v50 = vld [vmem:[%s20252_s7 + $0x1e4] sm:$0xf0] }
 0x830   :  { %7602 = vmatpush.bf16.msrb.mxu0 %v11529_v52  ;;  %7640 = vmatpush.bf16.msrb.mxu2 %v11533_v17  ;;  %v11746_v54 = vor.u32 %v12894_v50, %v11745_v46  ;;  %v12889_v46 = vld [vmem:[%s20252_s7 + $0x1c4] sm:$0xf] }
 0x832   :  { %7658 = vmatpush.bf16.msrb.mxu3 %v11605_v11  ;;  %7620 = vmatpush.bf16.msrb.mxu1 %v11601_v39  ;;  %v11842_v11 = vor.u32 %v12918_v7, %v11841_v55  ;;  %v11817_v7 = vld [vmem:[%s20252_s7 + $0x270] sm:$0xf] }
 0x834   :  { %7603 = vmatpush.bf16.msrb.mxu0 %v11521_v37  ;;  %7641 = vmatpush.bf16.msrb.mxu2 %v11525_v47  ;;  %v11834_v37 = vor.u32 %v12916_v3, %v11833_v18  ;;  %v12914_v47 = vld [vmem:[%s20252_s7 + $0x284] sm:$0xf0] }
 0x835   :  { %7315 = vmatmul.bf16.vlgmr.msra.gmra.mxu0 %v7110_v44  ;;  %7353 = vmatmul.bf16.vlgmr.msra.gmra.mxu2 %v7110_v44 }
 0x836   :  { %7659 = vmatpush.bf16.msrb.mxu3 %v11597_v26  ;;  %7621 = vmatpush.bf16.msrb.mxu1 %v11593_v61  ;;  %v11826_v26 = vor.u32 %v12914_v47, %v11825_v13 }
 0x83a   :  { %7660 = vmatpush.bf16.msrb.mxu3 %v11589_v51  ;;  %7622 = vmatpush.bf16.msrb.mxu1 %v11585_v30  ;;  %v11945_v51 = vld [vmem:[%s20252_s7 + $0x70] sm:$0xf]  ;;  %v12848_v30 = vld [vmem:[%s20252_s7 + $0x74] sm:$0xf0] }
 0x83b   :  { %7334 = vmatmul.bf16.vlgmr.msra.gmra.mxu1 %v7111_v43  ;;  %7372 = vmatmul.bf16.vlgmr.msra.gmra.mxu3 %v7111_v43  ;;  %v11937_v43 = vld [vmem:[%s20252_s7 + $0x60] sm:$0xf] }
 0x845   :  { %7320 = vmatmul.bf16.gmra.mxu0 %v18693_v23  ;;  %7358 = vmatmul.bf16.gmra.mxu2 %v18693_v23  ;;  %v7402_v23 = vpack.c.bf16 0.0, %v18636_v48  ;;  %v11881_v48 = vld [vmem:[%s20252_s7 + $0x2f0] sm:$0xf] }
 0x846   :  { %v11882_v60 = vor.u32 %v12928_v14, %v11881_v48  ;;  %v12895_v48 = vld [vmem:[%s20252_s7 + $0x1f4] sm:$0xf] }
 0x848   :  { %8142 = vmatpush.bf16.msra.mxu2 %v11882_v60  ;;  %v11755_v60 = vld [vmem:[%s20252_s7 + $0x1f8] sm:$0xf0] }
 0x84b   :  { %7339 = vmatmul.bf16.gmra.mxu1 %v18746_v8  ;;  %7377 = vmatmul.bf16.gmra.mxu3 %v18746_v8 }
 0x84c   :  { %8143 = vmatpush.bf16.msra.mxu2 %v11874_v59  ;;  %v11758_v59 = vor.u32 %v12895_v48, %v11755_v60  ;;  %v11809_v60 = vld [vmem:[%s20252_s7 + $0x260] sm:$0xf] }
 0x84e   :  { %8161 = vmatpush.bf16.msra.mxu3 %v11758_v59  ;;  %v11729_v59 = vld [vmem:[%s20252_s7 + $0x1c0] sm:$0xf] }
 0x850   :  { %8144 = vmatpush.bf16.msra.mxu2 %v11866_v36  ;;  %v12893_v36 = vld [vmem:[%s20252_s7 + $0x1e4] sm:$0xf] }
 0x854   :  { %8145 = vmatpush.bf16.msra.mxu2 %v11858_v29  ;;  %v11747_v29 = vld [vmem:[%s20252_s7 + $0x1e8] sm:$0xf0] }
 0x855   :  { %7604 = vmatmul.bf16.vlgmr.msrb.gmra.mxu0 %v18452_v56  ;;  %7642 = vmatmul.bf16.vlgmr.msrb.gmra.mxu2 %v18452_v56  ;;  %v11750_v55 = vor.u32 %v12893_v36, %v11747_v29  ;;  %v11731_v36 = vld [vmem:[%s20252_s7 + $0x1c8] sm:$0xf0]  ;;  %v12838_v29 = vld [vmem:[%s20252_s7 + $0x24] sm:$0xf0] }
 0x857   :  { %8162 = vmatpush.bf16.msra.mxu3 %v11750_v55  ;;  %v11801_v55 = vld [vmem:[%s20252_s7 + $0x250] sm:$0xf] }
 0x858   :  { %8146 = vmatpush.bf16.msra.mxu2 %v11850_v42  ;;  %v11922_v42 = vor.u32 %v12842_v33, %v11921_v9  ;;  %v11734_v9 = vor.u32 %v12889_v46, %v11731_v36  ;;  %v12886_v36 = vld [vmem:[%s20252_s7 + $0x1a4] sm:$0xf0] }
 0x85b   :  { %7623 = vmatmul.bf16.vlgmr.msrb.gmra.mxu1 %v18503_v27  ;;  %7661 = vmatmul.bf16.vlgmr.msrb.gmra.mxu3 %v18503_v27 }
 0x85c   :  { %8147 = vmatpush.bf16.msra.mxu2 %v11842_v11  ;;  %v12912_v11 = vld [vmem:[%s20252_s7 + $0x274] sm:$0xf0] }
 0x85d   :  { %v11818_v13 = vor.u32 %v12912_v11, %v11817_v7 }
 0x85f   :  { %8123 = vmatpush.bf16.msra.mxu1 %v11818_v13 }
 0x860   :  { %8148 = vmatpush.bf16.msra.mxu2 %v11834_v37 }
 0x862   :  { %v6799_v45 = vpop.f32.mrf.mxu0 }
 0x864   :  { %8149 = vmatpush.bf16.msra.mxu2 %v11826_v26 }
 0x865   :  { %7609 = vmatmul.bf16.gmra.mxu0 %v7401_v19  ;;  %7647 = vmatmul.bf16.gmra.mxu2 %v7401_v19  ;;  %v11946_v19 = vor.u32 %v12848_v30, %v11945_v51  ;;  %v11737_v51 = vld [vmem:[%s20252_s7 + $0x1d0] sm:$0xf]  ;;  %v12892_v30 = vld [vmem:[%s20252_s7 + $0x1d4] sm:$0xf0] }
 0x868   :  { %v6818_v5 = vpop.f32.mrf.mxu1  ;;  %v6837_v8 = vpop.f32.mrf.mxu2  ;;  %8458 = vmatpush.bf16.msrb.mxu2 %v11946_v19  ;;  %v11738_v19 = vor.u32 %v12892_v30, %v11737_v51  ;;  %v11721_v30 = vld [vmem:[%s20252_s7 + $0x1b0] sm:$0xf] }
 0x869   :  { %v18962_v34 = vadd.f32 %v6818_v5, %v6799_v45  ;;  %v12846_v45 = vld [vmem:[%s20252_s7 + $0x64] sm:$0xf0] }
 0x86a   :  { %v18967_v56 = vpop.f32.mrf.mxu0 }
 0x86b   :  { %7628 = vmatmul.bf16.gmra.mxu1 %v7402_v23  ;;  %7666 = vmatmul.bf16.gmra.mxu3 %v7402_v23  ;;  %v11938_v23 = vor.u32 %v12846_v45, %v11937_v43  ;;  %v12891_v43 = vld [vmem:[%s20252_s7 + $0x1d4] sm:$0xf]  ;;  %v11739_v45 = vld [vmem:[%s20252_s7 + $0x1d8] sm:$0xf0] }
 0x86c   :  { %v11742_v48 = vor.u32 %v12891_v43, %v11739_v45  ;;  %v12888_v43 = vld [vmem:[%s20252_s7 + $0x1b4] sm:$0xf0] }
 0x86d   :  { %8459 = vmatpush.bf16.msrb.mxu2 %v11938_v23  ;;  %v11913_v23 = vld [vmem:[%s20252_s7 + $0x30] sm:$0xf]  ;;  %v11722_v45 = vor.u32 %v12888_v43, %v11721_v30  ;;  %v12904_v43 = vld [vmem:[%s20252_s7 + $0x234] sm:$0xf0] }
 0x86e   :  { %v6856_v31 = vpop.f32.mrf.mxu3  ;;  %8163 = vmatpush.bf16.msra.mxu3 %v11742_v48  ;;  %v12836_v48 = vld [vmem:[%s20252_s7 + $0x14] sm:$0xf0]  ;;  %v11785_v30 = vld [vmem:[%s20252_s7 + $0x230] sm:$0xf] }
 0x86f   :  { %v18965_v63 = vadd.f32 %v6856_v31, %v6837_v8 }
 0x870   :  { %v18969_v16 = vpop.f32.mrf.mxu1  ;;  %v18971_v27 = vpop.f32.mrf.mxu2 }
 0x872   :  { %8164 = vmatpush.bf16.msra.mxu3 %v11734_v9  ;;  %v11715_v9 = vld [vmem:[%s20252_s7 + $0x1a8] sm:$0xf0] }
 0x875   :  { %8150 = vmatmul.bf16.vlgmr.msra.gmra.mxu2 %v19062_v49 }
 0x876   :  { %v18973_v10 = vpop.f32.mrf.mxu3 }
 0x882   :  { %v6804_v20 = vpop.f32.mrf.mxu0 }
 0x885   :  { %8155 = vmatmul.bf16.gmra.mxu2 %v19062_v49 }
 0x888   :  { %v6823_v25 = vpop.f32.mrf.mxu1  ;;  %v6842_v12 = vpop.f32.mrf.mxu2 }
 0x889   :  { %v18975_v24 = vadd.f32 %v6823_v25, %v6804_v20  ;;  %v11753_v25 = vld [vmem:[%s20252_s7 + $0x1f0] sm:$0xf] }
 0x88a   :  { %v18983_v40 = vpop.f32.mrf.mxu0 }
 0x88e   :  { %v6861_v22 = vpop.f32.mrf.mxu3 }
 0x88f   :  { %v18991_v32 = vadd.f32 %v6861_v22, %v6842_v12  ;;  %v12896_v12 = vld [vmem:[%s20252_s7 + $0x1f4] sm:$0xf0]  ;;  %v11930_v22 = vor.u32 %v12844_v58, %v11929_v15  ;;  %v12910_v15 = vld [vmem:[%s20252_s7 + $0x264] sm:$0xf0] }
 0x890   :  { %v18993_v21 = vpop.f32.mrf.mxu1  ;;  %v18995_v28 = vpop.f32.mrf.mxu2  ;;  %v11754_v14 = vor.u32 %v12896_v12, %v11753_v25  ;;  %v12840_v25 = vld [vmem:[%s20252_s7 + $0x34] sm:$0xf0]  ;;  %v11810_v58 = vor.u32 %v12910_v15, %v11809_v60  ;;  %v19221_v60 = vld [vmem:[%s20249_s8 + $0xc] sm:$0xf] }
 0x891   :  { %8460 = vmatpush.bf16.msrb.mxu2 %v11930_v22  ;;  %v12890_v22 = vld [vmem:[%s20252_s7 + $0x1c4] sm:$0xf0] }
 0x892   :  { %v19003_v53 = vpop.f32.mrf.mxu0  ;;  %8104 = vmatpush.bf16.msra.mxu0 %v11754_v14  ;;  %v11914_v14 = vor.u32 %v12840_v25, %v11913_v23  ;;  %v11730_v50 = vor.u32 %v12890_v22, %v11729_v59  ;;  %8124 = vmatpush.bf16.msra.mxu1 %v11810_v58  ;;  %v11723_v23 = vld [vmem:[%s20252_s7 + $0x1b8] sm:$0xf0]  ;;  %v11897_v25 = vld [vmem:[%s20252_s7 + $0x10] sm:$0xf]  ;;  %v11793_v59 = vld [vmem:[%s20252_s7 + $0x240] sm:$0xf] }
 0x893   :  { %v11898_v58 = vor.u32 %v12836_v48, %v11897_v25  ;;  %v12906_v22 = vld [vmem:[%s20252_s7 + $0x244] sm:$0xf0] }
 0x894   :  { %v11794_v46 = vor.u32 %v12906_v22, %v11793_v59  ;;  %v12883_v59 = vld [vmem:[%s20252_s7 + $0x194] sm:$0xf]  ;;  %v6821_v22 = vadd.f32 %v18969_v16, %v18967_v56  ;;  %v19284_v56 = vadd.f32 %v18993_v21, %v18983_v40  ;;  %v7036_v40 = vadd.f32 %v19003_v53, %v18962_v34  ;;  %v12881_v34 = vld [vmem:[%s20252_s7 + $0x184] sm:$0xf] }
 0x895   :  { %8461 = vmatpush.bf16.msrb.mxu2 %v11922_v42  ;;  %v12908_v42 = vld [vmem:[%s20252_s7 + $0x254] sm:$0xf0] }
 0x896   :  { %v19011_v38 = vpop.f32.mrf.mxu3  ;;  %8105 = vmatpush.bf16.msra.mxu0 %v11746_v54  ;;  %v11905_v54 = vld [vmem:[%s20252_s7 + $0x20] sm:$0xf]  ;;  %v11802_v11 = vor.u32 %v12908_v42, %v11801_v55  ;;  %v12834_v55 = vld [vmem:[%s20252_s7 + $0x4] sm:$0xf0] }
 0x897   :  { %v11906_v33 = vor.u32 %v12838_v29, %v11905_v54  ;;  %v12885_v54 = vld [vmem:[%s20252_s7 + $0x1a4] sm:$0xf]  ;;  %v19302_v21 = vadd.f32 %v19011_v38, %v18995_v28  ;;  %v11699_v38 = vld [vmem:[%s20252_s7 + $0x188] sm:$0xf0] }
 0x898   :  { %v19013_v4 = vpop.f32.mrf.mxu1  ;;  %v19015_v52 = vpop.f32.mrf.mxu2  ;;  %8125 = vmatpush.bf16.msra.mxu1 %v11802_v11  ;;  %v11718_v42 = vor.u32 %v12885_v54, %v11715_v9  ;;  %v12863_v54 = vld [vmem:[%s20252_s7 + $0xf4] sm:$0xf] }
 0x899   :  { %8462 = vmatpush.bf16.msrb.mxu2 %v11914_v14 }
 0x89a   :  { %v19017_v17 = vpop.f32.mrf.mxu0  ;;  %8106 = vmatpush.bf16.msra.mxu0 %v11738_v19  ;;  %v12887_v19 = vld [vmem:[%s20252_s7 + $0x1b4] sm:$0xf] }
 0x89b   :  { %v11726_v15 = vor.u32 %v12887_v19, %v11723_v23  ;;  %v7683_v23 = vperm.slane %v19221_v60, 0  ;;  %v7038_v28 = vadd.f32 %v19017_v17, %v6821_v22  ;;  %v7055_v17 = vadd.f32 %v19013_v4, %v7036_v40  ;;  %v12900_v22 = vld [vmem:[%s20252_s7 + $0x214] sm:$0xf0] }
 0x89c   :  { %8126 = vmatpush.bf16.msra.mxu1 %v11794_v46  ;;  %v6859_v46 = vadd.f32 %v18973_v10, %v18971_v27  ;;  %v7697_v27 = vperm.slane %v19221_v60, 1 }
 0x89d   :  { %8463 = vmatpush.bf16.msrb.mxu2 %v11906_v33  ;;  %8165 = vmatpush.bf16.msra.mxu3 %v11726_v15  ;;  %v11889_v33 = vld [vmem:[%s20252_s7] sm:$0xf]  ;;  %v11705_v15 = vld [vmem:[%s20252_s7 + $0x190] sm:$0xf]  ;;  %v19339_v4 = vperm.slane %v7683_v23, 0 }
 0x89e   :  { %v19031_v1 = vpop.f32.mrf.mxu3  ;;  %8107 = vmatpush.bf16.msra.mxu0 %v11730_v50  ;;  %v11713_v50 = vld [vmem:[%s20252_s7 + $0x1a0] sm:$0xf]  ;;  %v11890_v11 = vor.u32 %v12834_v55, %v11889_v33  ;;  %v12902_v55 = vld [vmem:[%s20252_s7 + $0x224] sm:$0xf0] }
 0x89f   :  { %v11714_v29 = vor.u32 %v12886_v36, %v11713_v50  ;;  %v11707_v36 = vld [vmem:[%s20252_s7 + $0x198] sm:$0xf0]  ;;  %v11777_v33 = vld [vmem:[%s20252_s7 + $0x220] sm:$0xf] }
 0x8a0   :  { %v19033_v39 = vpop.f32.mrf.mxu1  ;;  %v19035_v35 = vpop.f32.mrf.mxu2  ;;  %v11710_v10 = vor.u32 %v12883_v59, %v11707_v36  ;;  %v11769_v59 = vld [vmem:[%s20252_s7 + $0x210] sm:$0xf] }
 0x8a1   :  { %8464 = vmatpush.bf16.msrb.mxu2 %v11898_v58  ;;  %8166 = vmatpush.bf16.msra.mxu3 %v11718_v42  ;;  %v12884_v58 = vld [vmem:[%s20252_s7 + $0x194] sm:$0xf0]  ;;  %v19296_v42 = vld [vmem:[%s20254_s9 + $0x8] sm:$0xff]  ;;  %v7076_v36 = vadd.f32 %v19035_v35, %v6859_v46 }
 0x8a2   :  { %v19037_v41 = vpop.f32.mrf.mxu0  ;;  %8108 = vmatpush.bf16.msra.mxu0 %v11722_v45  ;;  %v11786_v45 = vor.u32 %v12904_v43, %v11785_v30  ;;  %v11706_v50 = vor.u32 %v12884_v58, %v11705_v15  ;;  %v11778_v30 = vor.u32 %v12902_v55, %v11777_v33  ;;  %v11697_v43 = vld [vmem:[%s20252_s7 + $0x180] sm:$0xf]  ;;  %v12003_v15 = vld [vmem:[%s20252_s7 + $0xe8] sm:$0xf0]  ;;  %v9124_v33 = vperm.slane %v19296_v42, 0 }
 0x8a3   :  { %v7041_v55 = vadd.f32 %v19037_v41, %v18975_v24  ;;  %v12009_v24 = vld [vmem:[%s20252_s7 + $0xf0] sm:$0xf] }
 0x8a4   :  { %8127 = vmatpush.bf16.msra.mxu1 %v11786_v45  ;;  %v12882_v45 = vld [vmem:[%s20252_s7 + $0x184] sm:$0xf0] }
 0x8a5   :  { %8465 = vmatpush.bf16.msrb.mxu2 %v11890_v11  ;;  %v7074_v11 = vadd.f32 %v19015_v52, %v18965_v63  ;;  %8167 = vmatpush.bf16.msra.mxu3 %v11710_v10  ;;  %v11698_v63 = vor.u32 %v12882_v45, %v11697_v43  ;;  %v12861_v52 = vld [vmem:[%s20252_s7 + $0xe4] sm:$0xf]  ;;  %v7684_v10 = vperm.slane %v19221_v60, 2  ;;  %v11995_v43 = vld [vmem:[%s20252_s7 + $0xd8] sm:$0xf0] }
 0x8a6   :  { %v19051_v44 = vpop.f32.mrf.mxu3  ;;  %8109 = vmatpush.bf16.msra.mxu0 %v11714_v29  ;;  %v12011_v29 = vld [vmem:[%s20252_s7 + $0xf8] sm:$0xf0]  ;;  %v12898_v45 = vld [vmem:[%s20252_s7 + $0x204] sm:$0xf0] }
 0x8a7   :  { %v12014_v9 = vor.u32 %v12863_v54, %v12011_v29  ;;  %v7093_v58 = vadd.f32 %v19031_v1, %v7074_v11  ;;  %v11770_v1 = vor.u32 %v12900_v22, %v11769_v59  ;;  %v19341_v29 = vperm.slane %v7697_v27, 1  ;;  %v12911_v27 = vld [vmem:[%s20252_s7 + $0x274] sm:$0xf]  ;;  %v12864_v11 = vld [vmem:[%s20252_s7 + $0xf4] sm:$0xf0] }
 0x8a8   :  { %v19053_v61 = vpop.f32.mrf.mxu1  ;;  %v19055_v6 = vpop.f32.mrf.mxu2  ;;  %8128 = vmatpush.bf16.msra.mxu1 %v11778_v30  ;;  %v12859_v30 = vld [vmem:[%s20252_s7 + $0xd4] sm:$0xf] }
 0x8a9   :  { %8534 = vmatpush.bf16.msra.mxu2 %v12014_v9  ;;  %v7698_v9 = vperm.slane %v19221_v60, 3  ;;  %v11819_v60 = vld [vmem:[%s20252_s7 + $0x278] sm:$0xf0] }
 0x8aa   :  { %v19060_v2 = vpop.f32.mrf.mxu0  ;;  %8110 = vmatpush.bf16.msra.mxu0 %v11706_v50  ;;  %v7057_v50 = vadd.f32 %v19033_v39, %v7038_v28  ;;  %v7079_v39 = vadd.f32 %v19055_v6, %v18991_v32  ;;  %v11822_v40 = vor.u32 %v12911_v27, %v11819_v60  ;;  %v9125_v27 = vperm.slane %v19296_v42, 4 }
 0x8ab   :  { %v19422_v60 = vperm.slane %v9124_v33, 0 }
 0x8ac   :  { %8129 = vmatpush.bf16.msra.mxu1 %v11770_v1 }
 0x8ae   :  { %v19077_v5 = vpop.f32.mrf.mxu3  ;;  %8111 = vmatpush.bf16.msra.mxu0 %v11698_v63  ;;  %v11811_v63 = vld [vmem:[%s20252_s7 + $0x268] sm:$0xf0] }
 0x8b0   :  { %v19079_v8 = vpop.f32.mrf.mxu1  ;;  %v19081_v31 = vpop.f32.mrf.mxu2 }
 0x8b2   :  { %v19083_v20 = vpop.f32.mrf.mxu0  ;;  %8180 = vmatpush.bf16.msrb.mxu0 %v11822_v40  ;;  %v12925_v40 = vld [vmem:[%s20252_s7 + $0x2e4] sm:$0xf] }
 0x8b6   :  { %v19112_v62 = vpop.f32.mrf.mxu3 }
 0x8b8   :  { %v19129_v18 = vpop.f32.mrf.mxu1  ;;  %v19131_v3 = vpop.f32.mrf.mxu2 }
 0x8b9   :  { %v7336_v53 = vadd.f32 %v19129_v18, %v19083_v20  ;;  %v11702_v20 = vor.u32 %v12881_v34, %v11699_v38  ;;  %v12006_v18 = vor.u32 %v12861_v52, %v12003_v15  ;;  %v12909_v34 = vld [vmem:[%s20252_s7 + $0x264] sm:$0xf]  ;;  %v12001_v38 = vld [vmem:[%s20252_s7 + $0xe0] sm:$0xf]  ;;  %v12862_v52 = vld [vmem:[%s20252_s7 + $0xe4] sm:$0xf0] }
 0x8ba   :  { %v19133_v37 = vpop.f32.mrf.mxu0  ;;  %v12002_v15 = vor.u32 %v12862_v52, %v12001_v38 }
 0x8bb   :  { %v7383_v35 = vadd.f32 %v7336_v53, %v7055_v17  ;;  %8168 = vmatpush.bf16.msra.mxu3 %v11702_v20  ;;  %8535 = vmatpush.bf16.msra.mxu2 %v12006_v18  ;;  %v12857_v17 = vld [vmem:[%s20252_s7 + $0xc4] sm:$0xf]  ;;  %v11987_v20 = vld [vmem:[%s20252_s7 + $0xc8] sm:$0xf0]  ;;  %v12927_v18 = vld [vmem:[%s20252_s7 + $0x2f4] sm:$0xf] }
 0x8be   :  { %v19136_v47 = vpop.f32.mrf.mxu3 }
 0x8bf   :  { %v7374_v32 = vadd.f32 %v19136_v47, %v19131_v3  ;;  %v7095_v3 = vadd.f32 %v19051_v44, %v7076_v36  ;;  %v19374_v47 = vadd.f32 %v19053_v61, %v7041_v55  ;;  %v7043_v44 = vadd.f32 %v19060_v2, %v19284_v56  ;;  %v11883_v36 = vld [vmem:[%s20252_s7 + $0x2f8] sm:$0xf0] }
 0x8c0   :  { %v19138_v26 = vpop.f32.mrf.mxu1  ;;  %v19140_v57 = vpop.f32.mrf.mxu2  ;;  %v19388_v61 = vadd.f32 %v19077_v5, %v7079_v39  ;;  %v7081_v2 = vadd.f32 %v19081_v31, %v19302_v21  ;;  %v11814_v56 = vor.u32 %v12909_v34, %v11811_v63  ;;  %v11990_v21 = vor.u32 %v12857_v17, %v11987_v20  ;;  %v11795_v34 = vld [vmem:[%s20252_s7 + $0x248] sm:$0xf0]  ;;  %v12853_v63 = vld [vmem:[%s20252_s7 + $0xa4] sm:$0xf] }
 0x8c1   :  { %v7338_v41 = vadd.f32 %v19138_v26, %v19133_v37  ;;  %v12010_v37 = vor.u32 %v12864_v11, %v12009_v24  ;;  %v11998_v26 = vor.u32 %v12859_v30, %v11995_v43  ;;  %v7384_v59 = vadd.f32 %v7374_v32, %v7093_v58  ;;  %v12907_v24 = vld [vmem:[%s20252_s7 + $0x254] sm:$0xf]  ;;  %v12860_v32 = vld [vmem:[%s20252_s7 + $0xd4] sm:$0xf0] }
 0x8c2   :  { %v19160_v12 = vpop.f32.mrf.mxu0  ;;  %v19416_v39 = vperm.slane %v7684_v10, 0  ;;  %8181 = vmatpush.bf16.msrb.mxu0 %v11814_v56  ;;  %v19450_v11 = vadd.f32 %v19079_v8, %v7043_v44  ;;  %v19453_v30 = vadd.f32 %v19112_v62, %v7081_v2  ;;  %v12923_v56 = vld [vmem:[%s20252_s7 + $0x2d4] sm:$0xf] }
 0x8c3   :  { %8477 = vmatpush.bf16.msrb.mxu3 %v12010_v37  ;;  %8536 = vmatpush.bf16.msra.mxu2 %v11998_v26  ;;  %v7385_v22 = vadd.f32 %v7338_v41, %v7057_v50  ;;  %v12855_v41 = vld [vmem:[%s20252_s7 + $0xb4] sm:$0xf] }
 0x8c6   :  { %v19192_v7 = vpop.f32.mrf.mxu3 }
 0x8c7   :  { %v7376_v1 = vadd.f32 %v19192_v7, %v19140_v57  ;;  %v11803_v57 = vld [vmem:[%s20252_s7 + $0x258] sm:$0xf0]  ;;  %8478 = vmatpush.bf16.msrb.mxu3 %v12002_v15  ;;  %8537 = vmatpush.bf16.msra.mxu2 %v11990_v21 }
 0x8c8   :  { %v19194_v13 = vpop.f32.mrf.mxu1  ;;  %v19196_v51 = vpop.f32.mrf.mxu2  ;;  %v11806_v33 = vor.u32 %v12907_v24, %v11803_v57  ;;  %v11867_v15 = vld [vmem:[%s20252_s7 + $0x2d8] sm:$0xf0] }
 0x8c9   :  { %v7341_v7 = vadd.f32 %v19194_v13, %v19160_v12  ;;  %v7386_v43 = vadd.f32 %v7376_v1, %v7095_v3  ;;  %v9135_v1 = vperm.slane %v19296_v42, 1 }
 0x8ca   :  { %v19216_v14 = vpop.f32.mrf.mxu0  ;;  %8182 = vmatpush.bf16.msrb.mxu0 %v11806_v33 }
 0x8cb   :  { %v7387_v38 = vadd.f32 %v7341_v7, %v19374_v47 }
 0x8ce   :  { %v19253_v19 = vpop.f32.mrf.mxu3 }
 0x8cf   :  { %v7379_v10 = vadd.f32 %v19253_v19, %v19196_v51  ;;  %v11979_v19 = vld [vmem:[%s20252_s7 + $0xb8] sm:$0xf0] }
 0x8d0   :  { %v19256_v25 = vpop.f32.mrf.mxu1  ;;  %v19258_v48 = vpop.f32.mrf.mxu2  ;;  %v11982_v26 = vor.u32 %v12855_v41, %v11979_v19 }
 0x8d1   :  { %v19487_v17 = vadd.f32 %v7379_v10, %v19388_v61  ;;  %v11977_v61 = vld [vmem:[%s20252_s7 + $0xb0] sm:$0xf]  ;;  %v11963_v10 = vld [vmem:[%s20252_s7 + $0x98] sm:$0xf0]  ;;  %v7343_v33 = vadd.f32 %v19256_v25, %v19216_v14 }
 0x8d2   :  { %v7605_v16 = vpop.f32.mrf.mxu0  ;;  %8538 = vmatpush.bf16.msra.mxu2 %v11982_v26 }
 0x8d6   :  { %v19337_v54 = vpop.f32.mrf.mxu3 }
 0x8d7   :  { %v7381_v26 = vadd.f32 %v19337_v54, %v19258_v48  ;;  %v12919_v54 = vld [vmem:[%s20252_s7 + $0x2b4] sm:$0xf] }
 0x8d8   :  { %v7624_v46 = vpop.f32.mrf.mxu1  ;;  %v7643_v23 = vpop.f32.mrf.mxu2 }
 0x8d9   :  { %v7625_v6 = vadd.f32 %v7624_v46, %v7605_v16  ;;  %v11761_v16 = vld [vmem:[%s20252_s7 + $0x200] sm:$0xf]  ;;  %v11886_v46 = vor.u32 %v12927_v18, %v11883_v36  ;;  %v9129_v36 = vperm.slane %v9125_v27, 0 }
 0x8da   :  { %v11762_v53 = vor.u32 %v12898_v45, %v11761_v16  ;;  %v7607_v5 = vpop.f32.mrf.mxu0  ;;  %v11875_v16 = vld [vmem:[%s20252_s7 + $0x2e8] sm:$0xf0]  ;;  %v12905_v45 = vld [vmem:[%s20252_s7 + $0x244] sm:$0xf] }
 0x8db   :  { %v7672_v28 = vadd.f32 %v7625_v6, %v7383_v35  ;;  %v19418_v35 = vperm.slane %v7698_v9, 1  ;;  %v11878_v3 = vor.u32 %v12925_v40, %v11875_v16  ;;  %v11798_v52 = vor.u32 %v12905_v45, %v11795_v34  ;;  %v11969_v40 = vld [vmem:[%s20252_s7 + $0xa0] sm:$0xf]  ;;  %v12849_v34 = vld [vmem:[%s20252_s7 + $0x84] sm:$0xf] }
 0x8dc   :  { %8130 = vmatpush.bf16.msra.mxu1 %v11762_v53  ;;  %v12858_v53 = vld [vmem:[%s20252_s7 + $0xc4] sm:$0xf0]  ;;  %v9136_v16 = vperm.slane %v19296_v42, 5  ;;  %v9147_v45 = vperm.slane %v19296_v42, 2 }
 0x8dd   :  { %v7689_v31 = vmul.f32 %v19339_v4, %v7672_v28  ;;  %v11985_v28 = vld [vmem:[%s20252_s7 + $0xc0] sm:$0xf]  ;;  %8183 = vmatpush.bf16.msrb.mxu0 %v11798_v52 }
 0x8de   :  { %v7662_v55 = vpop.f32.mrf.mxu3  ;;  %v11986_v2 = vor.u32 %v12858_v53, %v11985_v28  ;;  %v11851_v53 = vld [vmem:[%s20252_s7 + $0x2b8] sm:$0xf0] }
 0x8df   :  { %v7703_v58 = vadd.f32 %v19341_v29, %v7689_v31  ;;  %v7663_v50 = vadd.f32 %v7662_v55, %v7643_v23  ;;  %v11993_v23 = vld [vmem:[%s20252_s7 + $0xd0] sm:$0xf] }
 0x8e0   :  { %v7626_v9 = vpop.f32.mrf.mxu1  ;;  %8199 = vmatpush.bf16.msrb.mxu1 %v11886_v46  ;;  %v11994_v51 = vor.u32 %v12860_v32, %v11993_v23  ;;  %v7645_v37 = vpop.f32.mrf.mxu2  ;;  %v11870_v46 = vor.u32 %v12923_v56, %v11867_v15 }
 0x8e1   :  { %v7711_v12 = vmul.f32 0.2, %v7703_v58  ;;  %v7673_v13 = vadd.f32 %v7663_v50, %v7384_v59  ;;  %v7627_v6 = vadd.f32 %v7626_v9, %v7607_v5  ;;  %v11971_v5 = vld [vmem:[%s20252_s7 + $0xa8] sm:$0xf0]  ;;  %v12903_v59 = vld [vmem:[%s20252_s7 + $0x234] sm:$0xf] }
 0x8e2   :  { %8479 = vmatpush.bf16.msrb.mxu3 %v11994_v51  ;;  %v7610_v31 = vpop.f32.mrf.mxu0  ;;  %v11974_v55 = vor.u32 %v12853_v63, %v11971_v5  ;;  %v12851_v50 = vld [vmem:[%s20252_s7 + $0x94] sm:$0xf]  ;;  %v12921_v9 = vld [vmem:[%s20252_s7 + $0x2c4] sm:$0xf] }
 0x8e3   :  { %v19464_v8 = vmax.f32 %v7703_v58, %v7711_v12  ;;  %v7690_v62 = vmul.f32 %v19416_v39, %v7673_v13  ;;  %v7674_v44 = vadd.f32 %v7627_v6, %v7385_v22  ;;  %v11787_v22 = vld [vmem:[%s20252_s7 + $0x238] sm:$0xf0]  ;;  %v12856_v58 = vld [vmem:[%s20252_s7 + $0xb4] sm:$0xf0]  ;;  %v11966_v41 = vor.u32 %v12851_v50, %v11963_v10  ;;  %v11859_v12 = vld [vmem:[%s20252_s7 + $0x2c8] sm:$0xf0] }
 0x8e4   :  { %8200 = vmatpush.bf16.msrb.mxu1 %v11878_v3  ;;  %v11790_v27 = vor.u32 %v12903_v59, %v11787_v22  ;;  %8539 = vmatpush.bf16.msra.mxu2 %v11974_v55  ;;  %v11978_v32 = vor.u32 %v12856_v58, %v11977_v61  ;;  %v12901_v13 = vld [vmem:[%s20252_s7 + $0x224] sm:$0xf]  ;;  %v11779_v6 = vld [vmem:[%s20252_s7 + $0x228] sm:$0xf0]  ;;  %v11771_v59 = vld [vmem:[%s20252_s7 + $0x218] sm:$0xf0]  ;;  %v7389_v50 = vadd.f32 %v7343_v33, %v19450_v11 }
 0x8e5   :  { %v7704_v47 = vadd.f32 %v19418_v35, %v7690_v62  ;;  %v7691_v20 = vmul.f32 %v19339_v4, %v7674_v44  ;;  %v19493_v18 = vpack.c.bf16 %v19464_v8, %v20563_v0  ;;  %v11955_v62 = vld [vmem:[%s20252_s7 + $0x88] sm:$0xf0]  ;;  %v9130_v48 = vmul.f32 %v19422_v60, %v19464_v8  ;;  %v12899_v60 = vld [vmem:[%s20252_s7 + $0x214] sm:$0xf]  ;;  %v12313_v22 = vld [vmem:[%s20252_s7 + $0x470] sm:$0xf] }
 0x8e6   :  { %v7664_v21 = vpop.f32.mrf.mxu3  ;;  %8480 = vmatpush.bf16.msrb.mxu3 %v11986_v2  ;;  %8184 = vmatpush.bf16.msrb.mxu0 %v11790_v27  ;;  %v9148_v2 = vperm.slane %v19296_v42, 6  ;;  %v12976_v61 = vld [vmem:[%s20252_s7 + $0x474] sm:$0xf0]  ;;  %v9140_v55 = vperm.slane %v9136_v16, 1  ;;  %v11843_v27 = vld [vmem:[%s20252_s7 + $0x2a8] sm:$0xf0]  ;;  %v11774_v33 = vor.u32 %v12899_v60, %v11771_v59 }
 0x8e7   :  { %v7705_v24 = vadd.f32 %v19341_v29, %v7691_v20  ;;  %v7665_v57 = vadd.f32 %v7664_v21, %v7645_v37  ;;  %8466 = vmatmul.bf16.vlgmr.msrb.gmra.mxu2 %v19493_v18  ;;  %v7712_v7 = vmul.f32 0.2, %v7704_v47  ;;  %v12854_v37 = vld [vmem:[%s20252_s7 + $0xa4] sm:$0xf0]  ;;  %v11958_v20 = vor.u32 %v12849_v34, %v11955_v62  ;;  %v12852_v58 = vld [vmem:[%s20252_s7 + $0x94] sm:$0xf0] }
 0x8e8   :  { %v7629_v23 = vpop.f32.mrf.mxu1  ;;  %8201 = vmatpush.bf16.msrb.mxu1 %v11870_v46  ;;  %v7648_v63 = vpop.f32.mrf.mxu2  ;;  %8540 = vmatpush.bf16.msra.mxu2 %v11966_v41  ;;  %v11970_v5 = vor.u32 %v12854_v37, %v11969_v40  ;;  %v11854_v46 = vor.u32 %v12919_v54, %v11851_v53  ;;  %v19593_v11 = vperm.slane %v9148_v2, 2  ;;  %v12897_v41 = vld [vmem:[%s20252_s7 + $0x204] sm:$0xf]  ;;  %v12974_v40 = vld [vmem:[%s20252_s7 + $0x464] sm:$0xf0]  ;;  %v7390_v37 = vadd.f32 %v7381_v26, %v19453_v30 }
 0x8e9   :  { %v7713_v51 = vmul.f32 0.2, %v7705_v24  ;;  %v7675_v19 = vadd.f32 %v7665_v57, %v7386_v43  ;;  %v7630_v14 = vadd.f32 %v7629_v23, %v7610_v31  ;;  %v19530_v25 = vmax.f32 %v7704_v47, %v7712_v7  ;;  %v12880_v34 = vld [vmem:[%s20252_s7 + $0x174] sm:$0xf0]  ;;  %v11835_v54 = vld [vmem:[%s20252_s7 + $0x298] sm:$0xf0] }
 0x8ea   :  { %v11862_v43 = vor.u32 %v12921_v9, %v11859_v12  ;;  %8481 = vmatpush.bf16.msrb.mxu3 %v11978_v32  ;;  %v7612_v10 = vpop.f32.mrf.mxu0  ;;  %v19591_v23 = vperm.slane %v9147_v45, 2  ;;  %v12314_v32 = vor.u32 %v12976_v61, %v12313_v22  ;;  %v11763_v12 = vld [vmem:[%s20252_s7 + $0x208] sm:$0xf0] }
 0x8eb   :  { %v19548_v44 = vmax.f32 %v7705_v24, %v7713_v51  ;;  %v7692_v3 = vmul.f32 %v19416_v39, %v7675_v19  ;;  %v7676_v28 = vadd.f32 %v7630_v14, %v7387_v38  ;;  %v9131_v52 = vmul.f32 %v9129_v36, %v19530_v25  ;;  %v12305_v14 = vld [vmem:[%s20252_s7 + $0x460] sm:$0xf] }
 0x8ec   :  { %v11782_v38 = vor.u32 %v12901_v13, %v11779_v6  ;;  %8202 = vmatpush.bf16.msrb.mxu1 %v11862_v43  ;;  %v9139_v36 = vperm.slane %v9135_v1, 1  ;;  %v12917_v1 = vld [vmem:[%s20252_s7 + $0x2a4] sm:$0xf]  ;;  %8541 = vmatpush.bf16.msra.mxu2 %v11958_v20  ;;  %v12073_v43 = vld [vmem:[%s20252_s7 + $0x170] sm:$0xf]  ;;  %v12306_v2 = vor.u32 %v12974_v40, %v12305_v14 }
 0x8ed   :  { %v7706_v56 = vadd.f32 %v19418_v35, %v7692_v3  ;;  %v7693_v15 = vmul.f32 %v19339_v4, %v7676_v28  ;;  %v7809_v47 = vpack.c.bf16 %v19548_v44, %v19464_v8  ;;  %v9132_v21 = vadd.f32 %v9131_v52, %v9130_v48  ;;  %v11961_v8 = vld [vmem:[%s20252_s7 + $0x90] sm:$0xf]  ;;  %v12850_v28 = vld [vmem:[%s20252_s7 + $0x84] sm:$0xf0]  ;;  %v12915_v48 = vld [vmem:[%s20252_s7 + $0x294] sm:$0xf] }
 0x8ee   :  { %v7667_v31 = vpop.f32.mrf.mxu3  ;;  %8185 = vmatpush.bf16.msrb.mxu0 %v11782_v38  ;;  %8482 = vmatpush.bf16.msrb.mxu3 %v11970_v5  ;;  %v11962_v16 = vor.u32 %v12852_v58, %v11961_v8  ;;  %v11846_v45 = vor.u32 %v12917_v1, %v11843_v27  ;;  %v9141_v53 = vmul.f32 %v9139_v36, %v19548_v44  ;;  %v12879_v38 = vld [vmem:[%s20252_s7 + $0x174] sm:$0xf]  ;;  %v12075_v5 = vld [vmem:[%s20252_s7 + $0x178] sm:$0xf0]  ;;  %v12297_v20 = vld [vmem:[%s20252_s7 + $0x450] sm:$0xf] }
 0x8ef   :  { %v7714_v24 = vmul.f32 0.2, %v7706_v56  ;;  %v7707_v57 = vadd.f32 %v19341_v29, %v7693_v15  ;;  %v7668_v7 = vadd.f32 %v7667_v31, %v7648_v63  ;;  %8112 = vmatmul.bf16.vlgmr.msra.gmra.mxu0 %v7809_v47  ;;  %8169 = vmatmul.bf16.vlgmr.msra.gmra.mxu3 %v7809_v47  ;;  %v11766_v52 = vor.u32 %v12897_v41, %v11763_v12  ;;  %v11827_v36 = vld [vmem:[%s20252_s7 + $0x288] sm:$0xf0] }
 0x8f0   :  { %9133 = vadd.xlane.f32.xlu0 %v9132_v21  ;;  %v7631_v9 = vpop.f32.mrf.mxu1  ;;  %8203 = vmatpush.bf16.msrb.mxu1 %v11854_v46  ;;  %v12074_v47 = vor.u32 %v12880_v34, %v12073_v43  ;;  %v7650_v59 = vpop.f32.mrf.mxu2  ;;  %v11838_v21 = vor.u32 %v12915_v48, %v11835_v54  ;;  %v12078_v58 = vor.u32 %v12879_v38, %v12075_v5  ;;  %v12067_v1 = vld [vmem:[%s20252_s7 + $0x168] sm:$0xf0]  ;;  %v12059_v48 = vld [vmem:[%s20252_s7 + $0x158] sm:$0xf0]  ;;  %v12845_v54 = vld [vmem:[%s20252_s7 + $0x64] sm:$0xf] }
 0x8f1   :  { %v19601_v13 = vmax.f32 %v7706_v56, %v7714_v24  ;;  %v7715_v6 = vmul.f32 0.2, %v7707_v57  ;;  %v7677_v51 = vadd.f32 %v7668_v7, %v19487_v17  ;;  %v7632_v19 = vadd.f32 %v7631_v9, %v7612_v10  ;;  %8917 = vmatpush.bf16.msrb.mxu2 %v12314_v32  ;;  %v11953_v17 = vld [vmem:[%s20252_s7 + $0x80] sm:$0xf]  ;;  %v12878_v24 = vld [vmem:[%s20252_s7 + $0x164] sm:$0xf0] }
 0x8f2   :  { %8186 = vmatpush.bf16.msrb.mxu0 %v11774_v33  ;;  %8483 = vmatpush.bf16.msrb.mxu3 %v11962_v16  ;;  %v11954_v31 = vor.u32 %v12850_v28, %v11953_v17  ;;  %v9160_v7 = vperm.slane %v19296_v42, 7  ;;  %v11947_v32 = vld [vmem:[%s20252_s7 + $0x78] sm:$0xf0]  ;;  %v12057_v16 = vld [vmem:[%s20252_s7 + $0x150] sm:$0xf] }
 0x8f3   :  { %v19620_v62 = vmax.f32 %v7707_v57, %v7715_v6  ;;  %v7694_v30 = vmul.f32 %v19416_v39, %v7677_v51  ;;  %v19625_v26 = vpack.c.bf16 %v19601_v13, %v19530_v25  ;;  %v7678_v3 = vadd.f32 %v7632_v19, %v7389_v50  ;;  %v12065_v50 = vld [vmem:[%s20252_s7 + $0x160] sm:$0xf]  ;;  %v12970_v51 = vld [vmem:[%s20252_s7 + $0x444] sm:$0xf0] }
 0x8f4   :  { %v9142_v63 = vmul.f32 %v9140_v55, %v19601_v13  ;;  %8204 = vmatpush.bf16.msrb.mxu1 %v11846_v45  ;;  %v9159_v57 = vperm.slane %v19296_v42, 3  ;;  %v12847_v42 = vld [vmem:[%s20252_s7 + $0x74] sm:$0xf]  ;;  %v12066_v12 = vor.u32 %v12878_v24, %v12065_v50  ;;  %v12289_v6 = vld [vmem:[%s20252_s7 + $0x440] sm:$0xf]  ;;  %v9164_v43 = vperm.slane %v9160_v7, 3 }
 0x8f5   :  { %v7708_v60 = vadd.f32 %v19418_v35, %v7694_v30  ;;  %v7695_v56 = vmul.f32 %v19339_v4, %v7678_v3  ;;  %8131 = vmatmul.bf16.vlgmr.msra.gmra.mxu1 %v19625_v26  ;;  %v19649_v15 = vpack.c.bf16 %v19620_v62, %v19548_v44  ;;  %v12972_v4 = vld [vmem:[%s20252_s7 + $0x454] sm:$0xf0]  ;;  %v12913_v44 = vld [vmem:[%s20252_s7 + $0x284] sm:$0xf]  ;;  %8918 = vmatpush.bf16.msrb.mxu2 %v12306_v2  ;;  %v12049_v2 = vld [vmem:[%s20252_s7 + $0x140] sm:$0xf] }
 0x8f6   :  { %v7669_v22 = vpop.f32.mrf.mxu3  ;;  %v9143_v61 = vadd.f32 %v9142_v63, %v9141_v53  ;;  %8187 = vmatpush.bf16.msrb.mxu0 %v11766_v52  ;;  %v12298_v33 = vor.u32 %v12972_v4, %v12297_v20  ;;  %8484 = vmatpush.bf16.msrb.mxu3 %v11954_v31  ;;  %v11830_v41 = vor.u32 %v12913_v44, %v11827_v36  ;;  %v12876_v45 = vld [vmem:[%s20252_s7 + $0x154] sm:$0xf0]  ;;  %v9163_v17 = vperm.slane %v9159_v57, 3  ;;  %v11939_v53 = vld [vmem:[%s20252_s7 + $0x68] sm:$0xf0] }
 0x8f7   :  { %v7709_v55 = vadd.f32 %v19341_v29, %v7695_v56  ;;  %v7670_v46 = vadd.f32 %v7669_v22, %v7650_v59  ;;  %8471 = vmatmul.bf16.gmra.mxu2 %v19649_v15  ;;  %v7716_v8 = vmul.f32 0.2, %v7708_v60  ;;  %v12877_v29 = vld [vmem:[%s20252_s7 + $0x164] sm:$0xf]  ;;  %v9153_v14 = vmul.f32 %v19591_v23, %v19620_v62  ;;  %v12875_v23 = vld [vmem:[%s20252_s7 + $0x154] sm:$0xf] }
 0x8f8   :  { %9144 = vadd.xlane.f32.xlu0 %v9143_v61  ;;  %8205 = vmatpush.bf16.msrb.mxu1 %v11838_v21  ;;  %v11950_v34 = vor.u32 %v12847_v42, %v11947_v32  ;;  %v12290_v28 = vor.u32 %v12970_v51, %v12289_v6  ;;  %v12968_v63 = vld [vmem:[%s20252_s7 + $0x434] sm:$0xf0]  ;;  %v12874_v38 = vld [vmem:[%s20252_s7 + $0x144] sm:$0xf0]  ;;  %v11942_v5 = vor.u32 %v12845_v54, %v11939_v53  ;;  %v11931_v20 = vld [vmem:[%s20252_s7 + $0x58] sm:$0xf0] }
 0x8f9   :  { %v7717_v27 = vmul.f32 0.2, %v7709_v55  ;;  %v7679_v10 = vadd.f32 %v7670_v46, %v7390_v37  ;;  %v19679_v9 = vmax.f32 %v7708_v60, %v7716_v8  ;;  %8919 = vmatpush.bf16.msrb.mxu2 %v12298_v33  ;;  %v12062_v56 = vor.u32 %v12875_v23, %v12059_v48  ;;  %v12873_v61 = vld [vmem:[%s20252_s7 + $0x144] sm:$0xf]  ;;  %v12051_v31 = vld [vmem:[%s20252_s7 + $0x148] sm:$0xf0] }
 0x8fa   :  { %8496 = vmatpush.bf16.msra.mxu0 %v12074_v47  ;;  %8553 = vmatpush.bf16.msra.mxu3 %v12078_v58  ;;  %v12843_v47 = vld [vmem:[%s20252_s7 + $0x54] sm:$0xf]  ;;  %v12050_v22 = vor.u32 %v12874_v38, %v12049_v2  ;;  %v12273_v21 = vld [vmem:[%s20252_s7 + $0x420] sm:$0xf]  ;;  %v12041_v46 = vld [vmem:[%s20252_s7 + $0x130] sm:$0xf]  ;;  %v7753_v50 = vpack.c.bf16 %v19530_v25, %v20563_v0  ;;  %v12054_v57 = vor.u32 %v12873_v61, %v12051_v31 }
 0x8fb   :  { %v7696_v19 = vmul.f32 %v19416_v39, %v7679_v10  ;;  %v9154_v40 = vmul.f32 %v19593_v11, %v19679_v9  ;;  %v19698_v37 = vmax.f32 %v7709_v55, %v7717_v27  ;;  %v12070_v39 = vor.u32 %v12877_v29, %v12067_v1  ;;  %v12966_v55 = vld [vmem:[%s20252_s7 + $0x424] sm:$0xf0]  ;;  %v12872_v8 = vld [vmem:[%s20252_s7 + $0x134] sm:$0xf0]  ;;  %v12841_v7 = vld [vmem:[%s20252_s7 + $0x44] sm:$0xf] }
 0x8fc   :  { %8206 = vmatpush.bf16.msrb.mxu1 %v11830_v41  ;;  %v11934_v58 = vor.u32 %v12843_v47, %v11931_v20  ;;  %v11923_v29 = vld [vmem:[%s20252_s7 + $0x48] sm:$0xf0]  ;;  %v12274_v1 = vor.u32 %v12966_v55, %v12273_v21  ;;  %v12042_v27 = vor.u32 %v12872_v8, %v12041_v46  ;;  %v12871_v25 = vld [vmem:[%s20252_s7 + $0x134] sm:$0xf]  ;;  %v12043_v10 = vld [vmem:[%s20252_s7 + $0x138] sm:$0xf0] }
 0x8fd   :  { %v7710_v11 = vadd.f32 %v19418_v35, %v7696_v19  ;;  %v9155_v30 = vadd.f32 %v9154_v40, %v9153_v14  ;;  %v7812_v3 = vpack.c.bf16 %v19698_v37, %v19620_v62  ;;  %v12058_v35 = vor.u32 %v12876_v45, %v12057_v16  ;;  %v12281_v62 = vld [vmem:[%s20252_s7 + $0x430] sm:$0xf]  ;;  %8920 = vmatpush.bf16.msrb.mxu2 %v12290_v28  ;;  %v12964_v42 = vld [vmem:[%s20252_s7 + $0x414] sm:$0xf0]  ;;  %v12033_v32 = vld [vmem:[%s20252_s7 + $0x120] sm:$0xf] }
 0x8fe   :  { %8497 = vmatpush.bf16.msra.mxu0 %v12066_v12  ;;  %8554 = vmatpush.bf16.msra.mxu3 %v12070_v39  ;;  %v12282_v59 = vor.u32 %v12968_v63, %v12281_v62  ;;  %v9165_v44 = vmul.f32 %v9163_v17, %v19698_v37  ;;  %v12265_v33 = vld [vmem:[%s20252_s7 + $0x410] sm:$0xf]  ;;  %v12870_v41 = vld [vmem:[%s20252_s7 + $0x124] sm:$0xf0]  ;;  %v11926_v12 = vor.u32 %v12841_v7, %v11923_v29  ;;  %v12839_v51 = vld [vmem:[%s20252_s7 + $0x34] sm:$0xf] }
 0x8ff   :  { %v7718_v52 = vmul.f32 0.2, %v7710_v11  ;;  %9156 = vadd.xlane.f32.xlu2 %v9155_v30  ;;  %8117 = vmatmul.bf16.gmra.mxu0 %v7812_v3  ;;  %v12046_v6 = vor.u32 %v12871_v25, %v12043_v10  ;;  %v11915_v19 = vld [vmem:[%s20252_s7 + $0x38] sm:$0xf0]  ;;  %v12266_v14 = vor.u32 %v12964_v42, %v12265_v33  ;;  %v12034_v40 = vor.u32 %v12870_v41, %v12033_v32  ;;  %v12869_v16 = vld [vmem:[%s20252_s7 + $0x124] sm:$0xf] }
 0x900   :  { %8174 = vmatmul.bf16.gmra.mxu3 %v7812_v3  ;;  %8515 = vmatpush.bf16.msra.mxu1 %v11950_v34  ;;  %v12035_v45 = vld [vmem:[%s20252_s7 + $0x128] sm:$0xf0]  ;;  %v12257_v17 = vld [vmem:[%s20252_s7 + $0x400] sm:$0xf]  ;;  %v12025_v39 = vld [vmem:[%s20252_s7 + $0x110] sm:$0xf]  ;;  %v11918_v23 = vor.u32 %v12839_v51, %v11915_v19 }
 0x901   :  { %v19733_v60 = vmax.f32 %v7710_v11, %v7718_v52  ;;  %8921 = vmatpush.bf16.msrb.mxu2 %v12282_v59  ;;  %v12868_v34 = vld [vmem:[%s20252_s7 + $0x114] sm:$0xf0]  ;;  %v12959_v11 = vld [vmem:[%s20252_s7 + $0x3f4] sm:$0xf]  ;;  %v12251_v30 = vld [vmem:[%s20252_s7 + $0x3f8] sm:$0xf0]  ;;  %v12038_v3 = vor.u32 %v12869_v16, %v12035_v45 }
 0x902   :  { %8498 = vmatpush.bf16.msra.mxu0 %v12058_v35  ;;  %8555 = vmatpush.bf16.msra.mxu3 %v12062_v56  ;;  %v12837_v28 = vld [vmem:[%s20252_s7 + $0x24] sm:$0xf]  ;;  %v11907_v48 = vld [vmem:[%s20252_s7 + $0x28] sm:$0xf0]  ;;  %v12026_v53 = vor.u32 %v12868_v34, %v12025_v39  ;;  %v12867_v35 = vld [vmem:[%s20252_s7 + $0x114] sm:$0xf]  ;;  %v19835_v63 = vor.u32 %v12959_v11, %v12251_v30 }
 0x903   :  { %v19752_v4 = vpack.c.bf16 %v19733_v60, %v19679_v9  ;;  %v9166_v36 = vmul.f32 %v9164_v43, %v19733_v60  ;;  %v12962_v43 = vld [vmem:[%s20252_s7 + $0x404] sm:$0xf0]  ;;  %v12027_v62 = vld [vmem:[%s20252_s7 + $0x118] sm:$0xf0]  ;;  %v12017_v52 = vld [vmem:[%s20252_s7 + $0x100] sm:$0xf]  ;;  %v11910_v38 = vor.u32 %v12837_v28, %v11907_v48 }
 0x904   :  { %8516 = vmatpush.bf16.msra.mxu1 %v11942_v5  ;;  %v12258_v54 = vor.u32 %v12962_v43, %v12257_v17  ;;  %v12866_v2 = vld [vmem:[%s20252_s7 + $0x104] sm:$0xf0]  ;;  %v12957_v5 = vld [vmem:[%s20252_s7 + $0x3e4] sm:$0xf]  ;;  %v12944_v56 = vld [vmem:[%s20252_s7 + $0x374] sm:$0xf0]  ;;  %v12030_v47 = vor.u32 %v12867_v35, %v12027_v62 }
 0x905   :  { %8136 = vmatmul.bf16.gmra.mxu1 %v19752_v4  ;;  %v9167_v24 = vadd.f32 %v9166_v36, %v9165_v44  ;;  %8922 = vmatpush.bf16.msrb.mxu2 %v12274_v1  ;;  %v12243_v20 = vld [vmem:[%s20252_s7 + $0x3e8] sm:$0xf0]  ;;  %v12835_v59 = vld [vmem:[%s20252_s7 + $0x14] sm:$0xf]  ;;  %v12018_v61 = vor.u32 %v12866_v2, %v12017_v52  ;;  %v12865_v31 = vld [vmem:[%s20252_s7 + $0x104] sm:$0xf] }
 0x906   :  { %8499 = vmatpush.bf16.msra.mxu0 %v12050_v22  ;;  %8556 = vmatpush.bf16.msra.mxu3 %v12054_v57  ;;  %v11899_v22 = vld [vmem:[%s20252_s7 + $0x18] sm:$0xf0]  ;;  %v12019_v21 = vld [vmem:[%s20252_s7 + $0x108] sm:$0xf0]  ;;  %v12943_v36 = vld [vmem:[%s20252_s7 + $0x374] sm:$0xf]  ;;  %v19874_v46 = vor.u32 %v12957_v5, %v12243_v20  ;;  %v19888_v57 = vpack.c.bf16 %v19679_v9, %v19601_v13 }
 0x907   :  { %8542 = vmatmul.bf16.vlgmr.msra.gmra.mxu2 %v7753_v50  ;;  %9168 = vadd.xlane.f32.xlu0 %v9167_v24  ;;  %v12187_v55 = vld [vmem:[%s20252_s7 + $0x378] sm:$0xf0]  ;;  %v11902_v8 = vor.u32 %v12835_v59, %v11899_v22  ;;  %v12942_v24 = vld [vmem:[%s20252_s7 + $0x364] sm:$0xf0]  ;;  %v12022_v7 = vor.u32 %v12865_v31, %v12019_v21  ;;  %v12833_v1 = vld [vmem:[%s20252_s7 + $0x4] sm:$0xf] }
 0x908   :  { %8517 = vmatpush.bf16.msra.mxu1 %v11934_v58  ;;  %v12955_v58 = vld [vmem:[%s20252_s7 + $0x3d4] sm:$0xf]  ;;  %v12235_v29 = vld [vmem:[%s20252_s7 + $0x3d8] sm:$0xf0]  ;;  %v12190_v25 = vor.u32 %v12943_v36, %v12187_v55  ;;  %v12249_v13 = vld [vmem:[%s20252_s7 + $0x3f0] sm:$0xf] }
 0x909   :  { %8923 = vmatpush.bf16.msrb.mxu2 %v12266_v14  ;;  %v12960_v9 = vld [vmem:[%s20252_s7 + $0x3f4] sm:$0xf0]  ;;  %v12941_v33 = vld [vmem:[%s20252_s7 + $0x364] sm:$0xf]  ;;  %v12179_v42 = vld [vmem:[%s20252_s7 + $0x368] sm:$0xf0]  ;;  %v19913_v32 = vor.u32 %v12955_v58, %v12235_v29 }
 0x90a   :  { %8500 = vmatpush.bf16.msra.mxu0 %v12042_v27  ;;  %8557 = vmatpush.bf16.msra.mxu3 %v12046_v6  ;;  %v11891_v27 = vld [vmem:[%s20252_s7 + $0x8] sm:$0xf0]  ;;  %v12250_v51 = vor.u32 %v12960_v9, %v12249_v13  ;;  %v12169_v19 = vld [vmem:[%s20252_s7 + $0x350] sm:$0xf]  ;;  %v12182_v14 = vor.u32 %v12941_v33, %v12179_v42  ;;  %v12241_v16 = vld [vmem:[%s20252_s7 + $0x3e0] sm:$0xf] }
 0x90b   :  { %v11894_v41 = vor.u32 %v12833_v1, %v11891_v27  ;;  %v12227_v6 = vld [vmem:[%s20252_s7 + $0x3c8] sm:$0xf0]  ;;  %v12958_v45 = vld [vmem:[%s20252_s7 + $0x3e4] sm:$0xf0]  ;;  %v12939_v17 = vld [vmem:[%s20252_s7 + $0x354] sm:$0xf] }
 0x90c   :  { %8518 = vmatpush.bf16.msra.mxu1 %v11926_v12  ;;  %v12953_v12 = vld [vmem:[%s20252_s7 + $0x3c4] sm:$0xf]  ;;  %v12171_v43 = vld [vmem:[%s20252_s7 + $0x358] sm:$0xf0]  ;;  %v12242_v30 = vor.u32 %v12958_v45, %v12241_v16  ;;  %v12161_v28 = vld [vmem:[%s20252_s7 + $0x340] sm:$0xf] }
 0x90d   :  { %8924 = vmatpush.bf16.msrb.mxu2 %v12258_v54  ;;  %v19940_v39 = vor.u32 %v12953_v12, %v12227_v6  ;;  %v12219_v11 = vld [vmem:[%s20252_s7 + $0x3b8] sm:$0xf0]  ;;  %v12938_v48 = vld [vmem:[%s20252_s7 + $0x344] sm:$0xf0]  ;;  %v12937_v54 = vld [vmem:[%s20252_s7 + $0x344] sm:$0xf] }
 0x90e   :  { %8501 = vmatpush.bf16.msra.mxu0 %v12034_v40  ;;  %8558 = vmatpush.bf16.msra.mxu3 %v12038_v3  ;;  %v12940_v40 = vld [vmem:[%s20252_s7 + $0x354] sm:$0xf0]  ;;  %v12174_v3 = vor.u32 %v12939_v17, %v12171_v43  ;;  %v12233_v35 = vld [vmem:[%s20252_s7 + $0x3d0] sm:$0xf]  ;;  %v12949_v2 = vld [vmem:[%s20252_s7 + $0x3a4] sm:$0xf] }
 0x90f   :  { %8188 = vmatmul.bf16.vlgmr.msrb.gmra.mxu0 %v19625_v26  ;;  %v12185_v26 = vld [vmem:[%s20252_s7 + $0x370] sm:$0xf]  ;;  %v12170_v34 = vor.u32 %v12940_v40, %v12169_v19  ;;  %v12956_v62 = vld [vmem:[%s20252_s7 + $0x3d4] sm:$0xf0]  ;;  %v12935_v20 = vld [vmem:[%s20252_s7 + $0x334] sm:$0xf] }
 0x910   :  { %8485 = vmatmul.bf16.vlgmr.msrb.gmra.mxu3 %v7753_v50  ;;  %8519 = vmatpush.bf16.msra.mxu1 %v11918_v23  ;;  %v12186_v44 = vor.u32 %v12944_v56, %v12185_v26  ;;  %v12177_v50 = vld [vmem:[%s20252_s7 + $0x360] sm:$0xf]  ;;  %v12951_v23 = vld [vmem:[%s20252_s7 + $0x3b4] sm:$0xf]  ;;  %v12234_v26 = vor.u32 %v12956_v62, %v12233_v35  ;;  %v12153_v56 = vld [vmem:[%s20252_s7 + $0x330] sm:$0xf] }
 0x911   :  { %12977 = vmatpush.bf16.msra.mxu2 %v19835_v63  ;;  %v12178_v10 = vor.u32 %v12942_v24, %v12177_v50  ;;  %v19969_v52 = vor.u32 %v12951_v23, %v12219_v11  ;;  %v12155_v59 = vld [vmem:[%s20252_s7 + $0x338] sm:$0xf0]  ;;  %v12225_v22 = vld [vmem:[%s20252_s7 + $0x3c0] sm:$0xf]  ;;  %v12934_v50 = vld [vmem:[%s20252_s7 + $0x324] sm:$0xf0] }
 0x912   :  { %8502 = vmatpush.bf16.msra.mxu0 %v12026_v53  ;;  %8559 = vmatpush.bf16.msra.mxu3 %v12030_v47  ;;  %v12163_v53 = vld [vmem:[%s20252_s7 + $0x348] sm:$0xf0]  ;;  %v12936_v47 = vld [vmem:[%s20252_s7 + $0x334] sm:$0xf0]  ;;  %v12203_v36 = vld [vmem:[%s20252_s7 + $0x398] sm:$0xf0]  ;;  %v12158_v55 = vor.u32 %v12935_v20, %v12155_v59 }
 0x913   :  { %v12166_v5 = vor.u32 %v12937_v54, %v12163_v53  ;;  %v12154_v21 = vor.u32 %v12936_v47, %v12153_v56  ;;  %v12145_v58 = vld [vmem:[%s20252_s7 + $0x320] sm:$0xf]  ;;  %v12933_v24 = vld [vmem:[%s20252_s7 + $0x324] sm:$0xf]  ;;  %v12217_v29 = vld [vmem:[%s20252_s7 + $0x3b0] sm:$0xf] }
 0x914   :  { %8520 = vmatpush.bf16.msra.mxu1 %v11910_v38  ;;  %v12211_v38 = vld [vmem:[%s20252_s7 + $0x3a8] sm:$0xf0]  ;;  %v12952_v1 = vld [vmem:[%s20252_s7 + $0x3b4] sm:$0xf0]  ;;  %v12945_v13 = vld [vmem:[%s20252_s7 + $0x384] sm:$0xf] }
 0x915   :  { %8207 = vmatmul.bf16.vlgmr.msrb.gmra.mxu1 %v19062_v49  ;;  %12978 = vmatpush.bf16.msra.mxu2 %v19874_v46  ;;  %v19996_v31 = vor.u32 %v12949_v2, %v12211_v38  ;;  %v12195_v9 = vld [vmem:[%s20252_s7 + $0x388] sm:$0xf0]  ;;  %v12218_v33 = vor.u32 %v12952_v1, %v12217_v29  ;;  %v12137_v42 = vld [vmem:[%s20252_s7 + $0x310] sm:$0xf]  ;;  %v12931_v12 = vld [vmem:[%s20252_s7 + $0x314] sm:$0xf] }
 0x916   :  { %8503 = vmatpush.bf16.msra.mxu0 %v12018_v61  ;;  %8560 = vmatpush.bf16.msra.mxu3 %v12022_v7  ;;  %v12954_v61 = vld [vmem:[%s20252_s7 + $0x3c4] sm:$0xf0]  ;;  %v12147_v7 = vld [vmem:[%s20252_s7 + $0x328] sm:$0xf0]  ;;  %v20045_v6 = vld [vmem:[%s20253_s2] sm:$0xff]  ;;  %v20059_v16 = vor.u32 %v12945_v13, %v12195_v9  ;;  %v8587_v1 = vpack.c.bf16 0.0, %v19698_v37 }
 0x917   :  { %8547 = vmatmul.bf16.gmra.mxu2 %v19888_v57  ;;  %v12139_v19 = vld [vmem:[%s20252_s7 + $0x318] sm:$0xf0]  ;;  %v12950_v40 = vld [vmem:[%s20252_s7 + $0x3a4] sm:$0xf0]  ;;  %v12129_v43 = vld [vmem:[%s20252_s7 + $0x300] sm:$0xf] }
 0x918   :  { %8521 = vmatpush.bf16.msra.mxu1 %v11902_v8  ;;  %v12226_v8 = vor.u32 %v12954_v61, %v12225_v22  ;;  %v12929_v23 = vld [vmem:[%s20252_s7 + $0x304] sm:$0xf]  ;;  %v12131_v11 = vld [vmem:[%s20252_s7 + $0x308] sm:$0xf0]  ;;  %v12315_v54 = vld [vmem:[%s20252_s7 + $0x478] sm:$0xf0] }
 0x919   :  { %12979 = vmatpush.bf16.msra.mxu2 %v19913_v32  ;;  %v12134_v53 = vor.u32 %v12929_v23, %v12131_v11  ;;  %v8589_v62 = vpack.c.bf16 0.0, %v20045_v6  ;;  %v12946_v2 = vld [vmem:[%s20252_s7 + $0x384] sm:$0xf0]  ;;  %v12299_v20 = vld [vmem:[%s20252_s7 + $0x458] sm:$0xf0] }
 0x91a   :  { %8879 = vmatpush.bf16.msrb.mxu0 %v12186_v44  ;;  %8936 = vmatpush.bf16.msrb.mxu3 %v12190_v25  ;;  %v12947_v44 = vld [vmem:[%s20252_s7 + $0x394] sm:$0xf]  ;;  %v12146_v25 = vor.u32 %v12934_v50, %v12145_v58  ;;  %v12291_v22 = vld [vmem:[%s20252_s7 + $0x448] sm:$0xf0]  ;;  %v12267_v58 = vld [vmem:[%s20252_s7 + $0x418] sm:$0xf0] }
 0x91b   :  { %v20025_v27 = vor.u32 %v12947_v44, %v12203_v36  ;;  %v12967_v61 = vld [vmem:[%s20252_s7 + $0x434] sm:$0xf]  ;;  %v8588_v44 = vpack.c.bf16 0.0, %v19733_v60 }
 0x91c   :  { %8522 = vmatpush.bf16.msra.mxu1 %v11894_v41  ;;  %v12932_v41 = vld [vmem:[%s20252_s7 + $0x314] sm:$0xf0]  ;;  %v12963_v60 = vld [vmem:[%s20252_s7 + $0x414] sm:$0xf] }
 0x91d   :  { %12980 = vmatpush.bf16.msra.mxu2 %v19940_v39  ;;  %v12138_v45 = vor.u32 %v12932_v41, %v12137_v42  ;;  %v12270_v50 = vor.u32 %v12963_v60, %v12267_v58 }
 0x91e   :  { %8880 = vmatpush.bf16.msrb.mxu0 %v12178_v10  ;;  %8937 = vmatpush.bf16.msrb.mxu3 %v12182_v14  ;;  %v12150_v10 = vor.u32 %v12933_v24, %v12147_v7  ;;  %v12209_v14 = vld [vmem:[%s20252_s7 + $0x3a0] sm:$0xf]  ;;  %v12961_v24 = vld [vmem:[%s20252_s7 + $0x404] sm:$0xf] }
 0x91f   :  { %8193 = vmatmul.bf16.gmra.mxu0 %v19752_v4  ;;  %v12162_v4 = vor.u32 %v12938_v48, %v12161_v28  ;;  %v12210_v17 = vor.u32 %v12950_v40, %v12209_v14  ;;  %v12975_v48 = vld [vmem:[%s20252_s7 + $0x474] sm:$0xf] }
 0x920   :  { %8898 = vmatpush.bf16.msrb.mxu1 %v12250_v51  ;;  %8490 = vmatmul.bf16.gmra.mxu3 %v19888_v57  ;;  %v7754_v51 = vpack.c.bf16 %v20045_v6, %v20563_v0  ;;  %v12142_v0 = vor.u32 %v12931_v12, %v12139_v19  ;;  %v12318_v38 = vor.u32 %v12975_v48, %v12315_v54 }
 0x921   :  { %12981 = vmatpush.bf16.msra.mxu2 %v19969_v52 }
 0x922   :  { %8881 = vmatpush.bf16.msrb.mxu0 %v12170_v34  ;;  %8938 = vmatpush.bf16.msrb.mxu3 %v12174_v3  ;;  %v12930_v34 = vld [vmem:[%s20252_s7 + $0x304] sm:$0xf0]  ;;  %v12948_v3 = vld [vmem:[%s20252_s7 + $0x394] sm:$0xf0] }
 0x923   :  { %v12130_v28 = vor.u32 %v12930_v34, %v12129_v43 }
 0x924   :  { %8899 = vmatpush.bf16.msrb.mxu1 %v12242_v30  ;;  %v12201_v30 = vld [vmem:[%s20252_s7 + $0x390] sm:$0xf] }
 0x925   :  { %8212 = vmatmul.bf16.gmra.mxu1 %v19062_v49  ;;  %12982 = vmatpush.bf16.msra.mxu2 %v19996_v31  ;;  %v12202_v35 = vor.u32 %v12948_v3, %v12201_v30 }
 0x926   :  { %8882 = vmatpush.bf16.msrb.mxu0 %v12162_v4  ;;  %8939 = vmatpush.bf16.msrb.mxu3 %v12166_v5  ;;  %v12193_v4 = vld [vmem:[%s20252_s7 + $0x380] sm:$0xf]  ;;  %v12973_v5 = vld [vmem:[%s20252_s7 + $0x464] sm:$0xf] }
 0x927   :  { %8925 = vmatmul.bf16.vlgmr.msrb.gmra.mxu2 %v19062_v49  ;;  %v12194_v56 = vor.u32 %v12946_v2, %v12193_v4 }
 0x928   :  { %8900 = vmatpush.bf16.msrb.mxu1 %v12234_v26  ;;  %v12307_v26 = vld [vmem:[%s20252_s7 + $0x468] sm:$0xf0] }
 0x929   :  { %12983 = vmatpush.bf16.msra.mxu2 %v20025_v27  ;;  %v12310_v47 = vor.u32 %v12973_v5, %v12307_v26 }
 0x92a   :  { %8883 = vmatpush.bf16.msrb.mxu0 %v12154_v21  ;;  %8940 = vmatpush.bf16.msrb.mxu3 %v12158_v55  ;;  %v12283_v21 = vld [vmem:[%s20252_s7 + $0x438] sm:$0xf0]  ;;  %v12275_v55 = vld [vmem:[%s20252_s7 + $0x428] sm:$0xf0] }
 0x92b   :  { %v12286_v36 = vor.u32 %v12967_v61, %v12283_v21 }
 0x92c   :  { %8901 = vmatpush.bf16.msrb.mxu1 %v12226_v8  ;;  %v8151_v8 = vpop.f32.mrf.mxu2 }
 0x92d   :  { %12984 = vmatpush.bf16.msra.mxu2 %v20059_v16 }
 0x92e   :  { %8884 = vmatpush.bf16.msrb.mxu0 %v12146_v25  ;;  %8941 = vmatpush.bf16.msrb.mxu3 %v12150_v10 }
 0x92f   :  { %8504 = vmatmul.bf16.vlgmr.msra.gmra.mxu0 %v7754_v51 }
 0x930   :  { %8902 = vmatpush.bf16.msrb.mxu1 %v12218_v33  ;;  %8561 = vmatmul.bf16.vlgmr.msra.gmra.mxu3 %v7754_v51 }
 0x932   :  { %8885 = vmatpush.bf16.msrb.mxu0 %v12138_v45  ;;  %8942 = vmatpush.bf16.msrb.mxu3 %v12142_v0 }
 0x934   :  { %8903 = vmatpush.bf16.msrb.mxu1 %v12210_v17  ;;  %v8153_v7 = vpop.f32.mrf.mxu2 }
 0x935   :  { %8523 = vmatmul.bf16.vlgmr.msra.gmra.mxu1 %v19493_v18  ;;  %v12971_v18 = vld [vmem:[%s20252_s7 + $0x454] sm:$0xf] }
 0x936   :  { %8886 = vmatpush.bf16.msrb.mxu0 %v12130_v28  ;;  %8943 = vmatpush.bf16.msrb.mxu3 %v12134_v53  ;;  %v12302_v59 = vor.u32 %v12971_v18, %v12299_v20 }
 0x937   :  { %8930 = vmatmul.bf16.gmra.mxu2 %v8589_v62 }
 0x938   :  { %8904 = vmatpush.bf16.msrb.mxu1 %v12202_v35 }
 0x93a   :  { %8955 = vmatpush.bf16.msra.mxu0 %v19835_v63  ;;  %12985 = vmatpush.bf16.msra.mxu3 %v12318_v38  ;;  %v12969_v63 = vld [vmem:[%s20252_s7 + $0x444] sm:$0xf] }
 0x93c   :  { %8905 = vmatpush.bf16.msrb.mxu1 %v12194_v56  ;;  %v8156_v29 = vpop.f32.mrf.mxu2 }
 0x93e   :  { %8956 = vmatpush.bf16.msra.mxu0 %v19874_v46  ;;  %12986 = vmatpush.bf16.msra.mxu3 %v12310_v47  ;;  %v12294_v46 = vor.u32 %v12969_v63, %v12291_v22 }
 0x93f   :  { %8509 = vmatmul.bf16.gmra.mxu0 %v19062_v49 }
 0x940   :  { %8974 = vmatpush.bf16.msra.mxu1 %v12318_v38  ;;  %8566 = vmatmul.bf16.gmra.mxu3 %v19062_v49 }
 0x942   :  { %8957 = vmatpush.bf16.msra.mxu0 %v19913_v32  ;;  %12987 = vmatpush.bf16.msra.mxu3 %v12302_v59  ;;  %v12965_v32 = vld [vmem:[%s20252_s7 + $0x424] sm:$0xf] }
 0x944   :  { %8975 = vmatpush.bf16.msra.mxu1 %v12310_v47  ;;  %v8158_v25 = vpop.f32.mrf.mxu2 }
 0x945   :  { %8528 = vmatmul.bf16.gmra.mxu1 %v19649_v15 }
 0x946   :  { %8958 = vmatpush.bf16.msra.mxu0 %v19940_v39  ;;  %12988 = vmatpush.bf16.msra.mxu3 %v12294_v46  ;;  %v12278_v39 = vor.u32 %v12965_v32, %v12275_v55 }
 0x947   :  { %8968 = vmatmul.bf16.vlgmr.msra.gmra.mxu2 %v8588_v44 }
 0x948   :  { %8976 = vmatpush.bf16.msra.mxu1 %v12302_v59 }
 0x94a   :  { %8959 = vmatpush.bf16.msra.mxu0 %v19969_v52  ;;  %12989 = vmatpush.bf16.msra.mxu3 %v12286_v36  ;;  %v12259_v52 = vld [vmem:[%s20252_s7 + $0x408] sm:$0xf0] }
 0x94c   :  { %8977 = vmatpush.bf16.msra.mxu1 %v12294_v46 }
 0x94e   :  { %8960 = vmatpush.bf16.msra.mxu0 %v19996_v31  ;;  %12990 = vmatpush.bf16.msra.mxu3 %v12278_v39  ;;  %v12262_v31 = vor.u32 %v12961_v24, %v12259_v52 }
 0x94f   :  { %8887 = vmatmul.bf16.vlgmr.msrb.gmra.mxu0 %v19649_v15 }
 0x950   :  { %8978 = vmatpush.bf16.msra.mxu1 %v12286_v36  ;;  %8944 = vmatmul.bf16.vlgmr.msrb.gmra.mxu3 %v19649_v15 }
 0x952   :  { %8961 = vmatpush.bf16.msra.mxu0 %v20025_v27  ;;  %12991 = vmatpush.bf16.msra.mxu3 %v12270_v50 }
 0x954   :  { %8979 = vmatpush.bf16.msra.mxu1 %v12278_v39 }
 0x955   :  { %8906 = vmatmul.bf16.vlgmr.msrb.gmra.mxu1 %v19888_v57 }
 0x956   :  { %8962 = vmatpush.bf16.msra.mxu0 %v20059_v16  ;;  %12992 = vmatpush.bf16.msra.mxu3 %v12262_v31 }
 0x958   :  { %8980 = vmatpush.bf16.msra.mxu1 %v12270_v50 }
 0x95c   :  { %8981 = vmatpush.bf16.msra.mxu1 %v12262_v31 }
 0x95f   :  { %8892 = vmatmul.bf16.gmra.mxu0 %v8587_v1 }
 0x960   :  { %8949 = vmatmul.bf16.gmra.mxu3 %v8587_v1 }
 0x965   :  { %8911 = vmatmul.bf16.gmra.mxu1 %v8588_v44 }
 0x96a   :  { %v8467_v13 = vpop.f32.mrf.mxu2 }
 0x96c   :  { %v8113_v15 = vpop.f32.mrf.mxu0 }
 0x96f   :  { %8963 = vmatmul.bf16.vlgmr.msra.gmra.mxu0 %v19888_v57 }
 0x970   :  { %8987 = vmatmul.bf16.vlgmr.msra.gmra.mxu3 %v8589_v62 }
 0x972   :  { %v8132_v27 = vpop.f32.mrf.mxu1  ;;  %v8170_v9 = vpop.f32.mrf.mxu3 }
 0x973   :  { %v8133_v10 = vadd.f32 %v8132_v27, %v8113_v15  ;;  %v8469_v37 = vpop.f32.mrf.mxu2 }
 0x974   :  { %v8115_v33 = vpop.f32.mrf.mxu0 }
 0x975   :  { %v8152_v42 = vadd.f32 %v8151_v8, %v8133_v10  ;;  %8982 = vmatmul.bf16.vlgmr.msra.gmra.mxu1 %v19062_v49 }
 0x977   :  { %v8468_v41 = vadd.f32 %v8467_v13, %v8152_v42  ;;  %v9134_v13 = vpop.xlane.xlu0 %9133 }
 0x97a   :  { %v8134_v12 = vpop.f32.mrf.mxu1  ;;  %v8172_v51 = vpop.f32.mrf.mxu3 }
 0x97b   :  { %v8135_v19 = vadd.f32 %v8134_v12, %v8115_v33  ;;  %v8472_v6 = vpop.f32.mrf.mxu2 }
 0x97c   :  { %v8118_v14 = vpop.f32.mrf.mxu0 }
 0x97d   :  { %v8154_v40 = vadd.f32 %v8153_v7, %v8135_v19  ;;  %v9157_v19 = vpop.xlane.xlu2 %9156 }
 0x97f   :  { %v8470_v16 = vadd.f32 %v8469_v37, %v8154_v40  ;;  %v9145_v37 = vpop.xlane.xlu0 %9144 }
 0x980   :  { %v9146_v40 = vadd.f32 %v9145_v37, %v9134_v13 }
 0x982   :  { %v8137_v45 = vpop.f32.mrf.mxu1 }
 0x983   :  { %v8138_v57 = vadd.f32 %v8137_v45, %v8118_v14  ;;  %v8175_v0 = vpop.f32.mrf.mxu3  ;;  %v8474_v48 = vpop.f32.mrf.mxu2 }
 0x984   :  { %v8120_v17 = vpop.f32.mrf.mxu0 }
 0x985   :  { %v8157_v43 = vadd.f32 %v8156_v29, %v8138_v57 }
 0x987   :  { %v8473_v34 = vadd.f32 %v8472_v6, %v8157_v43  ;;  %v9169_v45 = vpop.xlane.xlu0 %9168  ;;  %v20191_v6 = vld [vmem:[%s20255_s10] ss:$0 sm:$0xff] }
 0x98a   :  { %v8139_v23 = vpop.f32.mrf.mxu1 }
 0x98b   :  { %v8140_v11 = vadd.f32 %v8139_v23, %v8120_v17  ;;  %v8177_v30 = vpop.f32.mrf.mxu3  ;;  %v20162_v59 = vpop.f32.mrf.mxu2 }
 0x98c   :  { %v8189_v3 = vpop.f32.mrf.mxu0 }
 0x98d   :  { %v8159_v49 = vadd.f32 %v8158_v25, %v8140_v11  ;;  %v8190_v28 = vadd.f32 %v8189_v3, %v8170_v9 }
 0x98f   :  { %v8475_v54 = vadd.f32 %v8474_v48, %v8159_v49 }
 0x992   :  { %v8208_v53 = vpop.f32.mrf.mxu1 }
 0x993   :  { %v20158_v35 = vadd.f32 %v8208_v53, %v8190_v28  ;;  %v8486_v62 = vpop.f32.mrf.mxu3  ;;  %v20166_v36 = vpop.f32.mrf.mxu2  ;;  %v12319_v28 = vld [vmem:[%s20249_s8 + $0x10] sm:$0xf] }
 0x994   :  { %v8487_v4 = vadd.f32 %v8486_v62, %v8468_v41  ;;  %v8191_v2 = vpop.f32.mrf.mxu0 }
 0x995   :  { %v8192_v38 = vadd.f32 %v8191_v2, %v8172_v51 }
 0x99a   :  { %v8210_v5 = vpop.f32.mrf.mxu1 }
 0x99b   :  { %v20160_v26 = vadd.f32 %v8210_v5, %v8192_v38  ;;  %v8488_v56 = vpop.f32.mrf.mxu3  ;;  %v20172_v24 = vpop.f32.mrf.mxu2  ;;  %v9004_v38 = vperm.slane %v12319_v28, 0 }
 0x99c   :  { %v8489_v47 = vadd.f32 %v8488_v56, %v8470_v16  ;;  %v8194_v18 = vpop.f32.mrf.mxu0 }
 0x99d   :  { %v8195_v20 = vadd.f32 %v8194_v18, %v8175_v0  ;;  %v9158_v0 = vadd.f32 %v9157_v19, %v9146_v40  ;;  %v9008_v18 = vperm.slane %v9004_v38, 0 }
 0x99f   :  { %v9170_v17 = vadd.f32 %v9169_v45, %v9158_v0 }
 0x9a2   :  { %v8213_v63 = vpop.f32.mrf.mxu1 }
 0x9a3   :  { %v20164_v22 = vadd.f32 %v8213_v63, %v8195_v20  ;;  %v8491_v46 = vpop.f32.mrf.mxu3  ;;  %v20180_v15 = vpop.f32.mrf.mxu2 }
 0x9a4   :  { %v8492_v61 = vadd.f32 %v8491_v46, %v8473_v34  ;;  %v8196_v21 = vpop.f32.mrf.mxu0  ;;  %v9171_v34 = vadd.f32 %v20191_v6, %v9170_v17 }
 0x9a5   :  { %v8197_v44 = vadd.f32 %v8196_v21, %v8177_v30 }
 0x9a6   :  { %v9172_v3 = vsub.f32 0.0, %v9171_v34 }
 0x9aa   :  { %v8215_v32 = vpop.f32.mrf.mxu1 }
 0x9ab   :  { %v20168_v55 = vadd.f32 %v8215_v32, %v8197_v44  ;;  %v8493_v8 = vpop.f32.mrf.mxu3  ;;  %v8926_v33 = vpop.f32.mrf.mxu2  ;;  %v9018_v44 = vperm.slane %v12319_v28, 1 }
 0x9ac   :  { %v20170_v39 = vadd.f32 %v8493_v8, %v8475_v54  ;;  %v8505_v60 = vpop.f32.mrf.mxu0  ;;  %v9173_v54 = vmul.f32 1.442695, %v9172_v3  ;;  %v13010_v3 = vmov 1  }
 0x9ad   :  { %v8506_v58 = vadd.f32 %v8505_v60, %v8487_v4  ;;  %12996 = vset.pattern.permute.xlu2 %v13010_v3 }
 0x9ae   :  { %12999 = vpow2.f32 %v9173_v54 }
 0x9b2   :  { %v8524_v50 = vpop.f32.mrf.mxu1 }
 0x9b3   :  { %v20174_v52 = vpop.f32.mrf.mxu3  ;;  %v8928_v51 = vpop.f32.mrf.mxu2  ;;  %v8525_v56 = vadd.f32 %v8524_v50, %v20158_v35  ;;  %v20203_v50 = vperm.slane %v9018_v44, 1 }
 0x9b4   :  { %v8507_v7 = vpop.f32.mrf.mxu0 }
 0x9b5   :  { %v20176_v31 = vadd.f32 %v8507_v7, %v8489_v47  ;;  %v8544_v60 = vadd.f32 %v20162_v59, %v8525_v56 }
 0x9ba   :  { %v8526_v29 = vpop.f32.mrf.mxu1 }
 0x9bb   :  { %v20178_v1 = vpop.f32.mrf.mxu3  ;;  %v8931_v23 = vpop.f32.mrf.mxu2 }
 0x9bc   :  { %v8510_v25 = vpop.f32.mrf.mxu0 }
 0x9bd   :  { %v8511_v20 = vadd.f32 %v8510_v25, %v8492_v61  ;;  %v9005_v25 = vperm.slane %v12319_v28, 2 }
 0x9c2   :  { %v8529_v27 = vpop.f32.mrf.mxu1 }
 0x9c3   :  { %v20182_v9 = vpop.f32.mrf.mxu3  ;;  %v8933_v2 = vpop.f32.mrf.mxu2  ;;  %v8530_v32 = vadd.f32 %v8529_v27, %v20164_v22  ;;  %v8563_v22 = vadd.f32 %v20174_v52, %v8544_v60 }
 0x9c4   :  { %v20184_v10 = vpop.f32.mrf.mxu0 }
 0x9c5   :  { %v8549_v61 = vadd.f32 %v20172_v24, %v8530_v32  ;;  %v8513_v24 = vadd.f32 %v20184_v10, %v20170_v39 }
 0x9ca   :  { %v8531_v42 = vpop.f32.mrf.mxu1 }
 0x9cb   :  { %v20186_v41 = vpop.f32.mrf.mxu3  ;;  %v8532_v45 = vadd.f32 %v8531_v42, %v20168_v55  ;;  %v9009_v55 = vperm.slane %v9005_v25, 0 }
 0x9cc   :  { %v8888_v12 = vpop.f32.mrf.mxu0 }
 0x9cd   :  { %v8551_v39 = vadd.f32 %v20180_v15, %v8532_v45 }
 0x9d2   :  { %v8907_v14 = vpop.f32.mrf.mxu1 }
 0x9d3   :  { %v8945_v16 = vpop.f32.mrf.mxu3  ;;  %v8908_v49 = vadd.f32 %v8907_v14, %v8888_v12  ;;  %v13000_v12 = vpop.eup %12999 }
 0x9d4   :  { %v8890_v57 = vpop.f32.mrf.mxu0  ;;  %v20206_v14 = vadd.f32 1.0, %v13000_v12 }
 0x9d5   :  { %v8927_v5 = vadd.f32 %v8926_v33, %v8908_v49  ;;  %v8527_v33 = vadd.f32 %v8526_v29, %v20160_v26  ;;  %v9019_v26 = vperm.slane %v12319_v28, 3  ;;  %v20214_v29 = vld [vmem:[%s20254_s9] sm:$0xff] }
 0x9d6   :  { %v9074_v49 = vperm.slane %v20214_v29, 2  ;;  %13001 = vrcp.f32 %v20206_v14  ;;  %vm9181_vm1 = vweird.f32 %v20206_v14 }
 0x9d7   :  { %v8993_v63 = vadd.f32 %v8927_v5, %v8506_v58  ;;  %v8969_v58 = vpop.f32.mrf.mxu2  ;;  %v8546_v40 = vadd.f32 %v20166_v36, %v8527_v33  ;;  %v8568_v36 = vadd.f32 %v20182_v9, %v8549_v61  ;;  %v9023_v10 = vperm.slane %v9019_v26, 1 }
 0x9d9   :  { %v9010_v19 = vmul.f32 %v9008_v18, %v8993_v63 }
 0x9da   :  { %v8909_v43 = vpop.f32.mrf.mxu1 }
 0x9db   :  { %v20194_v11 = vpop.f32.mrf.mxu3  ;;  %v8910_v46 = vadd.f32 %v8909_v43, %v8890_v57  ;;  %v9024_v17 = vadd.f32 %v20203_v50, %v9010_v19 }
 0x9dc   :  { %v8893_v30 = vpop.f32.mrf.mxu0  ;;  %v13002_v19 = vpop.eup %13001 }
 0x9dd   :  { %v8929_v35 = vadd.f32 %v8928_v51, %v8910_v46  ;;  %v9032_v54 = vmul.f32 0.2, %v9024_v17  ;;  %v9078_v46 = vperm.slane %v9074_v49, 2  ;;  %vm9182_vm0 = vweird.f32 %v13002_v19 }
 0x9de   :  { %vm9183_vm2 = vmor %vm9181_vm1, %vm9182_vm0 }
 0x9df   :  { %v8995_v51 = vadd.f32 %v8929_v35, %v20176_v31 }
 0x9e1   :  { %v9012_v9 = vmul.f32 %v9008_v18, %v8995_v51  ;;  %v9087_v51 = vperm.slane %v20214_v29, 7 }
 0x9e2   :  { %v8912_v48 = vpop.f32.mrf.mxu1 }
 0x9e3   :  { %v8950_v53 = vpop.f32.mrf.mxu3  ;;  %v8913_v62 = vadd.f32 %v8912_v48, %v8893_v30  ;;  %v9051_v30 = vperm.slane %v20214_v29, 0 }
 0x9e4   :  { %v8895_v4 = vpop.f32.mrf.mxu0  ;;  %v8970_v0 = vadd.f32 %v8969_v58, %v8950_v53  ;;  %v8565_v53 = vadd.f32 %v20178_v1, %v8546_v40  ;;  %v9040_v1 = vmax.f32 %v9024_v17, %v9032_v54 }
 0x9e5   :  { %v8932_v47 = vadd.f32 %v8931_v23, %v8913_v62  ;;  %v9055_v56 = vperm.slane %v9051_v30, 0 }
 0x9e7   :  { %v8997_v7 = vadd.f32 %v8932_v47, %v8511_v20  ;;  %v8570_v47 = vadd.f32 %v20186_v41, %v8551_v39  ;;  %v8971_v20 = vpop.f32.mrf.mxu2  ;;  %v9057_v40 = vmul.f32 %v9055_v56, %v9040_v1  ;;  %v9185_v56 = vand.u32 2147483647, %v20206_v14 }
 0x9e9   :  { %v9014_v27 = vmul.f32 %v9008_v18, %v8997_v7  ;;  %v9026_v7 = vadd.f32 %v20203_v50, %v9012_v9  ;;  %v9091_v9 = vperm.slane %v9087_v51, 3  ;;  %vm9186_vm3 = vcmp.eq.f32.partialorder %v9185_v56, 8.507059e+37 }
 0x9ea   :  { %v8914_v21 = vpop.f32.mrf.mxu1 }
 0x9eb   :  { %v8952_v8 = vpop.f32.mrf.mxu3  ;;  %v8915_v13 = vadd.f32 %v8914_v21, %v8895_v4  ;;  %v9028_v23 = vadd.f32 %v20203_v50, %v9014_v27  ;;  %v9075_v4 = vperm.slane %v20214_v29, 6  ;;  %v9034_v45 = vmul.f32 0.2, %v9026_v7 }
 0x9ec   :  { %v8964_v37 = vpop.f32.mrf.mxu0  ;;  %v8972_v44 = vadd.f32 %v8971_v20, %v8952_v8  ;;  %v9062_v8 = vperm.slane %v20214_v29, 1 }
 0x9ed   :  { %v8934_v59 = vadd.f32 %v8933_v2, %v8915_v13  ;;  %v8965_v57 = vadd.f32 %v8964_v37, %v8945_v16  ;;  %v9052_v2 = vperm.slane %v20214_v29, 4  ;;  %v9036_v15 = vmul.f32 0.2, %v9028_v23 }
 0x9ee   :  { %v9079_v12 = vperm.slane %v9075_v4, 2  ;;  %v9066_v30 = vperm.slane %v9062_v8, 1 }
 0x9ef   :  { %v8999_v16 = vadd.f32 %v8934_v59, %v8513_v24  ;;  %v9056_v33 = vperm.slane %v9052_v2, 0  ;;  %v9044_v41 = vmax.f32 %v9028_v23, %v9036_v15  ;;  %v9063_v24 = vperm.slane %v20214_v29, 5 }
 0x9f0   :  { %v9042_v23 = vmax.f32 %v9026_v7, %v9034_v45  ;;  %v9187_v15 = vand.u32 2147483648, %v20206_v14 }
 0x9f1   :  { %v9016_v38 = vmul.f32 %v9008_v18, %v8999_v16  ;;  %v9067_v3 = vperm.slane %v9063_v24, 1 }
 0x9f2   :  { %v8983_v52 = vpop.f32.mrf.mxu1  ;;  %v9188_v20 = vor.u32 1.1754944e-38, %v9187_v15 }
 0x9f3   :  { %v8984_v43 = vadd.f32 %v8983_v52, %v8965_v57  ;;  %v8988_v42 = vpop.f32.mrf.mxu3  ;;  %v9030_v58 = vadd.f32 %v20203_v50, %v9016_v38  ;;  %v9080_v52 = vmul.f32 %v9078_v46, %v9044_v41 }
 0x9f4   :  { %v8989_v34 = vadd.f32 %v8988_v42, %v8970_v0  ;;  %v8966_v48 = vpop.f32.mrf.mxu0 }
 0x9f5   :  { %v8994_v31 = vadd.f32 %v8984_v43, %v8563_v22  ;;  %v8967_v63 = vadd.f32 %v8966_v48, %v20194_v11  ;;  %v9086_v22 = vperm.slane %v20214_v29, 3  ;;  %v9038_v50 = vmul.f32 0.2, %v9030_v58 }
 0x9f6   :  { %v8998_v28 = vadd.f32 %v8989_v34, %v8568_v36 }
 0x9f7   :  { %v9011_v62 = vmul.f32 %v9009_v55, %v8994_v31  ;;  %v9046_v31 = vmax.f32 %v9030_v58, %v9038_v50  ;;  %v9090_v49 = vperm.slane %v9086_v22, 3 }
 0x9f8   :  { %v9015_v5 = vmul.f32 %v9009_v55, %v8998_v28 }
 0x9f9   :  { %v9025_v21 = vadd.f32 %v9023_v10, %v9011_v62  ;;  %v9092_v54 = vmul.f32 %v9090_v49, %v9046_v31  ;;  %v9177_v62 = vmul.f32 %v13002_v19, %v20206_v14 }
 0x9fa   :  { %v9029_v32 = vadd.f32 %v9023_v10, %v9015_v5  ;;  %v8985_v60 = vpop.f32.mrf.mxu1 }
 0x9fb   :  { %v8986_v13 = vadd.f32 %v8985_v60, %v8967_v63  ;;  %v8990_v37 = vpop.f32.mrf.mxu3  ;;  %v9033_v18 = vmul.f32 0.2, %v9025_v21  ;;  %v9178_v2 = vsub.f32 1.0, %v9177_v62 }
 0x9fc   :  { %v8991_v35 = vadd.f32 %v8990_v37, %v8972_v44  ;;  %v9037_v61 = vmul.f32 0.2, %v9029_v32 }
 0x9fd   :  { %v8996_v11 = vadd.f32 %v8986_v13, %v8565_v53  ;;  %v9041_v25 = vmax.f32 %v9025_v21, %v9033_v18  ;;  %v9179_v38 = vmul.f32 %v13002_v19, %v9178_v2  ;;  %v13011_v21 = vmov 0  }
 0x9fe   :  { %v9000_v27 = vadd.f32 %v8991_v35, %v8570_v47  ;;  %v9045_v59 = vmax.f32 %v9029_v32, %v9037_v61  ;;  %12997 = vset.pattern.permute.xlu0 %v13011_v21 }
 0x9ff   :  { %v9013_v57 = vmul.f32 %v9009_v55, %v8996_v11  ;;  %v9058_v26 = vmul.f32 %v9056_v33, %v9041_v25  ;;  %v9180_v5 = vadd.f32 %v13002_v19, %v9179_v38 }
 0xa00   :  { %v9017_v0 = vmul.f32 %v9009_v55, %v9000_v27  ;;  %v9081_v17 = vmul.f32 %v9079_v12, %v9045_v59  ;;  %v9068_v55 = vmul.f32 %v9066_v30, %v9042_v23  ;;  %v9191_v27 = vlaneseq }
 0xa01   :  { %v9027_v36 = vadd.f32 %v9023_v10, %v9013_v57  ;;  %v9059_v43 = vadd.f32 %v9058_v26, %v9057_v40  ;;  %v9184_v47 = vsel %vm9183_vm2, %v13002_v19, %v9180_v5 }
 0xa02   :  { %v9031_v42 = vadd.f32 %v9023_v10, %v9017_v0  ;;  %v9082_v16 = vadd.f32 %v9081_v17, %v9080_v52  ;;  %v9189_v63 = vsel %vm9186_vm3, %v9188_v20, %v9184_v47  ;;  %v9192_v59 = vand.u32 127, %v9191_v27 }
 0xa03   :  { %9060 = vadd.xlane.f32.xlu1 %v9059_v43  ;;  %v9035_v34 = vmul.f32 0.2, %v9027_v36 }
 0xa04   :  { %9083 = vadd.xlane.f32.xlu2 %v9082_v16  ;;  %v9039_v39 = vmul.f32 0.2, %v9031_v42  ;;  %vm9194_vm8 = vcmp.eq.s32.totalorder %v9192_v59, 1  ;;  %vm9193_vm9 = vcmp.eq.s32.totalorder %v9192_v59, 0 }
 0xa05   :  { %v9043_v28 = vmax.f32 %v9027_v36, %v9035_v34 }
 0xa06   :  { %v9047_v29 = vmax.f32 %v9031_v42, %v9039_v39 }
 0xa07   :  { %v9069_v48 = vmul.f32 %v9067_v3, %v9043_v28 }
 0xa08   :  { %v9093_v53 = vmul.f32 %v9091_v9, %v9047_v29 }
 0xa09   :  { %v9070_v10 = vadd.f32 %v9069_v48, %v9068_v55 }
 0xa0a   :  { %v9094_v4 = vadd.f32 %v9093_v53, %v9092_v54 }
 0xa0b   :  { %9071 = vadd.xlane.f32.xlu1 %v9070_v10 }
 0xa13   :  { %9095 = vadd.xlane.f32.xlu1 %v9094_v4 }
 0xa1c   :  { %9197 = vperm.xlu2 %12996, %v9189_v63  }
 0xa76   :  { %v9061_v46 = vpop.xlane.xlu1 %9060 }
 0xa77   :  { %v9084_v60 = vpop.xlane.xlu2 %9083 }
 0xa7e   :  { %v9072_v44 = vpop.xlane.xlu1 %9071 }
 0xa7f   :  { %v9073_v32 = vadd.f32 %v9072_v44, %v9061_v46  ;;  %v9198_v40 = vpop.permute.xlu2 %9197 }
 0xa80   :  { %v9200_v45 = vsel %vm9194_vm8, %v9198_v40, 0.0 }
 0xa81   :  { %v9085_v1 = vadd.f32 %v9084_v60, %v9073_v32 }
 0xa86   :  { %v9096_v7 = vpop.xlane.xlu1 %9095 }
 0xa87   :  { %v9097_v13 = vadd.f32 %v9096_v7, %v9085_v1 }
 0xa89   :  { %v9101_v37 = vadd.f32 %v20191_v6, %v9097_v13 }
 0xa8b   :  { %v9102_v12 = vsub.f32 0.0, %v9101_v37 }
 0xa8d   :  { %v9103_v18 = vmul.f32 1.442695, %v9102_v12 }
 0xa8f   :  { %13003 = vpow2.f32 %v9103_v18 }
 0xa95   :  { %v13004_v14 = vpop.eup %13003 }
 0xa96   :  { %v9105_v33 = vadd.f32 1.0, %v13004_v14 }
 0xa98   :  { %13005 = vrcp.f32 %v9105_v33  ;;  %v9117_v41 = vand.u32 2147483648, %v9105_v33  ;;  %v9115_v11 = vand.u32 2147483647, %v9105_v33  ;;  %vm9111_vm5 = vweird.f32 %v9105_v33 }
 0xa9a   :  { %v9118_v8 = vor.u32 1.1754944e-38, %v9117_v41  ;;  %vm9116_vm7 = vcmp.eq.f32.partialorder %v9115_v11, 8.507059e+37 }
 0xa9e   :  { %v13006_v19 = vpop.eup %13005 }
 0xa9f   :  { %v9107_v35 = vmul.f32 %v13006_v19, %v9105_v33  ;;  %vm9112_vm4 = vweird.f32 %v13006_v19 }
 0xaa0   :  { %vm9113_vm6 = vmor %vm9111_vm5, %vm9112_vm4 }
 0xaa1   :  { %v9108_v61 = vsub.f32 1.0, %v9107_v35 }
 0xaa3   :  { %v9109_v58 = vmul.f32 %v13006_v19, %v9108_v61 }
 0xaa5   :  { %v9110_v25 = vadd.f32 %v13006_v19, %v9109_v58 }
 0xaa7   :  { %v9114_v22 = vsel %vm9113_vm6, %v13006_v19, %v9110_v25 }
 0xaa8   :  { %v9119_v6 = vsel %vm9116_vm7, %v9118_v8, %v9114_v22 }
 0xaa9   :  { %9203 = vperm.xlu0 %12997, %v9119_v6  }
 0xb1b   :  { %v9204_v57 = vpop.permute.xlu0 %9203 }
 0xb1c   :  { %v9206_v26 = vsel %vm9193_vm9, %v9204_v57, %v9200_v45 }
 0xb1d   :  { %9207 = vst [vmem:[%s20256_s11] sm:$0xff] %v9206_v26 }

</bundles_post_ra>
